<compile_context>
chip_gen: v7x
topology: tpu7x:2x2x1
jax: 0.10.0
libtpu: 0.0.40
codegen_flags: <defaults>
</compile_context>

<pallas_src>
import functools

import jax
import jax.numpy as jnp
from jax.experimental import pallas as pl
from jax.experimental.pallas import tpu as pltpu


# ----------------------------------------------------------------------------
# small helpers (used inside kernels)
# ----------------------------------------------------------------------------
def _new_gelu(x):
    # GPT-style "new gelu": 0.5*x*(1+tanh(sqrt(2/pi)*(x+0.044715*x^3)))
    c = jnp.sqrt(2.0 / jnp.pi).astype(x.dtype)
    return 0.5 * x * (1.0 + jnp.tanh(c * (x + 0.044715 * x * x * x)))


def _layernorm(x, gamma, beta, eps=1e-5):
    mean = jnp.mean(x, axis=-1, keepdims=True)
    var = jnp.mean(jnp.square(x - mean), axis=-1, keepdims=True)
    return (x - mean) * jax.lax.rsqrt(var + eps) * gamma + beta


def _round_up(x, m):
    return ((x + m - 1) // m) * m


def _pick_row_tile(m, tm_max):
    """Balanced row tile (multiple of 8), capped by tm_max."""
    tm_max = max(8, int(tm_max))
    n_tiles = pl.cdiv(m, tm_max)
    tm = min(_round_up(pl.cdiv(m, n_tiles), 8), _round_up(m, 8))
    return tm, pl.cdiv(m, tm)


def _pick_col_tile(n, tn_max):
    """Lane-aligned column tile (multiple of 128) or the full dim."""
    if tn_max >= n:
        return n
    return max(128, (tn_max // 128) * 128)


def _pad_cols(a, n):
    pad = n - a.shape[-1]
    if pad == 0:
        return a
    return jnp.pad(a, [(0, 0)] * (a.ndim - 1) + [(0, pad)])


# ----------------------------------------------------------------------------
# Pallas kernels
# ----------------------------------------------------------------------------
def _encoder_branch_kernel(x_ref, w1_ref, b1_ref, g_ref, bb_ref,
                           w2_ref, b2_ref, o_ref, h_ref):
    """patch-embed -> NewGELU -> LayerNorm -> (dim -> final_dim) projection.

    grid = (row_tiles, final_dim_tiles).  The post-LN [tm, dim] activation is
    computed once per row tile (at n == 0) and kept resident in VMEM scratch.
    """
    f32 = jnp.float32

    @pl.when(pl.program_id(1) == 0)
    def _():
        h = jnp.dot(x_ref[...].astype(f32), w1_ref[...].astype(f32),
                    preferred_element_type=f32)
        h = _new_gelu(h + b1_ref[...].astype(f32))
        h_ref[...] = _layernorm(h, g_ref[...].astype(f32),
                                bb_ref[...].astype(f32))

    acc = jnp.dot(h_ref[...], w2_ref[...].astype(f32),
                  preferred_element_type=f32)
    o_ref[...] = (acc + b2_ref[...].astype(f32)).astype(o_ref.dtype)


def encoder_branch_pallas(x, w1, b1, ln_g, ln_b, w2, b2, *, tm=256, tn=1024):
    m, k_in = x.shape
    dim = w1.shape[1]
    final_dim = w2.shape[1]
    tm, rm = _pick_row_tile(m, tm)
    tn = _pick_col_tile(final_dim, tn)
    rn = pl.cdiv(final_dim, tn)
    return pl.pallas_call(
        _encoder_branch_kernel,
        out_shape=jax.ShapeDtypeStruct((m, final_dim), x.dtype),
        grid_spec=pltpu.PrefetchScalarGridSpec(
            num_scalar_prefetch=0,
            grid=(rm, rn),
            in_specs=[
                pl.BlockSpec((tm, k_in), lambda i, n: (i, 0)),
                pl.BlockSpec((k_in, dim), lambda i, n: (0, 0)),
                pl.BlockSpec((1, dim), lambda i, n: (0, 0)),
                pl.BlockSpec((1, dim), lambda i, n: (0, 0)),
                pl.BlockSpec((1, dim), lambda i, n: (0, 0)),
                pl.BlockSpec((dim, tn), lambda i, n: (0, n)),
                pl.BlockSpec((1, tn), lambda i, n: (0, n)),
            ],
            out_specs=pl.BlockSpec((tm, tn), lambda i, n: (i, n)),
            scratch_shapes=[pltpu.VMEM((tm, dim), jnp.float32)],
        ),
        compiler_params=pltpu.CompilerParams(
            dimension_semantics=("parallel", "arbitrary")),
    )(x, w1, b1.reshape(1, dim), ln_g.reshape(1, dim), ln_b.reshape(1, dim),
      w2, b2.reshape(1, final_dim))


def _decoder_kernel(te_ref, wi_ref, bi_ref, g_ref, bb_ref, wh_ref, bh_ref,
                    o_ref, acc_ref):
    """(final_dim -> dim, K tiled) -> NewGELU -> LayerNorm -> fused head.

    grid = (row_tiles, k_tiles over final_dim); f32 accumulator in VMEM.
    """
    f32 = jnp.float32
    k = pl.program_id(1)

    @pl.when(k == 0)
    def _():
        acc_ref[...] = jnp.zeros_like(acc_ref)

    acc_ref[...] += jnp.dot(te_ref[...].astype(f32), wi_ref[...].astype(f32),
                            preferred_element_type=f32)

    @pl.when(k == pl.num_programs(1) - 1)
    def _():
        hx = _new_gelu(acc_ref[...] + bi_ref[...].astype(f32))
        hx = _layernorm(hx, g_ref[...].astype(f32), bb_ref[...].astype(f32))
        out = jnp.dot(hx, wh_ref[...].astype(f32), preferred_element_type=f32)
        o_ref[...] = (out + bh_ref[...].astype(f32)).astype(o_ref.dtype)


def decoder_pallas(te, wi, bi, ln_g, ln_b, wh, bh, *, tm=256, tk=512):
    m, final_dim = te.shape
    dim = wi.shape[1]
    nh = wh.shape[1]                     # padded (lane-dense) head width
    tm, rm = _pick_row_tile(m, tm)
    tk = tk if (tk <= final_dim and final_dim % tk == 0) else final_dim
    rk = final_dim // tk
    return pl.pallas_call(
        _decoder_kernel,
        out_shape=jax.ShapeDtypeStruct((m, nh), te.dtype),
        grid_spec=pltpu.PrefetchScalarGridSpec(
            num_scalar_prefetch=0,
            grid=(rm, rk),
            in_specs=[
                pl.BlockSpec((tm, tk), lambda i, k: (i, k)),
                pl.BlockSpec((tk, dim), lambda i, k: (k, 0)),
                pl.BlockSpec((1, dim), lambda i, k: (0, 0)),
                pl.BlockSpec((1, dim), lambda i, k: (0, 0)),
                pl.BlockSpec((1, dim), lambda i, k: (0, 0)),
                pl.BlockSpec((dim, nh), lambda i, k: (0, 0)),
                pl.BlockSpec((1, nh), lambda i, k: (0, 0)),
            ],
            out_specs=pl.BlockSpec((tm, nh), lambda i, k: (i, 0)),
            scratch_shapes=[pltpu.VMEM((tm, dim), jnp.float32)],
        ),
        compiler_params=pltpu.CompilerParams(
            dimension_semantics=("parallel", "arbitrary")),
    )(te, wi, bi.reshape(1, dim), ln_g.reshape(1, dim), ln_b.reshape(1, dim),
      wh, bh.reshape(1, nh))


def _collapsed_branch_kernel(x_ref, w1_ref, b1_ref, g1_ref, bb1_ref,
                             wm_ref, bm_ref, g2_ref, bb2_ref,
                             wh_ref, bh_ref, o_ref):
    """Whole enc+dec chain per branch with enc_wp@dec_wi pre-folded to [dim,dim]."""
    f32 = jnp.float32
    h = jnp.dot(x_ref[...].astype(f32), w1_ref[...].astype(f32),
                preferred_element_type=f32)
    h = _new_gelu(h + b1_ref[...].astype(f32))
    h = _layernorm(h, g1_ref[...].astype(f32), bb1_ref[...].astype(f32))
    h = jnp.dot(h, wm_ref[...].astype(f32), preferred_element_type=f32)
    h = _new_gelu(h + bm_ref[...].astype(f32))
    h = _layernorm(h, g2_ref[...].astype(f32), bb2_ref[...].astype(f32))
    out = jnp.dot(h, wh_ref[...].astype(f32), preferred_element_type=f32)
    o_ref[...] = (out + bh_ref[...].astype(f32)).astype(o_ref.dtype)


def collapsed_branch_pallas(x, w1, b1, g1, bb1, wm, bm, g2, bb2, wh, bh, *, tm=256):
    m, k_in = x.shape
    dim = w1.shape[1]
    nh = wh.shape[1]
    tm, rm = _pick_row_tile(m, tm)
    return pl.pallas_call(
        _collapsed_branch_kernel,
        out_shape=jax.ShapeDtypeStruct((m, nh), x.dtype),
        grid_spec=pltpu.PrefetchScalarGridSpec(
            num_scalar_prefetch=0,
            grid=(rm,),
            in_specs=[
                pl.BlockSpec((tm, k_in), lambda i: (i, 0)),
                pl.BlockSpec((k_in, dim), lambda i: (0, 0)),
                pl.BlockSpec((1, dim), lambda i: (0, 0)),
                pl.BlockSpec((1, dim), lambda i: (0, 0)),
                pl.BlockSpec((1, dim), lambda i: (0, 0)),
                pl.BlockSpec((dim, dim), lambda i: (0, 0)),
                pl.BlockSpec((1, dim), lambda i: (0, 0)),
                pl.BlockSpec((1, dim), lambda i: (0, 0)),
                pl.BlockSpec((1, dim), lambda i: (0, 0)),
                pl.BlockSpec((dim, nh), lambda i: (0, 0)),
                pl.BlockSpec((1, nh), lambda i: (0, 0)),
            ],
            out_specs=pl.BlockSpec((tm, nh), lambda i: (i, 0)),
        ),
        compiler_params=pltpu.CompilerParams(
            dimension_semantics=("parallel",)),
    )(x, w1, b1.reshape(1, dim), g1.reshape(1, dim), bb1.reshape(1, dim),
      wm, bm.reshape(1, dim), g2.reshape(1, dim), bb2.reshape(1, dim),
      wh, bh.reshape(1, nh))


# ----------------------------------------------------------------------------
# Glue: patchify / unpatchify (pure reshapes/transposes)
# ----------------------------------------------------------------------------
def patchify_2d(x, ps):
    B, C, H, W = x.shape
    h, w = H // ps, W // ps
    x = x.reshape(B, C, h, ps, w, ps)
    x = x.transpose(0, 2, 4, 1, 3, 5)
    return x.reshape(B * h * w, C * ps * ps)


def unpatchify_2d(x, B, C, h, w, ps):
    x = x.reshape(B, h, w, C, ps, ps)
    x = x.transpose(0, 3, 1, 4, 2, 5)
    return x.reshape(B, C, h * ps, w * ps)


def patchify_3d(x, pp, ps):
    B, C, P, H, W = x.shape
    p, h, w = P // pp, H // ps, W // ps
    x = x.reshape(B, C, p, pp, h, ps, w, ps)
    x = x.transpose(0, 2, 4, 6, 1, 3, 5, 7)
    return x.reshape(B * p * h * w, C * pp * ps * ps)


def unpatchify_3d(x, B, C, p, h, w, pp, ps):
    x = x.reshape(B, p, h, w, C, pp, ps, ps)
    x = x.transpose(0, 4, 1, 5, 2, 6, 3, 7)
    return x.reshape(B, C, p * pp, h * ps, w * ps)


# ----------------------------------------------------------------------------
# Parameters (synthetic, deterministic)
# ----------------------------------------------------------------------------
def init_params(key, *, surface_in_chans=4, upper_in_chans=5, dim=64,
                final_dim=4096, if_surface_const_mask=True, ps=2, pp=2):
    ks = jax.random.split(key, 16)
    s_in = (surface_in_chans + (1 if if_surface_const_mask else 0)) * ps * ps
    u_in = upper_in_chans * pp * ps * ps
    n = lambda k, shape, s=0.02: (s * jax.random.normal(k, shape)).astype(jnp.float32)
    return {
        # encoder
        "enc_ws": n(ks[0], (s_in, dim)), "enc_bs": n(ks[1], (dim,)),
        "enc_wu": n(ks[2], (u_in, dim)), "enc_bu": n(ks[3], (dim,)),
        "enc_ln_g": 1.0 + n(ks[4], (dim,), 0.1), "enc_ln_b": n(ks[5], (dim,), 0.1),
        "enc_wp": n(ks[6], (dim, final_dim)), "enc_bp": n(ks[7], (final_dim,)),
        # decoder
        "dec_wi": n(ks[8], (final_dim, dim)), "dec_bi": n(ks[9], (dim,)),
        "dec_ln_g": 1.0 + n(ks[10], (dim,), 0.1), "dec_ln_b": n(ks[11], (dim,), 0.1),
        "dec_ws": n(ks[12], (dim, surface_in_chans * ps * ps)),
        "dec_bs": n(ks[13], (surface_in_chans * ps * ps,)),
        "dec_wu": n(ks[14], (dim, upper_in_chans * pp * ps * ps)),
        "dec_bu": n(ks[15], (upper_in_chans * pp * ps * ps,)),
    }


# ----------------------------------------------------------------------------
# Forward pass
# ----------------------------------------------------------------------------
def complete_model_forward(params, surface_u_input, upper_u_input, *,
                           p=1, h=12, w=6, ps=2, pp=2,
                           if_surface_const_mask=True,
                           llama_body=False, collapse_projections=None,
                           tm=256, tn=1024, tk=512):
    if collapse_projections is None:
        collapse_projections = not llama_body

    B, Cs, H, W = surface_u_input.shape
    _, Cu, P, _, _ = upper_u_input.shape
    assert H == h * ps and W == w * ps and P == p * pp

    surf = surface_u_input
    if if_surface_const_mask:
        mask = jnp.ones((B, 1, H, W), surf.dtype)
        surf = jnp.concatenate([surf, mask], axis=1)

    xs = patchify_2d(surf, ps)                 # [B*h*w, (Cs+1)*ps*ps]
    xu = patchify_3d(upper_u_input, pp, ps)    # [B*p*h*w, Cu*pp*ps*ps]

    ns = Cs * ps * ps
    nu = Cu * pp * ps * ps
    head_pad = _round_up(ns + nu, 128)         # lane-dense output slab width

    if collapse_projections and not llama_body:
        # No nonlinearity between enc_wp and dec_wi on the no-llama path
        # -> fold them into a single [dim, dim] weight + bias (one-time, tiny).
        hi = jax.lax.Precision.HIGHEST
        w_mid = jnp.dot(params["enc_wp"], params["dec_wi"], precision=hi)
        b_mid = jnp.dot(params["enc_bp"], params["dec_wi"], precision=hi) + params["dec_bi"]

        wh_s = _pad_cols(params["dec_ws"], head_pad)
        bh_s = _pad_cols(params["dec_bs"].reshape(1, -1), head_pad)[0]
        wh_u = _pad_cols(params["dec_wu"], head_pad)
        bh_u = _pad_cols(params["dec_bu"].reshape(1, -1), head_pad)[0]

        s_slab = collapsed_branch_pallas(
            xs, params["enc_ws"], params["enc_bs"],
            params["enc_ln_g"], params["enc_ln_b"],
            w_mid, b_mid, params["dec_ln_g"], params["dec_ln_b"],
            wh_s, bh_s, tm=tm)
        u_slab = collapsed_branch_pallas(
            xu, params["enc_wu"], params["enc_bu"],
            params["enc_ln_g"], params["enc_ln_b"],
            w_mid, b_mid, params["dec_ln_g"], params["dec_ln_b"],
            wh_u, bh_u, tm=tm)
        s_patches = s_slab[:, :ns]
        u_patches = u_slab[:, :nu]
    else:
        # Explicit path: materialize token_embed [B, L, final_dim].
        final_dim = params["enc_wp"].shape[1]
        ts = encoder_branch_pallas(
            xs, params["enc_ws"], params["enc_bs"],
            params["enc_ln_g"], params["enc_ln_b"],
            params["enc_wp"], params["enc_bp"], tm=tm, tn=tn)
        tu = encoder_branch_pallas(
            xu, params["enc_wu"], params["enc_bu"],
            params["enc_ln_g"], params["enc_ln_b"],
            params["enc_wp"], params["enc_bp"], tm=tm, tn=tn)
        token_embed = jnp.concatenate(
            [ts.reshape(B, h * w, final_dim),
             tu.reshape(B, p * h * w, final_dim)], axis=1)
        if llama_body:
            # TODO(synk): llama body weights/config unavailable; pass-through.
            pass
        L = token_embed.shape[1]

        # Fused, lane-dense decoder head: [dec_ws | dec_wu | 0-pad] -> 128 wide.
        wh = _pad_cols(jnp.concatenate([params["dec_ws"], params["dec_wu"]], axis=1), head_pad)
        bh = _pad_cols(jnp.concatenate([params["dec_bs"], params["dec_bu"]]).reshape(1, -1), head_pad)[0]

        slab = decoder_pallas(
            token_embed.reshape(B * L, final_dim),
            params["dec_wi"], params["dec_bi"],
            params["dec_ln_g"], params["dec_ln_b"], wh, bh, tm=tm, tk=tk)
        slab = slab.reshape(B, L, head_pad)
        s_patches = slab[:, : h * w, :ns].reshape(B * h * w, ns)
        u_patches = slab[:, h * w:, ns:ns + nu].reshape(B * p * h * w, nu)

    surface_u_output = unpatchify_2d(s_patches, B, Cs, h, w, ps)
    upper_u_output = unpatchify_3d(u_patches, B, Cu, p, h, w, pp, ps)
    return surface_u_output, upper_u_output


# ----------------------------------------------------------------------------
# Pure-JAX reference (for correctness check)
# ----------------------------------------------------------------------------
def reference_forward(params, surface_u_input, upper_u_input, *,
                      p=1, h=12, w=6, ps=2, pp=2, if_surface_const_mask=True):
    B, Cs, H, W = surface_u_input.shape
    _, Cu, P, _, _ = upper_u_input.shape
    surf = surface_u_input
    if if_surface_const_mask:
        surf = jnp.concatenate([surf, jnp.ones((B, 1, H, W), surf.dtype)], axis=1)
    xs = patchify_2d(surf, ps)
    xu = patchify_3d(upper_u_input, pp, ps)

    ts = _new_gelu(xs @ params["enc_ws"] + params["enc_bs"])
    tu = _new_gelu(xu @ params["enc_wu"] + params["enc_bu"])
    dim = ts.shape[-1]
    tok = jnp.concatenate([ts.reshape(B, h * w, dim),
                           tu.reshape(B, p * h * w, dim)], axis=1)
    tok = _layernorm(tok, params["enc_ln_g"], params["enc_ln_b"])
    te = tok @ params["enc_wp"] + params["enc_bp"]
    x = _new_gelu(te @ params["dec_wi"] + params["dec_bi"])
    x = _layernorm(x, params["dec_ln_g"], params["dec_ln_b"])
    s = x[:, : h * w] @ params["dec_ws"] + params["dec_bs"]
    u = x[:, h * w:] @ params["dec_wu"] + params["dec_bu"]
    ns = Cs * ps * ps
    nu = Cu * pp * ps * ps
    surface_out = unpatchify_2d(s.reshape(B * h * w, ns), B, Cs, h, w, ps)
    upper_out = unpatchify_3d(u.reshape(B * p * h * w, nu), B, Cu, p, h, w, pp, ps)
    return surface_out, upper_out


# ----------------------------------------------------------------------------
if __name__ == "__main__":
    key = jax.random.PRNGKey(0)
    k_param, k_s, k_u = jax.random.split(key, 3)

    # module-default token grid: p=1, h=12, w=6; patch ps=pp=2; dim/final_dim
    # as in the reference (64 / 4096) -> 144 tokens per batch, 288 total.
    B, Cs, Cu = 2, 4, 5
    p, h, w, ps, pp = 1, 12, 6, 2, 2
    dim, final_dim = 64, 4096

    surface_u_input = jax.random.normal(k_s, (B, Cs, h * ps, w * ps), jnp.float32)
    upper_u_input = jax.random.normal(k_u, (B, Cu, p * pp, h * ps, w * ps), jnp.float32)

    params = init_params(k_param, surface_in_chans=Cs, upper_in_chans=Cu,
                         dim=dim, final_dim=final_dim,
                         if_surface_const_mask=True, ps=ps, pp=pp)

    fwd_full = jax.jit(functools.partial(
        complete_model_forward, p=p, h=h, w=w, ps=ps, pp=pp,
        if_surface_const_mask=True, collapse_projections=False))
    fwd_fast = jax.jit(functools.partial(
        complete_model_forward, p=p, h=h, w=w, ps=ps, pp=pp,
        if_surface_const_mask=True, collapse_projections=True))

    s_full, u_full = fwd_full(params, surface_u_input, upper_u_input)
    s_fast, u_fast = fwd_fast(params, surface_u_input, upper_u_input)
    jax.block_until_ready((s_full, u_full, s_fast, u_fast))

    s_ref, u_ref = reference_forward(params, surface_u_input, upper_u_input,
                                     p=p, h=h, w=w, ps=ps, pp=pp,
                                     if_surface_const_mask=True)

    assert s_full.shape == (B, Cs, h * ps, w * ps), s_full.shape
    assert u_full.shape == (B, Cu, p * pp, h * ps, w * ps), u_full.shape
    for got, ref in ((s_full, s_ref), (u_full, u_ref),
                     (s_fast, s_ref), (u_fast, u_ref)):
        assert got.shape == ref.shape
        assert jnp.all(jnp.isfinite(got))
        err = jnp.max(jnp.abs(got - ref))
        assert err < 3e-2, f"max abs err {err}"
    print("KERNEL_OK")
</pallas_src>

<mosaic_0001>
module attributes {stable_mosaic.version = 11 : i64} {
  func.func @_encoder_branch_kernel(%arg0: i32, %arg1: i32, %arg2: memref<144x40xf32, #tpu.memory_space<vmem>>, %arg3: memref<40x64xf32, #tpu.memory_space<vmem>>, %arg4: memref<1x64xf32, #tpu.memory_space<vmem>>, %arg5: memref<1x64xf32, #tpu.memory_space<vmem>>, %arg6: memref<1x64xf32, #tpu.memory_space<vmem>>, %arg7: memref<64x1024xf32, #tpu.memory_space<vmem>>, %arg8: memref<1x1024xf32, #tpu.memory_space<vmem>>, %arg9: memref<144x1024xf32, #tpu.memory_space<vmem>>, %arg10: memref<144x64xf32, #tpu.memory_space<vmem>>) attributes {dimension_semantics = [#tpu.dimension_semantics<parallel>, #tpu.dimension_semantics<arbitrary>], iteration_bounds = array<i64: 1, 4>, scalar_prefetch = 0 : i64, scratch_operands = 1 : i64, tpu.core_type = #tpu.core_type<tc>, window_params = [{transform_indices = @transform_0, window_bounds = array<i64: 144, 40>}, {pipeline_mode = #tpu.pipeline_mode<synchronous>, transform_indices = @transform_1, window_bounds = array<i64: 40, 64>}, {pipeline_mode = #tpu.pipeline_mode<synchronous>, transform_indices = @transform_2, window_bounds = array<i64: 1, 64>}, {pipeline_mode = #tpu.pipeline_mode<synchronous>, transform_indices = @transform_3, window_bounds = array<i64: 1, 64>}, {pipeline_mode = #tpu.pipeline_mode<synchronous>, transform_indices = @transform_4, window_bounds = array<i64: 1, 64>}, {transform_indices = @transform_5, window_bounds = array<i64: 64, 1024>}, {transform_indices = @transform_6, window_bounds = array<i64: 1, 1024>}, {transform_indices = @transform_7, window_bounds = array<i64: 144, 1024>}]} {
    %c0_i32 = arith.constant 0 : i32
    %0 = arith.cmpi eq, %arg1, %c0_i32 : i32
    %1 = arith.extui %0 : i1 to i32
    %c0_i32_0 = arith.constant 0 : i32
    %2 = arith.cmpi ne, %1, %c0_i32_0 : i32
    scf.if %2 {
      %c0_8 = arith.constant 0 : index
      %c0_9 = arith.constant 0 : index
      %10 = vector.load %arg2[%c0_8, %c0_9] : memref<144x40xf32, #tpu.memory_space<vmem>>, vector<144x40xf32>
      %c0_10 = arith.constant 0 : index
      %c0_11 = arith.constant 0 : index
      %11 = vector.load %arg3[%c0_10, %c0_11] : memref<40x64xf32, #tpu.memory_space<vmem>>, vector<40x64xf32>
      %cst_12 = arith.constant dense<0.000000e+00> : vector<144x64xf32>
      %12 = tpu.matmul %10, %11, %cst_12 {dimension_numbers = #tpu.dot_dimension_numbers<[1], [0], [0], [1], [0, 0, 1, 1], [], []>} : vector<144x40xf32>, vector<40x64xf32>, vector<144x64xf32> -> vector<144x64xf32>
      %c0_13 = arith.constant 0 : index
      %c0_14 = arith.constant 0 : index
      %13 = vector.load %arg4[%c0_13, %c0_14] : memref<1x64xf32, #tpu.memory_space<vmem>>, vector<1x64xf32>
      %14 = vector.broadcast %13 : vector<1x64xf32> to vector<144x64xf32>
      %15 = arith.addf %12, %14 : vector<144x64xf32>
      %cst_15 = arith.constant 0.636619746 : f32
      %16 = math.sqrt %cst_15 : f32
      %cst_16 = arith.constant 5.000000e-01 : f32
      %17 = vector.broadcast %cst_16 : f32 to vector<144x64xf32>
      %18 = arith.mulf %17, %15 : vector<144x64xf32>
      %cst_17 = arith.constant 4.471500e-02 : f32
      %19 = vector.broadcast %cst_17 : f32 to vector<144x64xf32>
      %20 = arith.mulf %19, %15 : vector<144x64xf32>
      %21 = arith.mulf %20, %15 : vector<144x64xf32>
      %22 = arith.mulf %21, %15 : vector<144x64xf32>
      %23 = arith.addf %15, %22 : vector<144x64xf32>
      %24 = vector.broadcast %16 : f32 to vector<144x64xf32>
      %25 = arith.mulf %24, %23 : vector<144x64xf32>
      %26 = math.tanh %25 : vector<144x64xf32>
      %cst_18 = arith.constant 1.000000e+00 : f32
      %27 = vector.broadcast %cst_18 : f32 to vector<144x64xf32>
      %28 = arith.addf %27, %26 : vector<144x64xf32>
      %29 = arith.mulf %18, %28 : vector<144x64xf32>
      %c0_19 = arith.constant 0 : index
      %c0_20 = arith.constant 0 : index
      %30 = vector.load %arg5[%c0_19, %c0_20] : memref<1x64xf32, #tpu.memory_space<vmem>>, vector<1x64xf32>
      %c0_21 = arith.constant 0 : index
      %c0_22 = arith.constant 0 : index
      %31 = vector.load %arg6[%c0_21, %c0_22] : memref<1x64xf32, #tpu.memory_space<vmem>>, vector<1x64xf32>
      %cst_23 = arith.constant dense<0.000000e+00> : vector<144xf32>
      %32 = vector.multi_reduction <add>, %29, %cst_23 [1] : vector<144x64xf32> to vector<144xf32>
      %33 = vector.shape_cast %32 : vector<144xf32> to vector<144x1xf32>
      %cst_24 = arith.constant 6.400000e+01 : f32
      %34 = vector.broadcast %cst_24 : f32 to vector<144x1xf32>
      %35 = arith.divf %33, %34 : vector<144x1xf32>
      %36 = vector.broadcast %35 : vector<144x1xf32> to vector<144x64xf32>
      %37 = arith.subf %29, %36 : vector<144x64xf32>
      %38 = arith.mulf %37, %37 : vector<144x64xf32>
      %cst_25 = arith.constant dense<0.000000e+00> : vector<144xf32>
      %39 = vector.multi_reduction <add>, %38, %cst_25 [1] : vector<144x64xf32> to vector<144xf32>
      %40 = vector.shape_cast %39 : vector<144xf32> to vector<144x1xf32>
      %cst_26 = arith.constant 6.400000e+01 : f32
      %41 = vector.broadcast %cst_26 : f32 to vector<144x1xf32>
      %42 = arith.divf %40, %41 : vector<144x1xf32>
      %43 = vector.broadcast %35 : vector<144x1xf32> to vector<144x64xf32>
      %44 = arith.subf %29, %43 : vector<144x64xf32>
      %cst_27 = arith.constant 9.99999974E-6 : f32
      %45 = vector.broadcast %cst_27 : f32 to vector<144x1xf32>
      %46 = arith.addf %42, %45 : vector<144x1xf32>
      %47 = math.rsqrt %46 : vector<144x1xf32>
      %48 = vector.broadcast %47 : vector<144x1xf32> to vector<144x64xf32>
      %49 = arith.mulf %44, %48 : vector<144x64xf32>
      %50 = vector.broadcast %30 : vector<1x64xf32> to vector<144x64xf32>
      %51 = arith.mulf %49, %50 : vector<144x64xf32>
      %52 = vector.broadcast %31 : vector<1x64xf32> to vector<144x64xf32>
      %53 = arith.addf %51, %52 : vector<144x64xf32>
      %c0_28 = arith.constant 0 : index
      %c0_29 = arith.constant 0 : index
      %54 = vector.load %arg10[%c0_28, %c0_29] : memref<144x64xf32, #tpu.memory_space<vmem>>, vector<144x64xf32>
      tpu.vector_store %arg10[%c0_28, %c0_29], %53 {strides = array<i32>} : memref<144x64xf32, #tpu.memory_space<vmem>>, vector<144x64xf32>,
    } else {
    }
    %c0 = arith.constant 0 : index
    %c0_1 = arith.constant 0 : index
    %3 = vector.load %arg10[%c0, %c0_1] : memref<144x64xf32, #tpu.memory_space<vmem>>, vector<144x64xf32>
    %c0_2 = arith.constant 0 : index
    %c0_3 = arith.constant 0 : index
    %4 = vector.load %arg7[%c0_2, %c0_3] : memref<64x1024xf32, #tpu.memory_space<vmem>>, vector<64x1024xf32>
    %cst = arith.constant dense<0.000000e+00> : vector<144x1024xf32>
    %5 = tpu.matmul %3, %4, %cst {dimension_numbers = #tpu.dot_dimension_numbers<[1], [0], [0], [1], [0, 0, 1, 1], [], []>} : vector<144x64xf32>, vector<64x1024xf32>, vector<144x1024xf32> -> vector<144x1024xf32>
    %c0_4 = arith.constant 0 : index
    %c0_5 = arith.constant 0 : index
    %6 = vector.load %arg8[%c0_4, %c0_5] : memref<1x1024xf32, #tpu.memory_space<vmem>>, vector<1x1024xf32>
    %7 = vector.broadcast %6 : vector<1x1024xf32> to vector<144x1024xf32>
    %8 = arith.addf %5, %7 : vector<144x1024xf32>
    %c0_6 = arith.constant 0 : index
    %c0_7 = arith.constant 0 : index
    %9 = vector.load %arg9[%c0_6, %c0_7] : memref<144x1024xf32, #tpu.memory_space<vmem>>, vector<144x1024xf32>
    tpu.vector_store %arg9[%c0_6, %c0_7], %8 {strides = array<i32>} : memref<144x1024xf32, #tpu.memory_space<vmem>>, vector<144x1024xf32>,
    return
  }
  func.func @transform_0(%arg0: i32, %arg1: i32) -> (i32, i32) {
    %c0_i32 = arith.constant 0 : i32
    %c0_i32_0 = arith.constant 0 : i32
    return %arg0, %c0_i32 : i32, i32
  }
  func.func @transform_1(%arg0: i32, %arg1: i32) -> (i32, i32) {
    %c0_i32 = arith.constant 0 : i32
    %c0_i32_0 = arith.constant 0 : i32
    %c0_i32_1 = arith.constant 0 : i32
    return %c0_i32, %c0_i32_0 : i32, i32
  }
  func.func @transform_2(%arg0: i32, %arg1: i32) -> (i32, i32) {
    %c0_i32 = arith.constant 0 : i32
    %c0_i32_0 = arith.constant 0 : i32
    %c0_i32_1 = arith.constant 0 : i32
    return %c0_i32, %c0_i32_0 : i32, i32
  }
  func.func @transform_3(%arg0: i32, %arg1: i32) -> (i32, i32) {
    %c0_i32 = arith.constant 0 : i32
    %c0_i32_0 = arith.constant 0 : i32
    %c0_i32_1 = arith.constant 0 : i32
    return %c0_i32, %c0_i32_0 : i32, i32
  }
  func.func @transform_4(%arg0: i32, %arg1: i32) -> (i32, i32) {
    %c0_i32 = arith.constant 0 : i32
    %c0_i32_0 = arith.constant 0 : i32
    %c0_i32_1 = arith.constant 0 : i32
    return %c0_i32, %c0_i32_0 : i32, i32
  }
  func.func @transform_5(%arg0: i32, %arg1: i32) -> (i32, i32) {
    %c0_i32 = arith.constant 0 : i32
    %c0_i32_0 = arith.constant 0 : i32
    return %c0_i32, %arg1 : i32, i32
  }
  func.func @transform_6(%arg0: i32, %arg1: i32) -> (i32, i32) {
    %c0_i32 = arith.constant 0 : i32
    %c0_i32_0 = arith.constant 0 : i32
    return %c0_i32, %arg1 : i32, i32
  }
  func.func @transform_7(%arg0: i32, %arg1: i32) -> (i32, i32) {
    %c0_i32 = arith.constant 0 : i32
    return %arg0, %arg1 : i32, i32
  }
}

module attributes {stable_mosaic.version = 11 : i64} {
  func.func @_encoder_branch_kernel(%arg0: i32, %arg1: i32, %arg2: memref<144x20xf32, #tpu.memory_space<vmem>>, %arg3: memref<20x64xf32, #tpu.memory_space<vmem>>, %arg4: memref<1x64xf32, #tpu.memory_space<vmem>>, %arg5: memref<1x64xf32, #tpu.memory_space<vmem>>, %arg6: memref<1x64xf32, #tpu.memory_space<vmem>>, %arg7: memref<64x1024xf32, #tpu.memory_space<vmem>>, %arg8: memref<1x1024xf32, #tpu.memory_space<vmem>>, %arg9: memref<144x1024xf32, #tpu.memory_space<vmem>>, %arg10: memref<144x64xf32, #tpu.memory_space<vmem>>) attributes {dimension_semantics = [#tpu.dimension_semantics<parallel>, #tpu.dimension_semantics<arbitrary>], iteration_bounds = array<i64: 1, 4>, scalar_prefetch = 0 : i64, scratch_operands = 1 : i64, tpu.core_type = #tpu.core_type<tc>, window_params = [{transform_indices = @transform_0, window_bounds = array<i64: 144, 20>}, {pipeline_mode = #tpu.pipeline_mode<synchronous>, transform_indices = @transform_1, window_bounds = array<i64: 20, 64>}, {pipeline_mode = #tpu.pipeline_mode<synchronous>, transform_indices = @transform_2, window_bounds = array<i64: 1, 64>}, {pipeline_mode = #tpu.pipeline_mode<synchronous>, transform_indices = @transform_3, window_bounds = array<i64: 1, 64>}, {pipeline_mode = #tpu.pipeline_mode<synchronous>, transform_indices = @transform_4, window_bounds = array<i64: 1, 64>}, {transform_indices = @transform_5, window_bounds = array<i64: 64, 1024>}, {transform_indices = @transform_6, window_bounds = array<i64: 1, 1024>}, {transform_indices = @transform_7, window_bounds = array<i64: 144, 1024>}]} {
    %c0_i32 = arith.constant 0 : i32
    %0 = arith.cmpi eq, %arg1, %c0_i32 : i32
    %1 = arith.extui %0 : i1 to i32
    %c0_i32_0 = arith.constant 0 : i32
    %2 = arith.cmpi ne, %1, %c0_i32_0 : i32
    scf.if %2 {
      %c0_8 = arith.constant 0 : index
      %c0_9 = arith.constant 0 : index
      %10 = vector.load %arg2[%c0_8, %c0_9] : memref<144x20xf32, #tpu.memory_space<vmem>>, vector<144x20xf32>
      %c0_10 = arith.constant 0 : index
      %c0_11 = arith.constant 0 : index
      %11 = vector.load %arg3[%c0_10, %c0_11] : memref<20x64xf32, #tpu.memory_space<vmem>>, vector<20x64xf32>
      %cst_12 = arith.constant dense<0.000000e+00> : vector<144x64xf32>
      %12 = tpu.matmul %10, %11, %cst_12 {dimension_numbers = #tpu.dot_dimension_numbers<[1], [0], [0], [1], [0, 0, 1, 1], [], []>} : vector<144x20xf32>, vector<20x64xf32>, vector<144x64xf32> -> vector<144x64xf32>
      %c0_13 = arith.constant 0 : index
      %c0_14 = arith.constant 0 : index
      %13 = vector.load %arg4[%c0_13, %c0_14] : memref<1x64xf32, #tpu.memory_space<vmem>>, vector<1x64xf32>
      %14 = vector.broadcast %13 : vector<1x64xf32> to vector<144x64xf32>
      %15 = arith.addf %12, %14 : vector<144x64xf32>
      %cst_15 = arith.constant 0.636619746 : f32
      %16 = math.sqrt %cst_15 : f32
      %cst_16 = arith.constant 5.000000e-01 : f32
      %17 = vector.broadcast %cst_16 : f32 to vector<144x64xf32>
      %18 = arith.mulf %17, %15 : vector<144x64xf32>
      %cst_17 = arith.constant 4.471500e-02 : f32
      %19 = vector.broadcast %cst_17 : f32 to vector<144x64xf32>
      %20 = arith.mulf %19, %15 : vector<144x64xf32>
      %21 = arith.mulf %20, %15 : vector<144x64xf32>
      %22 = arith.mulf %21, %15 : vector<144x64xf32>
      %23 = arith.addf %15, %22 : vector<144x64xf32>
      %24 = vector.broadcast %16 : f32 to vector<144x64xf32>
      %25 = arith.mulf %24, %23 : vector<144x64xf32>
      %26 = math.tanh %25 : vector<144x64xf32>
      %cst_18 = arith.constant 1.000000e+00 : f32
      %27 = vector.broadcast %cst_18 : f32 to vector<144x64xf32>
      %28 = arith.addf %27, %26 : vector<144x64xf32>
      %29 = arith.mulf %18, %28 : vector<144x64xf32>
      %c0_19 = arith.constant 0 : index
      %c0_20 = arith.constant 0 : index
      %30 = vector.load %arg5[%c0_19, %c0_20] : memref<1x64xf32, #tpu.memory_space<vmem>>, vector<1x64xf32>
      %c0_21 = arith.constant 0 : index
      %c0_22 = arith.constant 0 : index
      %31 = vector.load %arg6[%c0_21, %c0_22] : memref<1x64xf32, #tpu.memory_space<vmem>>, vector<1x64xf32>
      %cst_23 = arith.constant dense<0.000000e+00> : vector<144xf32>
      %32 = vector.multi_reduction <add>, %29, %cst_23 [1] : vector<144x64xf32> to vector<144xf32>
      %33 = vector.shape_cast %32 : vector<144xf32> to vector<144x1xf32>
      %cst_24 = arith.constant 6.400000e+01 : f32
      %34 = vector.broadcast %cst_24 : f32 to vector<144x1xf32>
      %35 = arith.divf %33, %34 : vector<144x1xf32>
      %36 = vector.broadcast %35 : vector<144x1xf32> to vector<144x64xf32>
      %37 = arith.subf %29, %36 : vector<144x64xf32>
      %38 = arith.mulf %37, %37 : vector<144x64xf32>
      %cst_25 = arith.constant dense<0.000000e+00> : vector<144xf32>
      %39 = vector.multi_reduction <add>, %38, %cst_25 [1] : vector<144x64xf32> to vector<144xf32>
      %40 = vector.shape_cast %39 : vector<144xf32> to vector<144x1xf32>
      %cst_26 = arith.constant 6.400000e+01 : f32
      %41 = vector.broadcast %cst_26 : f32 to vector<144x1xf32>
      %42 = arith.divf %40, %41 : vector<144x1xf32>
      %43 = vector.broadcast %35 : vector<144x1xf32> to vector<144x64xf32>
      %44 = arith.subf %29, %43 : vector<144x64xf32>
      %cst_27 = arith.constant 9.99999974E-6 : f32
      %45 = vector.broadcast %cst_27 : f32 to vector<144x1xf32>
      %46 = arith.addf %42, %45 : vector<144x1xf32>
      %47 = math.rsqrt %46 : vector<144x1xf32>
      %48 = vector.broadcast %47 : vector<144x1xf32> to vector<144x64xf32>
      %49 = arith.mulf %44, %48 : vector<144x64xf32>
      %50 = vector.broadcast %30 : vector<1x64xf32> to vector<144x64xf32>
      %51 = arith.mulf %49, %50 : vector<144x64xf32>
      %52 = vector.broadcast %31 : vector<1x64xf32> to vector<144x64xf32>
      %53 = arith.addf %51, %52 : vector<144x64xf32>
      %c0_28 = arith.constant 0 : index
      %c0_29 = arith.constant 0 : index
      %54 = vector.load %arg10[%c0_28, %c0_29] : memref<144x64xf32, #tpu.memory_space<vmem>>, vector<144x64xf32>
      tpu.vector_store %arg10[%c0_28, %c0_29], %53 {strides = array<i32>} : memref<144x64xf32, #tpu.memory_space<vmem>>, vector<144x64xf32>,
    } else {
    }
    %c0 = arith.constant 0 : index
    %c0_1 = arith.constant 0 : index
    %3 = vector.load %arg10[%c0, %c0_1] : memref<144x64xf32, #tpu.memory_space<vmem>>, vector<144x64xf32>
    %c0_2 = arith.constant 0 : index
    %c0_3 = arith.constant 0 : index
    %4 = vector.load %arg7[%c0_2, %c0_3] : memref<64x1024xf32, #tpu.memory_space<vmem>>, vector<64x1024xf32>
    %cst = arith.constant dense<0.000000e+00> : vector<144x1024xf32>
    %5 = tpu.matmul %3, %4, %cst {dimension_numbers = #tpu.dot_dimension_numbers<[1], [0], [0], [1], [0, 0, 1, 1], [], []>} : vector<144x64xf32>, vector<64x1024xf32>, vector<144x1024xf32> -> vector<144x1024xf32>
    %c0_4 = arith.constant 0 : index
    %c0_5 = arith.constant 0 : index
    %6 = vector.load %arg8[%c0_4, %c0_5] : memref<1x1024xf32, #tpu.memory_space<vmem>>, vector<1x1024xf32>
    %7 = vector.broadcast %6 : vector<1x1024xf32> to vector<144x1024xf32>
    %8 = arith.addf %5, %7 : vector<144x1024xf32>
    %c0_6 = arith.constant 0 : index
    %c0_7 = arith.constant 0 : index
    %9 = vector.load %arg9[%c0_6, %c0_7] : memref<144x1024xf32, #tpu.memory_space<vmem>>, vector<144x1024xf32>
    tpu.vector_store %arg9[%c0_6, %c0_7], %8 {strides = array<i32>} : memref<144x1024xf32, #tpu.memory_space<vmem>>, vector<144x1024xf32>,
    return
  }
  func.func @transform_0(%arg0: i32, %arg1: i32) -> (i32, i32) {
    %c0_i32 = arith.constant 0 : i32
    %c0_i32_0 = arith.constant 0 : i32
    return %arg0, %c0_i32 : i32, i32
  }
  func.func @transform_1(%arg0: i32, %arg1: i32) -> (i32, i32) {
    %c0_i32 = arith.constant 0 : i32
    %c0_i32_0 = arith.constant 0 : i32
    %c0_i32_1 = arith.constant 0 : i32
    return %c0_i32, %c0_i32_0 : i32, i32
  }
  func.func @transform_2(%arg0: i32, %arg1: i32) -> (i32, i32) {
    %c0_i32 = arith.constant 0 : i32
    %c0_i32_0 = arith.constant 0 : i32
    %c0_i32_1 = arith.constant 0 : i32
    return %c0_i32, %c0_i32_0 : i32, i32
  }
  func.func @transform_3(%arg0: i32, %arg1: i32) -> (i32, i32) {
    %c0_i32 = arith.constant 0 : i32
    %c0_i32_0 = arith.constant 0 : i32
    %c0_i32_1 = arith.constant 0 : i32
    return %c0_i32, %c0_i32_0 : i32, i32
  }
  func.func @transform_4(%arg0: i32, %arg1: i32) -> (i32, i32) {
    %c0_i32 = arith.constant 0 : i32
    %c0_i32_0 = arith.constant 0 : i32
    %c0_i32_1 = arith.constant 0 : i32
    return %c0_i32, %c0_i32_0 : i32, i32
  }
  func.func @transform_5(%arg0: i32, %arg1: i32) -> (i32, i32) {
    %c0_i32 = arith.constant 0 : i32
    %c0_i32_0 = arith.constant 0 : i32
    return %c0_i32, %arg1 : i32, i32
  }
  func.func @transform_6(%arg0: i32, %arg1: i32) -> (i32, i32) {
    %c0_i32 = arith.constant 0 : i32
    %c0_i32_0 = arith.constant 0 : i32
    return %c0_i32, %arg1 : i32, i32
  }
  func.func @transform_7(%arg0: i32, %arg1: i32) -> (i32, i32) {
    %c0_i32 = arith.constant 0 : i32
    return %arg0, %arg1 : i32, i32
  }
}

module attributes {stable_mosaic.version = 11 : i64} {
  func.func @_decoder_kernel(%arg0: i32, %arg1: i32, %arg2: memref<144x512xf32, #tpu.memory_space<vmem>>, %arg3: memref<512x64xf32, #tpu.memory_space<vmem>>, %arg4: memref<1x64xf32, #tpu.memory_space<vmem>>, %arg5: memref<1x64xf32, #tpu.memory_space<vmem>>, %arg6: memref<1x64xf32, #tpu.memory_space<vmem>>, %arg7: memref<64x128xf32, #tpu.memory_space<vmem>>, %arg8: memref<1x128xf32, #tpu.memory_space<vmem>>, %arg9: memref<144x128xf32, #tpu.memory_space<vmem>>, %arg10: memref<144x64xf32, #tpu.memory_space<vmem>>) attributes {dimension_semantics = [#tpu.dimension_semantics<parallel>, #tpu.dimension_semantics<arbitrary>], iteration_bounds = array<i64: 2, 8>, scalar_prefetch = 0 : i64, scratch_operands = 1 : i64, tpu.core_type = #tpu.core_type<tc>, window_params = [{transform_indices = @transform_0, window_bounds = array<i64: 144, 512>}, {transform_indices = @transform_1, window_bounds = array<i64: 512, 64>}, {pipeline_mode = #tpu.pipeline_mode<synchronous>, transform_indices = @transform_2, window_bounds = array<i64: 1, 64>}, {pipeline_mode = #tpu.pipeline_mode<synchronous>, transform_indices = @transform_3, window_bounds = array<i64: 1, 64>}, {pipeline_mode = #tpu.pipeline_mode<synchronous>, transform_indices = @transform_4, window_bounds = array<i64: 1, 64>}, {pipeline_mode = #tpu.pipeline_mode<synchronous>, transform_indices = @transform_5, window_bounds = array<i64: 64, 128>}, {pipeline_mode = #tpu.pipeline_mode<synchronous>, transform_indices = @transform_6, window_bounds = array<i64: 1, 128>}, {transform_indices = @transform_7, window_bounds = array<i64: 144, 128>}]} {
    %c0_i32 = arith.constant 0 : i32
    %0 = arith.cmpi eq, %arg1, %c0_i32 : i32
    %1 = arith.extui %0 : i1 to i32
    %c0_i32_0 = arith.constant 0 : i32
    %2 = arith.cmpi ne, %1, %c0_i32_0 : i32
    scf.if %2 {
      %cst_9 = arith.constant 0.000000e+00 : f32
      %12 = vector.broadcast %cst_9 : f32 to vector<144x64xf32>
      %c0_10 = arith.constant 0 : index
      %c0_11 = arith.constant 0 : index
      %13 = vector.load %arg10[%c0_10, %c0_11] : memref<144x64xf32, #tpu.memory_space<vmem>>, vector<144x64xf32>
      tpu.vector_store %arg10[%c0_10, %c0_11], %12 {strides = array<i32>} : memref<144x64xf32, #tpu.memory_space<vmem>>, vector<144x64xf32>,
    } else {
    }
    %c0 = arith.constant 0 : index
    %c0_1 = arith.constant 0 : index
    %3 = vector.load %arg10[%c0, %c0_1] : memref<144x64xf32, #tpu.memory_space<vmem>>, vector<144x64xf32>
    %c0_2 = arith.constant 0 : index
    %c0_3 = arith.constant 0 : index
    %4 = vector.load %arg2[%c0_2, %c0_3] : memref<144x512xf32, #tpu.memory_space<vmem>>, vector<144x512xf32>
    %c0_4 = arith.constant 0 : index
    %c0_5 = arith.constant 0 : index
    %5 = vector.load %arg3[%c0_4, %c0_5] : memref<512x64xf32, #tpu.memory_space<vmem>>, vector<512x64xf32>
    %cst = arith.constant dense<0.000000e+00> : vector<144x64xf32>
    %6 = tpu.matmul %4, %5, %cst {dimension_numbers = #tpu.dot_dimension_numbers<[1], [0], [0], [1], [0, 0, 1, 1], [], []>} : vector<144x512xf32>, vector<512x64xf32>, vector<144x64xf32> -> vector<144x64xf32>
    %7 = arith.addf %3, %6 : vector<144x64xf32>
    %c0_6 = arith.constant 0 : index
    %c0_7 = arith.constant 0 : index
    %8 = vector.load %arg10[%c0_6, %c0_7] : memref<144x64xf32, #tpu.memory_space<vmem>>, vector<144x64xf32>
    tpu.vector_store %arg10[%c0_6, %c0_7], %7 {strides = array<i32>} : memref<144x64xf32, #tpu.memory_space<vmem>>, vector<144x64xf32>,
    %c7_i32 = arith.constant 7 : i32
    %9 = arith.cmpi eq, %arg1, %c7_i32 : i32
    %10 = arith.extui %9 : i1 to i32
    %c0_i32_8 = arith.constant 0 : i32
    %11 = arith.cmpi ne, %10, %c0_i32_8 : i32
    scf.if %11 {
      %c0_9 = arith.constant 0 : index
      %c0_10 = arith.constant 0 : index
      %12 = vector.load %arg10[%c0_9, %c0_10] : memref<144x64xf32, #tpu.memory_space<vmem>>, vector<144x64xf32>
      %c0_11 = arith.constant 0 : index
      %c0_12 = arith.constant 0 : index
      %13 = vector.load %arg4[%c0_11, %c0_12] : memref<1x64xf32, #tpu.memory_space<vmem>>, vector<1x64xf32>
      %14 = vector.broadcast %13 : vector<1x64xf32> to vector<144x64xf32>
      %15 = arith.addf %12, %14 : vector<144x64xf32>
      %cst_13 = arith.constant 0.636619746 : f32
      %16 = math.sqrt %cst_13 : f32
      %cst_14 = arith.constant 5.000000e-01 : f32
      %17 = vector.broadcast %cst_14 : f32 to vector<144x64xf32>
      %18 = arith.mulf %17, %15 : vector<144x64xf32>
      %cst_15 = arith.constant 4.471500e-02 : f32
      %19 = vector.broadcast %cst_15 : f32 to vector<144x64xf32>
      %20 = arith.mulf %19, %15 : vector<144x64xf32>
      %21 = arith.mulf %20, %15 : vector<144x64xf32>
      %22 = arith.mulf %21, %15 : vector<144x64xf32>
      %23 = arith.addf %15, %22 : vector<144x64xf32>
      %24 = vector.broadcast %16 : f32 to vector<144x64xf32>
      %25 = arith.mulf %24, %23 : vector<144x64xf32>
      %26 = math.tanh %25 : vector<144x64xf32>
      %cst_16 = arith.constant 1.000000e+00 : f32
      %27 = vector.broadcast %cst_16 : f32 to vector<144x64xf32>
      %28 = arith.addf %27, %26 : vector<144x64xf32>
      %29 = arith.mulf %18, %28 : vector<144x64xf32>
      %c0_17 = arith.constant 0 : index
      %c0_18 = arith.constant 0 : index
      %30 = vector.load %arg5[%c0_17, %c0_18] : memref<1x64xf32, #tpu.memory_space<vmem>>, vector<1x64xf32>
      %c0_19 = arith.constant 0 : index
      %c0_20 = arith.constant 0 : index
      %31 = vector.load %arg6[%c0_19, %c0_20] : memref<1x64xf32, #tpu.memory_space<vmem>>, vector<1x64xf32>
      %cst_21 = arith.constant dense<0.000000e+00> : vector<144xf32>
      %32 = vector.multi_reduction <add>, %29, %cst_21 [1] : vector<144x64xf32> to vector<144xf32>
      %33 = vector.shape_cast %32 : vector<144xf32> to vector<144x1xf32>
      %cst_22 = arith.constant 6.400000e+01 : f32
      %34 = vector.broadcast %cst_22 : f32 to vector<144x1xf32>
      %35 = arith.divf %33, %34 : vector<144x1xf32>
      %36 = vector.broadcast %35 : vector<144x1xf32> to vector<144x64xf32>
      %37 = arith.subf %29, %36 : vector<144x64xf32>
      %38 = arith.mulf %37, %37 : vector<144x64xf32>
      %cst_23 = arith.constant dense<0.000000e+00> : vector<144xf32>
      %39 = vector.multi_reduction <add>, %38, %cst_23 [1] : vector<144x64xf32> to vector<144xf32>
      %40 = vector.shape_cast %39 : vector<144xf32> to vector<144x1xf32>
      %cst_24 = arith.constant 6.400000e+01 : f32
      %41 = vector.broadcast %cst_24 : f32 to vector<144x1xf32>
      %42 = arith.divf %40, %41 : vector<144x1xf32>
      %43 = vector.broadcast %35 : vector<144x1xf32> to vector<144x64xf32>
      %44 = arith.subf %29, %43 : vector<144x64xf32>
      %cst_25 = arith.constant 9.99999974E-6 : f32
      %45 = vector.broadcast %cst_25 : f32 to vector<144x1xf32>
      %46 = arith.addf %42, %45 : vector<144x1xf32>
      %47 = math.rsqrt %46 : vector<144x1xf32>
      %48 = vector.broadcast %47 : vector<144x1xf32> to vector<144x64xf32>
      %49 = arith.mulf %44, %48 : vector<144x64xf32>
      %50 = vector.broadcast %30 : vector<1x64xf32> to vector<144x64xf32>
      %51 = arith.mulf %49, %50 : vector<144x64xf32>
      %52 = vector.broadcast %31 : vector<1x64xf32> to vector<144x64xf32>
      %53 = arith.addf %51, %52 : vector<144x64xf32>
      %c0_26 = arith.constant 0 : index
      %c0_27 = arith.constant 0 : index
      %54 = vector.load %arg7[%c0_26, %c0_27] : memref<64x128xf32, #tpu.memory_space<vmem>>, vector<64x128xf32>
      %cst_28 = arith.constant dense<0.000000e+00> : vector<144x128xf32>
      %55 = tpu.matmul %53, %54, %cst_28 {dimension_numbers = #tpu.dot_dimension_numbers<[1], [0], [0], [1], [0, 0, 1, 1], [], []>} : vector<144x64xf32>, vector<64x128xf32>, vector<144x128xf32> -> vector<144x128xf32>
      %c0_29 = arith.constant 0 : index
      %c0_30 = arith.constant 0 : index
      %56 = vector.load %arg8[%c0_29, %c0_30] : memref<1x128xf32, #tpu.memory_space<vmem>>, vector<1x128xf32>
      %57 = vector.broadcast %56 : vector<1x128xf32> to vector<144x128xf32>
      %58 = arith.addf %55, %57 : vector<144x128xf32>
      %c0_31 = arith.constant 0 : index
      %c0_32 = arith.constant 0 : index
      %59 = vector.load %arg9[%c0_31, %c0_32] : memref<144x128xf32, #tpu.memory_space<vmem>>, vector<144x128xf32>
      tpu.vector_store %arg9[%c0_31, %c0_32], %58 {strides = array<i32>} : memref<144x128xf32, #tpu.memory_space<vmem>>, vector<144x128xf32>,
    } else {
    }
    return
  }
  func.func @transform_0(%arg0: i32, %arg1: i32) -> (i32, i32) {
    %c0_i32 = arith.constant 0 : i32
    return %arg0, %arg1 : i32, i32
  }
  func.func @transform_1(%arg0: i32, %arg1: i32) -> (i32, i32) {
    %c0_i32 = arith.constant 0 : i32
    %c0_i32_0 = arith.constant 0 : i32
    return %arg1, %c0_i32 : i32, i32
  }
  func.func @transform_2(%arg0: i32, %arg1: i32) -> (i32, i32) {
    %c0_i32 = arith.constant 0 : i32
    %c0_i32_0 = arith.constant 0 : i32
    %c0_i32_1 = arith.constant 0 : i32
    return %c0_i32, %c0_i32_0 : i32, i32
  }
  func.func @transform_3(%arg0: i32, %arg1: i32) -> (i32, i32) {
    %c0_i32 = arith.constant 0 : i32
    %c0_i32_0 = arith.constant 0 : i32
    %c0_i32_1 = arith.constant 0 : i32
    return %c0_i32, %c0_i32_0 : i32, i32
  }
  func.func @transform_4(%arg0: i32, %arg1: i32) -> (i32, i32) {
    %c0_i32 = arith.constant 0 : i32
    %c0_i32_0 = arith.constant 0 : i32
    %c0_i32_1 = arith.constant 0 : i32
    return %c0_i32, %c0_i32_0 : i32, i32
  }
  func.func @transform_5(%arg0: i32, %arg1: i32) -> (i32, i32) {
    %c0_i32 = arith.constant 0 : i32
    %c0_i32_0 = arith.constant 0 : i32
    %c0_i32_1 = arith.constant 0 : i32
    return %c0_i32, %c0_i32_0 : i32, i32
  }
  func.func @transform_6(%arg0: i32, %arg1: i32) -> (i32, i32) {
    %c0_i32 = arith.constant 0 : i32
    %c0_i32_0 = arith.constant 0 : i32
    %c0_i32_1 = arith.constant 0 : i32
    return %c0_i32, %c0_i32_0 : i32, i32
  }
  func.func @transform_7(%arg0: i32, %arg1: i32) -> (i32, i32) {
    %c0_i32 = arith.constant 0 : i32
    %c0_i32_0 = arith.constant 0 : i32
    return %arg0, %c0_i32 : i32, i32
  }
}

</mosaic_0001>

<bundles_post_ra>
// kernel: complete_model_forward.4
= control target key start
LH: loop header
LB: loop body
LE: loop exit
PB: predicated region body
PF: predicated region fallthrough
CT: control target
= control target key end

     0   :  { %s3054_s24 = smov 0   ;;  %s3056_s25 = smov 0   ;;  %s4696_s0 = inlined_call_operand.vmem [shape: f32[144,40], index: 0, kind: input, shape index: {}]   ;;  %s4697_s1 = inlined_call_operand.vmem [shape: f32[40,64], index: 1, kind: input, shape index: {}]   ;;  %s4698_s2 = inlined_call_operand.vmem [shape: f32[1,64], index: 2, kind: input, shape index: {}]   ;;  %s4699_s3 = inlined_call_operand.vmem [shape: f32[1,64], index: 3, kind: input, shape index: {}]   ;;  %s4700_s4 = inlined_call_operand.vmem [shape: f32[1,64], index: 4, kind: input, shape index: {}]   ;;  %s4701_s5 = inlined_call_operand.vmem [shape: f32[64,4096], index: 5, kind: input, shape index: {}]   ;;  %s4702_s6 = inlined_call_operand.vmem [shape: f32[1,4096], index: 6, kind: input, shape index: {}]   ;;  %s4703_s7 = inlined_call_operand.vmem [shape: f32[144,4096], index: 7, kind: output, shape index: {}]  }
   0x1   :  { %s3058_s26 = smov 0   ;;  %s3060_s27 = smov 0  }
   0x2   :  { %s3062_s28 = smov 0  }
   0x3 LB: > { %s26_s29 = sadd.s32 1, %s3007_s27  ;;  %s2610_s30 = sadd.s32 4294967295, %s3011_s28   ;;  %s3011_s28 = sphi %s3062_s28, %s17_s28   ;;  %s3007_s27 = sphi %s3060_s27, %s4708_s27   ;;  %s3003_s26 = sphi %s3058_s26, %s4707_s26   ;;  %s2999_s25 = sphi %s3056_s25, %s4706_s25   ;;  %s2995_s24 = sphi %s3054_s24, %s4705_s24  }
   0x4   : > { %p27_p0 = scmp.ge.s32.totalorder %s26_s29, 4  ;;  %p153_p1 = scmp.ne.s32.totalorder %s2999_s25, %s2995_s24 }
   0x5   : > { %p154_p2 = scmp.eq.s32.totalorder %s3011_s28, 0  ;;  %p211_p4 = scmp.eq.s32.totalorder %s2610_s30, 3 }
   0x6   : > { %s4710_s29 = smov (%p27_p0, %s26_s29), 0  ;;  %s146_s9 = sadd.s32 1, %s2999_s25 }
   0x7   : > { %p155_p3 = por %p154_p2, %p153_p1  ;;  %s143_s8 = ssub.s32 %s3007_s27, %s4710_s29 }
   0x8   : > { %p144_p5 = scmp.eq.s32.totalorder %s143_s8, 0  ;;  %p3089_p6 = por %p211_p4, %p153_p1 }
   0x9   : > { %p2614_p7 = scmp.ge.s32.totalorder %s3011_s28, 4 }
   0xa   : > { %s3094_s11 = scalar_select %p144_p5, %s2999_s25, %s146_s9  }
   0xb   : > { %254 = sbr.rel (%p2614_p7) target bundleno = 54 (0x36), region = 36 }
  0x12   : > { %257 = sbr.rel (!%p155_p3) target bundleno = 54 (0x36), region = 40  ;;  %s259_s12 = sand.u32 (%p155_p3), 1, %s2999_s25  }
  0x13   : > { %s2719_s13 = sshll.u32 (%p155_p3), %s3007_s27, 6  ;;  %s2615_s14 = sshll.u32 (%p155_p3), %s259_s12, 9 }
  0x14   : > { %s3102_s17 = scalar_lea.vmem (%p155_p3), %s4701_s5, %s2719_s13  ;;  %s3107_s18 = scalar_lea.vmem (%p155_p3), [#allocation3], %s2615_s14 }
  0x15   : > { %v277_v0 = vld [vmem:[%s3102_s17] sm:$0xff] (%p155_p3)  ;;  %v279_v1 = vld [vmem:[%s3102_s17 + $0x8] sm:$0xff] (%p155_p3)  ;;  %v281_v2 = vld [vmem:[%s3102_s17 + $0x10] sm:$0xff] (%p155_p3) }
  0x16   : > { %278 = vst [vmem:[%s3107_s18] sm:$0xff] (%p155_p3), %v277_v0  ;;  %280 = vst [vmem:[%s3107_s18 + $0x8] sm:$0xff] (%p155_p3), %v279_v1  ;;  %v283_v3 = vld [vmem:[%s3102_s17 + $0x18] sm:$0xff] (%p155_p3)  ;;  %v285_v4 = vld [vmem:[%s3102_s17 + $0x20] sm:$0xff] (%p155_p3) }
  0x17   : > { %282 = vst [vmem:[%s3107_s18 + $0x10] sm:$0xff] (%p155_p3), %v281_v2  ;;  %v287_v5 = vld [vmem:[%s3102_s17 + $0x28] sm:$0xff] (%p155_p3)  ;;  %284 = vst [vmem:[%s3107_s18 + $0x18] sm:$0xff] (%p155_p3), %v283_v3  ;;  %v289_v6 = vld [vmem:[%s3102_s17 + $0x30] sm:$0xff] (%p155_p3) }
  0x18   : > { %286 = vst [vmem:[%s3107_s18 + $0x20] sm:$0xff] (%p155_p3), %v285_v4  ;;  %288 = vst [vmem:[%s3107_s18 + $0x28] sm:$0xff] (%p155_p3), %v287_v5  ;;  %v291_v7 = vld [vmem:[%s3102_s17 + $0x38] sm:$0xff] (%p155_p3)  ;;  %v293_v8 = vld [vmem:[%s3102_s17 + $0x100] sm:$0xff] (%p155_p3) }
  0x19   : > { %290 = vst [vmem:[%s3107_s18 + $0x30] sm:$0xff] %v289_v6  ;;  %292 = vst [vmem:[%s3107_s18 + $0x38] sm:$0xff] %v291_v7  ;;  %v295_v9 = vld [vmem:[%s3102_s17 + $0x108] sm:$0xff]  ;;  %v297_v10 = vld [vmem:[%s3102_s17 + $0x110] sm:$0xff] }
  0x1a   : > { %294 = vst [vmem:[%s3107_s18 + $0x40] sm:$0xff] %v293_v8  ;;  %v299_v11 = vld [vmem:[%s3102_s17 + $0x118] sm:$0xff]  ;;  %296 = vst [vmem:[%s3107_s18 + $0x48] sm:$0xff] %v295_v9  ;;  %v301_v12 = vld [vmem:[%s3102_s17 + $0x120] sm:$0xff] }
  0x1b   : > { %298 = vst [vmem:[%s3107_s18 + $0x50] sm:$0xff] %v297_v10  ;;  %300 = vst [vmem:[%s3107_s18 + $0x58] sm:$0xff] %v299_v11  ;;  %v303_v13 = vld [vmem:[%s3102_s17 + $0x128] sm:$0xff]  ;;  %v305_v14 = vld [vmem:[%s3102_s17 + $0x130] sm:$0xff] }
  0x1c   : > { %302 = vst [vmem:[%s3107_s18 + $0x60] sm:$0xff] %v301_v12  ;;  %304 = vst [vmem:[%s3107_s18 + $0x68] sm:$0xff] %v303_v13  ;;  %v307_v15 = vld [vmem:[%s3102_s17 + $0x138] sm:$0xff]  ;;  %v309_v16 = vld [vmem:[%s3102_s17 + $0x200] sm:$0xff] }
  0x1d   : > { %306 = vst [vmem:[%s3107_s18 + $0x70] sm:$0xff] %v305_v14  ;;  %v311_v17 = vld [vmem:[%s3102_s17 + $0x208] sm:$0xff]  ;;  %308 = vst [vmem:[%s3107_s18 + $0x78] sm:$0xff] %v307_v15  ;;  %v313_v18 = vld [vmem:[%s3102_s17 + $0x210] sm:$0xff] }
  0x1e   : > { %310 = vst [vmem:[%s3107_s18 + $0x80] sm:$0xff] %v309_v16  ;;  %312 = vst [vmem:[%s3107_s18 + $0x88] sm:$0xff] %v311_v17  ;;  %v315_v19 = vld [vmem:[%s3102_s17 + $0x218] sm:$0xff]  ;;  %v317_v20 = vld [vmem:[%s3102_s17 + $0x220] sm:$0xff] }
  0x1f   : > { %314 = vst [vmem:[%s3107_s18 + $0x90] sm:$0xff] %v313_v18  ;;  %316 = vst [vmem:[%s3107_s18 + $0x98] sm:$0xff] %v315_v19  ;;  %v319_v21 = vld [vmem:[%s3102_s17 + $0x228] sm:$0xff]  ;;  %v321_v22 = vld [vmem:[%s3102_s17 + $0x230] sm:$0xff] }
  0x20   : > { %318 = vst [vmem:[%s3107_s18 + $0xa0] sm:$0xff] %v317_v20  ;;  %v323_v23 = vld [vmem:[%s3102_s17 + $0x238] sm:$0xff]  ;;  %320 = vst [vmem:[%s3107_s18 + $0xa8] sm:$0xff] %v319_v21  ;;  %v325_v24 = vld [vmem:[%s3102_s17 + $0x300] sm:$0xff] }
  0x21   : > { %322 = vst [vmem:[%s3107_s18 + $0xb0] sm:$0xff] %v321_v22  ;;  %324 = vst [vmem:[%s3107_s18 + $0xb8] sm:$0xff] %v323_v23  ;;  %v327_v25 = vld [vmem:[%s3102_s17 + $0x308] sm:$0xff]  ;;  %v329_v26 = vld [vmem:[%s3102_s17 + $0x310] sm:$0xff] }
  0x22   : > { %326 = vst [vmem:[%s3107_s18 + $0xc0] sm:$0xff] %v325_v24  ;;  %328 = vst [vmem:[%s3107_s18 + $0xc8] sm:$0xff] %v327_v25  ;;  %v331_v27 = vld [vmem:[%s3102_s17 + $0x318] sm:$0xff]  ;;  %v333_v28 = vld [vmem:[%s3102_s17 + $0x320] sm:$0xff] }
  0x23   : > { %330 = vst [vmem:[%s3107_s18 + $0xd0] sm:$0xff] %v329_v26  ;;  %v335_v29 = vld [vmem:[%s3102_s17 + $0x328] sm:$0xff]  ;;  %332 = vst [vmem:[%s3107_s18 + $0xd8] sm:$0xff] %v331_v27  ;;  %v337_v30 = vld [vmem:[%s3102_s17 + $0x330] sm:$0xff] }
  0x24   : > { %334 = vst [vmem:[%s3107_s18 + $0xe0] sm:$0xff] %v333_v28  ;;  %336 = vst [vmem:[%s3107_s18 + $0xe8] sm:$0xff] %v335_v29  ;;  %v339_v31 = vld [vmem:[%s3102_s17 + $0x338] sm:$0xff]  ;;  %v341_v32 = vld [vmem:[%s3102_s17 + $0x400] sm:$0xff] }
  0x25   : > { %338 = vst [vmem:[%s3107_s18 + $0xf0] sm:$0xff] %v337_v30  ;;  %340 = vst [vmem:[%s3107_s18 + $0xf8] sm:$0xff] %v339_v31  ;;  %v343_v33 = vld [vmem:[%s3102_s17 + $0x408] sm:$0xff]  ;;  %v345_v34 = vld [vmem:[%s3102_s17 + $0x410] sm:$0xff] }
  0x26   : > { %342 = vst [vmem:[%s3107_s18 + $0x100] sm:$0xff] %v341_v32  ;;  %v347_v35 = vld [vmem:[%s3102_s17 + $0x418] sm:$0xff]  ;;  %344 = vst [vmem:[%s3107_s18 + $0x108] sm:$0xff] %v343_v33  ;;  %v349_v36 = vld [vmem:[%s3102_s17 + $0x420] sm:$0xff] }
  0x27   : > { %346 = vst [vmem:[%s3107_s18 + $0x110] sm:$0xff] %v345_v34  ;;  %348 = vst [vmem:[%s3107_s18 + $0x118] sm:$0xff] %v347_v35  ;;  %v351_v37 = vld [vmem:[%s3102_s17 + $0x428] sm:$0xff]  ;;  %v353_v38 = vld [vmem:[%s3102_s17 + $0x430] sm:$0xff] }
  0x28   : > { %350 = vst [vmem:[%s3107_s18 + $0x120] sm:$0xff] %v349_v36  ;;  %352 = vst [vmem:[%s3107_s18 + $0x128] sm:$0xff] %v351_v37  ;;  %v355_v39 = vld [vmem:[%s3102_s17 + $0x438] sm:$0xff]  ;;  %v357_v40 = vld [vmem:[%s3102_s17 + $0x500] sm:$0xff] }
  0x29   : > { %354 = vst [vmem:[%s3107_s18 + $0x130] sm:$0xff] %v353_v38  ;;  %v359_v41 = vld [vmem:[%s3102_s17 + $0x508] sm:$0xff]  ;;  %356 = vst [vmem:[%s3107_s18 + $0x138] sm:$0xff] %v355_v39  ;;  %v361_v42 = vld [vmem:[%s3102_s17 + $0x510] sm:$0xff] }
  0x2a   : > { %358 = vst [vmem:[%s3107_s18 + $0x140] sm:$0xff] %v357_v40  ;;  %360 = vst [vmem:[%s3107_s18 + $0x148] sm:$0xff] %v359_v41  ;;  %v363_v43 = vld [vmem:[%s3102_s17 + $0x518] sm:$0xff]  ;;  %v365_v44 = vld [vmem:[%s3102_s17 + $0x520] sm:$0xff] }
  0x2b   : > { %362 = vst [vmem:[%s3107_s18 + $0x150] sm:$0xff] %v361_v42  ;;  %364 = vst [vmem:[%s3107_s18 + $0x158] sm:$0xff] %v363_v43  ;;  %v367_v45 = vld [vmem:[%s3102_s17 + $0x528] sm:$0xff]  ;;  %v369_v46 = vld [vmem:[%s3102_s17 + $0x530] sm:$0xff] }
  0x2c   : > { %366 = vst [vmem:[%s3107_s18 + $0x160] sm:$0xff] %v365_v44  ;;  %v371_v47 = vld [vmem:[%s3102_s17 + $0x538] sm:$0xff]  ;;  %368 = vst [vmem:[%s3107_s18 + $0x168] sm:$0xff] %v367_v45  ;;  %v373_v48 = vld [vmem:[%s3102_s17 + $0x600] sm:$0xff] }
  0x2d   : > { %370 = vst [vmem:[%s3107_s18 + $0x170] sm:$0xff] %v369_v46  ;;  %372 = vst [vmem:[%s3107_s18 + $0x178] sm:$0xff] %v371_v47  ;;  %v375_v49 = vld [vmem:[%s3102_s17 + $0x608] sm:$0xff]  ;;  %v377_v50 = vld [vmem:[%s3102_s17 + $0x610] sm:$0xff] }
  0x2e   : > { %374 = vst [vmem:[%s3107_s18 + $0x180] sm:$0xff] %v373_v48  ;;  %376 = vst [vmem:[%s3107_s18 + $0x188] sm:$0xff] %v375_v49  ;;  %v379_v51 = vld [vmem:[%s3102_s17 + $0x618] sm:$0xff]  ;;  %v381_v52 = vld [vmem:[%s3102_s17 + $0x620] sm:$0xff] }
  0x2f   : > { %378 = vst [vmem:[%s3107_s18 + $0x190] sm:$0xff] %v377_v50  ;;  %v383_v53 = vld [vmem:[%s3102_s17 + $0x628] sm:$0xff]  ;;  %380 = vst [vmem:[%s3107_s18 + $0x198] sm:$0xff] %v379_v51  ;;  %v385_v54 = vld [vmem:[%s3102_s17 + $0x630] sm:$0xff] }
  0x30   : > { %382 = vst [vmem:[%s3107_s18 + $0x1a0] sm:$0xff] %v381_v52  ;;  %384 = vst [vmem:[%s3107_s18 + $0x1a8] sm:$0xff] %v383_v53  ;;  %v387_v55 = vld [vmem:[%s3102_s17 + $0x638] sm:$0xff]  ;;  %v389_v56 = vld [vmem:[%s3102_s17 + $0x700] sm:$0xff] }
  0x31   : > { %386 = vst [vmem:[%s3107_s18 + $0x1b0] sm:$0xff] %v385_v54  ;;  %388 = vst [vmem:[%s3107_s18 + $0x1b8] sm:$0xff] %v387_v55  ;;  %v391_v57 = vld [vmem:[%s3102_s17 + $0x708] sm:$0xff]  ;;  %v393_v58 = vld [vmem:[%s3102_s17 + $0x710] sm:$0xff] }
  0x32   : > { %390 = vst [vmem:[%s3107_s18 + $0x1c0] sm:$0xff] %v389_v56  ;;  %v395_v59 = vld [vmem:[%s3102_s17 + $0x718] sm:$0xff]  ;;  %392 = vst [vmem:[%s3107_s18 + $0x1c8] sm:$0xff] %v391_v57  ;;  %v397_v60 = vld [vmem:[%s3102_s17 + $0x720] sm:$0xff] }
  0x33   : > { %394 = vst [vmem:[%s3107_s18 + $0x1d0] sm:$0xff] %v393_v58  ;;  %396 = vst [vmem:[%s3107_s18 + $0x1d8] sm:$0xff] %v395_v59  ;;  %v399_v61 = vld [vmem:[%s3102_s17 + $0x728] sm:$0xff]  ;;  %v401_v62 = vld [vmem:[%s3102_s17 + $0x730] sm:$0xff] }
  0x34   : > { %398 = vst [vmem:[%s3107_s18 + $0x1e0] sm:$0xff] %v397_v60  ;;  %400 = vst [vmem:[%s3107_s18 + $0x1e8] sm:$0xff] %v399_v61  ;;  %v403_v63 = vld [vmem:[%s3102_s17 + $0x738] sm:$0xff] }
  0x35   : > { %402 = vst [vmem:[%s3107_s18 + $0x1f0] sm:$0xff] %v401_v62  ;;  %404 = vst [vmem:[%s3107_s18 + $0x1f8] sm:$0xff] %v403_v63 }
  0x36 PF: > { %p2618_p8 = scmp.ge.s32.totalorder %s3011_s28, 1  ;;  %p417_p9 = scmp.lt.s32.totalorder %s3011_s28, 5 }
  0x38   : > { %p418_p10 = pnand %p2618_p8, %p417_p9 }
  0x39   : > { %s424_s19 = sand.u32 (!%p418_p10), 1, %s2995_s24   ;;  %s2620_s20 = sshll.u32 (!%p418_p10), %s3003_s26, 3 }
  0x3a   : > { %421 = sbr.rel (%p418_p10) target bundleno = 1105 (0x451), region = 67  ;;  %s2619_s21 = sshll.u32 (!%p418_p10), %s424_s19, 9 }
  0x3b   : > { %s2859_s22 = smul.u32 (!%p418_p10), 1152, %s424_s19  ;;  %p471_p11 = scmp.lt.s32.totalorder (!%p418_p10), %s2620_s20, 31 }
  0x3c   : > { %s3244_s9 = scalar_lea.vmem (!%p418_p10), [#allocation3], %s2619_s21  ;;  %p2621_p12 = scmp.ne.s32.totalorder (!%p418_p10), %s3003_s26, 0 }
  0x3d   : > { %s3246_s12 = scalar_lea.vmem (!%p418_p10), [#allocation4], %s2859_s22 }
  0x41   : > { %s4712_s20 = smov (!%p471_p11, %s2620_s20), 31  ;;  %480 = sbr.rel (%p2621_p12) target bundleno = 670 (0x29e), region = 75 }
  0x42   : > { %s473_s8 = scalar_lea.vmem %s4702_s6, %s4712_s20  ;;  %v499_v0 = vld [vmem:[%s4697_s1] sm:$0xff] (!%p2621_p12)  ;;  %v500_v1 = vld [vmem:[%s4697_s1 + $0x8] sm:$0xff] (!%p2621_p12)  ;;  %v501_v2 = vld [vmem:[%s4697_s1 + $0x10] sm:$0xff] (!%p2621_p12)  ;;  %vm511_vm0 = vcmask (!%p2621_p12), 326656   ;;  %vm885_vm1 = vcmask (!%p2621_p12), 523264  }
  0x43   : > { %v2781_v3 = vpack.c.bf16 (!%p2621_p12), %v500_v1, %v499_v0  ;;  %v502_v4 = vld [vmem:[%s4697_s1 + $0x18] sm:$0xff] (!%p2621_p12)  ;;  %v481_v5 = vld [vmem:[%s4696_s0] sm:$0xff] (!%p2621_p12)  ;;  %v491_v7 = vld [vmem:[%s4696_s0 + $0x50] sm:$0xff] (!%p2621_p12) }
  0x44   : > { %v2785_v6 = vpack.c.bf16 (!%p2621_p12), %v502_v4, %v501_v2  ;;  %2754 = vmatprep.mubr.msk.f32.mxu0 (!%p2621_p12), %vm511_vm0, %v481_v5  ;;  %v503_v8 = vld [vmem:[%s4697_s1 + $0x20] sm:$0xff] (!%p2621_p12)  ;;  %2769 = vmatprep.mubr.msk.f32.mxu1 (!%p2621_p12), %vm511_vm0, %v491_v7  ;;  %v482_v9 = vld [vmem:[%s4696_s0 + $0x8] sm:$0xff] (!%p2621_p12)  ;;  %v492_v10 = vld [vmem:[%s4696_s0 + $0x58] sm:$0xff] (!%p2621_p12) }
  0x45   : > { %2782 = vmatprep.subr.bf16.mxu0 (!%p2621_p12), %v2781_v3  ;;  %2853 = vmatprep.subr.bf16.mxu1 (!%p2621_p12), %v2781_v3  ;;  %v483_v11 = vld [vmem:[%s4696_s0 + $0x10] sm:$0xff] (!%p2621_p12)  ;;  %v493_v12 = vld [vmem:[%s4696_s0 + $0x60] sm:$0xff] (!%p2621_p12)  ;;  %v484_v13 = vld [vmem:[%s4696_s0 + $0x18] sm:$0xff] (!%p2621_p12) }
  0x46   : > { %2784 = vmatpush3.bf16.msra.mxu0 (!%p2621_p12), %v2781_v3  ;;  %2856 = vmatpush3.bf16.msra.mxu1 (!%p2621_p12), %v2781_v3  ;;  %v494_v14 = vld [vmem:[%s4696_s0 + $0x68] sm:$0xff] (!%p2621_p12)  ;;  %v485_v15 = vld [vmem:[%s4696_s0 + $0x20] sm:$0xff] (!%p2621_p12)  ;;  %v495_v16 = vld [vmem:[%s4696_s0 + $0x70] sm:$0xff] (!%p2621_p12) }
  0x47   : > { %2786 = vmatprep.subr.bf16.mxu0 (!%p2621_p12), %v2785_v6  ;;  %2854 = vmatprep.subr.bf16.mxu1 (!%p2621_p12), %v2785_v6  ;;  %v486_v17 = vld [vmem:[%s4696_s0 + $0x28] sm:$0xff] (!%p2621_p12)  ;;  %v496_v18 = vld [vmem:[%s4696_s0 + $0x78] sm:$0xff] (!%p2621_p12)  ;;  %v487_v19 = vld [vmem:[%s4696_s0 + $0x30] sm:$0xff] (!%p2621_p12) }
  0x48   : > { %v497_v20 = vld [vmem:[%s4696_s0 + $0x80] sm:$0xff]  ;;  %v488_v21 = vld [vmem:[%s4696_s0 + $0x38] sm:$0xff]  ;;  %v498_v22 = vld [vmem:[%s4696_s0 + $0x88] sm:$0xff] }
  0x49   : > { %v489_v23 = vld [vmem:[%s4696_s0 + $0x40] sm:$0xff]  ;;  %v490_v24 = vld [vmem:[%s4696_s0 + $0x48] sm:$0xff] }
  0x4a   : > { %2788 = vmatpush3.bf16.msra.mxu0 %v2785_v6  ;;  %2857 = vmatpush3.bf16.msra.mxu1 %v2785_v6  ;;  %v3339_v25 = vld [vmem:[%s4698_s2] ss:$0 sm:$0xff] }
  0x4b   : > { %2752 = vmatprep.subr.mxu0 %v503_v8  ;;  %2855 = vmatprep.subr.mxu1 %v503_v8 }
  0x4e   : > { %2753 = vmatpush3.msra.mxu0 %v503_v8  ;;  %2858 = vmatpush3.msra.mxu1 %v503_v8 }
  0x4f   : > { %2755 = vmatmul.mubr.msk.f32.vlgmr.msra.gmra.mrb[0].mxu0 %vm511_vm0, %v482_v9  ;;  %2770 = vmatmul.mubr.msk.f32.vlgmr.msra.gmra.mrb[0].mxu1 %vm511_vm0, %v492_v10 }
  0x50   : > { %2757 = vmatprep.mubr.msk.f32.mxu0 %vm511_vm0, %v483_v11  ;;  %2772 = vmatprep.mubr.msk.f32.mxu1 %vm511_vm0, %v493_v12 }
  0x53   : > { %2758 = vmatmul.mubr.msk.f32.gmra.mrb[2].mxu0 %vm511_vm0, %v484_v13  ;;  %2773 = vmatmul.mubr.msk.f32.gmra.mrb[2].mxu1 %vm511_vm0, %v494_v14 }
  0x54   : > { %2760 = vmatprep.mubr.msk.f32.mxu0 %vm511_vm0, %v485_v15  ;;  %2775 = vmatprep.mubr.msk.f32.mxu1 %vm511_vm0, %v495_v16 }
  0x57   : > { %2761 = vmatmul.mubr.msk.f32.gmra.mrb[4].mxu0 %vm511_vm0, %v486_v17  ;;  %2776 = vmatmul.mubr.msk.f32.gmra.mrb[4].mxu1 %vm511_vm0, %v496_v18 }
  0x58   : > { %2763 = vmatprep.mubr.msk.f32.mxu0 %vm511_vm0, %v487_v19  ;;  %2778 = vmatprep.mubr.msk.f32.mxu1 %vm511_vm0, %v497_v20 }
  0x5b   : > { %2764 = vmatmul.mubr.msk.f32.gmra.mrb[6].mxu0 %vm511_vm0, %v488_v21  ;;  %2779 = vmatmul.mubr.msk.f32.gmra.mrb[6].mxu1 %vm511_vm0, %v498_v22 }
  0x5c   : > { %2766 = vmatprep.mubr.msk.f32.mxu0 %vm511_vm0, %v489_v23 }
  0x5f   : > { %2767 = vmatmul.mubr.msk.f32.gmra.mrb[8].mxu0 %vm511_vm0, %v490_v24 }
 0x122   : > { %v2756_v26 = vpop.f32.mrb[0].mxu0  ;;  %v2771_v27 = vpop.f32.mrb[0].mxu1 }
 0x123   : > { %v638_v28 = vadd.f32 %v2756_v26, %v3339_v25  ;;  %v688_v29 = vadd.f32 %v2771_v27, %v3339_v25  ;;  %v632_v30 = vpop.f32.mrb[1].mxu0  ;;  %v682_v31 = vpop.f32.mrb[1].mxu1 }
 0x124   : > { %v633_v32 = vadd.f32 %v3339_v25, %v632_v30  ;;  %v3345_v36 = vadd.f32 %v3339_v25, %v682_v31 }
 0x125   : > { %v740_v33 = vmul.f32 0.044715, %v638_v28  ;;  %v750_v34 = vmul.f32 0.044715, %v688_v29  ;;  %v3359_v60 = vmul.f32 0.5, %v688_v29  ;;  %v3361_v61 = vmul.f32 0.5, %v638_v28 }
 0x126   : > { %v739_v35 = vmul.f32 0.044715, %v633_v32  ;;  %v2759_v37 = vpop.f32.mrb[2].mxu0  ;;  %v2774_v38 = vpop.f32.mrb[2].mxu1  ;;  %v749_v55 = vmul.f32 0.044715, %v3345_v36 }
 0x127   : > { %v648_v39 = vadd.f32 %v2759_v37, %v3339_v25  ;;  %v3349_v40 = vadd.f32 %v2774_v38, %v3339_v25  ;;  %v642_v41 = vpop.f32.mrb[3].mxu0  ;;  %v692_v42 = vpop.f32.mrb[3].mxu1  ;;  %v768_v43 = vmul.f32 %v750_v34, %v688_v29  ;;  %v758_v44 = vmul.f32 %v740_v33, %v638_v28 }
 0x128   : > { %v757_v45 = vmul.f32 %v739_v35, %v633_v32  ;;  %v3352_v47 = vadd.f32 %v3339_v25, %v642_v41  ;;  %v3356_v51 = vadd.f32 %v3339_v25, %v692_v42  ;;  %v3363_v63 = vmul.f32 0.5, %v633_v32 }
 0x129   : > { %v742_v46 = vmul.f32 0.044715, %v648_v39  ;;  %v786_v48 = vmul.f32 %v768_v43, %v688_v29  ;;  %v776_v49 = vmul.f32 %v758_v44, %v638_v28  ;;  %v752_v50 = vmul.f32 0.044715, %v3349_v40 }
 0x12a   : > { %v2762_v52 = vpop.f32.mrb[4].mxu0  ;;  %v2777_v53 = vpop.f32.mrb[4].mxu1  ;;  %v775_v54 = vmul.f32 %v757_v45, %v633_v32  ;;  %v741_v0 = vmul.f32 0.044715, %v3352_v47  ;;  %v751_v4 = vmul.f32 0.044715, %v3356_v51  ;;  %v767_v14 = vmul.f32 %v749_v55, %v3345_v36 }
 0x12b   : > { %v652_v56 = vpop.f32.mrb[5].mxu0  ;;  %v702_v57 = vpop.f32.mrb[5].mxu1  ;;  %v804_v58 = vadd.f32 %v786_v48, %v688_v29  ;;  %v794_v59 = vadd.f32 %v776_v49, %v638_v28  ;;  %v760_v62 = vmul.f32 %v742_v46, %v648_v39  ;;  %v3367_v1 = vadd.f32 %v2762_v52, %v3339_v25 }
 0x12c   : > { %v793_v3 = vadd.f32 %v775_v54, %v633_v32  ;;  %v3371_v5 = vadd.f32 %v2777_v53, %v3339_v25  ;;  %v770_v9 = vmul.f32 %v752_v50, %v3349_v40  ;;  %v3375_v10 = vadd.f32 %v3339_v25, %v652_v56 }
 0x12d   : > { %v822_v2 = vmul.f32 0.7978845, %v804_v58  ;;  %v778_v8 = vmul.f32 %v760_v62, %v648_v39  ;;  %v812_v13 = vmul.f32 0.7978845, %v794_v59  ;;  %v3379_v15 = vadd.f32 %v3339_v25, %v702_v57 }
 0x12e   : > { %v2765_v6 = vpop.f32.mrb[6].mxu0  ;;  %v2780_v7 = vpop.f32.mrb[6].mxu1  ;;  %v811_v18 = vmul.f32 0.7978845, %v793_v3  ;;  %v744_v19 = vmul.f32 0.044715, %v3367_v1  ;;  %v788_v26 = vmul.f32 %v770_v9, %v3349_v40  ;;  %v785_v31 = vmul.f32 %v767_v14, %v3345_v36 }
 0x12f   : > { %v662_v11 = vpop.f32.mrb[7].mxu0  ;;  %v712_v12 = vpop.f32.mrb[7].mxu1  ;;  %2901 = vtanh.f32 %v822_v2  ;;  %v3382_v16 = vadd.f32 %v2765_v6, %v3339_v25  ;;  %v796_v17 = vadd.f32 %v778_v8, %v648_v39  ;;  %v3386_v20 = vadd.f32 %v2780_v7, %v3339_v25 }
 0x130   : > { %2903 = vtanh.f32 %v812_v13  ;;  %v3388_v21 = vmul.f32 0.5, %v648_v39  ;;  %v754_v22 = vmul.f32 0.044715, %v3371_v5  ;;  %v3392_v23 = vadd.f32 %v3339_v25, %v662_v11 }
 0x131   : > { %2905 = vtanh.f32 %v811_v18  ;;  %v743_v27 = vmul.f32 0.044715, %v3375_v10  ;;  %v3397_v28 = vadd.f32 %v3339_v25, %v712_v12  ;;  %v814_v30 = vmul.f32 0.7978845, %v796_v17 }
 0x132   : > { %v2768_v24 = vpop.f32.mrb[8].mxu0  ;;  %v753_v32 = vmul.f32 0.044715, %v3379_v15  ;;  %v746_v33 = vmul.f32 0.044715, %v3382_v16  ;;  %v806_v34 = vadd.f32 %v788_v26, %v3349_v40  ;;  %v759_v35 = vmul.f32 %v741_v0, %v3352_v47 }
 0x133   : > { %v672_v29 = vpop.f32.mrb[9].mxu0  ;;  %v3405_v37 = vmul.f32 0.044715, %v3386_v20  ;;  %2907 = vtanh.f32 %v814_v30  ;;  %v3408_v38 = vmul.f32 0.5, %v3349_v40  ;;  %v803_v39 = vadd.f32 %v785_v31, %v3345_v36 }
 0x134   : > { %v745_v41 = vmul.f32 0.044715, %v3392_v23  ;;  %v824_v42 = vmul.f32 0.7978845, %v806_v34  ;;  %v777_v43 = vmul.f32 %v759_v35, %v3352_v47  ;;  %v769_v44 = vmul.f32 %v751_v4, %v3356_v51 }
 0x135   : > { %v3415_v45 = vmul.f32 0.044715, %v3397_v28  ;;  %v3418_v46 = vadd.f32 %v2768_v24, %v3339_v25  ;;  %v821_v48 = vmul.f32 0.7978845, %v803_v39  ;;  %v762_v49 = vmul.f32 %v744_v19, %v3367_v1 }
 0x136   : > { %2909 = vtanh.f32 %v824_v42  ;;  %v795_v40 = vadd.f32 %v777_v43, %v3352_v47  ;;  %v787_v50 = vmul.f32 %v769_v44, %v3356_v51  ;;  %v761_v52 = vmul.f32 %v743_v27, %v3375_v10 }
 0x137   : > { %v3425_v54 = vadd.f32 %v3339_v25, %v672_v29  ;;  %2911 = vtanh.f32 %v821_v48  ;;  %v780_v55 = vmul.f32 %v762_v49, %v3367_v1  ;;  %v772_v56 = vmul.f32 %v754_v22, %v3371_v5 }
 0x138   : > { %v813_v58 = vmul.f32 0.7978845, %v795_v40  ;;  %v805_v59 = vadd.f32 %v787_v50, %v3356_v51  ;;  %v779_v62 = vmul.f32 %v761_v52, %v3375_v10  ;;  %v748_v2 = vmul.f32 0.044715, %v3418_v46 }
 0x139   : > { %v2902_v53 = vpop.eup %2901  ;;  %v798_v3 = vadd.f32 %v780_v55, %v3367_v1  ;;  %v790_v4 = vmul.f32 %v772_v56, %v3371_v5  ;;  %v771_v25 = vmul.f32 %v753_v32, %v3379_v15  ;;  %v731_v30 = vmul.f32 0.5, %v3345_v36 }
 0x13a   : > { %v858_v57 = vadd.f32 1.0, %v2902_v53  ;;  %v2904_v0 = vpop.eup %2903  ;;  %2913 = vtanh.f32 %v813_v58  ;;  %v823_v9 = vmul.f32 0.7978845, %v805_v59  ;;  %v797_v13 = vadd.f32 %v779_v62, %v3375_v10 }
 0x13b   : > { %v2906_v6 = vpop.eup %2905  ;;  %v848_v8 = vadd.f32 1.0, %v2904_v0  ;;  %v816_v12 = vmul.f32 0.7978845, %v798_v3  ;;  %v808_v14 = vadd.f32 %v790_v4, %v3371_v5  ;;  %v789_v19 = vmul.f32 %v771_v25, %v3379_v15 }
 0x13c   : > { %v3436_v7 = vmul.f32 %v858_v57, %v3359_v60  ;;  %v847_v11 = vadd.f32 1.0, %v2906_v6  ;;  %2915 = vtanh.f32 %v823_v9  ;;  %v815_v24 = vmul.f32 0.7978845, %v797_v13 }
 0x13d   : > { %v3443_v18 = vmul.f32 %v848_v8, %v3361_v61  ;;  %v2908_v60 = vpop.eup %2907  ;;  %2917 = vtanh.f32 %v816_v12  ;;  %v826_v26 = vmul.f32 0.7978845, %v808_v14  ;;  %v807_v61 = vadd.f32 %v789_v19, %v3379_v15 }
 0x13e   : > { %v919_v17 = vsel %vm885_vm1, %v3436_v7, 0.0  ;;  %v3447_v22 = vmul.f32 %v847_v11, %v3363_v63  ;;  %v850_v29 = vadd.f32 1.0, %v2908_v60  ;;  %v747_v31 = vmul.f32 0.044715, %v3425_v54 }
 0x13f   : > { %920 = vadd.xlane.f32.xlu1 %v919_v17  ;;  %v889_v27 = vsel %vm885_vm1, %v3443_v18, 0.0  ;;  %v723_v32 = vmul.f32 0.5, %v3352_v47  ;;  %2919 = vtanh.f32 %v815_v24  ;;  %v764_v63 = vmul.f32 %v746_v33, %v3382_v16 }
 0x140   : > { %890 = vadd.xlane.f32.xlu0 %v889_v27  ;;  %v2910_v34 = vpop.eup %2909  ;;  %v3457_v35 = vmul.f32 %v850_v29, %v3388_v21  ;;  %2921 = vtanh.f32 %v826_v26  ;;  %v825_v39 = vmul.f32 0.7978845, %v807_v61  ;;  %v763_v42 = vmul.f32 %v745_v41, %v3392_v23 }
 0x141   : > { %v2912_v43 = vpop.eup %2911  ;;  %v886_v36 = vsel %vm885_vm1, %v3447_v22, 0.0  ;;  %v860_v44 = vadd.f32 1.0, %v2910_v34  ;;  %v782_v48 = vmul.f32 %v764_v63, %v3382_v16  ;;  %v766_v47 = vmul.f32 %v748_v2, %v3418_v46 }
 0x142   : > { %v895_v33 = vsel %vm885_vm1, %v3457_v35, 0.0  ;;  %v857_v49 = vadd.f32 1.0, %v2912_v43  ;;  %2923 = vtanh.f32 %v825_v39  ;;  %v781_v21 = vmul.f32 %v763_v42, %v3392_v23 }
 0x143   : > { %896 = vadd.xlane.f32.xlu1 %v895_v33  ;;  %v3468_v41 = vmul.f32 %v860_v44, %v3408_v38  ;;  %v733_v40 = vmul.f32 0.5, %v3356_v51  ;;  %v800_v50 = vadd.f32 %v782_v48, %v3382_v16  ;;  %v784_v52 = vmul.f32 %v766_v47, %v3418_v46 }
 0x144   : > { %887 = vadd.xlane.f32.xlu0 %v886_v36  ;;  %v2914_v53 = vpop.eup %2913  ;;  %v3473_v55 = vmul.f32 %v857_v49, %v731_v30  ;;  %v726_v56 = vmul.f32 0.5, %v3367_v1  ;;  %v799_v57 = vadd.f32 %v781_v21, %v3392_v23  ;;  %v765_v58 = vmul.f32 %v747_v31, %v3425_v54 }
 0x145   : > { %v925_v59 = vsel %vm885_vm1, %v3468_v41, 0.0  ;;  %v849_v38 = vadd.f32 1.0, %v2914_v53  ;;  %v818_v62 = vmul.f32 0.7978845, %v800_v50  ;;  %v802_v51 = vadd.f32 %v784_v52, %v3418_v46 }
 0x146   : > { %v2916_v0 = vpop.eup %2915  ;;  %v916_v2 = vsel %vm885_vm1, %v3473_v55, 0.0  ;;  %v817_v3 = vmul.f32 0.7978845, %v799_v57  ;;  %v783_v4 = vmul.f32 %v765_v58, %v3425_v54  ;;  %v774_v1 = vmul.f32 %v3405_v37, %v3386_v20 }
 0x147   : > { %v2918_v25 = vpop.eup %2917  ;;  %926 = vadd.xlane.f32.xlu1 %v925_v59  ;;  %v3486_v6 = vmul.f32 %v849_v38, %v723_v32  ;;  %v859_v8 = vadd.f32 1.0, %v2916_v0  ;;  %2925 = vtanh.f32 %v818_v62  ;;  %v820_v9 = vmul.f32 0.7978845, %v802_v51 }
 0x148   : > { %917 = vadd.xlane.f32.xlu0 %v916_v2  ;;  %v852_v11 = vadd.f32 1.0, %v2918_v25  ;;  %2927 = vtanh.f32 %v817_v3  ;;  %v801_v12 = vadd.f32 %v783_v4, %v3425_v54  ;;  %v792_v13 = vmul.f32 %v774_v1, %v3386_v20 }
 0x149   : > { %v2920_v14 = vpop.eup %2919  ;;  %v892_v17 = vsel %vm885_vm1, %v3486_v6, 0.0  ;;  %v3492_v19 = vmul.f32 %v859_v8, %v733_v40  ;;  %v725_v37 = vmul.f32 0.5, %v3375_v10  ;;  %2929 = vtanh.f32 %v820_v9 }
 0x14a   : > { %v2922_v60 = vpop.eup %2921  ;;  %v3495_v24 = vmul.f32 %v852_v11, %v726_v56  ;;  %v851_v26 = vadd.f32 1.0, %v2920_v14  ;;  %v819_v27 = vmul.f32 0.7978845, %v801_v12  ;;  %v810_v29 = vadd.f32 %v792_v13, %v3386_v20 }
 0x14b   : > { %893 = vadd.xlane.f32.xlu1 %v892_v17  ;;  %v922_v30 = vsel %vm885_vm1, %v3492_v19, 0.0  ;;  %v862_v61 = vadd.f32 1.0, %v2922_v60  ;;  %v773_v31 = vmul.f32 %v3415_v45, %v3397_v28  ;;  %v736_v10 = vmul.f32 0.5, %v3371_v5 }
 0x14c   : > { %v2924_v32 = vpop.eup %2923  ;;  %923 = vadd.xlane.f32.xlu0 %v922_v30  ;;  %v3502_v63 = vmul.f32 %v851_v26, %v725_v37  ;;  %2931 = vtanh.f32 %v819_v27  ;;  %v828_v34 = vmul.f32 0.7978845, %v810_v29  ;;  %v735_v39 = vmul.f32 0.5, %v3379_v15 }
 0x14d   : > { %v861_v42 = vadd.f32 1.0, %v2924_v32  ;;  %v791_v43 = vmul.f32 %v773_v31, %v3397_v28  ;;  %v901_v36 = vsel %vm885_vm1, %v3495_v24, 0.0  ;;  %v3509_v44 = vmul.f32 %v862_v61, %v736_v10 }
 0x14e   : > { %2933 = vtanh.f32 %v828_v34  ;;  %v898_v45 = vsel %vm885_vm1, %v3502_v63, 0.0  ;;  %v728_v21 = vmul.f32 0.5, %v3382_v16  ;;  %v727_v53 = vmul.f32 0.5, %v3392_v23 }
 0x14f   : > { %902 = vadd.xlane.f32.xlu1 %v901_v36  ;;  %v3513_v48 = vmul.f32 %v861_v42, %v735_v39  ;;  %v809_v5 = vadd.f32 %v791_v43, %v3397_v28  ;;  %v931_v49 = vsel %vm885_vm1, %v3509_v44, 0.0  ;;  %v730_v58 = vmul.f32 0.5, %v3418_v46 }
 0x150   : > { %899 = vadd.xlane.f32.xlu0 %v898_v45  ;;  %v729_v0 = vmul.f32 0.5, %v3425_v54  ;;  %v738_v3 = vmul.f32 0.5, %v3386_v20  ;;  %v737_v54 = vmul.f32 0.5, %v3397_v28 }
 0x151   : > { %v2926_v47 = vpop.eup %2925  ;;  %v827_v15 = vmul.f32 0.7978845, %v809_v5  ;;  %v928_v52 = vsel %vm885_vm1, %v3513_v48, 0.0 }
 0x152   : > { %v2928_v33 = vpop.eup %2927  ;;  %v854_v40 = vadd.f32 1.0, %v2926_v47 }
 0x153   : > { %v2930_v50 = vpop.eup %2929  ;;  %932 = vadd.xlane.f32.xlu1 %v931_v49  ;;  %v853_v56 = vadd.f32 1.0, %v2928_v33  ;;  %2935 = vtanh.f32 %v827_v15 }
 0x154   : > { %929 = vadd.xlane.f32.xlu0 %v928_v52  ;;  %v3522_v57 = vmul.f32 %v854_v40, %v728_v21  ;;  %v856_v59 = vadd.f32 1.0, %v2930_v50 }
 0x155   : > { %v3525_v38 = vmul.f32 %v853_v56, %v727_v53 }
 0x156   : > { %v2932_v62 = vpop.eup %2931  ;;  %v907_v16 = vsel %vm885_vm1, %v3522_v57, 0.0  ;;  %v3529_v51 = vmul.f32 %v856_v59, %v730_v58 }
 0x157   : > { %908 = vadd.xlane.f32.xlu1 %v907_v16  ;;  %v904_v23 = vsel %vm885_vm1, %v3525_v38, 0.0  ;;  %v855_v2 = vadd.f32 1.0, %v2932_v62 }
 0x158   : > { %v2934_v4 = vpop.eup %2933  ;;  %905 = vadd.xlane.f32.xlu0 %v904_v23  ;;  %v913_v25 = vsel %vm885_vm1, %v3529_v51, 0.0 }
 0x159   : > { %v3535_v46 = vmul.f32 %v855_v2, %v729_v0  ;;  %v864_v1 = vadd.f32 1.0, %v2934_v4 }
 0x15b   : > { %914 = vadd.xlane.f32.xlu1 %v913_v25  ;;  %v910_v8 = vsel %vm885_vm1, %v3535_v46, 0.0  ;;  %v3541_v9 = vmul.f32 %v864_v1, %v738_v3 }
 0x15c   : > { %911 = vadd.xlane.f32.xlu0 %v910_v8 }
 0x15d   : > { %v2936_v11 = vpop.eup %2935  ;;  %v937_v20 = vsel %vm885_vm1, %v3541_v9, 0.0 }
 0x15e   : > { %v863_v12 = vadd.f32 1.0, %v2936_v11 }
 0x15f   : > { %938 = vadd.xlane.f32.xlu1 %v937_v20 }
 0x160   : > { %v3546_v13 = vmul.f32 %v863_v12, %v737_v54 }
 0x162   : > { %v934_v14 = vsel %vm885_vm1, %v3546_v13, 0.0 }
 0x163   : > { %935 = vadd.xlane.f32.xlu0 %v934_v14 }
 0x1cc   : > { %v921_v17 = vpop.xlane.xlu1 %920 }
 0x1cd   : > { %v952_v37 = vmul.f32 0.015625, %v921_v17  ;;  %v891_v60 = vpop.xlane.xlu0 %890 }
 0x1ce   : > { %v942_v26 = vmul.f32 0.015625, %v891_v60 }
 0x1cf   : > { %v3551_v27 = vsub.f32 %v3436_v7, %v952_v37 }
 0x1d0   : > { %v3554_v28 = vsub.f32 %v3443_v18, %v942_v26  ;;  %v897_v29 = vpop.xlane.xlu1 %896 }
 0x1d1   : > { %v888_v30 = vpop.xlane.xlu0 %887  ;;  %v944_v61 = vmul.f32 0.015625, %v897_v29  ;;  %v988_v10 = vmul.f32 %v3551_v27, %v3551_v27 }
 0x1d2   : > { %v941_v31 = vmul.f32 0.015625, %v888_v30  ;;  %v978_v32 = vmul.f32 %v3554_v28, %v3554_v28 }
 0x1d3   : > { %v3561_v34 = vsub.f32 %v3457_v35, %v944_v61  ;;  %v1028_v5 = vsel %vm885_vm1, %v988_v10, 0.0 }
 0x1d4   : > { %v3564_v39 = vsub.f32 %v3447_v22, %v941_v31  ;;  %v998_v7 = vsel %vm885_vm1, %v978_v32, 0.0  ;;  %v927_v18 = vpop.xlane.xlu1 %926 }
 0x1d5   : > { %999 = vadd.xlane.f32.xlu1 %v998_v7  ;;  %v918_v42 = vpop.xlane.xlu0 %917  ;;  %v954_v43 = vmul.f32 0.015625, %v927_v18  ;;  %v980_v15 = vmul.f32 %v3561_v34, %v3561_v34 }
 0x1d6   : > { %v951_v36 = vmul.f32 0.015625, %v918_v42  ;;  %v977_v45 = vmul.f32 %v3564_v39, %v3564_v39 }
 0x1d7   : > { %v3571_v47 = vsub.f32 %v3468_v41, %v954_v43 }
 0x1d8   : > { %v3574_v35 = vsub.f32 %v3473_v55, %v951_v36  ;;  %v995_v22 = vsel %vm885_vm1, %v977_v45, 0.0  ;;  %v894_v33 = vpop.xlane.xlu1 %893  ;;  %v1004_v55 = vsel %vm885_vm1, %v980_v15, 0.0 }
 0x1d9   : > { %1029 = vadd.xlane.f32.xlu1 %v1028_v5  ;;  %996 = vadd.xlane.f32.xlu0 %v995_v22  ;;  %v943_v49 = vmul.f32 0.015625, %v894_v33  ;;  %v924_v21 = vpop.xlane.xlu0 %923  ;;  %v990_v53 = vmul.f32 %v3571_v47, %v3571_v47 }
 0x1da   : > { %v987_v40 = vmul.f32 %v3574_v35, %v3574_v35  ;;  %v953_v50 = vmul.f32 0.015625, %v924_v21 }
 0x1db   : > { %v3582_v41 = vsub.f32 %v3486_v6, %v943_v49  ;;  %v1034_v0 = vsel %vm885_vm1, %v990_v53, 0.0 }
 0x1dc   : > { %v1025_v52 = vsel %vm885_vm1, %v987_v40, 0.0  ;;  %v3589_v56 = vsub.f32 %v3492_v19, %v953_v50  ;;  %v903_v58 = vpop.xlane.xlu1 %902 }
 0x1dd   : > { %1005 = vadd.xlane.f32.xlu1 %v1004_v55  ;;  %1026 = vadd.xlane.f32.xlu0 %v1025_v52  ;;  %v946_v59 = vmul.f32 0.015625, %v903_v58  ;;  %v900_v62 = vpop.xlane.xlu0 %899  ;;  %v979_v16 = vmul.f32 %v3582_v41, %v3582_v41 }
 0x1de   : > { %v945_v6 = vmul.f32 0.015625, %v900_v62  ;;  %v989_v19 = vmul.f32 %v3589_v56, %v3589_v56 }
 0x1df   : > { %v3594_v23 = vsub.f32 %v3495_v24, %v946_v59  ;;  %v1001_v2 = vsel %vm885_vm1, %v979_v16, 0.0 }
 0x1e0   : > { %v3601_v3 = vsub.f32 %v3502_v63, %v945_v6  ;;  %v933_v4 = vpop.xlane.xlu1 %932  ;;  %v1031_v20 = vsel %vm885_vm1, %v989_v19, 0.0 }
 0x1e1   : > { %1035 = vadd.xlane.f32.xlu1 %v1034_v0  ;;  %1002 = vadd.xlane.f32.xlu0 %v1001_v2  ;;  %v956_v1 = vmul.f32 0.015625, %v933_v4  ;;  %v930_v25 = vpop.xlane.xlu0 %929  ;;  %v982_v8 = vmul.f32 %v3594_v23, %v3594_v23 }
 0x1e2   : > { %v955_v24 = vmul.f32 0.015625, %v930_v25  ;;  %v981_v63 = vmul.f32 %v3601_v3, %v3601_v3 }
 0x1e3   : > { %v3606_v54 = vsub.f32 %v3509_v44, %v956_v1  ;;  %v1010_v11 = vsel %vm885_vm1, %v982_v8, 0.0 }
 0x1e4   : > { %v3613_v12 = vsub.f32 %v3513_v48, %v955_v24  ;;  %v909_v14 = vpop.xlane.xlu1 %908  ;;  %v1007_v30 = vsel %vm885_vm1, %v981_v63, 0.0 }
 0x1e5   : > { %1011 = vadd.xlane.f32.xlu1 %v1010_v11  ;;  %1032 = vadd.xlane.f32.xlu0 %v1031_v20  ;;  %v948_v17 = vmul.f32 0.015625, %v909_v14  ;;  %v906_v37 = vpop.xlane.xlu0 %905  ;;  %v992_v60 = vmul.f32 %v3606_v54, %v3606_v54 }
 0x1e6   : > { %v947_v44 = vmul.f32 0.015625, %v906_v37  ;;  %v991_v48 = vmul.f32 %v3613_v12, %v3613_v12 }
 0x1e7   : > { %v3618_v26 = vsub.f32 %v3522_v57, %v948_v17  ;;  %v1040_v29 = vsel %vm885_vm1, %v992_v60, 0.0  ;;  %v3661_v60 = vld [vmem:[%s4699_s3] ss:$0 sm:$0xff] }
 0x1e8   : > { %v3625_v61 = vsub.f32 %v3525_v38, %v947_v44  ;;  %v915_v31 = vpop.xlane.xlu1 %914  ;;  %v1037_v43 = vsel %vm885_vm1, %v991_v48, 0.0 }
 0x1e9   : > { %1041 = vadd.xlane.f32.xlu1 %v1040_v29  ;;  %1008 = vadd.xlane.f32.xlu0 %v1007_v30  ;;  %v950_v32 = vmul.f32 0.015625, %v915_v31  ;;  %v912_v10 = vpop.xlane.xlu0 %911  ;;  %v984_v7 = vmul.f32 %v3618_v26, %v3618_v26 }
 0x1ea   : > { %v949_v57 = vmul.f32 0.015625, %v912_v10  ;;  %v983_v38 = vmul.f32 %v3625_v61, %v3625_v61 }
 0x1eb   : > { %v3630_v18 = vsub.f32 %v3529_v51, %v950_v32  ;;  %v1016_v42 = vsel %vm885_vm1, %v984_v7, 0.0  ;;  %v3667_v32 = vld [vmem:[%s4700_s4] ss:$0 sm:$0xff] }
 0x1ec   : > { %v3637_v36 = vsub.f32 %v3535_v46, %v949_v57  ;;  %v939_v45 = vpop.xlane.xlu1 %938  ;;  %v1013_v33 = vsel %vm885_vm1, %v983_v38, 0.0 }
 0x1ed   : > { %1017 = vadd.xlane.f32.xlu1 %v1016_v42  ;;  %1038 = vadd.xlane.f32.xlu0 %v1037_v43  ;;  %v958_v5 = vmul.f32 0.015625, %v939_v45  ;;  %v986_v22 = vmul.f32 %v3630_v18, %v3630_v18 }
 0x1ee   : > { %v985_v49 = vmul.f32 %v3637_v36, %v3637_v36 }
 0x1ef   : > { %v3642_v51 = vsub.f32 %v3541_v9, %v958_v5  ;;  %v1022_v15 = vsel %vm885_vm1, %v986_v22, 0.0 }
 0x1f0   : > { %v936_v21 = vpop.xlane.xlu0 %935  ;;  %v1019_v55 = vsel %vm885_vm1, %v985_v49, 0.0 }
 0x1f1   : > { %1023 = vadd.xlane.f32.xlu1 %v1022_v15  ;;  %1014 = vadd.xlane.f32.xlu0 %v1013_v33  ;;  %v957_v46 = vmul.f32 0.015625, %v936_v21  ;;  %v994_v40 = vmul.f32 %v3642_v51, %v3642_v51 }
 0x1f3   : > { %v3651_v50 = vsub.f32 %v3546_v13, %v957_v46  ;;  %v1046_v9 = vsel %vm885_vm1, %v994_v40, 0.0 }
 0x1f5   : > { %1047 = vadd.xlane.f32.xlu1 %v1046_v9  ;;  %1020 = vadd.xlane.f32.xlu0 %v1019_v55  ;;  %v993_v52 = vmul.f32 %v3651_v50, %v3651_v50 }
 0x1f7   : > { %v1043_v53 = vsel %vm885_vm1, %v993_v52, 0.0 }
 0x1f9   : > { %1044 = vadd.xlane.f32.xlu0 %v1043_v53 }
 0x262   : > { %v1000_v58 = vpop.xlane.xlu1 %999 }
 0x263   : > { %v1050_v59 = vmul.f32 0.015625, %v1000_v58 }
 0x265   : > { %v1068_v62 = vadd.f32 1e-05, %v1050_v59 }
 0x266   : > { %v1030_v16 = vpop.xlane.xlu1 %1029  ;;  %v997_v6 = vpop.xlane.xlu0 %996 }
 0x267   : > { %2937 = vrsqrt.f32 %v1068_v62  ;;  %v1060_v13 = vmul.f32 0.015625, %v1030_v16  ;;  %v1049_v0 = vmul.f32 0.015625, %v997_v6 }
 0x269   : > { %v1078_v2 = vadd.f32 1e-05, %v1060_v13  ;;  %v1067_v19 = vadd.f32 1e-05, %v1049_v0 }
 0x26a   : > { %v1006_v4 = vpop.xlane.xlu1 %1005  ;;  %v1027_v1 = vpop.xlane.xlu0 %1026 }
 0x26b   : > { %2939 = vrsqrt.f32 %v1078_v2  ;;  %v1052_v25 = vmul.f32 0.015625, %v1006_v4  ;;  %v1059_v8 = vmul.f32 0.015625, %v1027_v1 }
 0x26c   : > { %2941 = vrsqrt.f32 %v1067_v19 }
 0x26d   : > { %v1070_v24 = vadd.f32 1e-05, %v1052_v25  ;;  %v1077_v11 = vadd.f32 1e-05, %v1059_v8 }
 0x26e   : > { %v1036_v20 = vpop.xlane.xlu1 %1035  ;;  %v1003_v63 = vpop.xlane.xlu0 %1002 }
 0x26f   : > { %2943 = vrsqrt.f32 %v1070_v24  ;;  %v1062_v14 = vmul.f32 0.015625, %v1036_v20  ;;  %v1051_v17 = vmul.f32 0.015625, %v1003_v63 }
 0x270   : > { %2945 = vrsqrt.f32 %v1077_v11 }
 0x271   : > { %v2938_v37 = vpop.eup %2937  ;;  %v1080_v44 = vadd.f32 1e-05, %v1062_v14  ;;  %v1069_v29 = vadd.f32 1e-05, %v1051_v17 }
 0x272   : > { %v1104_v30 = vmul.f32 %v2938_v37, %v3554_v28  ;;  %v1012_v48 = vpop.xlane.xlu1 %1011  ;;  %v1033_v31 = vpop.xlane.xlu0 %1032 }
 0x273   : > { %2947 = vrsqrt.f32 %v1080_v44  ;;  %v1054_v10 = vmul.f32 0.015625, %v1012_v48  ;;  %v1061_v7 = vmul.f32 0.015625, %v1033_v31 }
 0x274   : > { %v1128_v57 = vmul.f32 %v3661_v60, %v1104_v30  ;;  %2949 = vrsqrt.f32 %v1069_v29 }
 0x275   : > { %v2940_v42 = vpop.eup %2939  ;;  %v1072_v43 = vadd.f32 1e-05, %v1054_v10  ;;  %v1079_v38 = vadd.f32 1e-05, %v1061_v7 }
 0x276   : > { %v2942_v45 = vpop.eup %2941  ;;  %v1152_v5 = vadd.f32 %v3667_v32, %v1128_v57  ;;  %v1114_v28 = vmul.f32 %v2940_v42, %v3551_v27  ;;  %v1042_v22 = vpop.xlane.xlu1 %1041 }
 0x277   : > { %v1009_v15 = vpop.xlane.xlu0 %1008  ;;  %v1103_v33 = vmul.f32 %v2942_v45, %v3564_v39  ;;  %2951 = vrsqrt.f32 %v1072_v43  ;;  %v1064_v49 = vmul.f32 0.015625, %v1042_v22 }
 0x278   : > { %v1053_v21 = vmul.f32 0.015625, %v1009_v15  ;;  %1170 = vst.msk [vmem:[#allocation2 + $0x8] sm:$0xff] %vm885_vm1, %v1152_v5  ;;  %v1138_v46 = vmul.f32 %v3661_v60, %v1114_v28  ;;  %2953 = vrsqrt.f32 %v1079_v38 }
 0x279   : > { %v2944_v40 = vpop.eup %2943  ;;  %v1127_v9 = vmul.f32 %v3661_v60, %v1103_v33  ;;  %v1082_v55 = vadd.f32 1e-05, %v1064_v49 }
 0x27a   : > { %v1071_v52 = vadd.f32 1e-05, %v1053_v21  ;;  %v2946_v53 = vpop.eup %2945  ;;  %v1162_v27 = vadd.f32 %v3667_v32, %v1138_v46  ;;  %v1106_v58 = vmul.f32 %v2944_v40, %v3561_v34  ;;  %v1018_v59 = vpop.xlane.xlu1 %1017 }
 0x27b   : > { %v1039_v39 = vpop.xlane.xlu0 %1038  ;;  %v1151_v62 = vadd.f32 %v3667_v32, %v1127_v9  ;;  %v1113_v16 = vmul.f32 %v2946_v53, %v3574_v35  ;;  %2955 = vrsqrt.f32 %v1082_v55  ;;  %v1056_v6 = vmul.f32 0.015625, %v1018_v59 }
 0x27c   : > { %1180 = vst.msk [vmem:[#allocation2 + $0x58] sm:$0xff] %vm885_vm1, %v1162_v27  ;;  %v1130_v13 = vmul.f32 %v3661_v60, %v1106_v58  ;;  %2957 = vrsqrt.f32 %v1071_v52  ;;  %v1063_v0 = vmul.f32 0.015625, %v1039_v39 }
 0x27d   : > { %v2948_v2 = vpop.eup %2947  ;;  %1169 = vst.msk [vmem:[#allocation2] sm:$0xff] %vm885_vm1, %v1151_v62  ;;  %v1137_v19 = vmul.f32 %v3661_v60, %v1113_v16  ;;  %v1074_v34 = vadd.f32 1e-05, %v1056_v6 }
 0x27e   : > { %v2950_v4 = vpop.eup %2949  ;;  %v1154_v1 = vadd.f32 %v3667_v32, %v1130_v13  ;;  %v1116_v25 = vmul.f32 %v2948_v2, %v3571_v47  ;;  %v1081_v35 = vadd.f32 1e-05, %v1063_v0  ;;  %v1024_v8 = vpop.xlane.xlu1 %1023 }
 0x27f   : > { %v1015_v24 = vpop.xlane.xlu0 %1014  ;;  %v1161_v11 = vadd.f32 %v3667_v32, %v1137_v19  ;;  %v1105_v20 = vmul.f32 %v2950_v4, %v3582_v41  ;;  %2959 = vrsqrt.f32 %v1074_v34  ;;  %v1058_v63 = vmul.f32 0.015625, %v1024_v8 }
 0x280   : > { %1172 = vst.msk [vmem:[#allocation2 + $0x18] sm:$0xff] %vm885_vm1, %v1154_v1  ;;  %v1140_v14 = vmul.f32 %v3661_v60, %v1116_v25  ;;  %2961 = vrsqrt.f32 %v1081_v35  ;;  %v1055_v17 = vmul.f32 0.015625, %v1015_v24 }
 0x281   : > { %v2952_v37 = vpop.eup %2951  ;;  %1179 = vst.msk [vmem:[#allocation2 + $0x50] sm:$0xff] %vm885_vm1, %v1161_v11  ;;  %v1129_v47 = vmul.f32 %v3661_v60, %v1105_v20  ;;  %v1076_v44 = vadd.f32 1e-05, %v1058_v63 }
 0x282   : > { %v2954_v29 = vpop.eup %2953  ;;  %v1164_v30 = vadd.f32 %v3667_v32, %v1140_v14  ;;  %v1108_v48 = vmul.f32 %v2952_v37, %v3594_v23  ;;  %v1073_v41 = vadd.f32 1e-05, %v1055_v17  ;;  %v1048_v31 = vpop.xlane.xlu1 %1047 }
 0x283   : > { %v1021_v10 = vpop.xlane.xlu0 %1020  ;;  %v1153_v7 = vadd.f32 %v3667_v32, %v1129_v47  ;;  %v1115_v57 = vmul.f32 %v2954_v29, %v3589_v56  ;;  %2963 = vrsqrt.f32 %v1076_v44  ;;  %v1066_v42 = vmul.f32 0.015625, %v1048_v31 }
 0x284   : > { %1182 = vst.msk [vmem:[#allocation2 + $0x68] sm:$0xff] %vm885_vm1, %v1164_v30  ;;  %v1132_v43 = vmul.f32 %v3661_v60, %v1108_v48  ;;  %2965 = vrsqrt.f32 %v1073_v41  ;;  %v1057_v38 = vmul.f32 0.015625, %v1021_v10 }
 0x285   : > { %v2956_v45 = vpop.eup %2955  ;;  %1171 = vst.msk [vmem:[#allocation2 + $0x10] sm:$0xff] %vm885_vm1, %v1153_v7  ;;  %v1139_v23 = vmul.f32 %v3661_v60, %v1115_v57  ;;  %v1084_v5 = vadd.f32 1e-05, %v1066_v42 }
 0x286   : > { %v2958_v28 = vpop.eup %2957  ;;  %v1156_v22 = vadd.f32 %v3667_v32, %v1132_v43  ;;  %v1118_v15 = vmul.f32 %v2956_v45, %v3606_v54  ;;  %v1075_v56 = vadd.f32 1e-05, %v1057_v38 }
 0x287   : > { %v1045_v33 = vpop.xlane.xlu0 %1044  ;;  %v1163_v49 = vadd.f32 %v3667_v32, %v1139_v23  ;;  %v1107_v21 = vmul.f32 %v2958_v28, %v3601_v3  ;;  %2967 = vrsqrt.f32 %v1084_v5 }
 0x288   : > { %v1065_v46 = vmul.f32 0.015625, %v1045_v33  ;;  %1174 = vst.msk [vmem:[#allocation2 + $0x28] sm:$0xff] %vm885_vm1, %v1156_v22  ;;  %v1142_v40 = vmul.f32 %v3661_v60, %v1118_v15  ;;  %2969 = vrsqrt.f32 %v1075_v56 }
 0x289   : > { %v2960_v9 = vpop.eup %2959  ;;  %1181 = vst.msk [vmem:[#allocation2 + $0x60] sm:$0xff] %vm885_vm1, %v1163_v49  ;;  %v1131_v55 = vmul.f32 %v3661_v60, %v1107_v21 }
 0x28a   : > { %v1083_v52 = vadd.f32 1e-05, %v1065_v46  ;;  %v2962_v54 = vpop.eup %2961  ;;  %v1166_v53 = vadd.f32 %v3667_v32, %v1142_v40  ;;  %v1110_v27 = vmul.f32 %v2960_v9, %v3618_v26 }
 0x28b   : > { %v1155_v3 = vadd.f32 %v3667_v32, %v1131_v55  ;;  %v1117_v58 = vmul.f32 %v2962_v54, %v3613_v12 }
 0x28c   : > { %2971 = vrsqrt.f32 %v1083_v52  ;;  %1184 = vst.msk [vmem:[#allocation2 + $0x78] sm:$0xff] %vm885_vm1, %v1166_v53  ;;  %v1134_v59 = vmul.f32 %v3661_v60, %v1110_v27 }
 0x28d   : > { %v2964_v39 = vpop.eup %2963  ;;  %1173 = vst.msk [vmem:[#allocation2 + $0x20] sm:$0xff] %vm885_vm1, %v1155_v3  ;;  %v1141_v62 = vmul.f32 %v3661_v60, %v1117_v58 }
 0x28e   : > { %v2966_v16 = vpop.eup %2965  ;;  %v1158_v6 = vadd.f32 %v3667_v32, %v1134_v59  ;;  %v1112_v13 = vmul.f32 %v2964_v39, %v3630_v18 }
 0x28f   : > { %v1165_v26 = vadd.f32 %v3667_v32, %v1141_v62  ;;  %v1109_v0 = vmul.f32 %v2966_v16, %v3625_v61 }
 0x290   : > { %1176 = vst.msk [vmem:[#allocation2 + $0x38] sm:$0xff] %vm885_vm1, %v1158_v6  ;;  %v1136_v12 = vmul.f32 %v3661_v60, %v1112_v13 }
 0x291   : > { %v2968_v2 = vpop.eup %2967  ;;  %1183 = vst.msk [vmem:[#allocation2 + $0x70] sm:$0xff] %vm885_vm1, %v1165_v26  ;;  %v1133_v19 = vmul.f32 %v3661_v60, %v1109_v0 }
 0x292   : > { %v2970_v34 = vpop.eup %2969  ;;  %v1160_v4 = vadd.f32 %v3667_v32, %v1136_v12  ;;  %v1120_v1 = vmul.f32 %v2968_v2, %v3642_v51 }
 0x293   : > { %v1157_v18 = vadd.f32 %v3667_v32, %v1133_v19  ;;  %v1111_v25 = vmul.f32 %v2970_v34, %v3637_v36 }
 0x294   : > { %1178 = vst.msk [vmem:[#allocation2 + $0x48] sm:$0xff] %vm885_vm1, %v1160_v4  ;;  %v1144_v61 = vmul.f32 %v3661_v60, %v1120_v1 }
 0x295   : > { %1175 = vst.msk [vmem:[#allocation2 + $0x30] sm:$0xff] %vm885_vm1, %v1157_v18  ;;  %v1135_v8 = vmul.f32 %v3661_v60, %v1111_v25 }
 0x296   : > { %v2972_v35 = vpop.eup %2971  ;;  %v1168_v24 = vadd.f32 %v3667_v32, %v1144_v61 }
 0x297   : > { %v1119_v11 = vmul.f32 %v2972_v35, %v3651_v50  ;;  %v1159_v20 = vadd.f32 %v3667_v32, %v1135_v8 }
 0x298   : > { %1186 = vst.msk [vmem:[#allocation2 + $0x88] sm:$0xff] %vm885_vm1, %v1168_v24 }
 0x299   : > { %v1143_v51 = vmul.f32 %v3661_v60, %v1119_v11  ;;  %1177 = vst.msk [vmem:[#allocation2 + $0x40] sm:$0xff] %vm885_vm1, %v1159_v20 }
 0x29b   : > { %v1167_v36 = vadd.f32 %v3667_v32, %v1143_v51 }
 0x29d   : > { %1185 = vst.msk [vmem:[#allocation2 + $0x80] sm:$0xff] %vm885_vm1, %v1167_v36 }
 0x29e PF: > { %v1206_v50 = vld [vmem:[%s3244_s9 + $0x8] sm:$0xff]  ;;  %v1208_v60 = vld [vmem:[%s3244_s9 + $0x18] sm:$0xff]  ;;  %v1205_v17 = vld [vmem:[%s3244_s9] sm:$0xff]  ;;  %v3013_v47 = vmov 0.0   ;;  %vm1311_vm2 = vcmask 523264   ;;  %s2720_s20 = sshll.u32 (%p3089_p6), %s3003_s26, 6 }
 0x29f   : > { %v1214_v63 = vld [vmem:[%s3244_s9 + $0x48] sm:$0xff]  ;;  %v1216_v32 = vld [vmem:[%s3244_s9 + $0x58] sm:$0xff]  ;;  %v1213_v37 = vld [vmem:[%s3244_s9 + $0x40] sm:$0xff]  ;;  %1430 = vmatprep.mubr.f32.mxu0 %v3013_v47  ;;  %1603 = vmatprep.mubr.f32.mxu1 %v3013_v47  ;;  %s4394_s18 = scalar_lea.vmem (%p3089_p6), %s4703_s7, %s2720_s20 }
 0x2a0   : > { %v2789_v14 = vpack.c.bf16 %v1214_v63, %v1206_v50  ;;  %v2805_v44 = vpack.c.bf16 %v1216_v32, %v1208_v60  ;;  %v2791_v29 = vpack.c.bf16 %v1213_v37, %v1205_v17  ;;  %v1207_v30 = vld [vmem:[%s3244_s9 + $0x10] sm:$0xff]  ;;  %v1222_v41 = vld [vmem:[%s3244_s9 + $0x88] sm:$0xff]  ;;  %v1224_v7 = vld [vmem:[%s3244_s9 + $0x98] sm:$0xff] }
 0x2a1   : > { %v1215_v48 = vld [vmem:[%s3244_s9 + $0x50] sm:$0xff]  ;;  %v1230_v10 = vld [vmem:[%s3244_s9 + $0xc8] sm:$0xff]  ;;  %v1232_v57 = vld [vmem:[%s3244_s9 + $0xd8] sm:$0xff] }
 0x2a2   : > { %2790 = vmatprep.subr.bf16.mxu0 %v2789_v14  ;;  %v2807_v31 = vpack.c.bf16 %v1215_v48, %v1207_v30  ;;  %2806 = vmatprep.subr.bf16.mxu1 %v2805_v44  ;;  %v2793_v42 = vpack.c.bf16 %v1230_v10, %v1222_v41  ;;  %v2809_v43 = vpack.c.bf16 %v1232_v57, %v1224_v7  ;;  %v1221_v38 = vld [vmem:[%s3244_s9 + $0x80] sm:$0xff]  ;;  %v1223_v23 = vld [vmem:[%s3244_s9 + $0x90] sm:$0xff]  ;;  %v1238_v22 = vld [vmem:[%s3244_s9 + $0x108] sm:$0xff] }
 0x2a3   : > { %2792 = vmatpush1.bf16.msra.mxu0 %v2791_v29  ;;  %v1229_v45 = vld [vmem:[%s3244_s9 + $0xc0] sm:$0xff]  ;;  %v1231_v28 = vld [vmem:[%s3244_s9 + $0xd0] sm:$0xff]  ;;  %v1246_v15 = vld [vmem:[%s3244_s9 + $0x148] sm:$0xff] }
 0x2a4   : > { %2808 = vmatpush1.bf16.msra.mxu1 %v2807_v31  ;;  %v2795_v5 = vpack.c.bf16 %v1229_v45, %v1221_v38  ;;  %2794 = vmatprep.subr.bf16.mxu0 %v2793_v42  ;;  %v2811_v56 = vpack.c.bf16 %v1231_v28, %v1223_v23  ;;  %v2797_v33 = vpack.c.bf16 %v1246_v15, %v1238_v22  ;;  %v1240_v49 = vld [vmem:[%s3244_s9 + $0x118] sm:$0xff]  ;;  %v1237_v46 = vld [vmem:[%s3244_s9 + $0x100] sm:$0xff]  ;;  %v1239_v55 = vld [vmem:[%s3244_s9 + $0x110] sm:$0xff] }
 0x2a5   : > { %2810 = vmatprep.subr.bf16.mxu1 %v2809_v43  ;;  %v1248_v21 = vld [vmem:[%s3244_s9 + $0x158] sm:$0xff]  ;;  %v1245_v9 = vld [vmem:[%s3244_s9 + $0x140] sm:$0xff]  ;;  %v1247_v52 = vld [vmem:[%s3244_s9 + $0x150] sm:$0xff] }
 0x2a6   : > { %v2813_v40 = vpack.c.bf16 %v1248_v21, %v1240_v49  ;;  %v2799_v54 = vpack.c.bf16 %v1245_v9, %v1237_v46  ;;  %v1254_v53 = vld [vmem:[%s3244_s9 + $0x188] sm:$0xff]  ;;  %v1256_v3 = vld [vmem:[%s3244_s9 + $0x198] sm:$0xff]  ;;  %v2815_v58 = vpack.c.bf16 %v1247_v52, %v1239_v55  ;;  %v1253_v62 = vld [vmem:[%s3244_s9 + $0x180] sm:$0xff] }
 0x2a7   : > { %2796 = vmatpush1.bf16.msra.mxu0 %v2795_v5  ;;  %v1262_v27 = vld [vmem:[%s3244_s9 + $0x1c8] sm:$0xff]  ;;  %v1264_v39 = vld [vmem:[%s3244_s9 + $0x1d8] sm:$0xff]  ;;  %v1261_v16 = vld [vmem:[%s3244_s9 + $0x1c0] sm:$0xff] }
 0x2a8   : > { %2812 = vmatpush1.bf16.msra.mxu1 %v2811_v56  ;;  %2798 = vmatprep.subr.bf16.mxu0 %v2797_v33  ;;  %v2801_v59 = vpack.c.bf16 %v1262_v27, %v1254_v53  ;;  %v2817_v6 = vpack.c.bf16 %v1264_v39, %v1256_v3  ;;  %v1255_v13 = vld [vmem:[%s3244_s9 + $0x190] sm:$0xff]  ;;  %v1210_v0 = vld [vmem:[%s3244_s9 + $0x28] sm:$0xff]  ;;  %v1212_v2 = vld [vmem:[%s3244_s9 + $0x38] sm:$0xff]  ;;  %v2803_v19 = vpack.c.bf16 %v1261_v16, %v1253_v62 }
 0x2a9   : > { %2814 = vmatprep.subr.bf16.mxu1 %v2813_v40  ;;  %v1263_v26 = vld [vmem:[%s3244_s9 + $0x1d0] sm:$0xff]  ;;  %v1218_v12 = vld [vmem:[%s3244_s9 + $0x68] sm:$0xff]  ;;  %v1220_v34 = vld [vmem:[%s3244_s9 + $0x78] sm:$0xff] }
 0x2aa   : > { %v2819_v4 = vpack.c.bf16 %v1263_v26, %v1255_v13  ;;  %v2821_v1 = vpack.c.bf16 %v1218_v12, %v1210_v0  ;;  %v1209_v18 = vld [vmem:[%s3244_s9 + $0x20] sm:$0xff]  ;;  %v2837_v61 = vpack.c.bf16 %v1220_v34, %v1212_v2  ;;  %v1211_v35 = vld [vmem:[%s3244_s9 + $0x30] sm:$0xff]  ;;  %v1226_v24 = vld [vmem:[%s3244_s9 + $0xa8] sm:$0xff] }
 0x2ab   : > { %2800 = vmatpush1.bf16.msra.mxu0 %v2799_v54  ;;  %v1217_v25 = vld [vmem:[%s3244_s9 + $0x60] sm:$0xff]  ;;  %v1219_v8 = vld [vmem:[%s3244_s9 + $0x70] sm:$0xff]  ;;  %v1234_v11 = vld [vmem:[%s3244_s9 + $0xe8] sm:$0xff] }
 0x2ac   : > { %2816 = vmatpush1.bf16.msra.mxu1 %v2815_v58  ;;  %2802 = vmatprep.subr.bf16.mxu0 %v2801_v59  ;;  %v3784_v20 = vld [vmem:[#allocation2] sm:$0xff]  ;;  %v2823_v51 = vpack.c.bf16 %v1217_v25, %v1209_v18  ;;  %v1228_v36 = vld [vmem:[%s3244_s9 + $0xb8] sm:$0xff]  ;;  %v2839_v63 = vpack.c.bf16 %v1219_v8, %v1211_v35  ;;  %v2825_v60 = vpack.c.bf16 %v1234_v11, %v1226_v24  ;;  %v1225_v14 = vld [vmem:[%s3244_s9 + $0xa0] sm:$0xff] }
 0x2ad   : > { %2818 = vmatprep.subr.bf16.mxu1 %v2817_v6  ;;  %v1236_v50 = vld [vmem:[%s3244_s9 + $0xf8] sm:$0xff]  ;;  %v1233_v32 = vld [vmem:[%s3244_s9 + $0xe0] sm:$0xff]  ;;  %v1227_v17 = vld [vmem:[%s3244_s9 + $0xb0] sm:$0xff] }
 0x2ae   : > { %v2841_v37 = vpack.c.bf16 %v1236_v50, %v1228_v36  ;;  %v1235_v44 = vld [vmem:[%s3244_s9 + $0xf0] sm:$0xff]  ;;  %v1242_v29 = vld [vmem:[%s3244_s9 + $0x128] sm:$0xff]  ;;  %v3798_v48 = vld [vmem:[#allocation2 + $0x8] sm:$0xff]  ;;  %v2827_v10 = vpack.c.bf16 %v1233_v32, %v1225_v14 }
 0x2af   : > { %2804 = vmatpush1.bf16.msra.mxu0 %v2803_v19  ;;  %v1250_v30 = vld [vmem:[%s3244_s9 + $0x168] sm:$0xff]  ;;  %v1244_v41 = vld [vmem:[%s3244_s9 + $0x138] sm:$0xff]  ;;  %v2843_v7 = vpack.c.bf16 %v1235_v44, %v1227_v17  ;;  %v1241_v42 = vld [vmem:[%s3244_s9 + $0x120] sm:$0xff] }
 0x2b0   : > { %2820 = vmatpush1.bf16.msra.mxu1 %v2819_v4  ;;  %2822 = vmatprep.subr.bf16.mxu0 %v2821_v1  ;;  %v1252_v31 = vld [vmem:[%s3244_s9 + $0x178] sm:$0xff]  ;;  %v2829_v57 = vpack.c.bf16 %v1250_v30, %v1242_v29  ;;  %v1249_v43 = vld [vmem:[%s3244_s9 + $0x160] sm:$0xff]  ;;  %v1243_v38 = vld [vmem:[%s3244_s9 + $0x130] sm:$0xff]  ;;  %v1271_v4 = vlaneseq }
 0x2b1   : > { %2838 = vmatprep.subr.bf16.mxu1 %v2837_v61  ;;  %v2845_v45 = vpack.c.bf16 %v1252_v31, %v1244_v41  ;;  %v1251_v23 = vld [vmem:[%s3244_s9 + $0x170] sm:$0xff]  ;;  %v1258_v5 = vld [vmem:[%s3244_s9 + $0x1a8] sm:$0xff]  ;;  %v3815_v22 = vld [vmem:[#allocation2 + $0x10] sm:$0xff]  ;;  %v2831_v33 = vpack.c.bf16 %v1249_v43, %v1241_v42 }
 0x2b2   : > { %2643 = vmatmul.mubr.msk.f32.vlgmr.msra.gmra.mrb[0].mxu0 %vm1311_vm2, %v3784_v20  ;;  %v1266_v28 = vld [vmem:[%s3244_s9 + $0x1e8] sm:$0xff]  ;;  %v1260_v15 = vld [vmem:[%s3244_s9 + $0x1b8] sm:$0xff]  ;;  %v2847_v49 = vpack.c.bf16 %v1251_v23, %v1243_v38  ;;  %v1257_v46 = vld [vmem:[%s3244_s9 + $0x1a0] sm:$0xff]  ;;  %v4056_v1 = vshrl.u32 %v1271_v4, 7 }
 0x2b3   : > { %2661 = vmatmul.mubr.msk.f32.vlgmr.msra.gmra.mrb[0].mxu1 %vm1311_vm2, %v3784_v20  ;;  %2824 = vmatpush1.bf16.msra.mxu0 %v2823_v51  ;;  %v1268_v56 = vld [vmem:[%s3244_s9 + $0x1f8] sm:$0xff]  ;;  %v2833_v21 = vpack.c.bf16 %v1266_v28, %v1258_v5  ;;  %v1265_v40 = vld [vmem:[%s3244_s9 + $0x1e0] sm:$0xff]  ;;  %v1259_v55 = vld [vmem:[%s3244_s9 + $0x1b0] sm:$0xff] }
 0x2b4   : > { %2840 = vmatpush1.bf16.msra.mxu1 %v2839_v63  ;;  %1436 = vmatprep.mubr.f32.mxu0 %v3013_v47  ;;  %v2849_v9 = vpack.c.bf16 %v1268_v56, %v1260_v15  ;;  %v1267_v52 = vld [vmem:[%s3244_s9 + $0x1f0] sm:$0xff]  ;;  %v3829_v54 = vld [vmem:[#allocation2 + $0x18] sm:$0xff]  ;;  %v2835_v53 = vpack.c.bf16 %v1265_v40, %v1257_v46  ;;  %v3845_v58 = vld [vmem:[#allocation2 + $0x28] sm:$0xff]  ;;  %v1273_v18 = vsub.s32 0, %v4056_v1  ;;  %v1277_v61 = vsub.s32 1, %v4056_v1 }
 0x2b5   : > { %1609 = vmatprep.mubr.f32.mxu1 %v3013_v47  ;;  %2826 = vmatprep.subr.bf16.mxu0 %v2825_v60  ;;  %v2851_v27 = vpack.c.bf16 %v1267_v52, %v1259_v55  ;;  %v3837_v3 = vld [vmem:[#allocation2 + $0x20] sm:$0xff]  ;;  %v3853_v59 = vld [vmem:[#allocation2 + $0x30] sm:$0xff]  ;;  %v3861_v39 = vld [vmem:[#allocation2 + $0x38] sm:$0xff]  ;;  %v1285_v35 = vsub.s32 3, %v4056_v1 }
 0x2b6   : > { %2644 = vmatmul.mubr.msk.f32.gmra.mrb[2].mxu0 %vm1311_vm2, %v3798_v48  ;;  %2842 = vmatprep.subr.bf16.mxu1 %v2841_v37  ;;  %v3869_v62 = vld [vmem:[#allocation2 + $0x40] sm:$0xff]  ;;  %v3877_v16 = vld [vmem:[#allocation2 + $0x48] sm:$0xff]  ;;  %v3885_v6 = vld [vmem:[#allocation2 + $0x50] sm:$0xff] }
 0x2b7   : > { %2662 = vmatmul.mubr.msk.f32.gmra.mrb[2].mxu1 %vm1311_vm2, %v3798_v48  ;;  %1442 = vmatprep.mubr.f32.mxu0 %v3013_v47  ;;  %v3893_v13 = vld [vmem:[#allocation2 + $0x58] sm:$0xff]  ;;  %v3901_v26 = vld [vmem:[#allocation2 + $0x60] sm:$0xff]  ;;  %v3909_v0 = vld [vmem:[#allocation2 + $0x68] sm:$0xff] }
 0x2b8   : > { %1615 = vmatprep.mubr.f32.mxu1 %v3013_v47  ;;  %2828 = vmatpush1.bf16.msra.mxu0 %v2827_v10  ;;  %v3917_v12 = vld [vmem:[#allocation2 + $0x70] sm:$0xff]  ;;  %v3925_v2 = vld [vmem:[#allocation2 + $0x78] sm:$0xff]  ;;  %v3933_v19 = vld [vmem:[#allocation2 + $0x80] sm:$0xff] }
 0x2b9   : > { %2844 = vmatpush1.bf16.msra.mxu1 %v2843_v7  ;;  %2830 = vmatprep.subr.bf16.mxu0 %v2829_v57  ;;  %v3941_v34 = vld [vmem:[#allocation2 + $0x88] sm:$0xff]  ;;  %v4064_v25 = vld [vmem:[%s473_s8] sm:$0xff] }
 0x2ba   : > { %2645 = vmatmul.mubr.msk.f32.gmra.mrb[4].mxu0 %vm1311_vm2, %v3815_v22  ;;  %2846 = vmatprep.subr.bf16.mxu1 %v2845_v45  ;;  %v4070_v8 = vrot.slane %v4064_v25, %v1273_v18  ;;  %v4076_v11 = vrot.slane %v4064_v25, %v1277_v61 }
 0x2bb   : > { %2663 = vmatmul.mubr.msk.f32.gmra.mrb[4].mxu1 %vm1311_vm2, %v3815_v22  ;;  %1448 = vmatprep.mubr.f32.mxu0 %v3013_v47 }
 0x2bc   : > { %1621 = vmatprep.mubr.f32.mxu1 %v3013_v47  ;;  %2832 = vmatpush1.bf16.msra.mxu0 %v2831_v33 }
 0x2bd   : > { %2848 = vmatpush1.bf16.msra.mxu1 %v2847_v49  ;;  %2834 = vmatprep.subr.bf16.mxu0 %v2833_v21 }
 0x2be   : > { %2646 = vmatmul.mubr.msk.f32.gmra.mrb[6].mxu0 %vm1311_vm2, %v3829_v54  ;;  %2850 = vmatprep.subr.bf16.mxu1 %v2849_v9 }
 0x2bf   : > { %2664 = vmatmul.mubr.msk.f32.gmra.mrb[6].mxu1 %vm1311_vm2, %v3829_v54  ;;  %1454 = vmatprep.mubr.f32.mxu0 %v3013_v47 }
 0x2c0   : > { %1627 = vmatprep.mubr.f32.mxu1 %v3013_v47  ;;  %2836 = vmatpush1.bf16.msra.mxu0 %v2835_v53 }
 0x2c1   : > { %2852 = vmatpush1.bf16.msra.mxu1 %v2851_v27 }
 0x2c2   : > { %2647 = vmatmul.mubr.msk.f32.gmra.mrb[8].mxu0 %vm1311_vm2, %v3837_v3 }
 0x2c3   : > { %2665 = vmatmul.mubr.msk.f32.gmra.mrb[8].mxu1 %vm1311_vm2, %v3837_v3  ;;  %1460 = vmatprep.mubr.f32.mxu0 %v3013_v47 }
 0x2c4   : > { %1633 = vmatprep.mubr.f32.mxu1 %v3013_v47 }
 0x2c6   : > { %2648 = vmatmul.mubr.msk.f32.gmra.mrb[10].mxu0 %vm1311_vm2, %v3845_v58 }
 0x2c7   : > { %2666 = vmatmul.mubr.msk.f32.gmra.mrb[10].mxu1 %vm1311_vm2, %v3845_v58  ;;  %1466 = vmatprep.mubr.f32.mxu0 %v3013_v47 }
 0x2c8   : > { %1639 = vmatprep.mubr.f32.mxu1 %v3013_v47 }
 0x2ca   : > { %2649 = vmatmul.mubr.msk.f32.gmra.mrb[12].mxu0 %vm1311_vm2, %v3853_v59 }
 0x2cb   : > { %2667 = vmatmul.mubr.msk.f32.gmra.mrb[12].mxu1 %vm1311_vm2, %v3853_v59  ;;  %1472 = vmatprep.mubr.f32.mxu0 %v3013_v47 }
 0x2cc   : > { %1645 = vmatprep.mubr.f32.mxu1 %v3013_v47 }
 0x2ce   : > { %2650 = vmatmul.mubr.msk.f32.gmra.mrb[14].mxu0 %vm1311_vm2, %v3861_v39 }
 0x2cf   : > { %2668 = vmatmul.mubr.msk.f32.gmra.mrb[14].mxu1 %vm1311_vm2, %v3861_v39  ;;  %1478 = vmatprep.mubr.f32.mxu0 %v3013_v47 }
 0x2d0   : > { %1651 = vmatprep.mubr.f32.mxu1 %v3013_v47 }
 0x2d2   : > { %2651 = vmatmul.mubr.msk.f32.gmra.mrb[16].mxu0 %vm1311_vm2, %v3869_v62 }
 0x2d3   : > { %2669 = vmatmul.mubr.msk.f32.gmra.mrb[16].mxu1 %vm1311_vm2, %v3869_v62  ;;  %1484 = vmatprep.mubr.f32.mxu0 %v3013_v47 }
 0x2d4   : > { %1657 = vmatprep.mubr.f32.mxu1 %v3013_v47 }
 0x2d6   : > { %2652 = vmatmul.mubr.msk.f32.gmra.mrb[18].mxu0 %vm1311_vm2, %v3877_v16 }
 0x2d7   : > { %2670 = vmatmul.mubr.msk.f32.gmra.mrb[18].mxu1 %vm1311_vm2, %v3877_v16  ;;  %1490 = vmatprep.mubr.f32.mxu0 %v3013_v47 }
 0x2d8   : > { %1663 = vmatprep.mubr.f32.mxu1 %v3013_v47 }
 0x2da   : > { %2653 = vmatmul.mubr.msk.f32.gmra.mrb[20].mxu0 %vm1311_vm2, %v3885_v6 }
 0x2db   : > { %2671 = vmatmul.mubr.msk.f32.gmra.mrb[20].mxu1 %vm1311_vm2, %v3885_v6  ;;  %1496 = vmatprep.mubr.f32.mxu0 %v3013_v47 }
 0x2dc   : > { %1669 = vmatprep.mubr.f32.mxu1 %v3013_v47 }
 0x2de   : > { %2654 = vmatmul.mubr.msk.f32.gmra.mrb[22].mxu0 %vm1311_vm2, %v3893_v13 }
 0x2df   : > { %2672 = vmatmul.mubr.msk.f32.gmra.mrb[22].mxu1 %vm1311_vm2, %v3893_v13  ;;  %1502 = vmatprep.mubr.f32.mxu0 %v3013_v47 }
 0x2e0   : > { %1675 = vmatprep.mubr.f32.mxu1 %v3013_v47 }
 0x2e2   : > { %2655 = vmatmul.mubr.msk.f32.gmra.mrb[24].mxu0 %vm1311_vm2, %v3901_v26 }
 0x2e3   : > { %2673 = vmatmul.mubr.msk.f32.gmra.mrb[24].mxu1 %vm1311_vm2, %v3901_v26  ;;  %1508 = vmatprep.mubr.f32.mxu0 %v3013_v47 }
 0x2e4   : > { %1681 = vmatprep.mubr.f32.mxu1 %v3013_v47 }
 0x2e6   : > { %2656 = vmatmul.mubr.msk.f32.gmra.mrb[26].mxu0 %vm1311_vm2, %v3909_v0 }
 0x2e7   : > { %2674 = vmatmul.mubr.msk.f32.gmra.mrb[26].mxu1 %vm1311_vm2, %v3909_v0  ;;  %1514 = vmatprep.mubr.f32.mxu0 %v3013_v47 }
 0x2e8   : > { %1687 = vmatprep.mubr.f32.mxu1 %v3013_v47 }
 0x2ea   : > { %2657 = vmatmul.mubr.msk.f32.gmra.mrb[28].mxu0 %vm1311_vm2, %v3917_v12 }
 0x2eb   : > { %2675 = vmatmul.mubr.msk.f32.gmra.mrb[28].mxu1 %vm1311_vm2, %v3917_v12  ;;  %1520 = vmatprep.mubr.f32.mxu0 %v3013_v47 }
 0x2ec   : > { %1693 = vmatprep.mubr.f32.mxu1 %v3013_v47 }
 0x2ee   : > { %2658 = vmatmul.mubr.msk.f32.gmra.mrb[30].mxu0 %vm1311_vm2, %v3925_v2 }
 0x2ef   : > { %2676 = vmatmul.mubr.msk.f32.gmra.mrb[30].mxu1 %vm1311_vm2, %v3925_v2  ;;  %1526 = vmatprep.mubr.f32.mxu0 %v3013_v47 }
 0x2f0   : > { %1699 = vmatprep.mubr.f32.mxu1 %v3013_v47 }
 0x2f2   : > { %2659 = vmatmul.mubr.msk.f32.gmra.mrb[32].mxu0 %vm1311_vm2, %v3933_v19 }
 0x2f3   : > { %2677 = vmatmul.mubr.msk.f32.gmra.mrb[32].mxu1 %vm1311_vm2, %v3933_v19  ;;  %1532 = vmatprep.mubr.f32.mxu0 %v3013_v47 }
 0x2f4   : > { %1705 = vmatprep.mubr.f32.mxu1 %v3013_v47 }
 0x2f6   : > { %2660 = vmatmul.mubr.msk.f32.gmra.mrb[34].mxu0 %vm1311_vm2, %v3941_v34 }
 0x2f7   : > { %2678 = vmatmul.mubr.msk.f32.gmra.mrb[34].mxu1 %vm1311_vm2, %v3941_v34  ;;  %1776 = vmatprep.mubr.f32.mxu0 %v3013_v47 }
 0x2f8   : > { %1949 = vmatprep.mubr.f32.mxu1 %v3013_v47 }
 0x2fa   : > { %2679 = vmatmul.mubr.msk.f32.vlgmr.msra.gmra.mrb[36].mxu0 %vm1311_vm2, %v3784_v20 }
 0x2fb   : > { %2697 = vmatmul.mubr.msk.f32.vlgmr.msra.gmra.mrb[36].mxu1 %vm1311_vm2, %v3784_v20  ;;  %1782 = vmatprep.mubr.f32.mxu0 %v3013_v47  ;;  %v4079_v20 = vrot.slane %v4064_v25, %v1285_v35 }
 0x2fc   : > { %1955 = vmatprep.mubr.f32.mxu1 %v3013_v47 }
 0x2fe   : > { %2680 = vmatmul.mubr.msk.f32.gmra.mrb[38].mxu0 %vm1311_vm2, %v3798_v48 }
 0x2ff   : > { %2698 = vmatmul.mubr.msk.f32.gmra.mrb[38].mxu1 %vm1311_vm2, %v3798_v48  ;;  %1788 = vmatprep.mubr.f32.mxu0 %v3013_v47 }
 0x300   : > { %1961 = vmatprep.mubr.f32.mxu1 %v3013_v47 }
 0x302   : > { %2681 = vmatmul.mubr.msk.f32.gmra.mrb[40].mxu0 %vm1311_vm2, %v3815_v22 }
 0x303   : > { %2699 = vmatmul.mubr.msk.f32.gmra.mrb[40].mxu1 %vm1311_vm2, %v3815_v22  ;;  %1794 = vmatprep.mubr.f32.mxu0 %v3013_v47 }
 0x304   : > { %1967 = vmatprep.mubr.f32.mxu1 %v3013_v47 }
 0x306   : > { %2682 = vmatmul.mubr.msk.f32.gmra.mrb[42].mxu0 %vm1311_vm2, %v3829_v54 }
 0x307   : > { %2700 = vmatmul.mubr.msk.f32.gmra.mrb[42].mxu1 %vm1311_vm2, %v3829_v54  ;;  %1800 = vmatprep.mubr.f32.mxu0 %v3013_v47 }
 0x308   : > { %1973 = vmatprep.mubr.f32.mxu1 %v3013_v47 }
 0x30a   : > { %2683 = vmatmul.mubr.msk.f32.gmra.mrb[44].mxu0 %vm1311_vm2, %v3837_v3 }
 0x30b   : > { %2701 = vmatmul.mubr.msk.f32.gmra.mrb[44].mxu1 %vm1311_vm2, %v3837_v3  ;;  %1806 = vmatprep.mubr.f32.mxu0 %v3013_v47 }
 0x30c   : > { %1979 = vmatprep.mubr.f32.mxu1 %v3013_v47 }
 0x30e   : > { %2684 = vmatmul.mubr.msk.f32.gmra.mrb[46].mxu0 %vm1311_vm2, %v3845_v58 }
 0x30f   : > { %2702 = vmatmul.mubr.msk.f32.gmra.mrb[46].mxu1 %vm1311_vm2, %v3845_v58  ;;  %1812 = vmatprep.mubr.f32.mxu0 %v3013_v47 }
 0x310   : > { %1985 = vmatprep.mubr.f32.mxu1 %v3013_v47 }
 0x312   : > { %2685 = vmatmul.mubr.msk.f32.gmra.mrb[48].mxu0 %vm1311_vm2, %v3853_v59 }
 0x313   : > { %2703 = vmatmul.mubr.msk.f32.gmra.mrb[48].mxu1 %vm1311_vm2, %v3853_v59  ;;  %1818 = vmatprep.mubr.f32.mxu0 %v3013_v47 }
 0x314   : > { %1991 = vmatprep.mubr.f32.mxu1 %v3013_v47 }
 0x316   : > { %2686 = vmatmul.mubr.msk.f32.gmra.mrb[50].mxu0 %vm1311_vm2, %v3861_v39 }
 0x317   : > { %2704 = vmatmul.mubr.msk.f32.gmra.mrb[50].mxu1 %vm1311_vm2, %v3861_v39  ;;  %1824 = vmatprep.mubr.f32.mxu0 %v3013_v47 }
 0x318   : > { %1997 = vmatprep.mubr.f32.mxu1 %v3013_v47 }
 0x31a   : > { %2687 = vmatmul.mubr.msk.f32.gmra.mrb[52].mxu0 %vm1311_vm2, %v3869_v62 }
 0x31b   : > { %2705 = vmatmul.mubr.msk.f32.gmra.mrb[52].mxu1 %vm1311_vm2, %v3869_v62  ;;  %1830 = vmatprep.mubr.f32.mxu0 %v3013_v47 }
 0x31c   : > { %2003 = vmatprep.mubr.f32.mxu1 %v3013_v47 }
 0x31e   : > { %2688 = vmatmul.mubr.msk.f32.gmra.mrb[54].mxu0 %vm1311_vm2, %v3877_v16 }
 0x31f   : > { %2706 = vmatmul.mubr.msk.f32.gmra.mrb[54].mxu1 %vm1311_vm2, %v3877_v16  ;;  %1836 = vmatprep.mubr.f32.mxu0 %v3013_v47 }
 0x320   : > { %2009 = vmatprep.mubr.f32.mxu1 %v3013_v47 }
 0x322   : > { %2689 = vmatmul.mubr.msk.f32.gmra.mrb[56].mxu0 %vm1311_vm2, %v3885_v6 }
 0x323   : > { %2707 = vmatmul.mubr.msk.f32.gmra.mrb[56].mxu1 %vm1311_vm2, %v3885_v6  ;;  %1842 = vmatprep.mubr.f32.mxu0 %v3013_v47 }
 0x324   : > { %2015 = vmatprep.mubr.f32.mxu1 %v3013_v47 }
 0x326   : > { %2690 = vmatmul.mubr.msk.f32.gmra.mrb[58].mxu0 %vm1311_vm2, %v3893_v13 }
 0x327   : > { %2708 = vmatmul.mubr.msk.f32.gmra.mrb[58].mxu1 %vm1311_vm2, %v3893_v13  ;;  %1848 = vmatprep.mubr.f32.mxu0 %v3013_v47 }
 0x328   : > { %2021 = vmatprep.mubr.f32.mxu1 %v3013_v47 }
 0x32a   : > { %2691 = vmatmul.mubr.msk.f32.gmra.mrb[60].mxu0 %vm1311_vm2, %v3901_v26 }
 0x32b   : > { %2709 = vmatmul.mubr.msk.f32.gmra.mrb[60].mxu1 %vm1311_vm2, %v3901_v26  ;;  %1854 = vmatprep.mubr.f32.mxu0 %v3013_v47 }
 0x32c   : > { %2027 = vmatprep.mubr.f32.mxu1 %v3013_v47 }
 0x32e   : > { %2692 = vmatmul.mubr.msk.f32.gmra.mrb[62].mxu0 %vm1311_vm2, %v3909_v0 }
 0x32f   : > { %2710 = vmatmul.mubr.msk.f32.gmra.mrb[62].mxu1 %vm1311_vm2, %v3909_v0  ;;  %1860 = vmatprep.mubr.f32.mxu0 %v3013_v47 }
 0x330   : > { %2033 = vmatprep.mubr.f32.mxu1 %v3013_v47 }
 0x332   : > { %2693 = vmatmul.mubr.msk.f32.gmra.mrb[64].mxu0 %vm1311_vm2, %v3917_v12 }
 0x333   : > { %2711 = vmatmul.mubr.msk.f32.gmra.mrb[64].mxu1 %vm1311_vm2, %v3917_v12  ;;  %1866 = vmatprep.mubr.f32.mxu0 %v3013_v47 }
 0x334   : > { %2039 = vmatprep.mubr.f32.mxu1 %v3013_v47 }
 0x336   : > { %2694 = vmatmul.mubr.msk.f32.gmra.mrb[66].mxu0 %vm1311_vm2, %v3925_v2 }
 0x337   : > { %2712 = vmatmul.mubr.msk.f32.gmra.mrb[66].mxu1 %vm1311_vm2, %v3925_v2  ;;  %1872 = vmatprep.mubr.f32.mxu0 %v3013_v47 }
 0x338   : > { %2045 = vmatprep.mubr.f32.mxu1 %v3013_v47 }
 0x33a   : > { %2695 = vmatmul.mubr.msk.f32.gmra.mrb[68].mxu0 %vm1311_vm2, %v3933_v19 }
 0x33b   : > { %2713 = vmatmul.mubr.msk.f32.gmra.mrb[68].mxu1 %vm1311_vm2, %v3933_v19  ;;  %1878 = vmatprep.mubr.f32.mxu0 %v3013_v47 }
 0x33c   : > { %2051 = vmatprep.mubr.f32.mxu1 %v3013_v47  ;;  %v1281_v47 = vsub.s32 2, %v4056_v1 }
 0x33e   : > { %2696 = vmatmul.mubr.msk.f32.gmra.mrb[70].mxu0 %vm1311_vm2, %v3941_v34  ;;  %v4073_v24 = vrot.slane %v4064_v25, %v1281_v47 }
 0x33f   : > { %2714 = vmatmul.mubr.msk.f32.gmra.mrb[70].mxu1 %vm1311_vm2, %v3941_v34 }
 0x385   : > { %v1432_v51 = vpop.f32.mrb[0].mxu0 }
 0x386   : > { %v1433_v36 = vadd.f32 %v1432_v51, %v4070_v8  ;;  %v1605_v50 = vpop.f32.mrb[0].mxu1  ;;  %v1434_v63 = vpop.f32.mrb[1].mxu0 }
 0x387   : > { %v1606_v60 = vadd.f32 %v1605_v50, %v4073_v24  ;;  %v1435_v14 = vadd.f32 %v1434_v63, %v4076_v11  ;;  %v1607_v32 = vpop.f32.mrb[1].mxu1 }
 0x388   : > { %2058 = vst [vmem:[%s3246_s12] sm:$0xff] %v1433_v36  ;;  %v1608_v17 = vadd.f32 %v1607_v32, %v4079_v20 }
 0x389   : > { %2060 = vst [vmem:[%s3246_s12 + $0x10] sm:$0xff] %v1606_v60  ;;  %2059 = vst [vmem:[%s3246_s12 + $0x8] sm:$0xff] %v1435_v14  ;;  %v1438_v37 = vpop.f32.mrb[2].mxu0 }
 0x38a   : > { %2061 = vst [vmem:[%s3246_s12 + $0x18] sm:$0xff] %v1608_v17  ;;  %v1439_v44 = vadd.f32 %v1438_v37, %v4070_v8  ;;  %v1611_v29 = vpop.f32.mrb[2].mxu1  ;;  %v1440_v30 = vpop.f32.mrb[3].mxu0 }
 0x38b   : > { %v1612_v48 = vadd.f32 %v1611_v29, %v4073_v24  ;;  %v1441_v41 = vadd.f32 %v1440_v30, %v4076_v11  ;;  %v1613_v31 = vpop.f32.mrb[3].mxu1 }
 0x38c   : > { %2066 = vst [vmem:[%s3246_s12 + $0x40] sm:$0xff] %v1439_v44  ;;  %v1614_v10 = vadd.f32 %v1613_v31, %v4079_v20 }
 0x38d   : > { %2068 = vst [vmem:[%s3246_s12 + $0x50] sm:$0xff] %v1612_v48  ;;  %2067 = vst [vmem:[%s3246_s12 + $0x48] sm:$0xff] %v1441_v41  ;;  %v1444_v7 = vpop.f32.mrb[4].mxu0 }
 0x38e   : > { %2069 = vst [vmem:[%s3246_s12 + $0x58] sm:$0xff] %v1614_v10  ;;  %v1445_v57 = vadd.f32 %v1444_v7, %v4070_v8  ;;  %v1617_v42 = vpop.f32.mrb[4].mxu1  ;;  %v1446_v43 = vpop.f32.mrb[5].mxu0 }
 0x38f   : > { %v1618_v38 = vadd.f32 %v1617_v42, %v4073_v24  ;;  %v1447_v45 = vadd.f32 %v1446_v43, %v4076_v11  ;;  %v1619_v23 = vpop.f32.mrb[5].mxu1 }
 0x390   : > { %2074 = vst [vmem:[%s3246_s12 + $0x80] sm:$0xff] %v1445_v57  ;;  %v1620_v5 = vadd.f32 %v1619_v23, %v4079_v20 }
 0x391   : > { %2076 = vst [vmem:[%s3246_s12 + $0x90] sm:$0xff] %v1618_v38  ;;  %2075 = vst [vmem:[%s3246_s12 + $0x88] sm:$0xff] %v1447_v45  ;;  %v1450_v28 = vpop.f32.mrb[6].mxu0 }
 0x392   : > { %2077 = vst [vmem:[%s3246_s12 + $0x98] sm:$0xff] %v1620_v5  ;;  %v1451_v22 = vadd.f32 %v1450_v28, %v4070_v8  ;;  %v1623_v15 = vpop.f32.mrb[6].mxu1  ;;  %v1452_v56 = vpop.f32.mrb[7].mxu0 }
 0x393   : > { %v1624_v33 = vadd.f32 %v1623_v15, %v4073_v24  ;;  %v1453_v49 = vadd.f32 %v1452_v56, %v4076_v11  ;;  %v1625_v21 = vpop.f32.mrb[7].mxu1 }
 0x394   : > { %2082 = vst [vmem:[%s3246_s12 + $0xc0] sm:$0xff] %v1451_v22  ;;  %v1626_v46 = vadd.f32 %v1625_v21, %v4079_v20 }
 0x395   : > { %2084 = vst [vmem:[%s3246_s12 + $0xd0] sm:$0xff] %v1624_v33  ;;  %2083 = vst [vmem:[%s3246_s12 + $0xc8] sm:$0xff] %v1453_v49  ;;  %v1456_v40 = vpop.f32.mrb[8].mxu0 }
 0x396   : > { %2085 = vst [vmem:[%s3246_s12 + $0xd8] sm:$0xff] %v1626_v46  ;;  %v1457_v9 = vadd.f32 %v1456_v40, %v4070_v8  ;;  %v1629_v55 = vpop.f32.mrb[8].mxu1  ;;  %v1458_v52 = vpop.f32.mrb[9].mxu0 }
 0x397   : > { %v1630_v54 = vadd.f32 %v1629_v55, %v4073_v24  ;;  %v1459_v53 = vadd.f32 %v1458_v52, %v4076_v11  ;;  %v1631_v27 = vpop.f32.mrb[9].mxu1 }
 0x398   : > { %2090 = vst [vmem:[%s3246_s12 + $0x100] sm:$0xff] %v1457_v9  ;;  %v1632_v3 = vadd.f32 %v1631_v27, %v4079_v20 }
 0x399   : > { %2092 = vst [vmem:[%s3246_s12 + $0x110] sm:$0xff] %v1630_v54  ;;  %2091 = vst [vmem:[%s3246_s12 + $0x108] sm:$0xff] %v1459_v53  ;;  %v1462_v58 = vpop.f32.mrb[10].mxu0 }
 0x39a   : > { %2093 = vst [vmem:[%s3246_s12 + $0x118] sm:$0xff] %v1632_v3  ;;  %v1463_v59 = vadd.f32 %v1462_v58, %v4070_v8  ;;  %v1635_v39 = vpop.f32.mrb[10].mxu1  ;;  %v1464_v62 = vpop.f32.mrb[11].mxu0 }
 0x39b   : > { %v1636_v16 = vadd.f32 %v1635_v39, %v4073_v24  ;;  %v1465_v6 = vadd.f32 %v1464_v62, %v4076_v11  ;;  %v1637_v13 = vpop.f32.mrb[11].mxu1 }
 0x39c   : > { %2098 = vst [vmem:[%s3246_s12 + $0x140] sm:$0xff] %v1463_v59  ;;  %v1638_v26 = vadd.f32 %v1637_v13, %v4079_v20 }
 0x39d   : > { %2100 = vst [vmem:[%s3246_s12 + $0x150] sm:$0xff] %v1636_v16  ;;  %2099 = vst [vmem:[%s3246_s12 + $0x148] sm:$0xff] %v1465_v6  ;;  %v1468_v0 = vpop.f32.mrb[12].mxu0 }
 0x39e   : > { %2101 = vst [vmem:[%s3246_s12 + $0x158] sm:$0xff] %v1638_v26  ;;  %v1469_v12 = vadd.f32 %v1468_v0, %v4070_v8  ;;  %v1641_v2 = vpop.f32.mrb[12].mxu1  ;;  %v1470_v19 = vpop.f32.mrb[13].mxu0 }
 0x39f   : > { %v1642_v34 = vadd.f32 %v1641_v2, %v4073_v24  ;;  %v1471_v4 = vadd.f32 %v1470_v19, %v4076_v11  ;;  %v1643_v18 = vpop.f32.mrb[13].mxu1 }
 0x3a0   : > { %2106 = vst [vmem:[%s3246_s12 + $0x180] sm:$0xff] %v1469_v12  ;;  %v1644_v47 = vadd.f32 %v1643_v18, %v4079_v20 }
 0x3a1   : > { %2108 = vst [vmem:[%s3246_s12 + $0x190] sm:$0xff] %v1642_v34  ;;  %2107 = vst [vmem:[%s3246_s12 + $0x188] sm:$0xff] %v1471_v4  ;;  %v1474_v61 = vpop.f32.mrb[14].mxu0 }
 0x3a2   : > { %2109 = vst [vmem:[%s3246_s12 + $0x198] sm:$0xff] %v1644_v47  ;;  %v1475_v35 = vadd.f32 %v1474_v61, %v4070_v8  ;;  %v1647_v51 = vpop.f32.mrb[14].mxu1  ;;  %v1476_v36 = vpop.f32.mrb[15].mxu0 }
 0x3a3   : > { %v1648_v50 = vadd.f32 %v1647_v51, %v4073_v24  ;;  %v1477_v63 = vadd.f32 %v1476_v36, %v4076_v11  ;;  %v1649_v60 = vpop.f32.mrb[15].mxu1 }
 0x3a4   : > { %2114 = vst [vmem:[%s3246_s12 + $0x1c0] sm:$0xff] %v1475_v35  ;;  %v1650_v14 = vadd.f32 %v1649_v60, %v4079_v20 }
 0x3a5   : > { %2116 = vst [vmem:[%s3246_s12 + $0x1d0] sm:$0xff] %v1648_v50  ;;  %2115 = vst [vmem:[%s3246_s12 + $0x1c8] sm:$0xff] %v1477_v63  ;;  %v1480_v32 = vpop.f32.mrb[16].mxu0 }
 0x3a6   : > { %2117 = vst [vmem:[%s3246_s12 + $0x1d8] sm:$0xff] %v1650_v14  ;;  %v1481_v17 = vadd.f32 %v1480_v32, %v4070_v8  ;;  %v1653_v37 = vpop.f32.mrb[16].mxu1  ;;  %v1482_v44 = vpop.f32.mrb[17].mxu0 }
 0x3a7   : > { %v1654_v29 = vadd.f32 %v1653_v37, %v4073_v24  ;;  %v1483_v30 = vadd.f32 %v1482_v44, %v4076_v11  ;;  %v1655_v48 = vpop.f32.mrb[17].mxu1 }
 0x3a8   : > { %2122 = vst [vmem:[%s3246_s12 + $0x200] sm:$0xff] %v1481_v17  ;;  %v1656_v41 = vadd.f32 %v1655_v48, %v4079_v20 }
 0x3a9   : > { %2124 = vst [vmem:[%s3246_s12 + $0x210] sm:$0xff] %v1654_v29  ;;  %2123 = vst [vmem:[%s3246_s12 + $0x208] sm:$0xff] %v1483_v30  ;;  %v1486_v31 = vpop.f32.mrb[18].mxu0 }
 0x3aa   : > { %2125 = vst [vmem:[%s3246_s12 + $0x218] sm:$0xff] %v1656_v41  ;;  %v1487_v10 = vadd.f32 %v1486_v31, %v4070_v8  ;;  %v1659_v7 = vpop.f32.mrb[18].mxu1  ;;  %v1488_v57 = vpop.f32.mrb[19].mxu0 }
 0x3ab   : > { %v1660_v42 = vadd.f32 %v1659_v7, %v4073_v24  ;;  %v1489_v43 = vadd.f32 %v1488_v57, %v4076_v11  ;;  %v1661_v38 = vpop.f32.mrb[19].mxu1  ;;  %v1289_v7 = vsub.s32 4, %v4056_v1 }
 0x3ac   : > { %2130 = vst [vmem:[%s3246_s12 + $0x240] sm:$0xff] %v1487_v10  ;;  %v1662_v45 = vadd.f32 %v1661_v38, %v4079_v20  ;;  %v1297_v38 = vsub.s32 6, %v4056_v1 }
 0x3ad   : > { %2132 = vst [vmem:[%s3246_s12 + $0x250] sm:$0xff] %v1660_v42  ;;  %2131 = vst [vmem:[%s3246_s12 + $0x248] sm:$0xff] %v1489_v43  ;;  %v1492_v23 = vpop.f32.mrb[20].mxu0 }
 0x3ae   : > { %2133 = vst [vmem:[%s3246_s12 + $0x258] sm:$0xff] %v1662_v45  ;;  %v1493_v5 = vadd.f32 %v1492_v23, %v4070_v8  ;;  %v1665_v28 = vpop.f32.mrb[20].mxu1  ;;  %v1494_v22 = vpop.f32.mrb[21].mxu0  ;;  %v1293_v45 = vsub.s32 5, %v4056_v1 }
 0x3af   : > { %v1666_v15 = vadd.f32 %v1665_v28, %v4073_v24  ;;  %v1495_v56 = vadd.f32 %v1494_v22, %v4076_v11  ;;  %v1667_v33 = vpop.f32.mrb[21].mxu1 }
 0x3b0   : > { %2138 = vst [vmem:[%s3246_s12 + $0x280] sm:$0xff] %v1493_v5  ;;  %v1668_v49 = vadd.f32 %v1667_v33, %v4079_v20  ;;  %v1301_v5 = vsub.s32 7, %v4056_v1  ;;  %v4223_v33 = vrot.slane %v4064_v25, %v1289_v7  ;;  %v4228_v1 = vrot.slane %v4064_v25, %v1297_v38 }
 0x3b1   : > { %2140 = vst [vmem:[%s3246_s12 + $0x290] sm:$0xff] %v1666_v15  ;;  %2139 = vst [vmem:[%s3246_s12 + $0x288] sm:$0xff] %v1495_v56  ;;  %v1498_v21 = vpop.f32.mrb[22].mxu0 }
 0x3b2   : > { %2141 = vst [vmem:[%s3246_s12 + $0x298] sm:$0xff] %v1668_v49  ;;  %v1499_v46 = vadd.f32 %v1498_v21, %v4070_v8  ;;  %v1671_v40 = vpop.f32.mrb[22].mxu1  ;;  %v1500_v9 = vpop.f32.mrb[23].mxu0 }
 0x3b3   : > { %v1672_v55 = vadd.f32 %v1671_v40, %v4073_v24  ;;  %v1501_v52 = vadd.f32 %v1500_v9, %v4076_v11  ;;  %v1673_v54 = vpop.f32.mrb[23].mxu1  ;;  %v4231_v40 = vrot.slane %v4064_v25, %v1293_v45  ;;  %v4236_v9 = vrot.slane %v4064_v25, %v1301_v5 }
 0x3b4   : > { %2146 = vst [vmem:[%s3246_s12 + $0x2c0] sm:$0xff] %v1499_v46  ;;  %v1674_v53 = vadd.f32 %v1673_v54, %v4079_v20 }
 0x3b5   : > { %2148 = vst [vmem:[%s3246_s12 + $0x2d0] sm:$0xff] %v1672_v55  ;;  %2147 = vst [vmem:[%s3246_s12 + $0x2c8] sm:$0xff] %v1501_v52  ;;  %v1504_v27 = vpop.f32.mrb[24].mxu0 }
 0x3b6   : > { %2149 = vst [vmem:[%s3246_s12 + $0x2d8] sm:$0xff] %v1674_v53  ;;  %v1505_v3 = vadd.f32 %v1504_v27, %v4070_v8  ;;  %v1677_v58 = vpop.f32.mrb[24].mxu1  ;;  %v1506_v59 = vpop.f32.mrb[25].mxu0 }
 0x3b7   : > { %v1678_v39 = vadd.f32 %v1677_v58, %v4073_v24  ;;  %v1507_v62 = vadd.f32 %v1506_v59, %v4076_v11  ;;  %v1679_v16 = vpop.f32.mrb[25].mxu1 }
 0x3b8   : > { %2154 = vst [vmem:[%s3246_s12 + $0x300] sm:$0xff] %v1505_v3  ;;  %v1680_v6 = vadd.f32 %v1679_v16, %v4079_v20 }
 0x3b9   : > { %2156 = vst [vmem:[%s3246_s12 + $0x310] sm:$0xff] %v1678_v39  ;;  %2155 = vst [vmem:[%s3246_s12 + $0x308] sm:$0xff] %v1507_v62  ;;  %v1510_v13 = vpop.f32.mrb[26].mxu0 }
 0x3ba   : > { %2157 = vst [vmem:[%s3246_s12 + $0x318] sm:$0xff] %v1680_v6  ;;  %v1511_v26 = vadd.f32 %v1510_v13, %v4070_v8  ;;  %v1683_v0 = vpop.f32.mrb[26].mxu1  ;;  %v1512_v12 = vpop.f32.mrb[27].mxu0 }
 0x3bb   : > { %v1684_v2 = vadd.f32 %v1683_v0, %v4073_v24  ;;  %v1513_v19 = vadd.f32 %v1512_v12, %v4076_v11  ;;  %v1685_v34 = vpop.f32.mrb[27].mxu1 }
 0x3bc   : > { %2162 = vst [vmem:[%s3246_s12 + $0x340] sm:$0xff] %v1511_v26  ;;  %v1686_v4 = vadd.f32 %v1685_v34, %v4079_v20 }
 0x3bd   : > { %2164 = vst [vmem:[%s3246_s12 + $0x350] sm:$0xff] %v1684_v2  ;;  %2163 = vst [vmem:[%s3246_s12 + $0x348] sm:$0xff] %v1513_v19  ;;  %v1516_v18 = vpop.f32.mrb[28].mxu0 }
 0x3be   : > { %2165 = vst [vmem:[%s3246_s12 + $0x358] sm:$0xff] %v1686_v4  ;;  %v1517_v47 = vadd.f32 %v1516_v18, %v4070_v8  ;;  %v1689_v61 = vpop.f32.mrb[28].mxu1  ;;  %v1518_v35 = vpop.f32.mrb[29].mxu0 }
 0x3bf   : > { %v1690_v51 = vadd.f32 %v1689_v61, %v4073_v24  ;;  %v1519_v36 = vadd.f32 %v1518_v35, %v4076_v11  ;;  %v1691_v50 = vpop.f32.mrb[29].mxu1 }
 0x3c0   : > { %2170 = vst [vmem:[%s3246_s12 + $0x380] sm:$0xff] %v1517_v47  ;;  %v1692_v63 = vadd.f32 %v1691_v50, %v4079_v20 }
 0x3c1   : > { %2172 = vst [vmem:[%s3246_s12 + $0x390] sm:$0xff] %v1690_v51  ;;  %2171 = vst [vmem:[%s3246_s12 + $0x388] sm:$0xff] %v1519_v36  ;;  %v1522_v60 = vpop.f32.mrb[30].mxu0 }
 0x3c2   : > { %2173 = vst [vmem:[%s3246_s12 + $0x398] sm:$0xff] %v1692_v63  ;;  %v1523_v14 = vadd.f32 %v1522_v60, %v4070_v8  ;;  %v1695_v32 = vpop.f32.mrb[30].mxu1  ;;  %v1524_v17 = vpop.f32.mrb[31].mxu0 }
 0x3c3   : > { %v1696_v37 = vadd.f32 %v1695_v32, %v4073_v24  ;;  %v1525_v44 = vadd.f32 %v1524_v17, %v4076_v11  ;;  %v1697_v29 = vpop.f32.mrb[31].mxu1 }
 0x3c4   : > { %2178 = vst [vmem:[%s3246_s12 + $0x3c0] sm:$0xff] %v1523_v14  ;;  %v1698_v30 = vadd.f32 %v1697_v29, %v4079_v20 }
 0x3c5   : > { %2180 = vst [vmem:[%s3246_s12 + $0x3d0] sm:$0xff] %v1696_v37  ;;  %2179 = vst [vmem:[%s3246_s12 + $0x3c8] sm:$0xff] %v1525_v44  ;;  %v1528_v48 = vpop.f32.mrb[32].mxu0 }
 0x3c6   : > { %2181 = vst [vmem:[%s3246_s12 + $0x3d8] sm:$0xff] %v1698_v30  ;;  %v1529_v41 = vadd.f32 %v1528_v48, %v4070_v8  ;;  %v1701_v31 = vpop.f32.mrb[32].mxu1  ;;  %v1530_v10 = vpop.f32.mrb[33].mxu0 }
 0x3c7   : > { %v1702_v57 = vadd.f32 %v1701_v31, %v4073_v24  ;;  %v1531_v42 = vadd.f32 %v1530_v10, %v4076_v11  ;;  %v1703_v43 = vpop.f32.mrb[33].mxu1 }
 0x3c8   : > { %2186 = vst [vmem:[%s3246_s12 + $0x400] sm:$0xff] %v1529_v41  ;;  %v1704_v23 = vadd.f32 %v1703_v43, %v4079_v20 }
 0x3c9   : > { %2188 = vst [vmem:[%s3246_s12 + $0x410] sm:$0xff] %v1702_v57  ;;  %2187 = vst [vmem:[%s3246_s12 + $0x408] sm:$0xff] %v1531_v42  ;;  %v1534_v28 = vpop.f32.mrb[34].mxu0 }
 0x3ca   : > { %2189 = vst [vmem:[%s3246_s12 + $0x418] sm:$0xff] %v1704_v23  ;;  %v1535_v22 = vadd.f32 %v1534_v28, %v4070_v8  ;;  %v1707_v15 = vpop.f32.mrb[34].mxu1  ;;  %v1536_v56 = vpop.f32.mrb[35].mxu0 }
 0x3cb   : > { %v1708_v49 = vadd.f32 %v1707_v15, %v4073_v24  ;;  %v1537_v21 = vadd.f32 %v1536_v56, %v4076_v11  ;;  %v1709_v46 = vpop.f32.mrb[35].mxu1 }
 0x3cc   : > { %2194 = vst [vmem:[%s3246_s12 + $0x440] sm:$0xff] %v1535_v22  ;;  %v1710_v8 = vadd.f32 %v1709_v46, %v4079_v20 }
 0x3cd   : > { %2196 = vst [vmem:[%s3246_s12 + $0x450] sm:$0xff] %v1708_v49  ;;  %2195 = vst [vmem:[%s3246_s12 + $0x448] sm:$0xff] %v1537_v21  ;;  %v1778_v24 = vpop.f32.mrb[36].mxu0 }
 0x3ce   : > { %2197 = vst [vmem:[%s3246_s12 + $0x458] sm:$0xff] %v1710_v8  ;;  %v1779_v11 = vadd.f32 %v1778_v24, %v4223_v33  ;;  %v1951_v55 = vpop.f32.mrb[36].mxu1  ;;  %v1780_v52 = vpop.f32.mrb[37].mxu0 }
 0x3cf   : > { %v1952_v54 = vadd.f32 %v1951_v55, %v4228_v1  ;;  %v1781_v53 = vadd.f32 %v1780_v52, %v4231_v40  ;;  %v1953_v27 = vpop.f32.mrb[37].mxu1 }
 0x3d0   : > { %2062 = vst [vmem:[%s3246_s12 + $0x20] sm:$0xff] %v1779_v11  ;;  %v1954_v25 = vadd.f32 %v1953_v27, %v4236_v9 }
 0x3d1   : > { %2064 = vst [vmem:[%s3246_s12 + $0x30] sm:$0xff] %v1952_v54  ;;  %2063 = vst [vmem:[%s3246_s12 + $0x28] sm:$0xff] %v1781_v53  ;;  %v1784_v20 = vpop.f32.mrb[38].mxu0 }
 0x3d2   : > { %2065 = vst [vmem:[%s3246_s12 + $0x38] sm:$0xff] %v1954_v25  ;;  %v1785_v3 = vadd.f32 %v1784_v20, %v4223_v33  ;;  %v1957_v58 = vpop.f32.mrb[38].mxu1  ;;  %v1786_v59 = vpop.f32.mrb[39].mxu0 }
 0x3d3   : > { %v1958_v39 = vadd.f32 %v1957_v58, %v4228_v1  ;;  %v1787_v62 = vadd.f32 %v1786_v59, %v4231_v40  ;;  %v1959_v16 = vpop.f32.mrb[39].mxu1 }
 0x3d4   : > { %2070 = vst [vmem:[%s3246_s12 + $0x60] sm:$0xff] %v1785_v3  ;;  %v1960_v6 = vadd.f32 %v1959_v16, %v4236_v9 }
 0x3d5   : > { %2072 = vst [vmem:[%s3246_s12 + $0x70] sm:$0xff] %v1958_v39  ;;  %2071 = vst [vmem:[%s3246_s12 + $0x68] sm:$0xff] %v1787_v62  ;;  %v1790_v13 = vpop.f32.mrb[40].mxu0 }
 0x3d6   : > { %2073 = vst [vmem:[%s3246_s12 + $0x78] sm:$0xff] %v1960_v6  ;;  %v1791_v26 = vadd.f32 %v1790_v13, %v4223_v33  ;;  %v1963_v0 = vpop.f32.mrb[40].mxu1  ;;  %v1792_v12 = vpop.f32.mrb[41].mxu0 }
 0x3d7   : > { %v1964_v2 = vadd.f32 %v1963_v0, %v4228_v1  ;;  %v1793_v19 = vadd.f32 %v1792_v12, %v4231_v40  ;;  %v1965_v34 = vpop.f32.mrb[41].mxu1 }
 0x3d8   : > { %2078 = vst [vmem:[%s3246_s12 + $0xa0] sm:$0xff] %v1791_v26  ;;  %v1966_v4 = vadd.f32 %v1965_v34, %v4236_v9 }
 0x3d9   : > { %2080 = vst [vmem:[%s3246_s12 + $0xb0] sm:$0xff] %v1964_v2  ;;  %2079 = vst [vmem:[%s3246_s12 + $0xa8] sm:$0xff] %v1793_v19  ;;  %v1796_v18 = vpop.f32.mrb[42].mxu0 }
 0x3da   : > { %2081 = vst [vmem:[%s3246_s12 + $0xb8] sm:$0xff] %v1966_v4  ;;  %v1797_v47 = vadd.f32 %v1796_v18, %v4223_v33  ;;  %v1969_v61 = vpop.f32.mrb[42].mxu1  ;;  %v1798_v35 = vpop.f32.mrb[43].mxu0 }
 0x3db   : > { %v1970_v51 = vadd.f32 %v1969_v61, %v4228_v1  ;;  %v1799_v36 = vadd.f32 %v1798_v35, %v4231_v40  ;;  %v1971_v50 = vpop.f32.mrb[43].mxu1 }
 0x3dc   : > { %2086 = vst [vmem:[%s3246_s12 + $0xe0] sm:$0xff] %v1797_v47  ;;  %v1972_v63 = vadd.f32 %v1971_v50, %v4236_v9 }
 0x3dd   : > { %2088 = vst [vmem:[%s3246_s12 + $0xf0] sm:$0xff] %v1970_v51  ;;  %2087 = vst [vmem:[%s3246_s12 + $0xe8] sm:$0xff] %v1799_v36  ;;  %v1802_v60 = vpop.f32.mrb[44].mxu0 }
 0x3de   : > { %2089 = vst [vmem:[%s3246_s12 + $0xf8] sm:$0xff] %v1972_v63  ;;  %v1803_v14 = vadd.f32 %v1802_v60, %v4223_v33  ;;  %v1975_v32 = vpop.f32.mrb[44].mxu1  ;;  %v1804_v17 = vpop.f32.mrb[45].mxu0 }
 0x3df   : > { %v1976_v37 = vadd.f32 %v1975_v32, %v4228_v1  ;;  %v1805_v44 = vadd.f32 %v1804_v17, %v4231_v40  ;;  %v1977_v29 = vpop.f32.mrb[45].mxu1 }
 0x3e0   : > { %2094 = vst [vmem:[%s3246_s12 + $0x120] sm:$0xff] %v1803_v14  ;;  %v1978_v30 = vadd.f32 %v1977_v29, %v4236_v9 }
 0x3e1   : > { %2096 = vst [vmem:[%s3246_s12 + $0x130] sm:$0xff] %v1976_v37  ;;  %2095 = vst [vmem:[%s3246_s12 + $0x128] sm:$0xff] %v1805_v44  ;;  %v1808_v48 = vpop.f32.mrb[46].mxu0 }
 0x3e2   : > { %2097 = vst [vmem:[%s3246_s12 + $0x138] sm:$0xff] %v1978_v30  ;;  %v1809_v41 = vadd.f32 %v1808_v48, %v4223_v33  ;;  %v1981_v31 = vpop.f32.mrb[46].mxu1  ;;  %v1810_v10 = vpop.f32.mrb[47].mxu0 }
 0x3e3   : > { %v1982_v7 = vadd.f32 %v1981_v31, %v4228_v1  ;;  %v1811_v57 = vadd.f32 %v1810_v10, %v4231_v40  ;;  %v1983_v42 = vpop.f32.mrb[47].mxu1 }
 0x3e4   : > { %2102 = vst [vmem:[%s3246_s12 + $0x160] sm:$0xff] %v1809_v41  ;;  %v1984_v43 = vadd.f32 %v1983_v42, %v4236_v9 }
 0x3e5   : > { %2104 = vst [vmem:[%s3246_s12 + $0x170] sm:$0xff] %v1982_v7  ;;  %2103 = vst [vmem:[%s3246_s12 + $0x168] sm:$0xff] %v1811_v57  ;;  %v1814_v38 = vpop.f32.mrb[48].mxu0 }
 0x3e6   : > { %2105 = vst [vmem:[%s3246_s12 + $0x178] sm:$0xff] %v1984_v43  ;;  %v1815_v45 = vadd.f32 %v1814_v38, %v4223_v33  ;;  %v1987_v23 = vpop.f32.mrb[48].mxu1  ;;  %v1816_v5 = vpop.f32.mrb[49].mxu0 }
 0x3e7   : > { %v1988_v28 = vadd.f32 %v1987_v23, %v4228_v1  ;;  %v1817_v22 = vadd.f32 %v1816_v5, %v4231_v40  ;;  %v1989_v15 = vpop.f32.mrb[49].mxu1 }
 0x3e8   : > { %2110 = vst [vmem:[%s3246_s12 + $0x1a0] sm:$0xff] %v1815_v45  ;;  %v1990_v56 = vadd.f32 %v1989_v15, %v4236_v9 }
 0x3e9   : > { %2112 = vst [vmem:[%s3246_s12 + $0x1b0] sm:$0xff] %v1988_v28  ;;  %2111 = vst [vmem:[%s3246_s12 + $0x1a8] sm:$0xff] %v1817_v22  ;;  %v1820_v49 = vpop.f32.mrb[50].mxu0 }
 0x3ea   : > { %2113 = vst [vmem:[%s3246_s12 + $0x1b8] sm:$0xff] %v1990_v56  ;;  %v1821_v21 = vadd.f32 %v1820_v49, %v4223_v33  ;;  %v1993_v46 = vpop.f32.mrb[50].mxu1  ;;  %v1822_v8 = vpop.f32.mrb[51].mxu0 }
 0x3eb   : > { %v1994_v24 = vadd.f32 %v1993_v46, %v4228_v1  ;;  %v1823_v11 = vadd.f32 %v1822_v8, %v4231_v40  ;;  %v1995_v55 = vpop.f32.mrb[51].mxu1 }
 0x3ec   : > { %2118 = vst [vmem:[%s3246_s12 + $0x1e0] sm:$0xff] %v1821_v21  ;;  %v1996_v52 = vadd.f32 %v1995_v55, %v4236_v9 }
 0x3ed   : > { %2120 = vst [vmem:[%s3246_s12 + $0x1f0] sm:$0xff] %v1994_v24  ;;  %2119 = vst [vmem:[%s3246_s12 + $0x1e8] sm:$0xff] %v1823_v11  ;;  %v1826_v54 = vpop.f32.mrb[52].mxu0 }
 0x3ee   : > { %2121 = vst [vmem:[%s3246_s12 + $0x1f8] sm:$0xff] %v1996_v52  ;;  %v1827_v53 = vadd.f32 %v1826_v54, %v4223_v33  ;;  %v1999_v27 = vpop.f32.mrb[52].mxu1  ;;  %v1828_v25 = vpop.f32.mrb[53].mxu0 }
 0x3ef   : > { %v2000_v20 = vadd.f32 %v1999_v27, %v4228_v1  ;;  %v1829_v3 = vadd.f32 %v1828_v25, %v4231_v40  ;;  %v2001_v58 = vpop.f32.mrb[53].mxu1 }
 0x3f0   : > { %2126 = vst [vmem:[%s3246_s12 + $0x220] sm:$0xff] %v1827_v53  ;;  %v2002_v59 = vadd.f32 %v2001_v58, %v4236_v9 }
 0x3f1   : > { %2128 = vst [vmem:[%s3246_s12 + $0x230] sm:$0xff] %v2000_v20  ;;  %2127 = vst [vmem:[%s3246_s12 + $0x228] sm:$0xff] %v1829_v3  ;;  %v1832_v39 = vpop.f32.mrb[54].mxu0 }
 0x3f2   : > { %2129 = vst [vmem:[%s3246_s12 + $0x238] sm:$0xff] %v2002_v59  ;;  %v1833_v62 = vadd.f32 %v1832_v39, %v4223_v33  ;;  %v2005_v16 = vpop.f32.mrb[54].mxu1  ;;  %v1834_v6 = vpop.f32.mrb[55].mxu0 }
 0x3f3   : > { %v2006_v13 = vadd.f32 %v2005_v16, %v4228_v1  ;;  %v1835_v26 = vadd.f32 %v1834_v6, %v4231_v40  ;;  %v2007_v0 = vpop.f32.mrb[55].mxu1 }
 0x3f4   : > { %2134 = vst [vmem:[%s3246_s12 + $0x260] sm:$0xff] %v1833_v62  ;;  %v2008_v12 = vadd.f32 %v2007_v0, %v4236_v9 }
 0x3f5   : > { %2136 = vst [vmem:[%s3246_s12 + $0x270] sm:$0xff] %v2006_v13  ;;  %2135 = vst [vmem:[%s3246_s12 + $0x268] sm:$0xff] %v1835_v26  ;;  %v1838_v2 = vpop.f32.mrb[56].mxu0 }
 0x3f6   : > { %2137 = vst [vmem:[%s3246_s12 + $0x278] sm:$0xff] %v2008_v12  ;;  %v1839_v19 = vadd.f32 %v1838_v2, %v4223_v33  ;;  %v2011_v34 = vpop.f32.mrb[56].mxu1  ;;  %v1840_v4 = vpop.f32.mrb[57].mxu0 }
 0x3f7   : > { %v2012_v18 = vadd.f32 %v2011_v34, %v4228_v1  ;;  %v1841_v47 = vadd.f32 %v1840_v4, %v4231_v40  ;;  %v2013_v61 = vpop.f32.mrb[57].mxu1 }
 0x3f8   : > { %2142 = vst [vmem:[%s3246_s12 + $0x2a0] sm:$0xff] %v1839_v19  ;;  %v2014_v35 = vadd.f32 %v2013_v61, %v4236_v9  ;;  %v2239_v61 = vld [vmem:[%s3246_s12 + $0x30] sm:$0xff] (%p3089_p6) }
 0x3f9   : > { %2144 = vst [vmem:[%s3246_s12 + $0x2b0] sm:$0xff] %v2012_v18  ;;  %2143 = vst [vmem:[%s3246_s12 + $0x2a8] sm:$0xff] %v1841_v47  ;;  %v1844_v51 = vpop.f32.mrb[58].mxu0  ;;  %v2235_v18 = vld [vmem:[%s3246_s12 + $0x20] sm:$0xff] (%p3089_p6)  ;;  %v2237_v47 = vld [vmem:[%s3246_s12 + $0x28] sm:$0xff] (%p3089_p6) }
 0x3fa   : > { %2145 = vst [vmem:[%s3246_s12 + $0x2b8] sm:$0xff] %v2014_v35  ;;  %v1845_v36 = vadd.f32 %v1844_v51, %v4223_v33  ;;  %v2017_v50 = vpop.f32.mrb[58].mxu1  ;;  %v1846_v63 = vpop.f32.mrb[59].mxu0  ;;  %2236 = vst [vmem:[%s4394_s18 + $0x20] sm:$0xff] (%p3089_p6), %v2235_v18  ;;  %v2241_v35 = vld [vmem:[%s3246_s12 + $0x38] sm:$0xff] (%p3089_p6)  ;;  %v2243_v51 = vld [vmem:[%s3246_s12 + $0x40] sm:$0xff] (%p3089_p6) }
 0x3fb   : > { %v2018_v60 = vadd.f32 %v2017_v50, %v4228_v1  ;;  %v1847_v14 = vadd.f32 %v1846_v63, %v4231_v40  ;;  %v2019_v32 = vpop.f32.mrb[59].mxu1  ;;  %2238 = vst [vmem:[%s4394_s18 + $0x28] sm:$0xff] (%p3089_p6), %v2237_v47  ;;  %2240 = vst [vmem:[%s4394_s18 + $0x30] sm:$0xff] (%p3089_p6), %v2239_v61  ;;  %v2247_v50 = vld [vmem:[%s3246_s12 + $0x50] sm:$0xff] (%p3089_p6)  ;;  %v2249_v63 = vld [vmem:[%s3246_s12 + $0x58] sm:$0xff] (%p3089_p6) }
 0x3fc   : > { %2150 = vst [vmem:[%s3246_s12 + $0x2e0] sm:$0xff] %v1845_v36  ;;  %v2020_v17 = vadd.f32 %v2019_v32, %v4236_v9  ;;  %2242 = vst [vmem:[%s4394_s18 + $0x38] sm:$0xff] (%p3089_p6), %v2241_v35  ;;  %v2245_v36 = vld [vmem:[%s3246_s12 + $0x48] sm:$0xff] (%p3089_p6)  ;;  %v2255_v32 = vld [vmem:[%s3246_s12 + $0x70] sm:$0xff] (%p3089_p6) }
 0x3fd   : > { %2152 = vst [vmem:[%s3246_s12 + $0x2f0] sm:$0xff] %v2018_v60  ;;  %2151 = vst [vmem:[%s3246_s12 + $0x2e8] sm:$0xff] %v1847_v14  ;;  %v1850_v37 = vpop.f32.mrb[60].mxu0  ;;  %v2251_v60 = vld [vmem:[%s3246_s12 + $0x60] sm:$0xff] (%p3089_p6)  ;;  %v2253_v14 = vld [vmem:[%s3246_s12 + $0x68] sm:$0xff] (%p3089_p6) }
 0x3fe   : > { %2153 = vst [vmem:[%s3246_s12 + $0x2f8] sm:$0xff] %v2020_v17  ;;  %v1851_v44 = vadd.f32 %v1850_v37, %v4223_v33  ;;  %v2023_v29 = vpop.f32.mrb[60].mxu1  ;;  %v1852_v30 = vpop.f32.mrb[61].mxu0  ;;  %2244 = vst [vmem:[%s4394_s18 + $0x100] sm:$0xff] (%p3089_p6), %v2243_v51  ;;  %v2257_v17 = vld [vmem:[%s3246_s12 + $0x78] sm:$0xff] (%p3089_p6)  ;;  %v2259_v37 = vld [vmem:[%s3246_s12 + $0x80] sm:$0xff] (%p3089_p6) }
 0x3ff   : > { %v2024_v48 = vadd.f32 %v2023_v29, %v4228_v1  ;;  %v1853_v41 = vadd.f32 %v1852_v30, %v4231_v40  ;;  %v2025_v31 = vpop.f32.mrb[61].mxu1  ;;  %2246 = vst [vmem:[%s4394_s18 + $0x108] sm:$0xff] (%p3089_p6), %v2245_v36  ;;  %2248 = vst [vmem:[%s4394_s18 + $0x110] sm:$0xff] (%p3089_p6), %v2247_v50  ;;  %v2263_v29 = vld [vmem:[%s3246_s12 + $0x90] sm:$0xff] (%p3089_p6)  ;;  %v2265_v30 = vld [vmem:[%s3246_s12 + $0x98] sm:$0xff] (%p3089_p6) }
 0x400   : > { %2158 = vst [vmem:[%s3246_s12 + $0x320] sm:$0xff] %v1851_v44  ;;  %v2026_v10 = vadd.f32 %v2025_v31, %v4236_v9  ;;  %2250 = vst [vmem:[%s4394_s18 + $0x118] sm:$0xff] (%p3089_p6), %v2249_v63  ;;  %v2261_v44 = vld [vmem:[%s3246_s12 + $0x88] sm:$0xff] (%p3089_p6)  ;;  %v2271_v31 = vld [vmem:[%s3246_s12 + $0xb0] sm:$0xff] (%p3089_p6) }
 0x401   : > { %2160 = vst [vmem:[%s3246_s12 + $0x330] sm:$0xff] %v2024_v48  ;;  %2159 = vst [vmem:[%s3246_s12 + $0x328] sm:$0xff] %v1853_v41  ;;  %v1856_v7 = vpop.f32.mrb[62].mxu0  ;;  %v2267_v48 = vld [vmem:[%s3246_s12 + $0xa0] sm:$0xff] (%p3089_p6)  ;;  %v2269_v41 = vld [vmem:[%s3246_s12 + $0xa8] sm:$0xff] (%p3089_p6) }
 0x402   : > { %2161 = vst [vmem:[%s3246_s12 + $0x338] sm:$0xff] %v2026_v10  ;;  %v1857_v57 = vadd.f32 %v1856_v7, %v4223_v33  ;;  %v2029_v42 = vpop.f32.mrb[62].mxu1  ;;  %v1858_v43 = vpop.f32.mrb[63].mxu0  ;;  %2252 = vst [vmem:[%s4394_s18 + $0x120] sm:$0xff] (%p3089_p6), %v2251_v60  ;;  %v2273_v10 = vld [vmem:[%s3246_s12 + $0xb8] sm:$0xff] (%p3089_p6)  ;;  %v2275_v7 = vld [vmem:[%s3246_s12 + $0xc0] sm:$0xff] (%p3089_p6) }
 0x403   : > { %v2030_v38 = vadd.f32 %v2029_v42, %v4228_v1  ;;  %v1859_v45 = vadd.f32 %v1858_v43, %v4231_v40  ;;  %v2031_v23 = vpop.f32.mrb[63].mxu1  ;;  %2254 = vst [vmem:[%s4394_s18 + $0x128] sm:$0xff] (%p3089_p6), %v2253_v14  ;;  %2256 = vst [vmem:[%s4394_s18 + $0x130] sm:$0xff] (%p3089_p6), %v2255_v32  ;;  %v2279_v42 = vld [vmem:[%s3246_s12 + $0xd0] sm:$0xff] (%p3089_p6)  ;;  %v2281_v43 = vld [vmem:[%s3246_s12 + $0xd8] sm:$0xff] (%p3089_p6) }
 0x404   : > { %2166 = vst [vmem:[%s3246_s12 + $0x360] sm:$0xff] %v1857_v57  ;;  %v2032_v5 = vadd.f32 %v2031_v23, %v4236_v9  ;;  %2258 = vst [vmem:[%s4394_s18 + $0x138] sm:$0xff] (%p3089_p6), %v2257_v17  ;;  %v2277_v57 = vld [vmem:[%s3246_s12 + $0xc8] sm:$0xff] (%p3089_p6)  ;;  %v2287_v23 = vld [vmem:[%s3246_s12 + $0xf0] sm:$0xff] (%p3089_p6) }
 0x405   : > { %2168 = vst [vmem:[%s3246_s12 + $0x370] sm:$0xff] %v2030_v38  ;;  %2167 = vst [vmem:[%s3246_s12 + $0x368] sm:$0xff] %v1859_v45  ;;  %v1862_v28 = vpop.f32.mrb[64].mxu0  ;;  %v2283_v38 = vld [vmem:[%s3246_s12 + $0xe0] sm:$0xff] (%p3089_p6)  ;;  %v2285_v45 = vld [vmem:[%s3246_s12 + $0xe8] sm:$0xff] (%p3089_p6) }
 0x406   : > { %2169 = vst [vmem:[%s3246_s12 + $0x378] sm:$0xff] %v2032_v5  ;;  %v1863_v22 = vadd.f32 %v1862_v28, %v4223_v33  ;;  %v2035_v15 = vpop.f32.mrb[64].mxu1  ;;  %v1864_v56 = vpop.f32.mrb[65].mxu0  ;;  %2260 = vst [vmem:[%s4394_s18 + $0x200] sm:$0xff] (%p3089_p6), %v2259_v37  ;;  %v2289_v5 = vld [vmem:[%s3246_s12 + $0xf8] sm:$0xff] (%p3089_p6)  ;;  %v2291_v28 = vld [vmem:[%s3246_s12 + $0x100] sm:$0xff] (%p3089_p6) }
 0x407   : > { %v2036_v49 = vadd.f32 %v2035_v15, %v4228_v1  ;;  %v1865_v21 = vadd.f32 %v1864_v56, %v4231_v40  ;;  %v2037_v46 = vpop.f32.mrb[65].mxu1  ;;  %2262 = vst [vmem:[%s4394_s18 + $0x208] sm:$0xff] (%p3089_p6), %v2261_v44  ;;  %2264 = vst [vmem:[%s4394_s18 + $0x210] sm:$0xff] (%p3089_p6), %v2263_v29  ;;  %v2295_v15 = vld [vmem:[%s3246_s12 + $0x110] sm:$0xff] (%p3089_p6)  ;;  %v2297_v56 = vld [vmem:[%s3246_s12 + $0x118] sm:$0xff] (%p3089_p6) }
 0x408   : > { %2174 = vst [vmem:[%s3246_s12 + $0x3a0] sm:$0xff] %v1863_v22  ;;  %v2038_v8 = vadd.f32 %v2037_v46, %v4236_v9  ;;  %2266 = vst [vmem:[%s4394_s18 + $0x218] sm:$0xff] (%p3089_p6), %v2265_v30  ;;  %v2293_v22 = vld [vmem:[%s3246_s12 + $0x108] sm:$0xff] (%p3089_p6)  ;;  %v2303_v46 = vld [vmem:[%s3246_s12 + $0x130] sm:$0xff] (%p3089_p6) }
 0x409   : > { %2176 = vst [vmem:[%s3246_s12 + $0x3b0] sm:$0xff] %v2036_v49  ;;  %2175 = vst [vmem:[%s3246_s12 + $0x3a8] sm:$0xff] %v1865_v21  ;;  %v1868_v24 = vpop.f32.mrb[66].mxu0  ;;  %v2299_v49 = vld [vmem:[%s3246_s12 + $0x120] sm:$0xff] (%p3089_p6)  ;;  %v2301_v21 = vld [vmem:[%s3246_s12 + $0x128] sm:$0xff] (%p3089_p6) }
 0x40a   : > { %2177 = vst [vmem:[%s3246_s12 + $0x3b8] sm:$0xff] %v2038_v8  ;;  %v1869_v11 = vadd.f32 %v1868_v24, %v4223_v33  ;;  %v2041_v55 = vpop.f32.mrb[66].mxu1  ;;  %v1870_v52 = vpop.f32.mrb[67].mxu0  ;;  %2268 = vst [vmem:[%s4394_s18 + $0x220] sm:$0xff] (%p3089_p6), %v2267_v48  ;;  %v2305_v8 = vld [vmem:[%s3246_s12 + $0x138] sm:$0xff] (%p3089_p6)  ;;  %v2307_v24 = vld [vmem:[%s3246_s12 + $0x140] sm:$0xff] (%p3089_p6) }
 0x40b   : > { %v2042_v54 = vadd.f32 %v2041_v55, %v4228_v1  ;;  %v1871_v53 = vadd.f32 %v1870_v52, %v4231_v40  ;;  %v2043_v27 = vpop.f32.mrb[67].mxu1  ;;  %2270 = vst [vmem:[%s4394_s18 + $0x228] sm:$0xff] (%p3089_p6), %v2269_v41  ;;  %2272 = vst [vmem:[%s4394_s18 + $0x230] sm:$0xff] (%p3089_p6), %v2271_v31  ;;  %v2311_v55 = vld [vmem:[%s3246_s12 + $0x150] sm:$0xff] (%p3089_p6)  ;;  %v2313_v52 = vld [vmem:[%s3246_s12 + $0x158] sm:$0xff] (%p3089_p6) }
 0x40c   : > { %2182 = vst [vmem:[%s3246_s12 + $0x3e0] sm:$0xff] %v1869_v11  ;;  %v2044_v25 = vadd.f32 %v2043_v27, %v4236_v9  ;;  %2274 = vst [vmem:[%s4394_s18 + $0x238] sm:$0xff] (%p3089_p6), %v2273_v10  ;;  %v2309_v11 = vld [vmem:[%s3246_s12 + $0x148] sm:$0xff] (%p3089_p6)  ;;  %v2319_v27 = vld [vmem:[%s3246_s12 + $0x170] sm:$0xff] (%p3089_p6) }
 0x40d   : > { %2184 = vst [vmem:[%s3246_s12 + $0x3f0] sm:$0xff] %v2042_v54  ;;  %2183 = vst [vmem:[%s3246_s12 + $0x3e8] sm:$0xff] %v1871_v53  ;;  %v1874_v20 = vpop.f32.mrb[68].mxu0  ;;  %v2315_v54 = vld [vmem:[%s3246_s12 + $0x160] sm:$0xff] (%p3089_p6)  ;;  %v2317_v53 = vld [vmem:[%s3246_s12 + $0x168] sm:$0xff] (%p3089_p6) }
 0x40e   : > { %2185 = vst [vmem:[%s3246_s12 + $0x3f8] sm:$0xff] %v2044_v25  ;;  %v1875_v3 = vadd.f32 %v1874_v20, %v4223_v33  ;;  %v2047_v58 = vpop.f32.mrb[68].mxu1  ;;  %v1876_v59 = vpop.f32.mrb[69].mxu0  ;;  %2276 = vst [vmem:[%s4394_s18 + $0x300] sm:$0xff] (%p3089_p6), %v2275_v7  ;;  %v2321_v25 = vld [vmem:[%s3246_s12 + $0x178] sm:$0xff] (%p3089_p6)  ;;  %v2323_v20 = vld [vmem:[%s3246_s12 + $0x180] sm:$0xff] (%p3089_p6) }
 0x40f   : > { %v2048_v39 = vadd.f32 %v2047_v58, %v4228_v1  ;;  %v1877_v62 = vadd.f32 %v1876_v59, %v4231_v40  ;;  %v2049_v16 = vpop.f32.mrb[69].mxu1  ;;  %2278 = vst [vmem:[%s4394_s18 + $0x308] sm:$0xff] (%p3089_p6), %v2277_v57  ;;  %2280 = vst [vmem:[%s4394_s18 + $0x310] sm:$0xff] (%p3089_p6), %v2279_v42  ;;  %v2327_v58 = vld [vmem:[%s3246_s12 + $0x190] sm:$0xff] (%p3089_p6)  ;;  %v2329_v59 = vld [vmem:[%s3246_s12 + $0x198] sm:$0xff] (%p3089_p6) }
 0x410   : > { %2190 = vst [vmem:[%s3246_s12 + $0x420] sm:$0xff] %v1875_v3  ;;  %v2050_v6 = vadd.f32 %v2049_v16, %v4236_v9  ;;  %2208 = sbr.rel (!%p3089_p6) target bundleno = 1105 (0x451), region = 79  ;;  %2282 = vst [vmem:[%s4394_s18 + $0x318] sm:$0xff] (%p3089_p6), %v2281_v43  ;;  %v2325_v3 = vld [vmem:[%s3246_s12 + $0x188] sm:$0xff] (%p3089_p6)  ;;  %v2335_v16 = vld [vmem:[%s3246_s12 + $0x1b0] sm:$0xff] (%p3089_p6) }
 0x411   : > { %2192 = vst [vmem:[%s3246_s12 + $0x430] sm:$0xff] %v2048_v39  ;;  %2191 = vst [vmem:[%s3246_s12 + $0x428] sm:$0xff] %v1877_v62  ;;  %v1880_v13 = vpop.f32.mrb[70].mxu0  ;;  %v2331_v39 = vld [vmem:[%s3246_s12 + $0x1a0] sm:$0xff] (%p3089_p6)  ;;  %v2333_v62 = vld [vmem:[%s3246_s12 + $0x1a8] sm:$0xff] (%p3089_p6) }
 0x412   : > { %2193 = vst [vmem:[%s3246_s12 + $0x438] sm:$0xff] %v2050_v6  ;;  %v1881_v26 = vadd.f32 %v1880_v13, %v4223_v33  ;;  %v2053_v0 = vpop.f32.mrb[70].mxu1  ;;  %v1882_v12 = vpop.f32.mrb[71].mxu0  ;;  %v2227_v33 = vld [vmem:[%s3246_s12] sm:$0xff] (%p3089_p6)  ;;  %2284 = vst [vmem:[%s4394_s18 + $0x320] sm:$0xff] (%p3089_p6), %v2283_v38  ;;  %v2337_v6 = vld [vmem:[%s3246_s12 + $0x1b8] sm:$0xff] (%p3089_p6) }
 0x413   : > { %v2054_v2 = vadd.f32 %v2053_v0, %v4228_v1  ;;  %v1883_v19 = vadd.f32 %v1882_v12, %v4231_v40  ;;  %v2055_v34 = vpop.f32.mrb[71].mxu1  ;;  %v2229_v1 = vld [vmem:[%s3246_s12 + $0x8] sm:$0xff] (%p3089_p6)  ;;  %v2231_v40 = vld [vmem:[%s3246_s12 + $0x10] sm:$0xff] (%p3089_p6)  ;;  %2228 = vst [vmem:[%s4394_s18] sm:$0xff] (%p3089_p6), %v2227_v33  ;;  %2286 = vst [vmem:[%s4394_s18 + $0x328] sm:$0xff] (%p3089_p6), %v2285_v45 }
 0x414   : > { %2198 = vst [vmem:[%s3246_s12 + $0x460] sm:$0xff] %v1881_v26  ;;  %v2056_v4 = vadd.f32 %v2055_v34, %v4236_v9  ;;  %v2233_v9 = vld [vmem:[%s3246_s12 + $0x18] sm:$0xff] (%p3089_p6)  ;;  %2230 = vst [vmem:[%s4394_s18 + $0x8] sm:$0xff] (%p3089_p6), %v2229_v1  ;;  %v2339_v13 = vld [vmem:[%s3246_s12 + $0x1c0] sm:$0xff] (%p3089_p6) }
 0x415   : > { %2200 = vst [vmem:[%s3246_s12 + $0x470] sm:$0xff] %v2054_v2  ;;  %2199 = vst [vmem:[%s3246_s12 + $0x468] sm:$0xff] %v1883_v19  ;;  %v2341_v26 = vld [vmem:[%s3246_s12 + $0x1c8] sm:$0xff] (%p3089_p6)  ;;  %v2343_v0 = vld [vmem:[%s3246_s12 + $0x1d0] sm:$0xff] (%p3089_p6) }
 0x416   : > { %2201 = vst [vmem:[%s3246_s12 + $0x478] sm:$0xff] %v2056_v4  ;;  %2232 = vst [vmem:[%s4394_s18 + $0x10] sm:$0xff] (%p3089_p6), %v2231_v40  ;;  %v2345_v12 = vld [vmem:[%s3246_s12 + $0x1d8] sm:$0xff] (%p3089_p6)  ;;  %v2347_v2 = vld [vmem:[%s3246_s12 + $0x1e0] sm:$0xff] (%p3089_p6) }
 0x417   : > { %2234 = vst [vmem:[%s4394_s18 + $0x18] sm:$0xff] %v2233_v9  ;;  %2288 = vst [vmem:[%s4394_s18 + $0x330] sm:$0xff] %v2287_v23  ;;  %v2349_v19 = vld [vmem:[%s3246_s12 + $0x1e8] sm:$0xff]  ;;  %v2351_v34 = vld [vmem:[%s3246_s12 + $0x1f0] sm:$0xff] }
 0x418   : > { %2290 = vst [vmem:[%s4394_s18 + $0x338] sm:$0xff] %v2289_v5  ;;  %2292 = vst [vmem:[%s4394_s18 + $0x400] sm:$0xff] %v2291_v28  ;;  %v2353_v4 = vld [vmem:[%s3246_s12 + $0x1f8] sm:$0xff]  ;;  %v2355_v33 = vld [vmem:[%s3246_s12 + $0x200] sm:$0xff] }
 0x419   : > { %2294 = vst [vmem:[%s4394_s18 + $0x408] sm:$0xff] %v2293_v22  ;;  %2296 = vst [vmem:[%s4394_s18 + $0x410] sm:$0xff] %v2295_v15  ;;  %v2357_v1 = vld [vmem:[%s3246_s12 + $0x208] sm:$0xff]  ;;  %v2359_v40 = vld [vmem:[%s3246_s12 + $0x210] sm:$0xff] }
 0x41a   : > { %2298 = vst [vmem:[%s4394_s18 + $0x418] sm:$0xff] %v2297_v56  ;;  %2300 = vst [vmem:[%s4394_s18 + $0x420] sm:$0xff] %v2299_v49  ;;  %v2361_v9 = vld [vmem:[%s3246_s12 + $0x218] sm:$0xff]  ;;  %v2363_v18 = vld [vmem:[%s3246_s12 + $0x220] sm:$0xff] }
 0x41b   : > { %2302 = vst [vmem:[%s4394_s18 + $0x428] sm:$0xff] %v2301_v21  ;;  %2304 = vst [vmem:[%s4394_s18 + $0x430] sm:$0xff] %v2303_v46  ;;  %v2365_v47 = vld [vmem:[%s3246_s12 + $0x228] sm:$0xff]  ;;  %v2367_v61 = vld [vmem:[%s3246_s12 + $0x230] sm:$0xff] }
 0x41c   : > { %2306 = vst [vmem:[%s4394_s18 + $0x438] sm:$0xff] %v2305_v8  ;;  %2308 = vst [vmem:[%s4394_s18 + $0x500] sm:$0xff] %v2307_v24  ;;  %v2369_v35 = vld [vmem:[%s3246_s12 + $0x238] sm:$0xff]  ;;  %v2371_v51 = vld [vmem:[%s3246_s12 + $0x240] sm:$0xff] }
 0x41d   : > { %2310 = vst [vmem:[%s4394_s18 + $0x508] sm:$0xff] %v2309_v11  ;;  %2312 = vst [vmem:[%s4394_s18 + $0x510] sm:$0xff] %v2311_v55  ;;  %v2373_v36 = vld [vmem:[%s3246_s12 + $0x248] sm:$0xff]  ;;  %v2375_v50 = vld [vmem:[%s3246_s12 + $0x250] sm:$0xff] }
 0x41e   : > { %2314 = vst [vmem:[%s4394_s18 + $0x518] sm:$0xff] %v2313_v52  ;;  %2316 = vst [vmem:[%s4394_s18 + $0x520] sm:$0xff] %v2315_v54  ;;  %v2377_v63 = vld [vmem:[%s3246_s12 + $0x258] sm:$0xff]  ;;  %v2379_v60 = vld [vmem:[%s3246_s12 + $0x260] sm:$0xff] }
 0x41f   : > { %2318 = vst [vmem:[%s4394_s18 + $0x528] sm:$0xff] %v2317_v53  ;;  %2320 = vst [vmem:[%s4394_s18 + $0x530] sm:$0xff] %v2319_v27  ;;  %v2381_v14 = vld [vmem:[%s3246_s12 + $0x268] sm:$0xff]  ;;  %v2383_v32 = vld [vmem:[%s3246_s12 + $0x270] sm:$0xff] }
 0x420   : > { %2322 = vst [vmem:[%s4394_s18 + $0x538] sm:$0xff] %v2321_v25  ;;  %2324 = vst [vmem:[%s4394_s18 + $0x600] sm:$0xff] %v2323_v20  ;;  %v2385_v17 = vld [vmem:[%s3246_s12 + $0x278] sm:$0xff]  ;;  %v2387_v37 = vld [vmem:[%s3246_s12 + $0x280] sm:$0xff] }
 0x421   : > { %2326 = vst [vmem:[%s4394_s18 + $0x608] sm:$0xff] %v2325_v3  ;;  %2328 = vst [vmem:[%s4394_s18 + $0x610] sm:$0xff] %v2327_v58  ;;  %v2389_v44 = vld [vmem:[%s3246_s12 + $0x288] sm:$0xff]  ;;  %v2391_v29 = vld [vmem:[%s3246_s12 + $0x290] sm:$0xff] }
 0x422   : > { %2330 = vst [vmem:[%s4394_s18 + $0x618] sm:$0xff] %v2329_v59  ;;  %2332 = vst [vmem:[%s4394_s18 + $0x620] sm:$0xff] %v2331_v39  ;;  %v2393_v30 = vld [vmem:[%s3246_s12 + $0x298] sm:$0xff]  ;;  %v2395_v48 = vld [vmem:[%s3246_s12 + $0x2a0] sm:$0xff] }
 0x423   : > { %2334 = vst [vmem:[%s4394_s18 + $0x628] sm:$0xff] %v2333_v62  ;;  %2336 = vst [vmem:[%s4394_s18 + $0x630] sm:$0xff] %v2335_v16  ;;  %v2397_v41 = vld [vmem:[%s3246_s12 + $0x2a8] sm:$0xff]  ;;  %v2399_v31 = vld [vmem:[%s3246_s12 + $0x2b0] sm:$0xff] }
 0x424   : > { %2338 = vst [vmem:[%s4394_s18 + $0x638] sm:$0xff] %v2337_v6  ;;  %2340 = vst [vmem:[%s4394_s18 + $0x700] sm:$0xff] %v2339_v13  ;;  %v2401_v10 = vld [vmem:[%s3246_s12 + $0x2b8] sm:$0xff]  ;;  %v2403_v7 = vld [vmem:[%s3246_s12 + $0x2c0] sm:$0xff] }
 0x425   : > { %2342 = vst [vmem:[%s4394_s18 + $0x708] sm:$0xff] %v2341_v26  ;;  %2344 = vst [vmem:[%s4394_s18 + $0x710] sm:$0xff] %v2343_v0  ;;  %v2405_v57 = vld [vmem:[%s3246_s12 + $0x2c8] sm:$0xff]  ;;  %v2407_v42 = vld [vmem:[%s3246_s12 + $0x2d0] sm:$0xff] }
 0x426   : > { %2346 = vst [vmem:[%s4394_s18 + $0x718] sm:$0xff] %v2345_v12  ;;  %2348 = vst [vmem:[%s4394_s18 + $0x720] sm:$0xff] %v2347_v2  ;;  %v2409_v43 = vld [vmem:[%s3246_s12 + $0x2d8] sm:$0xff]  ;;  %v2411_v38 = vld [vmem:[%s3246_s12 + $0x2e0] sm:$0xff] }
 0x427   : > { %2350 = vst [vmem:[%s4394_s18 + $0x728] sm:$0xff] %v2349_v19  ;;  %2352 = vst [vmem:[%s4394_s18 + $0x730] sm:$0xff] %v2351_v34  ;;  %v2413_v45 = vld [vmem:[%s3246_s12 + $0x2e8] sm:$0xff]  ;;  %v2415_v23 = vld [vmem:[%s3246_s12 + $0x2f0] sm:$0xff] }
 0x428   : > { %2354 = vst [vmem:[%s4394_s18 + $0x738] sm:$0xff] %v2353_v4  ;;  %2356 = vst [vmem:[%s4394_s18 + $0x800] sm:$0xff] %v2355_v33  ;;  %v2417_v5 = vld [vmem:[%s3246_s12 + $0x2f8] sm:$0xff]  ;;  %v2419_v28 = vld [vmem:[%s3246_s12 + $0x300] sm:$0xff] }
 0x429   : > { %2358 = vst [vmem:[%s4394_s18 + $0x808] sm:$0xff] %v2357_v1  ;;  %2360 = vst [vmem:[%s4394_s18 + $0x810] sm:$0xff] %v2359_v40  ;;  %v2421_v22 = vld [vmem:[%s3246_s12 + $0x308] sm:$0xff]  ;;  %v2423_v15 = vld [vmem:[%s3246_s12 + $0x310] sm:$0xff] }
 0x42a   : > { %2362 = vst [vmem:[%s4394_s18 + $0x818] sm:$0xff] %v2361_v9  ;;  %2364 = vst [vmem:[%s4394_s18 + $0x820] sm:$0xff] %v2363_v18  ;;  %v2425_v56 = vld [vmem:[%s3246_s12 + $0x318] sm:$0xff]  ;;  %v2427_v49 = vld [vmem:[%s3246_s12 + $0x320] sm:$0xff] }
 0x42b   : > { %2366 = vst [vmem:[%s4394_s18 + $0x828] sm:$0xff] %v2365_v47  ;;  %2368 = vst [vmem:[%s4394_s18 + $0x830] sm:$0xff] %v2367_v61  ;;  %v2429_v21 = vld [vmem:[%s3246_s12 + $0x328] sm:$0xff]  ;;  %v2431_v46 = vld [vmem:[%s3246_s12 + $0x330] sm:$0xff] }
 0x42c   : > { %2370 = vst [vmem:[%s4394_s18 + $0x838] sm:$0xff] %v2369_v35  ;;  %2372 = vst [vmem:[%s4394_s18 + $0x900] sm:$0xff] %v2371_v51  ;;  %v2433_v8 = vld [vmem:[%s3246_s12 + $0x338] sm:$0xff]  ;;  %v2435_v24 = vld [vmem:[%s3246_s12 + $0x340] sm:$0xff] }
 0x42d   : > { %2374 = vst [vmem:[%s4394_s18 + $0x908] sm:$0xff] %v2373_v36  ;;  %2376 = vst [vmem:[%s4394_s18 + $0x910] sm:$0xff] %v2375_v50  ;;  %v2437_v11 = vld [vmem:[%s3246_s12 + $0x348] sm:$0xff]  ;;  %v2439_v55 = vld [vmem:[%s3246_s12 + $0x350] sm:$0xff] }
 0x42e   : > { %2378 = vst [vmem:[%s4394_s18 + $0x918] sm:$0xff] %v2377_v63  ;;  %2380 = vst [vmem:[%s4394_s18 + $0x920] sm:$0xff] %v2379_v60  ;;  %v2441_v52 = vld [vmem:[%s3246_s12 + $0x358] sm:$0xff]  ;;  %v2443_v54 = vld [vmem:[%s3246_s12 + $0x360] sm:$0xff] }
 0x42f   : > { %2382 = vst [vmem:[%s4394_s18 + $0x928] sm:$0xff] %v2381_v14  ;;  %2384 = vst [vmem:[%s4394_s18 + $0x930] sm:$0xff] %v2383_v32  ;;  %v2445_v53 = vld [vmem:[%s3246_s12 + $0x368] sm:$0xff]  ;;  %v2447_v27 = vld [vmem:[%s3246_s12 + $0x370] sm:$0xff] }
 0x430   : > { %2386 = vst [vmem:[%s4394_s18 + $0x938] sm:$0xff] %v2385_v17  ;;  %2388 = vst [vmem:[%s4394_s18 + $0xa00] sm:$0xff] %v2387_v37  ;;  %v2449_v25 = vld [vmem:[%s3246_s12 + $0x378] sm:$0xff]  ;;  %v2451_v20 = vld [vmem:[%s3246_s12 + $0x380] sm:$0xff] }
 0x431   : > { %2390 = vst [vmem:[%s4394_s18 + $0xa08] sm:$0xff] %v2389_v44  ;;  %2392 = vst [vmem:[%s4394_s18 + $0xa10] sm:$0xff] %v2391_v29  ;;  %v2453_v3 = vld [vmem:[%s3246_s12 + $0x388] sm:$0xff]  ;;  %v2455_v58 = vld [vmem:[%s3246_s12 + $0x390] sm:$0xff] }
 0x432   : > { %2394 = vst [vmem:[%s4394_s18 + $0xa18] sm:$0xff] %v2393_v30  ;;  %2396 = vst [vmem:[%s4394_s18 + $0xa20] sm:$0xff] %v2395_v48  ;;  %v2457_v59 = vld [vmem:[%s3246_s12 + $0x398] sm:$0xff]  ;;  %v2459_v39 = vld [vmem:[%s3246_s12 + $0x3a0] sm:$0xff] }
 0x433   : > { %2398 = vst [vmem:[%s4394_s18 + $0xa28] sm:$0xff] %v2397_v41  ;;  %2400 = vst [vmem:[%s4394_s18 + $0xa30] sm:$0xff] %v2399_v31  ;;  %v2461_v62 = vld [vmem:[%s3246_s12 + $0x3a8] sm:$0xff]  ;;  %v2463_v16 = vld [vmem:[%s3246_s12 + $0x3b0] sm:$0xff] }
 0x434   : > { %2402 = vst [vmem:[%s4394_s18 + $0xa38] sm:$0xff] %v2401_v10  ;;  %2404 = vst [vmem:[%s4394_s18 + $0xb00] sm:$0xff] %v2403_v7  ;;  %v2465_v6 = vld [vmem:[%s3246_s12 + $0x3b8] sm:$0xff]  ;;  %v2467_v13 = vld [vmem:[%s3246_s12 + $0x3c0] sm:$0xff] }
 0x435   : > { %2406 = vst [vmem:[%s4394_s18 + $0xb08] sm:$0xff] %v2405_v57  ;;  %2408 = vst [vmem:[%s4394_s18 + $0xb10] sm:$0xff] %v2407_v42  ;;  %v2469_v26 = vld [vmem:[%s3246_s12 + $0x3c8] sm:$0xff]  ;;  %v2471_v0 = vld [vmem:[%s3246_s12 + $0x3d0] sm:$0xff] }
 0x436   : > { %2410 = vst [vmem:[%s4394_s18 + $0xb18] sm:$0xff] %v2409_v43  ;;  %2412 = vst [vmem:[%s4394_s18 + $0xb20] sm:$0xff] %v2411_v38  ;;  %v2473_v12 = vld [vmem:[%s3246_s12 + $0x3d8] sm:$0xff]  ;;  %v2475_v2 = vld [vmem:[%s3246_s12 + $0x3e0] sm:$0xff] }
 0x437   : > { %2414 = vst [vmem:[%s4394_s18 + $0xb28] sm:$0xff] %v2413_v45  ;;  %2416 = vst [vmem:[%s4394_s18 + $0xb30] sm:$0xff] %v2415_v23  ;;  %v2477_v19 = vld [vmem:[%s3246_s12 + $0x3e8] sm:$0xff]  ;;  %v2479_v34 = vld [vmem:[%s3246_s12 + $0x3f0] sm:$0xff] }
 0x438   : > { %2418 = vst [vmem:[%s4394_s18 + $0xb38] sm:$0xff] %v2417_v5  ;;  %2420 = vst [vmem:[%s4394_s18 + $0xc00] sm:$0xff] %v2419_v28  ;;  %v2481_v4 = vld [vmem:[%s3246_s12 + $0x3f8] sm:$0xff]  ;;  %v2483_v33 = vld [vmem:[%s3246_s12 + $0x400] sm:$0xff] }
 0x439   : > { %2422 = vst [vmem:[%s4394_s18 + $0xc08] sm:$0xff] %v2421_v22  ;;  %2424 = vst [vmem:[%s4394_s18 + $0xc10] sm:$0xff] %v2423_v15  ;;  %v2485_v1 = vld [vmem:[%s3246_s12 + $0x408] sm:$0xff]  ;;  %v2487_v40 = vld [vmem:[%s3246_s12 + $0x410] sm:$0xff] }
 0x43a   : > { %2426 = vst [vmem:[%s4394_s18 + $0xc18] sm:$0xff] %v2425_v56  ;;  %2428 = vst [vmem:[%s4394_s18 + $0xc20] sm:$0xff] %v2427_v49  ;;  %v2489_v9 = vld [vmem:[%s3246_s12 + $0x418] sm:$0xff]  ;;  %v2491_v18 = vld [vmem:[%s3246_s12 + $0x420] sm:$0xff] }
 0x43b   : > { %2430 = vst [vmem:[%s4394_s18 + $0xc28] sm:$0xff] %v2429_v21  ;;  %2432 = vst [vmem:[%s4394_s18 + $0xc30] sm:$0xff] %v2431_v46  ;;  %v2493_v47 = vld [vmem:[%s3246_s12 + $0x428] sm:$0xff]  ;;  %v2495_v61 = vld [vmem:[%s3246_s12 + $0x430] sm:$0xff] }
 0x43c   : > { %2434 = vst [vmem:[%s4394_s18 + $0xc38] sm:$0xff] %v2433_v8  ;;  %2436 = vst [vmem:[%s4394_s18 + $0xd00] sm:$0xff] %v2435_v24  ;;  %v2497_v35 = vld [vmem:[%s3246_s12 + $0x438] sm:$0xff]  ;;  %v2499_v51 = vld [vmem:[%s3246_s12 + $0x440] sm:$0xff] }
 0x43d   : > { %2438 = vst [vmem:[%s4394_s18 + $0xd08] sm:$0xff] %v2437_v11  ;;  %2440 = vst [vmem:[%s4394_s18 + $0xd10] sm:$0xff] %v2439_v55  ;;  %v2501_v36 = vld [vmem:[%s3246_s12 + $0x448] sm:$0xff]  ;;  %v2503_v50 = vld [vmem:[%s3246_s12 + $0x450] sm:$0xff] }
 0x43e   : > { %2442 = vst [vmem:[%s4394_s18 + $0xd18] sm:$0xff] %v2441_v52  ;;  %2444 = vst [vmem:[%s4394_s18 + $0xd20] sm:$0xff] %v2443_v54  ;;  %v2505_v63 = vld [vmem:[%s3246_s12 + $0x458] sm:$0xff]  ;;  %v2507_v60 = vld [vmem:[%s3246_s12 + $0x460] sm:$0xff] }
 0x43f   : > { %2446 = vst [vmem:[%s4394_s18 + $0xd28] sm:$0xff] %v2445_v53  ;;  %2448 = vst [vmem:[%s4394_s18 + $0xd30] sm:$0xff] %v2447_v27  ;;  %v2509_v14 = vld [vmem:[%s3246_s12 + $0x468] sm:$0xff]  ;;  %v2511_v32 = vld [vmem:[%s3246_s12 + $0x470] sm:$0xff] }
 0x440   : > { %2450 = vst [vmem:[%s4394_s18 + $0xd38] sm:$0xff] %v2449_v25  ;;  %2452 = vst [vmem:[%s4394_s18 + $0xe00] sm:$0xff] %v2451_v20  ;;  %v2513_v17 = vld [vmem:[%s3246_s12 + $0x478] sm:$0xff] }
 0x441   : > { %2454 = vst [vmem:[%s4394_s18 + $0xe08] sm:$0xff] %v2453_v3  ;;  %2456 = vst [vmem:[%s4394_s18 + $0xe10] sm:$0xff] %v2455_v58 }
 0x442   : > { %2458 = vst [vmem:[%s4394_s18 + $0xe18] sm:$0xff] %v2457_v59  ;;  %2460 = vst [vmem:[%s4394_s18 + $0xe20] sm:$0xff] %v2459_v39 }
 0x443   : > { %2462 = vst [vmem:[%s4394_s18 + $0xe28] sm:$0xff] %v2461_v62  ;;  %2464 = vst [vmem:[%s4394_s18 + $0xe30] sm:$0xff] %v2463_v16 }
 0x444   : > { %2466 = vst [vmem:[%s4394_s18 + $0xe38] sm:$0xff] %v2465_v6  ;;  %2468 = vst [vmem:[%s4394_s18 + $0xf00] sm:$0xff] %v2467_v13 }
 0x445   : > { %2470 = vst [vmem:[%s4394_s18 + $0xf08] sm:$0xff] %v2469_v26  ;;  %2472 = vst [vmem:[%s4394_s18 + $0xf10] sm:$0xff] %v2471_v0 }
 0x446   : > { %2474 = vst [vmem:[%s4394_s18 + $0xf18] sm:$0xff] %v2473_v12  ;;  %2476 = vst [vmem:[%s4394_s18 + $0xf20] sm:$0xff] %v2475_v2 }
 0x447   : > { %2478 = vst [vmem:[%s4394_s18 + $0xf28] sm:$0xff] %v2477_v19  ;;  %2480 = vst [vmem:[%s4394_s18 + $0xf30] sm:$0xff] %v2479_v34 }
 0x448   : > { %2482 = vst [vmem:[%s4394_s18 + $0xf38] sm:$0xff] %v2481_v4  ;;  %2484 = vst [vmem:[%s4394_s18 + $0x1000] sm:$0xff] %v2483_v33 }
 0x449   : > { %2486 = vst [vmem:[%s4394_s18 + $0x1008] sm:$0xff] %v2485_v1  ;;  %2488 = vst [vmem:[%s4394_s18 + $0x1010] sm:$0xff] %v2487_v40 }
 0x44a   : > { %2490 = vst [vmem:[%s4394_s18 + $0x1018] sm:$0xff] %v2489_v9  ;;  %2492 = vst [vmem:[%s4394_s18 + $0x1020] sm:$0xff] %v2491_v18 }
 0x44b   : > { %2494 = vst [vmem:[%s4394_s18 + $0x1028] sm:$0xff] %v2493_v47  ;;  %2496 = vst [vmem:[%s4394_s18 + $0x1030] sm:$0xff] %v2495_v61 }
 0x44c   : > { %2498 = vst [vmem:[%s4394_s18 + $0x1038] sm:$0xff] %v2497_v35  ;;  %2500 = vst [vmem:[%s4394_s18 + $0x1100] sm:$0xff] %v2499_v51 }
 0x44d   : > { %2502 = vst [vmem:[%s4394_s18 + $0x1108] sm:$0xff] %v2501_v36  ;;  %2504 = vst [vmem:[%s4394_s18 + $0x1110] sm:$0xff] %v2503_v50 }
 0x44e   : > { %2506 = vst [vmem:[%s4394_s18 + $0x1118] sm:$0xff] %v2505_v63  ;;  %2508 = vst [vmem:[%s4394_s18 + $0x1120] sm:$0xff] %v2507_v60 }
 0x44f   : > { %2510 = vst [vmem:[%s4394_s18 + $0x1128] sm:$0xff] %v2509_v14  ;;  %2512 = vst [vmem:[%s4394_s18 + $0x1130] sm:$0xff] %v2511_v32 }
 0x450   : > { %2514 = vst [vmem:[%s4394_s18 + $0x1138] sm:$0xff] %v2513_v17 }
 0x451 PF: > { %s17_s28 = sadd.s32 1, %s3011_s28   ;;  %s4705_s24 = smov %s2999_s25 }
 0x452   : > { %p14_p13 = scmp.ge.s32.totalorder %s17_s28, 6   ;;  %s4706_s25 = smov %s3094_s11 }
 0x453   : > { %s4707_s26 = smov %s3007_s27  ;;  %s4708_s27 = smov %s4710_s29 }
 0x454   :  { %16 = sbr.rel (!%p14_p13) target bundleno = 3 (0x3), region = 139 }

// kernel: complete_model_forward.3
= control target key start
LH: loop header
LB: loop body
LE: loop exit
PB: predicated region body
PF: predicated region fallthrough
CT: control target
= control target key end

     0   :  { %s3045_s24 = smov 0   ;;  %s3047_s25 = smov 0   ;;  %s4681_s0 = inlined_call_operand.vmem [shape: f32[144,20], index: 0, kind: input, shape index: {}]   ;;  %s4682_s1 = inlined_call_operand.vmem [shape: f32[20,64], index: 1, kind: input, shape index: {}]   ;;  %s4683_s2 = inlined_call_operand.vmem [shape: f32[1,64], index: 2, kind: input, shape index: {}]   ;;  %s4684_s3 = inlined_call_operand.vmem [shape: f32[1,64], index: 3, kind: input, shape index: {}]   ;;  %s4685_s4 = inlined_call_operand.vmem [shape: f32[1,64], index: 4, kind: input, shape index: {}]   ;;  %s4686_s5 = inlined_call_operand.vmem [shape: f32[64,4096], index: 5, kind: input, shape index: {}]   ;;  %s4687_s6 = inlined_call_operand.vmem [shape: f32[1,4096], index: 6, kind: input, shape index: {}]   ;;  %s4688_s7 = inlined_call_operand.vmem [shape: f32[144,4096], index: 7, kind: output, shape index: {}]  }
   0x1   :  { %s3049_s26 = smov 0   ;;  %s3051_s27 = smov 0  }
   0x2   :  { %s3053_s28 = smov 0  }
   0x3 LB: > { %s26_s29 = sadd.s32 1, %s2998_s27  ;;  %s2612_s30 = sadd.s32 4294967295, %s3002_s28   ;;  %s3002_s28 = sphi %s3053_s28, %s17_s28   ;;  %s2998_s27 = sphi %s3051_s27, %s4693_s27   ;;  %s2994_s26 = sphi %s3049_s26, %s4692_s26   ;;  %s2990_s25 = sphi %s3047_s25, %s4691_s25   ;;  %s2986_s24 = sphi %s3045_s24, %s4690_s24  }
   0x4   : > { %p27_p0 = scmp.ge.s32.totalorder %s26_s29, 4  ;;  %p153_p1 = scmp.ne.s32.totalorder %s2990_s25, %s2986_s24 }
   0x5   : > { %p154_p2 = scmp.eq.s32.totalorder %s3002_s28, 0  ;;  %p211_p4 = scmp.eq.s32.totalorder %s2612_s30, 3 }
   0x6   : > { %s4695_s29 = smov (%p27_p0, %s26_s29), 0  ;;  %s146_s9 = sadd.s32 1, %s2990_s25 }
   0x7   : > { %p155_p3 = por %p154_p2, %p153_p1  ;;  %s143_s8 = ssub.s32 %s2998_s27, %s4695_s29 }
   0x8   : > { %p144_p5 = scmp.eq.s32.totalorder %s143_s8, 0  ;;  %p3080_p6 = por %p211_p4, %p153_p1 }
   0x9   : > { %p2616_p7 = scmp.ge.s32.totalorder %s3002_s28, 4 }
   0xa   : > { %s3085_s11 = scalar_select %p144_p5, %s2990_s25, %s146_s9  }
   0xb   : > { %254 = sbr.rel (%p2616_p7) target bundleno = 54 (0x36), region = 36 }
  0x12   : > { %257 = sbr.rel (!%p155_p3) target bundleno = 54 (0x36), region = 40  ;;  %s259_s12 = sand.u32 (%p155_p3), 1, %s2990_s25  }
  0x13   : > { %s2722_s13 = sshll.u32 (%p155_p3), %s2998_s27, 6  ;;  %s2617_s14 = sshll.u32 (%p155_p3), %s259_s12, 9 }
  0x14   : > { %s3093_s17 = scalar_lea.vmem (%p155_p3), %s4686_s5, %s2722_s13  ;;  %s3098_s18 = scalar_lea.vmem (%p155_p3), [#allocation3], %s2617_s14 }
  0x15   : > { %v277_v0 = vld [vmem:[%s3093_s17] sm:$0xff] (%p155_p3)  ;;  %v279_v1 = vld [vmem:[%s3093_s17 + $0x8] sm:$0xff] (%p155_p3)  ;;  %v281_v2 = vld [vmem:[%s3093_s17 + $0x10] sm:$0xff] (%p155_p3) }
  0x16   : > { %278 = vst [vmem:[%s3098_s18] sm:$0xff] (%p155_p3), %v277_v0  ;;  %280 = vst [vmem:[%s3098_s18 + $0x8] sm:$0xff] (%p155_p3), %v279_v1  ;;  %v283_v3 = vld [vmem:[%s3093_s17 + $0x18] sm:$0xff] (%p155_p3)  ;;  %v285_v4 = vld [vmem:[%s3093_s17 + $0x20] sm:$0xff] (%p155_p3) }
  0x17   : > { %282 = vst [vmem:[%s3098_s18 + $0x10] sm:$0xff] (%p155_p3), %v281_v2  ;;  %v287_v5 = vld [vmem:[%s3093_s17 + $0x28] sm:$0xff] (%p155_p3)  ;;  %284 = vst [vmem:[%s3098_s18 + $0x18] sm:$0xff] (%p155_p3), %v283_v3  ;;  %v289_v6 = vld [vmem:[%s3093_s17 + $0x30] sm:$0xff] (%p155_p3) }
  0x18   : > { %286 = vst [vmem:[%s3098_s18 + $0x20] sm:$0xff] (%p155_p3), %v285_v4  ;;  %288 = vst [vmem:[%s3098_s18 + $0x28] sm:$0xff] (%p155_p3), %v287_v5  ;;  %v291_v7 = vld [vmem:[%s3093_s17 + $0x38] sm:$0xff] (%p155_p3)  ;;  %v293_v8 = vld [vmem:[%s3093_s17 + $0x100] sm:$0xff] (%p155_p3) }
  0x19   : > { %290 = vst [vmem:[%s3098_s18 + $0x30] sm:$0xff] %v289_v6  ;;  %292 = vst [vmem:[%s3098_s18 + $0x38] sm:$0xff] %v291_v7  ;;  %v295_v9 = vld [vmem:[%s3093_s17 + $0x108] sm:$0xff]  ;;  %v297_v10 = vld [vmem:[%s3093_s17 + $0x110] sm:$0xff] }
  0x1a   : > { %294 = vst [vmem:[%s3098_s18 + $0x40] sm:$0xff] %v293_v8  ;;  %v299_v11 = vld [vmem:[%s3093_s17 + $0x118] sm:$0xff]  ;;  %296 = vst [vmem:[%s3098_s18 + $0x48] sm:$0xff] %v295_v9  ;;  %v301_v12 = vld [vmem:[%s3093_s17 + $0x120] sm:$0xff] }
  0x1b   : > { %298 = vst [vmem:[%s3098_s18 + $0x50] sm:$0xff] %v297_v10  ;;  %300 = vst [vmem:[%s3098_s18 + $0x58] sm:$0xff] %v299_v11  ;;  %v303_v13 = vld [vmem:[%s3093_s17 + $0x128] sm:$0xff]  ;;  %v305_v14 = vld [vmem:[%s3093_s17 + $0x130] sm:$0xff] }
  0x1c   : > { %302 = vst [vmem:[%s3098_s18 + $0x60] sm:$0xff] %v301_v12  ;;  %304 = vst [vmem:[%s3098_s18 + $0x68] sm:$0xff] %v303_v13  ;;  %v307_v15 = vld [vmem:[%s3093_s17 + $0x138] sm:$0xff]  ;;  %v309_v16 = vld [vmem:[%s3093_s17 + $0x200] sm:$0xff] }
  0x1d   : > { %306 = vst [vmem:[%s3098_s18 + $0x70] sm:$0xff] %v305_v14  ;;  %v311_v17 = vld [vmem:[%s3093_s17 + $0x208] sm:$0xff]  ;;  %308 = vst [vmem:[%s3098_s18 + $0x78] sm:$0xff] %v307_v15  ;;  %v313_v18 = vld [vmem:[%s3093_s17 + $0x210] sm:$0xff] }
  0x1e   : > { %310 = vst [vmem:[%s3098_s18 + $0x80] sm:$0xff] %v309_v16  ;;  %312 = vst [vmem:[%s3098_s18 + $0x88] sm:$0xff] %v311_v17  ;;  %v315_v19 = vld [vmem:[%s3093_s17 + $0x218] sm:$0xff]  ;;  %v317_v20 = vld [vmem:[%s3093_s17 + $0x220] sm:$0xff] }
  0x1f   : > { %314 = vst [vmem:[%s3098_s18 + $0x90] sm:$0xff] %v313_v18  ;;  %316 = vst [vmem:[%s3098_s18 + $0x98] sm:$0xff] %v315_v19  ;;  %v319_v21 = vld [vmem:[%s3093_s17 + $0x228] sm:$0xff]  ;;  %v321_v22 = vld [vmem:[%s3093_s17 + $0x230] sm:$0xff] }
  0x20   : > { %318 = vst [vmem:[%s3098_s18 + $0xa0] sm:$0xff] %v317_v20  ;;  %v323_v23 = vld [vmem:[%s3093_s17 + $0x238] sm:$0xff]  ;;  %320 = vst [vmem:[%s3098_s18 + $0xa8] sm:$0xff] %v319_v21  ;;  %v325_v24 = vld [vmem:[%s3093_s17 + $0x300] sm:$0xff] }
  0x21   : > { %322 = vst [vmem:[%s3098_s18 + $0xb0] sm:$0xff] %v321_v22  ;;  %324 = vst [vmem:[%s3098_s18 + $0xb8] sm:$0xff] %v323_v23  ;;  %v327_v25 = vld [vmem:[%s3093_s17 + $0x308] sm:$0xff]  ;;  %v329_v26 = vld [vmem:[%s3093_s17 + $0x310] sm:$0xff] }
  0x22   : > { %326 = vst [vmem:[%s3098_s18 + $0xc0] sm:$0xff] %v325_v24  ;;  %328 = vst [vmem:[%s3098_s18 + $0xc8] sm:$0xff] %v327_v25  ;;  %v331_v27 = vld [vmem:[%s3093_s17 + $0x318] sm:$0xff]  ;;  %v333_v28 = vld [vmem:[%s3093_s17 + $0x320] sm:$0xff] }
  0x23   : > { %330 = vst [vmem:[%s3098_s18 + $0xd0] sm:$0xff] %v329_v26  ;;  %v335_v29 = vld [vmem:[%s3093_s17 + $0x328] sm:$0xff]  ;;  %332 = vst [vmem:[%s3098_s18 + $0xd8] sm:$0xff] %v331_v27  ;;  %v337_v30 = vld [vmem:[%s3093_s17 + $0x330] sm:$0xff] }
  0x24   : > { %334 = vst [vmem:[%s3098_s18 + $0xe0] sm:$0xff] %v333_v28  ;;  %336 = vst [vmem:[%s3098_s18 + $0xe8] sm:$0xff] %v335_v29  ;;  %v339_v31 = vld [vmem:[%s3093_s17 + $0x338] sm:$0xff]  ;;  %v341_v32 = vld [vmem:[%s3093_s17 + $0x400] sm:$0xff] }
  0x25   : > { %338 = vst [vmem:[%s3098_s18 + $0xf0] sm:$0xff] %v337_v30  ;;  %340 = vst [vmem:[%s3098_s18 + $0xf8] sm:$0xff] %v339_v31  ;;  %v343_v33 = vld [vmem:[%s3093_s17 + $0x408] sm:$0xff]  ;;  %v345_v34 = vld [vmem:[%s3093_s17 + $0x410] sm:$0xff] }
  0x26   : > { %342 = vst [vmem:[%s3098_s18 + $0x100] sm:$0xff] %v341_v32  ;;  %v347_v35 = vld [vmem:[%s3093_s17 + $0x418] sm:$0xff]  ;;  %344 = vst [vmem:[%s3098_s18 + $0x108] sm:$0xff] %v343_v33  ;;  %v349_v36 = vld [vmem:[%s3093_s17 + $0x420] sm:$0xff] }
  0x27   : > { %346 = vst [vmem:[%s3098_s18 + $0x110] sm:$0xff] %v345_v34  ;;  %348 = vst [vmem:[%s3098_s18 + $0x118] sm:$0xff] %v347_v35  ;;  %v351_v37 = vld [vmem:[%s3093_s17 + $0x428] sm:$0xff]  ;;  %v353_v38 = vld [vmem:[%s3093_s17 + $0x430] sm:$0xff] }
  0x28   : > { %350 = vst [vmem:[%s3098_s18 + $0x120] sm:$0xff] %v349_v36  ;;  %352 = vst [vmem:[%s3098_s18 + $0x128] sm:$0xff] %v351_v37  ;;  %v355_v39 = vld [vmem:[%s3093_s17 + $0x438] sm:$0xff]  ;;  %v357_v40 = vld [vmem:[%s3093_s17 + $0x500] sm:$0xff] }
  0x29   : > { %354 = vst [vmem:[%s3098_s18 + $0x130] sm:$0xff] %v353_v38  ;;  %v359_v41 = vld [vmem:[%s3093_s17 + $0x508] sm:$0xff]  ;;  %356 = vst [vmem:[%s3098_s18 + $0x138] sm:$0xff] %v355_v39  ;;  %v361_v42 = vld [vmem:[%s3093_s17 + $0x510] sm:$0xff] }
  0x2a   : > { %358 = vst [vmem:[%s3098_s18 + $0x140] sm:$0xff] %v357_v40  ;;  %360 = vst [vmem:[%s3098_s18 + $0x148] sm:$0xff] %v359_v41  ;;  %v363_v43 = vld [vmem:[%s3093_s17 + $0x518] sm:$0xff]  ;;  %v365_v44 = vld [vmem:[%s3093_s17 + $0x520] sm:$0xff] }
  0x2b   : > { %362 = vst [vmem:[%s3098_s18 + $0x150] sm:$0xff] %v361_v42  ;;  %364 = vst [vmem:[%s3098_s18 + $0x158] sm:$0xff] %v363_v43  ;;  %v367_v45 = vld [vmem:[%s3093_s17 + $0x528] sm:$0xff]  ;;  %v369_v46 = vld [vmem:[%s3093_s17 + $0x530] sm:$0xff] }
  0x2c   : > { %366 = vst [vmem:[%s3098_s18 + $0x160] sm:$0xff] %v365_v44  ;;  %v371_v47 = vld [vmem:[%s3093_s17 + $0x538] sm:$0xff]  ;;  %368 = vst [vmem:[%s3098_s18 + $0x168] sm:$0xff] %v367_v45  ;;  %v373_v48 = vld [vmem:[%s3093_s17 + $0x600] sm:$0xff] }
  0x2d   : > { %370 = vst [vmem:[%s3098_s18 + $0x170] sm:$0xff] %v369_v46  ;;  %372 = vst [vmem:[%s3098_s18 + $0x178] sm:$0xff] %v371_v47  ;;  %v375_v49 = vld [vmem:[%s3093_s17 + $0x608] sm:$0xff]  ;;  %v377_v50 = vld [vmem:[%s3093_s17 + $0x610] sm:$0xff] }
  0x2e   : > { %374 = vst [vmem:[%s3098_s18 + $0x180] sm:$0xff] %v373_v48  ;;  %376 = vst [vmem:[%s3098_s18 + $0x188] sm:$0xff] %v375_v49  ;;  %v379_v51 = vld [vmem:[%s3093_s17 + $0x618] sm:$0xff]  ;;  %v381_v52 = vld [vmem:[%s3093_s17 + $0x620] sm:$0xff] }
  0x2f   : > { %378 = vst [vmem:[%s3098_s18 + $0x190] sm:$0xff] %v377_v50  ;;  %v383_v53 = vld [vmem:[%s3093_s17 + $0x628] sm:$0xff]  ;;  %380 = vst [vmem:[%s3098_s18 + $0x198] sm:$0xff] %v379_v51  ;;  %v385_v54 = vld [vmem:[%s3093_s17 + $0x630] sm:$0xff] }
  0x30   : > { %382 = vst [vmem:[%s3098_s18 + $0x1a0] sm:$0xff] %v381_v52  ;;  %384 = vst [vmem:[%s3098_s18 + $0x1a8] sm:$0xff] %v383_v53  ;;  %v387_v55 = vld [vmem:[%s3093_s17 + $0x638] sm:$0xff]  ;;  %v389_v56 = vld [vmem:[%s3093_s17 + $0x700] sm:$0xff] }
  0x31   : > { %386 = vst [vmem:[%s3098_s18 + $0x1b0] sm:$0xff] %v385_v54  ;;  %388 = vst [vmem:[%s3098_s18 + $0x1b8] sm:$0xff] %v387_v55  ;;  %v391_v57 = vld [vmem:[%s3093_s17 + $0x708] sm:$0xff]  ;;  %v393_v58 = vld [vmem:[%s3093_s17 + $0x710] sm:$0xff] }
  0x32   : > { %390 = vst [vmem:[%s3098_s18 + $0x1c0] sm:$0xff] %v389_v56  ;;  %v395_v59 = vld [vmem:[%s3093_s17 + $0x718] sm:$0xff]  ;;  %392 = vst [vmem:[%s3098_s18 + $0x1c8] sm:$0xff] %v391_v57  ;;  %v397_v60 = vld [vmem:[%s3093_s17 + $0x720] sm:$0xff] }
  0x33   : > { %394 = vst [vmem:[%s3098_s18 + $0x1d0] sm:$0xff] %v393_v58  ;;  %396 = vst [vmem:[%s3098_s18 + $0x1d8] sm:$0xff] %v395_v59  ;;  %v399_v61 = vld [vmem:[%s3093_s17 + $0x728] sm:$0xff]  ;;  %v401_v62 = vld [vmem:[%s3093_s17 + $0x730] sm:$0xff] }
  0x34   : > { %398 = vst [vmem:[%s3098_s18 + $0x1e0] sm:$0xff] %v397_v60  ;;  %400 = vst [vmem:[%s3098_s18 + $0x1e8] sm:$0xff] %v399_v61  ;;  %v403_v63 = vld [vmem:[%s3093_s17 + $0x738] sm:$0xff] }
  0x35   : > { %402 = vst [vmem:[%s3098_s18 + $0x1f0] sm:$0xff] %v401_v62  ;;  %404 = vst [vmem:[%s3098_s18 + $0x1f8] sm:$0xff] %v403_v63 }
  0x36 PF: > { %p2620_p8 = scmp.ge.s32.totalorder %s3002_s28, 1  ;;  %p417_p9 = scmp.lt.s32.totalorder %s3002_s28, 5 }
  0x38   : > { %p418_p10 = pnand %p2620_p8, %p417_p9 }
  0x39   : > { %s424_s19 = sand.u32 (!%p418_p10), 1, %s2986_s24   ;;  %s2622_s20 = sshll.u32 (!%p418_p10), %s2994_s26, 3 }
  0x3a   : > { %421 = sbr.rel (%p418_p10) target bundleno = 1101 (0x44d), region = 67  ;;  %s2621_s21 = sshll.u32 (!%p418_p10), %s424_s19, 9 }
  0x3b   : > { %s2850_s22 = smul.u32 (!%p418_p10), 1152, %s424_s19  ;;  %p471_p11 = scmp.lt.s32.totalorder (!%p418_p10), %s2622_s20, 31 }
  0x3c   : > { %s3235_s9 = scalar_lea.vmem (!%p418_p10), [#allocation3], %s2621_s21  ;;  %p2623_p12 = scmp.ne.s32.totalorder (!%p418_p10), %s2994_s26, 0 }
  0x3d   : > { %s3237_s12 = scalar_lea.vmem (!%p418_p10), [#allocation4], %s2850_s22 }
  0x41   : > { %s4697_s20 = smov (!%p471_p11, %s2622_s20), 31  ;;  %480 = sbr.rel (%p2623_p12) target bundleno = 666 (0x29a), region = 75 }
  0x42   : > { %s473_s8 = scalar_lea.vmem %s4687_s6, %s4697_s20  ;;  %v499_v0 = vld [vmem:[%s4682_s1] sm:$0xff] (!%p2623_p12)  ;;  %v500_v1 = vld [vmem:[%s4682_s1 + $0x8] sm:$0xff] (!%p2623_p12)  ;;  %vm509_vm0 = vcmask (!%p2623_p12), 162816   ;;  %v491_v4 = vld [vmem:[%s4681_s0 + $0x50] sm:$0xff] (!%p2623_p12)  ;;  %vm564_vm1 = vcmask (!%p2623_p12), 1043456   ;;  %vm887_vm2 = vcmask (!%p2623_p12), 523264  }
  0x43   : > { %v2778_v2 = vpack.c.bf16 (!%p2623_p12), %v500_v1, %v499_v0  ;;  %v481_v3 = vld [vmem:[%s4681_s0] sm:$0xff] (!%p2623_p12)  ;;  %v501_v5 = vld [vmem:[%s4682_s1 + $0x10] sm:$0xf] (!%p2623_p12)  ;;  %2766 = vmatprep.mubr.msk.f32.mxu1 (!%p2623_p12), %vm509_vm0, %v491_v4  ;;  %v482_v6 = vld [vmem:[%s4681_s0 + $0x8] sm:$0xff] (!%p2623_p12) }
  0x44   : > { %2751 = vmatprep.mubr.msk.f32.mxu0 (!%p2623_p12), %vm509_vm0, %v481_v3  ;;  %v492_v7 = vld [vmem:[%s4681_s0 + $0x58] sm:$0xff] (!%p2623_p12)  ;;  %v483_v8 = vld [vmem:[%s4681_s0 + $0x10] sm:$0xff] (!%p2623_p12)  ;;  %v493_v9 = vld [vmem:[%s4681_s0 + $0x60] sm:$0xff] (!%p2623_p12) }
  0x45   : > { %2779 = vmatprep.subr.bf16.mxu0 (!%p2623_p12), %v2778_v2  ;;  %2846 = vmatprep.subr.bf16.mxu1 (!%p2623_p12), %v2778_v2  ;;  %v484_v10 = vld [vmem:[%s4681_s0 + $0x18] sm:$0xff] (!%p2623_p12)  ;;  %v494_v11 = vld [vmem:[%s4681_s0 + $0x68] sm:$0xff] (!%p2623_p12)  ;;  %v485_v12 = vld [vmem:[%s4681_s0 + $0x20] sm:$0xff] (!%p2623_p12) }
  0x46   : > { %2781 = vmatpush3.bf16.msra.mxu0 (!%p2623_p12), %v2778_v2  ;;  %2848 = vmatpush3.bf16.msra.mxu1 (!%p2623_p12), %v2778_v2  ;;  %v495_v13 = vld [vmem:[%s4681_s0 + $0x70] sm:$0xff] (!%p2623_p12)  ;;  %v486_v14 = vld [vmem:[%s4681_s0 + $0x28] sm:$0xff] (!%p2623_p12)  ;;  %v496_v15 = vld [vmem:[%s4681_s0 + $0x78] sm:$0xff] (!%p2623_p12) }
  0x47   : > { %2749 = vmatprep.subr.msk.mxu0 (!%p2623_p12), %vm564_vm1, %v501_v5  ;;  %2847 = vmatprep.subr.msk.mxu1 (!%p2623_p12), %vm564_vm1, %v501_v5  ;;  %v487_v16 = vld [vmem:[%s4681_s0 + $0x30] sm:$0xff] (!%p2623_p12)  ;;  %v497_v17 = vld [vmem:[%s4681_s0 + $0x80] sm:$0xff] (!%p2623_p12)  ;;  %v488_v18 = vld [vmem:[%s4681_s0 + $0x38] sm:$0xff] (!%p2623_p12) }
  0x48   : > { %v498_v19 = vld [vmem:[%s4681_s0 + $0x88] sm:$0xff]  ;;  %v489_v20 = vld [vmem:[%s4681_s0 + $0x40] sm:$0xff] }
  0x49   : > { %v490_v21 = vld [vmem:[%s4681_s0 + $0x48] sm:$0xff]  ;;  %v3324_v22 = vld [vmem:[%s4683_s2] ss:$0 sm:$0xff] }
  0x4a   : > { %2750 = vmatpush3.msk.msra.mxu0 %vm564_vm1, %v501_v5  ;;  %2849 = vmatpush3.msk.msra.mxu1 %vm564_vm1, %v501_v5 }
  0x4b   : > { %2752 = vmatmul.mubr.msk.f32.vlgmr.msra.gmra.mrb[0].mxu0 %vm509_vm0, %v482_v6  ;;  %2767 = vmatmul.mubr.msk.f32.vlgmr.msra.gmra.mrb[0].mxu1 %vm509_vm0, %v492_v7 }
  0x4c   : > { %2754 = vmatprep.mubr.msk.f32.mxu0 %vm509_vm0, %v483_v8  ;;  %2769 = vmatprep.mubr.msk.f32.mxu1 %vm509_vm0, %v493_v9 }
  0x4f   : > { %2755 = vmatmul.mubr.msk.f32.gmra.mrb[2].mxu0 %vm509_vm0, %v484_v10  ;;  %2770 = vmatmul.mubr.msk.f32.gmra.mrb[2].mxu1 %vm509_vm0, %v494_v11 }
  0x50   : > { %2757 = vmatprep.mubr.msk.f32.mxu0 %vm509_vm0, %v485_v12  ;;  %2772 = vmatprep.mubr.msk.f32.mxu1 %vm509_vm0, %v495_v13 }
  0x53   : > { %2758 = vmatmul.mubr.msk.f32.gmra.mrb[4].mxu0 %vm509_vm0, %v486_v14  ;;  %2773 = vmatmul.mubr.msk.f32.gmra.mrb[4].mxu1 %vm509_vm0, %v496_v15 }
  0x54   : > { %2760 = vmatprep.mubr.msk.f32.mxu0 %vm509_vm0, %v487_v16  ;;  %2775 = vmatprep.mubr.msk.f32.mxu1 %vm509_vm0, %v497_v17 }
  0x57   : > { %2761 = vmatmul.mubr.msk.f32.gmra.mrb[6].mxu0 %vm509_vm0, %v488_v18  ;;  %2776 = vmatmul.mubr.msk.f32.gmra.mrb[6].mxu1 %vm509_vm0, %v498_v19 }
  0x58   : > { %2763 = vmatprep.mubr.msk.f32.mxu0 %vm509_vm0, %v489_v20 }
  0x5b   : > { %2764 = vmatmul.mubr.msk.f32.gmra.mrb[8].mxu0 %vm509_vm0, %v490_v21 }
 0x11e   : > { %v2753_v23 = vpop.f32.mrb[0].mxu0  ;;  %v2768_v24 = vpop.f32.mrb[0].mxu1 }
 0x11f   : > { %v640_v25 = vadd.f32 %v2753_v23, %v3324_v22  ;;  %v690_v26 = vadd.f32 %v2768_v24, %v3324_v22  ;;  %v634_v27 = vpop.f32.mrb[1].mxu0  ;;  %v684_v28 = vpop.f32.mrb[1].mxu1 }
 0x120   : > { %v635_v29 = vadd.f32 %v3324_v22, %v634_v27  ;;  %v3330_v33 = vadd.f32 %v3324_v22, %v684_v28 }
 0x121   : > { %v742_v30 = vmul.f32 0.044715, %v640_v25  ;;  %v752_v31 = vmul.f32 0.044715, %v690_v26  ;;  %v3344_v57 = vmul.f32 0.5, %v690_v26  ;;  %v3346_v58 = vmul.f32 0.5, %v640_v25 }
 0x122   : > { %v741_v32 = vmul.f32 0.044715, %v635_v29  ;;  %v2756_v34 = vpop.f32.mrb[2].mxu0  ;;  %v2771_v35 = vpop.f32.mrb[2].mxu1  ;;  %v751_v52 = vmul.f32 0.044715, %v3330_v33 }
 0x123   : > { %v650_v36 = vadd.f32 %v2756_v34, %v3324_v22  ;;  %v3334_v37 = vadd.f32 %v2771_v35, %v3324_v22  ;;  %v644_v38 = vpop.f32.mrb[3].mxu0  ;;  %v694_v39 = vpop.f32.mrb[3].mxu1  ;;  %v770_v40 = vmul.f32 %v752_v31, %v690_v26  ;;  %v760_v41 = vmul.f32 %v742_v30, %v640_v25 }
 0x124   : > { %v759_v42 = vmul.f32 %v741_v32, %v635_v29  ;;  %v3337_v44 = vadd.f32 %v3324_v22, %v644_v38  ;;  %v3341_v48 = vadd.f32 %v3324_v22, %v694_v39  ;;  %v3348_v60 = vmul.f32 0.5, %v635_v29 }
 0x125   : > { %v744_v43 = vmul.f32 0.044715, %v650_v36  ;;  %v788_v45 = vmul.f32 %v770_v40, %v690_v26  ;;  %v778_v46 = vmul.f32 %v760_v41, %v640_v25  ;;  %v754_v47 = vmul.f32 0.044715, %v3334_v37 }
 0x126   : > { %v2759_v49 = vpop.f32.mrb[4].mxu0  ;;  %v2774_v50 = vpop.f32.mrb[4].mxu1  ;;  %v777_v51 = vmul.f32 %v759_v42, %v635_v29  ;;  %v743_v61 = vmul.f32 0.044715, %v3337_v44  ;;  %v753_v1 = vmul.f32 0.044715, %v3341_v48  ;;  %v769_v11 = vmul.f32 %v751_v52, %v3330_v33 }
 0x127   : > { %v654_v53 = vpop.f32.mrb[5].mxu0  ;;  %v704_v54 = vpop.f32.mrb[5].mxu1  ;;  %v806_v55 = vadd.f32 %v788_v45, %v690_v26  ;;  %v796_v56 = vadd.f32 %v778_v46, %v640_v25  ;;  %v762_v59 = vmul.f32 %v744_v43, %v650_v36  ;;  %v3352_v62 = vadd.f32 %v2759_v49, %v3324_v22 }
 0x128   : > { %v795_v0 = vadd.f32 %v777_v51, %v635_v29  ;;  %v3356_v2 = vadd.f32 %v2774_v50, %v3324_v22  ;;  %v772_v6 = vmul.f32 %v754_v47, %v3334_v37  ;;  %v3360_v7 = vadd.f32 %v3324_v22, %v654_v53 }
 0x129   : > { %v824_v63 = vmul.f32 0.7978845, %v806_v55  ;;  %v780_v5 = vmul.f32 %v762_v59, %v650_v36  ;;  %v814_v10 = vmul.f32 0.7978845, %v796_v56  ;;  %v3364_v12 = vadd.f32 %v3324_v22, %v704_v54 }
 0x12a   : > { %v2762_v3 = vpop.f32.mrb[6].mxu0  ;;  %v2777_v4 = vpop.f32.mrb[6].mxu1  ;;  %v813_v15 = vmul.f32 0.7978845, %v795_v0  ;;  %v746_v16 = vmul.f32 0.044715, %v3352_v62  ;;  %v790_v23 = vmul.f32 %v772_v6, %v3334_v37  ;;  %v787_v28 = vmul.f32 %v769_v11, %v3330_v33 }
 0x12b   : > { %v664_v8 = vpop.f32.mrb[7].mxu0  ;;  %v714_v9 = vpop.f32.mrb[7].mxu1  ;;  %2892 = vtanh.f32 %v824_v63  ;;  %v3367_v13 = vadd.f32 %v2762_v3, %v3324_v22  ;;  %v798_v14 = vadd.f32 %v780_v5, %v650_v36  ;;  %v3371_v17 = vadd.f32 %v2777_v4, %v3324_v22 }
 0x12c   : > { %2894 = vtanh.f32 %v814_v10  ;;  %v3373_v18 = vmul.f32 0.5, %v650_v36  ;;  %v756_v19 = vmul.f32 0.044715, %v3356_v2  ;;  %v3377_v20 = vadd.f32 %v3324_v22, %v664_v8 }
 0x12d   : > { %2896 = vtanh.f32 %v813_v15  ;;  %v745_v24 = vmul.f32 0.044715, %v3360_v7  ;;  %v3382_v25 = vadd.f32 %v3324_v22, %v714_v9  ;;  %v816_v27 = vmul.f32 0.7978845, %v798_v14 }
 0x12e   : > { %v2765_v21 = vpop.f32.mrb[8].mxu0  ;;  %v755_v29 = vmul.f32 0.044715, %v3364_v12  ;;  %v748_v30 = vmul.f32 0.044715, %v3367_v13  ;;  %v808_v31 = vadd.f32 %v790_v23, %v3334_v37  ;;  %v761_v32 = vmul.f32 %v743_v61, %v3337_v44 }
 0x12f   : > { %v674_v26 = vpop.f32.mrb[9].mxu0  ;;  %v3390_v34 = vmul.f32 0.044715, %v3371_v17  ;;  %2898 = vtanh.f32 %v816_v27  ;;  %v3393_v35 = vmul.f32 0.5, %v3334_v37  ;;  %v805_v36 = vadd.f32 %v787_v28, %v3330_v33 }
 0x130   : > { %v747_v38 = vmul.f32 0.044715, %v3377_v20  ;;  %v826_v39 = vmul.f32 0.7978845, %v808_v31  ;;  %v779_v40 = vmul.f32 %v761_v32, %v3337_v44  ;;  %v771_v41 = vmul.f32 %v753_v1, %v3341_v48 }
 0x131   : > { %v3400_v42 = vmul.f32 0.044715, %v3382_v25  ;;  %v3403_v43 = vadd.f32 %v2765_v21, %v3324_v22  ;;  %v823_v45 = vmul.f32 0.7978845, %v805_v36  ;;  %v764_v46 = vmul.f32 %v746_v16, %v3352_v62 }
 0x132   : > { %2900 = vtanh.f32 %v826_v39  ;;  %v797_v37 = vadd.f32 %v779_v40, %v3337_v44  ;;  %v789_v47 = vmul.f32 %v771_v41, %v3341_v48  ;;  %v763_v49 = vmul.f32 %v745_v24, %v3360_v7 }
 0x133   : > { %v3410_v51 = vadd.f32 %v3324_v22, %v674_v26  ;;  %2902 = vtanh.f32 %v823_v45  ;;  %v782_v52 = vmul.f32 %v764_v46, %v3352_v62  ;;  %v774_v53 = vmul.f32 %v756_v19, %v3356_v2 }
 0x134   : > { %v815_v55 = vmul.f32 0.7978845, %v797_v37  ;;  %v807_v56 = vadd.f32 %v789_v47, %v3341_v48  ;;  %v781_v59 = vmul.f32 %v763_v49, %v3360_v7  ;;  %v750_v63 = vmul.f32 0.044715, %v3403_v43 }
 0x135   : > { %v2893_v50 = vpop.eup %2892  ;;  %v800_v0 = vadd.f32 %v782_v52, %v3352_v62  ;;  %v792_v1 = vmul.f32 %v774_v53, %v3356_v2  ;;  %v773_v22 = vmul.f32 %v755_v29, %v3364_v12  ;;  %v733_v27 = vmul.f32 0.5, %v3330_v33 }
 0x136   : > { %v860_v54 = vadd.f32 1.0, %v2893_v50  ;;  %v2895_v61 = vpop.eup %2894  ;;  %2904 = vtanh.f32 %v815_v55  ;;  %v825_v6 = vmul.f32 0.7978845, %v807_v56  ;;  %v799_v10 = vadd.f32 %v781_v59, %v3360_v7 }
 0x137   : > { %v2897_v3 = vpop.eup %2896  ;;  %v850_v5 = vadd.f32 1.0, %v2895_v61  ;;  %v818_v9 = vmul.f32 0.7978845, %v800_v0  ;;  %v810_v11 = vadd.f32 %v792_v1, %v3356_v2  ;;  %v791_v16 = vmul.f32 %v773_v22, %v3364_v12 }
 0x138   : > { %v3421_v4 = vmul.f32 %v860_v54, %v3344_v57  ;;  %v849_v8 = vadd.f32 1.0, %v2897_v3  ;;  %2906 = vtanh.f32 %v825_v6  ;;  %v817_v21 = vmul.f32 0.7978845, %v799_v10 }
 0x139   : > { %v3428_v15 = vmul.f32 %v850_v5, %v3346_v58  ;;  %v2899_v57 = vpop.eup %2898  ;;  %2908 = vtanh.f32 %v818_v9  ;;  %v828_v23 = vmul.f32 0.7978845, %v810_v11  ;;  %v809_v58 = vadd.f32 %v791_v16, %v3364_v12 }
 0x13a   : > { %v921_v14 = vsel %vm887_vm2, %v3421_v4, 0.0  ;;  %v3432_v19 = vmul.f32 %v849_v8, %v3348_v60  ;;  %v852_v26 = vadd.f32 1.0, %v2899_v57  ;;  %v749_v28 = vmul.f32 0.044715, %v3410_v51 }
 0x13b   : > { %922 = vadd.xlane.f32.xlu1 %v921_v14  ;;  %v891_v24 = vsel %vm887_vm2, %v3428_v15, 0.0  ;;  %v725_v29 = vmul.f32 0.5, %v3337_v44  ;;  %2910 = vtanh.f32 %v817_v21  ;;  %v766_v60 = vmul.f32 %v748_v30, %v3367_v13 }
 0x13c   : > { %892 = vadd.xlane.f32.xlu0 %v891_v24  ;;  %v2901_v31 = vpop.eup %2900  ;;  %v3442_v32 = vmul.f32 %v852_v26, %v3373_v18  ;;  %2912 = vtanh.f32 %v828_v23  ;;  %v827_v36 = vmul.f32 0.7978845, %v809_v58  ;;  %v765_v39 = vmul.f32 %v747_v38, %v3377_v20 }
 0x13d   : > { %v2903_v40 = vpop.eup %2902  ;;  %v888_v33 = vsel %vm887_vm2, %v3432_v19, 0.0  ;;  %v862_v41 = vadd.f32 1.0, %v2901_v31  ;;  %v784_v45 = vmul.f32 %v766_v60, %v3367_v13  ;;  %v768_v44 = vmul.f32 %v750_v63, %v3403_v43 }
 0x13e   : > { %v897_v30 = vsel %vm887_vm2, %v3442_v32, 0.0  ;;  %v859_v46 = vadd.f32 1.0, %v2903_v40  ;;  %2914 = vtanh.f32 %v827_v36  ;;  %v783_v18 = vmul.f32 %v765_v39, %v3377_v20 }
 0x13f   : > { %898 = vadd.xlane.f32.xlu1 %v897_v30  ;;  %v3453_v38 = vmul.f32 %v862_v41, %v3393_v35  ;;  %v735_v37 = vmul.f32 0.5, %v3341_v48  ;;  %v802_v47 = vadd.f32 %v784_v45, %v3367_v13  ;;  %v786_v49 = vmul.f32 %v768_v44, %v3403_v43 }
 0x140   : > { %889 = vadd.xlane.f32.xlu0 %v888_v33  ;;  %v2905_v50 = vpop.eup %2904  ;;  %v3458_v52 = vmul.f32 %v859_v46, %v733_v27  ;;  %v728_v53 = vmul.f32 0.5, %v3352_v62  ;;  %v801_v54 = vadd.f32 %v783_v18, %v3377_v20  ;;  %v767_v55 = vmul.f32 %v749_v28, %v3410_v51 }
 0x141   : > { %v927_v56 = vsel %vm887_vm2, %v3453_v38, 0.0  ;;  %v851_v35 = vadd.f32 1.0, %v2905_v50  ;;  %v820_v59 = vmul.f32 0.7978845, %v802_v47  ;;  %v804_v48 = vadd.f32 %v786_v49, %v3403_v43 }
 0x142   : > { %v2907_v61 = vpop.eup %2906  ;;  %v918_v63 = vsel %vm887_vm2, %v3458_v52, 0.0  ;;  %v819_v0 = vmul.f32 0.7978845, %v801_v54  ;;  %v785_v1 = vmul.f32 %v767_v55, %v3410_v51  ;;  %v776_v62 = vmul.f32 %v3390_v34, %v3371_v17 }
 0x143   : > { %v2909_v22 = vpop.eup %2908  ;;  %928 = vadd.xlane.f32.xlu1 %v927_v56  ;;  %v3471_v3 = vmul.f32 %v851_v35, %v725_v29  ;;  %v861_v5 = vadd.f32 1.0, %v2907_v61  ;;  %2916 = vtanh.f32 %v820_v59  ;;  %v822_v6 = vmul.f32 0.7978845, %v804_v48 }
 0x144   : > { %919 = vadd.xlane.f32.xlu0 %v918_v63  ;;  %v854_v8 = vadd.f32 1.0, %v2909_v22  ;;  %2918 = vtanh.f32 %v819_v0  ;;  %v803_v9 = vadd.f32 %v785_v1, %v3410_v51  ;;  %v794_v10 = vmul.f32 %v776_v62, %v3371_v17 }
 0x145   : > { %v2911_v11 = vpop.eup %2910  ;;  %v894_v14 = vsel %vm887_vm2, %v3471_v3, 0.0  ;;  %v3477_v16 = vmul.f32 %v861_v5, %v735_v37  ;;  %v727_v34 = vmul.f32 0.5, %v3360_v7  ;;  %2920 = vtanh.f32 %v822_v6 }
 0x146   : > { %v2913_v57 = vpop.eup %2912  ;;  %v3480_v21 = vmul.f32 %v854_v8, %v728_v53  ;;  %v853_v23 = vadd.f32 1.0, %v2911_v11  ;;  %v821_v24 = vmul.f32 0.7978845, %v803_v9  ;;  %v812_v26 = vadd.f32 %v794_v10, %v3371_v17 }
 0x147   : > { %895 = vadd.xlane.f32.xlu1 %v894_v14  ;;  %v924_v27 = vsel %vm887_vm2, %v3477_v16, 0.0  ;;  %v864_v58 = vadd.f32 1.0, %v2913_v57  ;;  %v775_v28 = vmul.f32 %v3400_v42, %v3382_v25  ;;  %v738_v7 = vmul.f32 0.5, %v3356_v2 }
 0x148   : > { %v2915_v29 = vpop.eup %2914  ;;  %925 = vadd.xlane.f32.xlu0 %v924_v27  ;;  %v3487_v60 = vmul.f32 %v853_v23, %v727_v34  ;;  %2922 = vtanh.f32 %v821_v24  ;;  %v830_v31 = vmul.f32 0.7978845, %v812_v26  ;;  %v737_v36 = vmul.f32 0.5, %v3364_v12 }
 0x149   : > { %v863_v39 = vadd.f32 1.0, %v2915_v29  ;;  %v793_v40 = vmul.f32 %v775_v28, %v3382_v25  ;;  %v903_v33 = vsel %vm887_vm2, %v3480_v21, 0.0  ;;  %v3494_v41 = vmul.f32 %v864_v58, %v738_v7 }
 0x14a   : > { %2924 = vtanh.f32 %v830_v31  ;;  %v900_v42 = vsel %vm887_vm2, %v3487_v60, 0.0  ;;  %v730_v18 = vmul.f32 0.5, %v3367_v13  ;;  %v729_v50 = vmul.f32 0.5, %v3377_v20 }
 0x14b   : > { %904 = vadd.xlane.f32.xlu1 %v903_v33  ;;  %v3498_v45 = vmul.f32 %v863_v39, %v737_v36  ;;  %v811_v2 = vadd.f32 %v793_v40, %v3382_v25  ;;  %v933_v46 = vsel %vm887_vm2, %v3494_v41, 0.0  ;;  %v732_v55 = vmul.f32 0.5, %v3403_v43 }
 0x14c   : > { %901 = vadd.xlane.f32.xlu0 %v900_v42  ;;  %v731_v61 = vmul.f32 0.5, %v3410_v51  ;;  %v740_v0 = vmul.f32 0.5, %v3371_v17  ;;  %v739_v51 = vmul.f32 0.5, %v3382_v25 }
 0x14d   : > { %v2917_v44 = vpop.eup %2916  ;;  %v829_v12 = vmul.f32 0.7978845, %v811_v2  ;;  %v930_v49 = vsel %vm887_vm2, %v3498_v45, 0.0 }
 0x14e   : > { %v2919_v30 = vpop.eup %2918  ;;  %v856_v37 = vadd.f32 1.0, %v2917_v44 }
 0x14f   : > { %v2921_v47 = vpop.eup %2920  ;;  %934 = vadd.xlane.f32.xlu1 %v933_v46  ;;  %v855_v53 = vadd.f32 1.0, %v2919_v30  ;;  %2926 = vtanh.f32 %v829_v12 }
 0x150   : > { %931 = vadd.xlane.f32.xlu0 %v930_v49  ;;  %v3507_v54 = vmul.f32 %v856_v37, %v730_v18  ;;  %v858_v56 = vadd.f32 1.0, %v2921_v47 }
 0x151   : > { %v3510_v35 = vmul.f32 %v855_v53, %v729_v50 }
 0x152   : > { %v2923_v59 = vpop.eup %2922  ;;  %v909_v13 = vsel %vm887_vm2, %v3507_v54, 0.0  ;;  %v3514_v48 = vmul.f32 %v858_v56, %v732_v55 }
 0x153   : > { %910 = vadd.xlane.f32.xlu1 %v909_v13  ;;  %v906_v20 = vsel %vm887_vm2, %v3510_v35, 0.0  ;;  %v857_v63 = vadd.f32 1.0, %v2923_v59 }
 0x154   : > { %v2925_v1 = vpop.eup %2924  ;;  %907 = vadd.xlane.f32.xlu0 %v906_v20  ;;  %v915_v22 = vsel %vm887_vm2, %v3514_v48, 0.0 }
 0x155   : > { %v3520_v43 = vmul.f32 %v857_v63, %v731_v61  ;;  %v866_v62 = vadd.f32 1.0, %v2925_v1 }
 0x157   : > { %916 = vadd.xlane.f32.xlu1 %v915_v22  ;;  %v912_v5 = vsel %vm887_vm2, %v3520_v43, 0.0  ;;  %v3526_v6 = vmul.f32 %v866_v62, %v740_v0 }
 0x158   : > { %913 = vadd.xlane.f32.xlu0 %v912_v5 }
 0x159   : > { %v2927_v8 = vpop.eup %2926  ;;  %v939_v17 = vsel %vm887_vm2, %v3526_v6, 0.0 }
 0x15a   : > { %v865_v9 = vadd.f32 1.0, %v2927_v8 }
 0x15b   : > { %940 = vadd.xlane.f32.xlu1 %v939_v17 }
 0x15c   : > { %v3531_v10 = vmul.f32 %v865_v9, %v739_v51 }
 0x15e   : > { %v936_v11 = vsel %vm887_vm2, %v3531_v10, 0.0 }
 0x15f   : > { %937 = vadd.xlane.f32.xlu0 %v936_v11 }
 0x1c8   : > { %v923_v14 = vpop.xlane.xlu1 %922 }
 0x1c9   : > { %v954_v34 = vmul.f32 0.015625, %v923_v14  ;;  %v893_v57 = vpop.xlane.xlu0 %892 }
 0x1ca   : > { %v944_v23 = vmul.f32 0.015625, %v893_v57 }
 0x1cb   : > { %v3536_v24 = vsub.f32 %v3421_v4, %v954_v34 }
 0x1cc   : > { %v3539_v25 = vsub.f32 %v3428_v15, %v944_v23  ;;  %v899_v26 = vpop.xlane.xlu1 %898 }
 0x1cd   : > { %v890_v27 = vpop.xlane.xlu0 %889  ;;  %v946_v58 = vmul.f32 0.015625, %v899_v26  ;;  %v990_v7 = vmul.f32 %v3536_v24, %v3536_v24 }
 0x1ce   : > { %v943_v28 = vmul.f32 0.015625, %v890_v27  ;;  %v980_v29 = vmul.f32 %v3539_v25, %v3539_v25 }
 0x1cf   : > { %v3546_v31 = vsub.f32 %v3442_v32, %v946_v58  ;;  %v1030_v2 = vsel %vm887_vm2, %v990_v7, 0.0 }
 0x1d0   : > { %v3549_v36 = vsub.f32 %v3432_v19, %v943_v28  ;;  %v1000_v4 = vsel %vm887_vm2, %v980_v29, 0.0  ;;  %v929_v15 = vpop.xlane.xlu1 %928 }
 0x1d1   : > { %1001 = vadd.xlane.f32.xlu1 %v1000_v4  ;;  %v920_v39 = vpop.xlane.xlu0 %919  ;;  %v956_v40 = vmul.f32 0.015625, %v929_v15  ;;  %v982_v12 = vmul.f32 %v3546_v31, %v3546_v31 }
 0x1d2   : > { %v953_v33 = vmul.f32 0.015625, %v920_v39  ;;  %v979_v42 = vmul.f32 %v3549_v36, %v3549_v36 }
 0x1d3   : > { %v3556_v44 = vsub.f32 %v3453_v38, %v956_v40 }
 0x1d4   : > { %v3559_v32 = vsub.f32 %v3458_v52, %v953_v33  ;;  %v997_v19 = vsel %vm887_vm2, %v979_v42, 0.0  ;;  %v896_v30 = vpop.xlane.xlu1 %895  ;;  %v1006_v52 = vsel %vm887_vm2, %v982_v12, 0.0 }
 0x1d5   : > { %1031 = vadd.xlane.f32.xlu1 %v1030_v2  ;;  %998 = vadd.xlane.f32.xlu0 %v997_v19  ;;  %v945_v46 = vmul.f32 0.015625, %v896_v30  ;;  %v926_v18 = vpop.xlane.xlu0 %925  ;;  %v992_v50 = vmul.f32 %v3556_v44, %v3556_v44 }
 0x1d6   : > { %v989_v37 = vmul.f32 %v3559_v32, %v3559_v32  ;;  %v955_v47 = vmul.f32 0.015625, %v926_v18 }
 0x1d7   : > { %v3567_v38 = vsub.f32 %v3471_v3, %v945_v46  ;;  %v1036_v61 = vsel %vm887_vm2, %v992_v50, 0.0 }
 0x1d8   : > { %v1027_v49 = vsel %vm887_vm2, %v989_v37, 0.0  ;;  %v3574_v53 = vsub.f32 %v3477_v16, %v955_v47  ;;  %v905_v55 = vpop.xlane.xlu1 %904 }
 0x1d9   : > { %1007 = vadd.xlane.f32.xlu1 %v1006_v52  ;;  %1028 = vadd.xlane.f32.xlu0 %v1027_v49  ;;  %v948_v56 = vmul.f32 0.015625, %v905_v55  ;;  %v902_v59 = vpop.xlane.xlu0 %901  ;;  %v981_v13 = vmul.f32 %v3567_v38, %v3567_v38 }
 0x1da   : > { %v947_v3 = vmul.f32 0.015625, %v902_v59  ;;  %v991_v16 = vmul.f32 %v3574_v53, %v3574_v53 }
 0x1db   : > { %v3579_v20 = vsub.f32 %v3480_v21, %v948_v56  ;;  %v1003_v63 = vsel %vm887_vm2, %v981_v13, 0.0 }
 0x1dc   : > { %v3586_v0 = vsub.f32 %v3487_v60, %v947_v3  ;;  %v935_v1 = vpop.xlane.xlu1 %934  ;;  %v1033_v17 = vsel %vm887_vm2, %v991_v16, 0.0 }
 0x1dd   : > { %1037 = vadd.xlane.f32.xlu1 %v1036_v61  ;;  %1004 = vadd.xlane.f32.xlu0 %v1003_v63  ;;  %v958_v62 = vmul.f32 0.015625, %v935_v1  ;;  %v932_v22 = vpop.xlane.xlu0 %931  ;;  %v984_v5 = vmul.f32 %v3579_v20, %v3579_v20 }
 0x1de   : > { %v957_v21 = vmul.f32 0.015625, %v932_v22  ;;  %v983_v60 = vmul.f32 %v3586_v0, %v3586_v0 }
 0x1df   : > { %v3591_v51 = vsub.f32 %v3494_v41, %v958_v62  ;;  %v1012_v8 = vsel %vm887_vm2, %v984_v5, 0.0 }
 0x1e0   : > { %v3598_v9 = vsub.f32 %v3498_v45, %v957_v21  ;;  %v911_v11 = vpop.xlane.xlu1 %910  ;;  %v1009_v27 = vsel %vm887_vm2, %v983_v60, 0.0 }
 0x1e1   : > { %1013 = vadd.xlane.f32.xlu1 %v1012_v8  ;;  %1034 = vadd.xlane.f32.xlu0 %v1033_v17  ;;  %v950_v14 = vmul.f32 0.015625, %v911_v11  ;;  %v908_v34 = vpop.xlane.xlu0 %907  ;;  %v994_v57 = vmul.f32 %v3591_v51, %v3591_v51 }
 0x1e2   : > { %v949_v41 = vmul.f32 0.015625, %v908_v34  ;;  %v993_v45 = vmul.f32 %v3598_v9, %v3598_v9 }
 0x1e3   : > { %v3603_v23 = vsub.f32 %v3507_v54, %v950_v14  ;;  %v1042_v26 = vsel %vm887_vm2, %v994_v57, 0.0  ;;  %v3646_v57 = vld [vmem:[%s4684_s3] ss:$0 sm:$0xff] }
 0x1e4   : > { %v3610_v58 = vsub.f32 %v3510_v35, %v949_v41  ;;  %v917_v28 = vpop.xlane.xlu1 %916  ;;  %v1039_v40 = vsel %vm887_vm2, %v993_v45, 0.0 }
 0x1e5   : > { %1043 = vadd.xlane.f32.xlu1 %v1042_v26  ;;  %1010 = vadd.xlane.f32.xlu0 %v1009_v27  ;;  %v952_v29 = vmul.f32 0.015625, %v917_v28  ;;  %v914_v7 = vpop.xlane.xlu0 %913  ;;  %v986_v4 = vmul.f32 %v3603_v23, %v3603_v23 }
 0x1e6   : > { %v951_v54 = vmul.f32 0.015625, %v914_v7  ;;  %v985_v35 = vmul.f32 %v3610_v58, %v3610_v58 }
 0x1e7   : > { %v3615_v15 = vsub.f32 %v3514_v48, %v952_v29  ;;  %v1018_v39 = vsel %vm887_vm2, %v986_v4, 0.0  ;;  %v3652_v29 = vld [vmem:[%s4685_s4] ss:$0 sm:$0xff] }
 0x1e8   : > { %v3622_v33 = vsub.f32 %v3520_v43, %v951_v54  ;;  %v941_v42 = vpop.xlane.xlu1 %940  ;;  %v1015_v30 = vsel %vm887_vm2, %v985_v35, 0.0 }
 0x1e9   : > { %1019 = vadd.xlane.f32.xlu1 %v1018_v39  ;;  %1040 = vadd.xlane.f32.xlu0 %v1039_v40  ;;  %v960_v2 = vmul.f32 0.015625, %v941_v42  ;;  %v988_v19 = vmul.f32 %v3615_v15, %v3615_v15 }
 0x1ea   : > { %v987_v46 = vmul.f32 %v3622_v33, %v3622_v33 }
 0x1eb   : > { %v3627_v48 = vsub.f32 %v3526_v6, %v960_v2  ;;  %v1024_v12 = vsel %vm887_vm2, %v988_v19, 0.0 }
 0x1ec   : > { %v938_v18 = vpop.xlane.xlu0 %937  ;;  %v1021_v52 = vsel %vm887_vm2, %v987_v46, 0.0 }
 0x1ed   : > { %1025 = vadd.xlane.f32.xlu1 %v1024_v12  ;;  %1016 = vadd.xlane.f32.xlu0 %v1015_v30  ;;  %v959_v43 = vmul.f32 0.015625, %v938_v18  ;;  %v996_v37 = vmul.f32 %v3627_v48, %v3627_v48 }
 0x1ef   : > { %v3636_v47 = vsub.f32 %v3531_v10, %v959_v43  ;;  %v1048_v6 = vsel %vm887_vm2, %v996_v37, 0.0 }
 0x1f1   : > { %1049 = vadd.xlane.f32.xlu1 %v1048_v6  ;;  %1022 = vadd.xlane.f32.xlu0 %v1021_v52  ;;  %v995_v49 = vmul.f32 %v3636_v47, %v3636_v47 }
 0x1f3   : > { %v1045_v50 = vsel %vm887_vm2, %v995_v49, 0.0 }
 0x1f5   : > { %1046 = vadd.xlane.f32.xlu0 %v1045_v50 }
 0x25e   : > { %v1002_v55 = vpop.xlane.xlu1 %1001 }
 0x25f   : > { %v1052_v56 = vmul.f32 0.015625, %v1002_v55 }
 0x261   : > { %v1070_v59 = vadd.f32 1e-05, %v1052_v56 }
 0x262   : > { %v1032_v13 = vpop.xlane.xlu1 %1031  ;;  %v999_v3 = vpop.xlane.xlu0 %998 }
 0x263   : > { %2928 = vrsqrt.f32 %v1070_v59  ;;  %v1062_v10 = vmul.f32 0.015625, %v1032_v13  ;;  %v1051_v61 = vmul.f32 0.015625, %v999_v3 }
 0x265   : > { %v1080_v63 = vadd.f32 1e-05, %v1062_v10  ;;  %v1069_v16 = vadd.f32 1e-05, %v1051_v61 }
 0x266   : > { %v1008_v1 = vpop.xlane.xlu1 %1007  ;;  %v1029_v62 = vpop.xlane.xlu0 %1028 }
 0x267   : > { %2930 = vrsqrt.f32 %v1080_v63  ;;  %v1054_v22 = vmul.f32 0.015625, %v1008_v1  ;;  %v1061_v5 = vmul.f32 0.015625, %v1029_v62 }
 0x268   : > { %2932 = vrsqrt.f32 %v1069_v16 }
 0x269   : > { %v1072_v21 = vadd.f32 1e-05, %v1054_v22  ;;  %v1079_v8 = vadd.f32 1e-05, %v1061_v5 }
 0x26a   : > { %v1038_v17 = vpop.xlane.xlu1 %1037  ;;  %v1005_v60 = vpop.xlane.xlu0 %1004 }
 0x26b   : > { %2934 = vrsqrt.f32 %v1072_v21  ;;  %v1064_v11 = vmul.f32 0.015625, %v1038_v17  ;;  %v1053_v14 = vmul.f32 0.015625, %v1005_v60 }
 0x26c   : > { %2936 = vrsqrt.f32 %v1079_v8 }
 0x26d   : > { %v2929_v34 = vpop.eup %2928  ;;  %v1082_v41 = vadd.f32 1e-05, %v1064_v11  ;;  %v1071_v26 = vadd.f32 1e-05, %v1053_v14 }
 0x26e   : > { %v1106_v27 = vmul.f32 %v2929_v34, %v3539_v25  ;;  %v1014_v45 = vpop.xlane.xlu1 %1013  ;;  %v1035_v28 = vpop.xlane.xlu0 %1034 }
 0x26f   : > { %2938 = vrsqrt.f32 %v1082_v41  ;;  %v1056_v7 = vmul.f32 0.015625, %v1014_v45  ;;  %v1063_v4 = vmul.f32 0.015625, %v1035_v28 }
 0x270   : > { %v1130_v54 = vmul.f32 %v3646_v57, %v1106_v27  ;;  %2940 = vrsqrt.f32 %v1071_v26 }
 0x271   : > { %v2931_v39 = vpop.eup %2930  ;;  %v1074_v40 = vadd.f32 1e-05, %v1056_v7  ;;  %v1081_v35 = vadd.f32 1e-05, %v1063_v4 }
 0x272   : > { %v2933_v42 = vpop.eup %2932  ;;  %v1154_v2 = vadd.f32 %v3652_v29, %v1130_v54  ;;  %v1116_v25 = vmul.f32 %v2931_v39, %v3536_v24  ;;  %v1044_v19 = vpop.xlane.xlu1 %1043 }
 0x273   : > { %v1011_v12 = vpop.xlane.xlu0 %1010  ;;  %v1105_v30 = vmul.f32 %v2933_v42, %v3549_v36  ;;  %2942 = vrsqrt.f32 %v1074_v40  ;;  %v1066_v46 = vmul.f32 0.015625, %v1044_v19 }
 0x274   : > { %v1055_v18 = vmul.f32 0.015625, %v1011_v12  ;;  %1172 = vst.msk [vmem:[#allocation2 + $0x8] sm:$0xff] %vm887_vm2, %v1154_v2  ;;  %v1140_v43 = vmul.f32 %v3646_v57, %v1116_v25  ;;  %2944 = vrsqrt.f32 %v1081_v35 }
 0x275   : > { %v2935_v37 = vpop.eup %2934  ;;  %v1129_v6 = vmul.f32 %v3646_v57, %v1105_v30  ;;  %v1084_v52 = vadd.f32 1e-05, %v1066_v46 }
 0x276   : > { %v1073_v49 = vadd.f32 1e-05, %v1055_v18  ;;  %v2937_v50 = vpop.eup %2936  ;;  %v1164_v24 = vadd.f32 %v3652_v29, %v1140_v43  ;;  %v1108_v55 = vmul.f32 %v2935_v37, %v3546_v31  ;;  %v1020_v56 = vpop.xlane.xlu1 %1019 }
 0x277   : > { %v1041_v36 = vpop.xlane.xlu0 %1040  ;;  %v1153_v59 = vadd.f32 %v3652_v29, %v1129_v6  ;;  %v1115_v13 = vmul.f32 %v2937_v50, %v3559_v32  ;;  %2946 = vrsqrt.f32 %v1084_v52  ;;  %v1058_v3 = vmul.f32 0.015625, %v1020_v56 }
 0x278   : > { %1182 = vst.msk [vmem:[#allocation2 + $0x58] sm:$0xff] %vm887_vm2, %v1164_v24  ;;  %v1132_v10 = vmul.f32 %v3646_v57, %v1108_v55  ;;  %2948 = vrsqrt.f32 %v1073_v49  ;;  %v1065_v61 = vmul.f32 0.015625, %v1041_v36 }
 0x279   : > { %v2939_v63 = vpop.eup %2938  ;;  %1171 = vst.msk [vmem:[#allocation2] sm:$0xff] %vm887_vm2, %v1153_v59  ;;  %v1139_v16 = vmul.f32 %v3646_v57, %v1115_v13  ;;  %v1076_v31 = vadd.f32 1e-05, %v1058_v3 }
 0x27a   : > { %v2941_v1 = vpop.eup %2940  ;;  %v1156_v62 = vadd.f32 %v3652_v29, %v1132_v10  ;;  %v1118_v22 = vmul.f32 %v2939_v63, %v3556_v44  ;;  %v1083_v32 = vadd.f32 1e-05, %v1065_v61  ;;  %v1026_v5 = vpop.xlane.xlu1 %1025 }
 0x27b   : > { %v1017_v21 = vpop.xlane.xlu0 %1016  ;;  %v1163_v8 = vadd.f32 %v3652_v29, %v1139_v16  ;;  %v1107_v17 = vmul.f32 %v2941_v1, %v3567_v38  ;;  %2950 = vrsqrt.f32 %v1076_v31  ;;  %v1060_v60 = vmul.f32 0.015625, %v1026_v5 }
 0x27c   : > { %1174 = vst.msk [vmem:[#allocation2 + $0x18] sm:$0xff] %vm887_vm2, %v1156_v62  ;;  %v1142_v11 = vmul.f32 %v3646_v57, %v1118_v22  ;;  %2952 = vrsqrt.f32 %v1083_v32  ;;  %v1057_v14 = vmul.f32 0.015625, %v1017_v21 }
 0x27d   : > { %v2943_v34 = vpop.eup %2942  ;;  %1181 = vst.msk [vmem:[#allocation2 + $0x50] sm:$0xff] %vm887_vm2, %v1163_v8  ;;  %v1131_v44 = vmul.f32 %v3646_v57, %v1107_v17  ;;  %v1078_v41 = vadd.f32 1e-05, %v1060_v60 }
 0x27e   : > { %v2945_v26 = vpop.eup %2944  ;;  %v1166_v27 = vadd.f32 %v3652_v29, %v1142_v11  ;;  %v1110_v45 = vmul.f32 %v2943_v34, %v3579_v20  ;;  %v1075_v38 = vadd.f32 1e-05, %v1057_v14  ;;  %v1050_v28 = vpop.xlane.xlu1 %1049 }
 0x27f   : > { %v1023_v7 = vpop.xlane.xlu0 %1022  ;;  %v1155_v4 = vadd.f32 %v3652_v29, %v1131_v44  ;;  %v1117_v54 = vmul.f32 %v2945_v26, %v3574_v53  ;;  %2954 = vrsqrt.f32 %v1078_v41  ;;  %v1068_v39 = vmul.f32 0.015625, %v1050_v28 }
 0x280   : > { %1184 = vst.msk [vmem:[#allocation2 + $0x68] sm:$0xff] %vm887_vm2, %v1166_v27  ;;  %v1134_v40 = vmul.f32 %v3646_v57, %v1110_v45  ;;  %2956 = vrsqrt.f32 %v1075_v38  ;;  %v1059_v35 = vmul.f32 0.015625, %v1023_v7 }
 0x281   : > { %v2947_v42 = vpop.eup %2946  ;;  %1173 = vst.msk [vmem:[#allocation2 + $0x10] sm:$0xff] %vm887_vm2, %v1155_v4  ;;  %v1141_v20 = vmul.f32 %v3646_v57, %v1117_v54  ;;  %v1086_v2 = vadd.f32 1e-05, %v1068_v39 }
 0x282   : > { %v2949_v25 = vpop.eup %2948  ;;  %v1158_v19 = vadd.f32 %v3652_v29, %v1134_v40  ;;  %v1120_v12 = vmul.f32 %v2947_v42, %v3591_v51  ;;  %v1077_v53 = vadd.f32 1e-05, %v1059_v35 }
 0x283   : > { %v1047_v30 = vpop.xlane.xlu0 %1046  ;;  %v1165_v46 = vadd.f32 %v3652_v29, %v1141_v20  ;;  %v1109_v18 = vmul.f32 %v2949_v25, %v3586_v0  ;;  %2958 = vrsqrt.f32 %v1086_v2 }
 0x284   : > { %v1067_v43 = vmul.f32 0.015625, %v1047_v30  ;;  %1176 = vst.msk [vmem:[#allocation2 + $0x28] sm:$0xff] %vm887_vm2, %v1158_v19  ;;  %v1144_v37 = vmul.f32 %v3646_v57, %v1120_v12  ;;  %2960 = vrsqrt.f32 %v1077_v53 }
 0x285   : > { %v2951_v6 = vpop.eup %2950  ;;  %1183 = vst.msk [vmem:[#allocation2 + $0x60] sm:$0xff] %vm887_vm2, %v1165_v46  ;;  %v1133_v52 = vmul.f32 %v3646_v57, %v1109_v18 }
 0x286   : > { %v1085_v49 = vadd.f32 1e-05, %v1067_v43  ;;  %v2953_v51 = vpop.eup %2952  ;;  %v1168_v50 = vadd.f32 %v3652_v29, %v1144_v37  ;;  %v1112_v24 = vmul.f32 %v2951_v6, %v3603_v23 }
 0x287   : > { %v1157_v0 = vadd.f32 %v3652_v29, %v1133_v52  ;;  %v1119_v55 = vmul.f32 %v2953_v51, %v3598_v9 }
 0x288   : > { %2962 = vrsqrt.f32 %v1085_v49  ;;  %1186 = vst.msk [vmem:[#allocation2 + $0x78] sm:$0xff] %vm887_vm2, %v1168_v50  ;;  %v1136_v56 = vmul.f32 %v3646_v57, %v1112_v24 }
 0x289   : > { %v2955_v36 = vpop.eup %2954  ;;  %1175 = vst.msk [vmem:[#allocation2 + $0x20] sm:$0xff] %vm887_vm2, %v1157_v0  ;;  %v1143_v59 = vmul.f32 %v3646_v57, %v1119_v55 }
 0x28a   : > { %v2957_v13 = vpop.eup %2956  ;;  %v1160_v3 = vadd.f32 %v3652_v29, %v1136_v56  ;;  %v1114_v10 = vmul.f32 %v2955_v36, %v3615_v15 }
 0x28b   : > { %v1167_v23 = vadd.f32 %v3652_v29, %v1143_v59  ;;  %v1111_v61 = vmul.f32 %v2957_v13, %v3610_v58 }
 0x28c   : > { %1178 = vst.msk [vmem:[#allocation2 + $0x38] sm:$0xff] %vm887_vm2, %v1160_v3  ;;  %v1138_v9 = vmul.f32 %v3646_v57, %v1114_v10 }
 0x28d   : > { %v2959_v63 = vpop.eup %2958  ;;  %1185 = vst.msk [vmem:[#allocation2 + $0x70] sm:$0xff] %vm887_vm2, %v1167_v23  ;;  %v1135_v16 = vmul.f32 %v3646_v57, %v1111_v61 }
 0x28e   : > { %v2961_v31 = vpop.eup %2960  ;;  %v1162_v1 = vadd.f32 %v3652_v29, %v1138_v9  ;;  %v1122_v62 = vmul.f32 %v2959_v63, %v3627_v48 }
 0x28f   : > { %v1159_v15 = vadd.f32 %v3652_v29, %v1135_v16  ;;  %v1113_v22 = vmul.f32 %v2961_v31, %v3622_v33 }
 0x290   : > { %1180 = vst.msk [vmem:[#allocation2 + $0x48] sm:$0xff] %vm887_vm2, %v1162_v1  ;;  %v1146_v58 = vmul.f32 %v3646_v57, %v1122_v62 }
 0x291   : > { %1177 = vst.msk [vmem:[#allocation2 + $0x30] sm:$0xff] %vm887_vm2, %v1159_v15  ;;  %v1137_v5 = vmul.f32 %v3646_v57, %v1113_v22 }
 0x292   : > { %v2963_v32 = vpop.eup %2962  ;;  %v1170_v21 = vadd.f32 %v3652_v29, %v1146_v58 }
 0x293   : > { %v1121_v8 = vmul.f32 %v2963_v32, %v3636_v47  ;;  %v1161_v17 = vadd.f32 %v3652_v29, %v1137_v5 }
 0x294   : > { %1188 = vst.msk [vmem:[#allocation2 + $0x88] sm:$0xff] %vm887_vm2, %v1170_v21 }
 0x295   : > { %v1145_v48 = vmul.f32 %v3646_v57, %v1121_v8  ;;  %1179 = vst.msk [vmem:[#allocation2 + $0x40] sm:$0xff] %vm887_vm2, %v1161_v17 }
 0x297   : > { %v1169_v33 = vadd.f32 %v3652_v29, %v1145_v48 }
 0x299   : > { %1187 = vst.msk [vmem:[#allocation2 + $0x80] sm:$0xff] %vm887_vm2, %v1169_v33 }
 0x29a PF: > { %v1208_v47 = vld [vmem:[%s3235_s9 + $0x8] sm:$0xff]  ;;  %v1210_v57 = vld [vmem:[%s3235_s9 + $0x18] sm:$0xff]  ;;  %v1207_v14 = vld [vmem:[%s3235_s9] sm:$0xff]  ;;  %v3004_v44 = vmov 0.0   ;;  %vm1313_vm3 = vcmask 523264   ;;  %s2723_s20 = sshll.u32 (%p3080_p6), %s2994_s26, 6 }
 0x29b   : > { %v1216_v60 = vld [vmem:[%s3235_s9 + $0x48] sm:$0xff]  ;;  %v1218_v29 = vld [vmem:[%s3235_s9 + $0x58] sm:$0xff]  ;;  %v1215_v34 = vld [vmem:[%s3235_s9 + $0x40] sm:$0xff]  ;;  %1432 = vmatprep.mubr.f32.mxu0 %v3004_v44  ;;  %1605 = vmatprep.mubr.f32.mxu1 %v3004_v44  ;;  %s4379_s14 = scalar_lea.vmem (%p3080_p6), %s4688_s7, %s2723_s20 }
 0x29c   : > { %v2782_v11 = vpack.c.bf16 %v1216_v60, %v1208_v47  ;;  %v2798_v41 = vpack.c.bf16 %v1218_v29, %v1210_v57  ;;  %v2784_v26 = vpack.c.bf16 %v1215_v34, %v1207_v14  ;;  %v1209_v27 = vld [vmem:[%s3235_s9 + $0x10] sm:$0xff]  ;;  %v1224_v38 = vld [vmem:[%s3235_s9 + $0x88] sm:$0xff]  ;;  %v1226_v4 = vld [vmem:[%s3235_s9 + $0x98] sm:$0xff] }
 0x29d   : > { %v1217_v45 = vld [vmem:[%s3235_s9 + $0x50] sm:$0xff]  ;;  %v1232_v7 = vld [vmem:[%s3235_s9 + $0xc8] sm:$0xff]  ;;  %v1234_v54 = vld [vmem:[%s3235_s9 + $0xd8] sm:$0xff] }
 0x29e   : > { %2783 = vmatprep.subr.bf16.mxu0 %v2782_v11  ;;  %v2800_v28 = vpack.c.bf16 %v1217_v45, %v1209_v27  ;;  %2799 = vmatprep.subr.bf16.mxu1 %v2798_v41  ;;  %v2786_v39 = vpack.c.bf16 %v1232_v7, %v1224_v38  ;;  %v2802_v40 = vpack.c.bf16 %v1234_v54, %v1226_v4  ;;  %v1223_v35 = vld [vmem:[%s3235_s9 + $0x80] sm:$0xff]  ;;  %v1225_v20 = vld [vmem:[%s3235_s9 + $0x90] sm:$0xff]  ;;  %v1240_v19 = vld [vmem:[%s3235_s9 + $0x108] sm:$0xff] }
 0x29f   : > { %2785 = vmatpush1.bf16.msra.mxu0 %v2784_v26  ;;  %v1231_v42 = vld [vmem:[%s3235_s9 + $0xc0] sm:$0xff]  ;;  %v1233_v25 = vld [vmem:[%s3235_s9 + $0xd0] sm:$0xff]  ;;  %v1248_v12 = vld [vmem:[%s3235_s9 + $0x148] sm:$0xff] }
 0x2a0   : > { %2801 = vmatpush1.bf16.msra.mxu1 %v2800_v28  ;;  %v2788_v2 = vpack.c.bf16 %v1231_v42, %v1223_v35  ;;  %2787 = vmatprep.subr.bf16.mxu0 %v2786_v39  ;;  %v2804_v53 = vpack.c.bf16 %v1233_v25, %v1225_v20  ;;  %v2790_v30 = vpack.c.bf16 %v1248_v12, %v1240_v19  ;;  %v1242_v46 = vld [vmem:[%s3235_s9 + $0x118] sm:$0xff]  ;;  %v1239_v43 = vld [vmem:[%s3235_s9 + $0x100] sm:$0xff]  ;;  %v1241_v52 = vld [vmem:[%s3235_s9 + $0x110] sm:$0xff] }
 0x2a1   : > { %2803 = vmatprep.subr.bf16.mxu1 %v2802_v40  ;;  %v1250_v18 = vld [vmem:[%s3235_s9 + $0x158] sm:$0xff]  ;;  %v1247_v6 = vld [vmem:[%s3235_s9 + $0x140] sm:$0xff]  ;;  %v1249_v49 = vld [vmem:[%s3235_s9 + $0x150] sm:$0xff] }
 0x2a2   : > { %v2806_v37 = vpack.c.bf16 %v1250_v18, %v1242_v46  ;;  %v2792_v51 = vpack.c.bf16 %v1247_v6, %v1239_v43  ;;  %v1256_v50 = vld [vmem:[%s3235_s9 + $0x188] sm:$0xff]  ;;  %v1258_v0 = vld [vmem:[%s3235_s9 + $0x198] sm:$0xff]  ;;  %v2808_v55 = vpack.c.bf16 %v1249_v49, %v1241_v52  ;;  %v1255_v59 = vld [vmem:[%s3235_s9 + $0x180] sm:$0xff] }
 0x2a3   : > { %2789 = vmatpush1.bf16.msra.mxu0 %v2788_v2  ;;  %v1264_v24 = vld [vmem:[%s3235_s9 + $0x1c8] sm:$0xff]  ;;  %v1266_v36 = vld [vmem:[%s3235_s9 + $0x1d8] sm:$0xff]  ;;  %v1263_v13 = vld [vmem:[%s3235_s9 + $0x1c0] sm:$0xff] }
 0x2a4   : > { %2805 = vmatpush1.bf16.msra.mxu1 %v2804_v53  ;;  %2791 = vmatprep.subr.bf16.mxu0 %v2790_v30  ;;  %v2794_v56 = vpack.c.bf16 %v1264_v24, %v1256_v50  ;;  %v2810_v3 = vpack.c.bf16 %v1266_v36, %v1258_v0  ;;  %v1257_v10 = vld [vmem:[%s3235_s9 + $0x190] sm:$0xff]  ;;  %v1212_v61 = vld [vmem:[%s3235_s9 + $0x28] sm:$0xff]  ;;  %v1214_v63 = vld [vmem:[%s3235_s9 + $0x38] sm:$0xff]  ;;  %v2796_v16 = vpack.c.bf16 %v1263_v13, %v1255_v59 }
 0x2a5   : > { %2807 = vmatprep.subr.bf16.mxu1 %v2806_v37  ;;  %v1265_v23 = vld [vmem:[%s3235_s9 + $0x1d0] sm:$0xff]  ;;  %v1220_v9 = vld [vmem:[%s3235_s9 + $0x68] sm:$0xff]  ;;  %v1222_v31 = vld [vmem:[%s3235_s9 + $0x78] sm:$0xff] }
 0x2a6   : > { %v2812_v1 = vpack.c.bf16 %v1265_v23, %v1257_v10  ;;  %v2814_v62 = vpack.c.bf16 %v1220_v9, %v1212_v61  ;;  %v1211_v15 = vld [vmem:[%s3235_s9 + $0x20] sm:$0xff]  ;;  %v2830_v58 = vpack.c.bf16 %v1222_v31, %v1214_v63  ;;  %v1213_v32 = vld [vmem:[%s3235_s9 + $0x30] sm:$0xff]  ;;  %v1228_v21 = vld [vmem:[%s3235_s9 + $0xa8] sm:$0xff] }
 0x2a7   : > { %2793 = vmatpush1.bf16.msra.mxu0 %v2792_v51  ;;  %v1219_v22 = vld [vmem:[%s3235_s9 + $0x60] sm:$0xff]  ;;  %v1221_v5 = vld [vmem:[%s3235_s9 + $0x70] sm:$0xff]  ;;  %v1236_v8 = vld [vmem:[%s3235_s9 + $0xe8] sm:$0xff] }
 0x2a8   : > { %2809 = vmatpush1.bf16.msra.mxu1 %v2808_v55  ;;  %2795 = vmatprep.subr.bf16.mxu0 %v2794_v56  ;;  %v3769_v17 = vld [vmem:[#allocation2] sm:$0xff]  ;;  %v2816_v48 = vpack.c.bf16 %v1219_v22, %v1211_v15  ;;  %v1230_v33 = vld [vmem:[%s3235_s9 + $0xb8] sm:$0xff]  ;;  %v2832_v60 = vpack.c.bf16 %v1221_v5, %v1213_v32  ;;  %v2818_v57 = vpack.c.bf16 %v1236_v8, %v1228_v21  ;;  %v1227_v11 = vld [vmem:[%s3235_s9 + $0xa0] sm:$0xff] }
 0x2a9   : > { %2811 = vmatprep.subr.bf16.mxu1 %v2810_v3  ;;  %v1238_v47 = vld [vmem:[%s3235_s9 + $0xf8] sm:$0xff]  ;;  %v1235_v29 = vld [vmem:[%s3235_s9 + $0xe0] sm:$0xff]  ;;  %v1229_v14 = vld [vmem:[%s3235_s9 + $0xb0] sm:$0xff] }
 0x2aa   : > { %v2834_v34 = vpack.c.bf16 %v1238_v47, %v1230_v33  ;;  %v1237_v41 = vld [vmem:[%s3235_s9 + $0xf0] sm:$0xff]  ;;  %v1244_v26 = vld [vmem:[%s3235_s9 + $0x128] sm:$0xff]  ;;  %v3783_v45 = vld [vmem:[#allocation2 + $0x8] sm:$0xff]  ;;  %v2820_v7 = vpack.c.bf16 %v1235_v29, %v1227_v11 }
 0x2ab   : > { %2797 = vmatpush1.bf16.msra.mxu0 %v2796_v16  ;;  %v1252_v27 = vld [vmem:[%s3235_s9 + $0x168] sm:$0xff]  ;;  %v1246_v38 = vld [vmem:[%s3235_s9 + $0x138] sm:$0xff]  ;;  %v2836_v4 = vpack.c.bf16 %v1237_v41, %v1229_v14  ;;  %v1243_v39 = vld [vmem:[%s3235_s9 + $0x120] sm:$0xff] }
 0x2ac   : > { %2813 = vmatpush1.bf16.msra.mxu1 %v2812_v1  ;;  %2815 = vmatprep.subr.bf16.mxu0 %v2814_v62  ;;  %v1254_v28 = vld [vmem:[%s3235_s9 + $0x178] sm:$0xff]  ;;  %v2822_v54 = vpack.c.bf16 %v1252_v27, %v1244_v26  ;;  %v1251_v40 = vld [vmem:[%s3235_s9 + $0x160] sm:$0xff]  ;;  %v1245_v35 = vld [vmem:[%s3235_s9 + $0x130] sm:$0xff]  ;;  %v1273_v1 = vlaneseq }
 0x2ad   : > { %2831 = vmatprep.subr.bf16.mxu1 %v2830_v58  ;;  %v2838_v42 = vpack.c.bf16 %v1254_v28, %v1246_v38  ;;  %v1253_v20 = vld [vmem:[%s3235_s9 + $0x170] sm:$0xff]  ;;  %v1260_v2 = vld [vmem:[%s3235_s9 + $0x1a8] sm:$0xff]  ;;  %v3800_v19 = vld [vmem:[#allocation2 + $0x10] sm:$0xff]  ;;  %v2824_v30 = vpack.c.bf16 %v1251_v40, %v1243_v39 }
 0x2ae   : > { %2646 = vmatmul.mubr.msk.f32.vlgmr.msra.gmra.mrb[0].mxu0 %vm1313_vm3, %v3769_v17  ;;  %v1268_v25 = vld [vmem:[%s3235_s9 + $0x1e8] sm:$0xff]  ;;  %v1262_v12 = vld [vmem:[%s3235_s9 + $0x1b8] sm:$0xff]  ;;  %v2840_v46 = vpack.c.bf16 %v1253_v20, %v1245_v35  ;;  %v1259_v43 = vld [vmem:[%s3235_s9 + $0x1a0] sm:$0xff]  ;;  %v4041_v62 = vshrl.u32 %v1273_v1, 7 }
 0x2af   : > { %2664 = vmatmul.mubr.msk.f32.vlgmr.msra.gmra.mrb[0].mxu1 %vm1313_vm3, %v3769_v17  ;;  %2817 = vmatpush1.bf16.msra.mxu0 %v2816_v48  ;;  %v1270_v53 = vld [vmem:[%s3235_s9 + $0x1f8] sm:$0xff]  ;;  %v2826_v18 = vpack.c.bf16 %v1268_v25, %v1260_v2  ;;  %v1267_v37 = vld [vmem:[%s3235_s9 + $0x1e0] sm:$0xff]  ;;  %v1261_v52 = vld [vmem:[%s3235_s9 + $0x1b0] sm:$0xff] }
 0x2b0   : > { %2833 = vmatpush1.bf16.msra.mxu1 %v2832_v60  ;;  %1438 = vmatprep.mubr.f32.mxu0 %v3004_v44  ;;  %v2842_v6 = vpack.c.bf16 %v1270_v53, %v1262_v12  ;;  %v1269_v49 = vld [vmem:[%s3235_s9 + $0x1f0] sm:$0xff]  ;;  %v3814_v51 = vld [vmem:[#allocation2 + $0x18] sm:$0xff]  ;;  %v2828_v50 = vpack.c.bf16 %v1267_v37, %v1259_v43  ;;  %v3830_v55 = vld [vmem:[#allocation2 + $0x28] sm:$0xff]  ;;  %v1275_v15 = vsub.s32 0, %v4041_v62  ;;  %v1279_v58 = vsub.s32 1, %v4041_v62 }
 0x2b1   : > { %1611 = vmatprep.mubr.f32.mxu1 %v3004_v44  ;;  %2819 = vmatprep.subr.bf16.mxu0 %v2818_v57  ;;  %v2844_v24 = vpack.c.bf16 %v1269_v49, %v1261_v52  ;;  %v3822_v0 = vld [vmem:[#allocation2 + $0x20] sm:$0xff]  ;;  %v3838_v56 = vld [vmem:[#allocation2 + $0x30] sm:$0xff]  ;;  %v3846_v36 = vld [vmem:[#allocation2 + $0x38] sm:$0xff]  ;;  %v1287_v32 = vsub.s32 3, %v4041_v62 }
 0x2b2   : > { %2647 = vmatmul.mubr.msk.f32.gmra.mrb[2].mxu0 %vm1313_vm3, %v3783_v45  ;;  %2835 = vmatprep.subr.bf16.mxu1 %v2834_v34  ;;  %v3854_v59 = vld [vmem:[#allocation2 + $0x40] sm:$0xff]  ;;  %v3862_v13 = vld [vmem:[#allocation2 + $0x48] sm:$0xff]  ;;  %v3870_v3 = vld [vmem:[#allocation2 + $0x50] sm:$0xff] }
 0x2b3   : > { %2665 = vmatmul.mubr.msk.f32.gmra.mrb[2].mxu1 %vm1313_vm3, %v3783_v45  ;;  %1444 = vmatprep.mubr.f32.mxu0 %v3004_v44  ;;  %v3878_v10 = vld [vmem:[#allocation2 + $0x58] sm:$0xff]  ;;  %v3886_v23 = vld [vmem:[#allocation2 + $0x60] sm:$0xff]  ;;  %v3894_v61 = vld [vmem:[#allocation2 + $0x68] sm:$0xff] }
 0x2b4   : > { %1617 = vmatprep.mubr.f32.mxu1 %v3004_v44  ;;  %2821 = vmatpush1.bf16.msra.mxu0 %v2820_v7  ;;  %v3902_v9 = vld [vmem:[#allocation2 + $0x70] sm:$0xff]  ;;  %v3910_v63 = vld [vmem:[#allocation2 + $0x78] sm:$0xff]  ;;  %v3918_v16 = vld [vmem:[#allocation2 + $0x80] sm:$0xff] }
 0x2b5   : > { %2837 = vmatpush1.bf16.msra.mxu1 %v2836_v4  ;;  %2823 = vmatprep.subr.bf16.mxu0 %v2822_v54  ;;  %v3926_v31 = vld [vmem:[#allocation2 + $0x88] sm:$0xff]  ;;  %v4049_v22 = vld [vmem:[%s473_s8] sm:$0xff] }
 0x2b6   : > { %2648 = vmatmul.mubr.msk.f32.gmra.mrb[4].mxu0 %vm1313_vm3, %v3800_v19  ;;  %2839 = vmatprep.subr.bf16.mxu1 %v2838_v42  ;;  %v4055_v5 = vrot.slane %v4049_v22, %v1275_v15  ;;  %v4061_v8 = vrot.slane %v4049_v22, %v1279_v58 }
 0x2b7   : > { %2666 = vmatmul.mubr.msk.f32.gmra.mrb[4].mxu1 %vm1313_vm3, %v3800_v19  ;;  %1450 = vmatprep.mubr.f32.mxu0 %v3004_v44 }
 0x2b8   : > { %1623 = vmatprep.mubr.f32.mxu1 %v3004_v44  ;;  %2825 = vmatpush1.bf16.msra.mxu0 %v2824_v30 }
 0x2b9   : > { %2841 = vmatpush1.bf16.msra.mxu1 %v2840_v46  ;;  %2827 = vmatprep.subr.bf16.mxu0 %v2826_v18 }
 0x2ba   : > { %2649 = vmatmul.mubr.msk.f32.gmra.mrb[6].mxu0 %vm1313_vm3, %v3814_v51  ;;  %2843 = vmatprep.subr.bf16.mxu1 %v2842_v6 }
 0x2bb   : > { %2667 = vmatmul.mubr.msk.f32.gmra.mrb[6].mxu1 %vm1313_vm3, %v3814_v51  ;;  %1456 = vmatprep.mubr.f32.mxu0 %v3004_v44 }
 0x2bc   : > { %1629 = vmatprep.mubr.f32.mxu1 %v3004_v44  ;;  %2829 = vmatpush1.bf16.msra.mxu0 %v2828_v50 }
 0x2bd   : > { %2845 = vmatpush1.bf16.msra.mxu1 %v2844_v24 }
 0x2be   : > { %2650 = vmatmul.mubr.msk.f32.gmra.mrb[8].mxu0 %vm1313_vm3, %v3822_v0 }
 0x2bf   : > { %2668 = vmatmul.mubr.msk.f32.gmra.mrb[8].mxu1 %vm1313_vm3, %v3822_v0  ;;  %1462 = vmatprep.mubr.f32.mxu0 %v3004_v44 }
 0x2c0   : > { %1635 = vmatprep.mubr.f32.mxu1 %v3004_v44 }
 0x2c2   : > { %2651 = vmatmul.mubr.msk.f32.gmra.mrb[10].mxu0 %vm1313_vm3, %v3830_v55 }
 0x2c3   : > { %2669 = vmatmul.mubr.msk.f32.gmra.mrb[10].mxu1 %vm1313_vm3, %v3830_v55  ;;  %1468 = vmatprep.mubr.f32.mxu0 %v3004_v44 }
 0x2c4   : > { %1641 = vmatprep.mubr.f32.mxu1 %v3004_v44 }
 0x2c6   : > { %2652 = vmatmul.mubr.msk.f32.gmra.mrb[12].mxu0 %vm1313_vm3, %v3838_v56 }
 0x2c7   : > { %2670 = vmatmul.mubr.msk.f32.gmra.mrb[12].mxu1 %vm1313_vm3, %v3838_v56  ;;  %1474 = vmatprep.mubr.f32.mxu0 %v3004_v44 }
 0x2c8   : > { %1647 = vmatprep.mubr.f32.mxu1 %v3004_v44 }
 0x2ca   : > { %2653 = vmatmul.mubr.msk.f32.gmra.mrb[14].mxu0 %vm1313_vm3, %v3846_v36 }
 0x2cb   : > { %2671 = vmatmul.mubr.msk.f32.gmra.mrb[14].mxu1 %vm1313_vm3, %v3846_v36  ;;  %1480 = vmatprep.mubr.f32.mxu0 %v3004_v44 }
 0x2cc   : > { %1653 = vmatprep.mubr.f32.mxu1 %v3004_v44 }
 0x2ce   : > { %2654 = vmatmul.mubr.msk.f32.gmra.mrb[16].mxu0 %vm1313_vm3, %v3854_v59 }
 0x2cf   : > { %2672 = vmatmul.mubr.msk.f32.gmra.mrb[16].mxu1 %vm1313_vm3, %v3854_v59  ;;  %1486 = vmatprep.mubr.f32.mxu0 %v3004_v44 }
 0x2d0   : > { %1659 = vmatprep.mubr.f32.mxu1 %v3004_v44 }
 0x2d2   : > { %2655 = vmatmul.mubr.msk.f32.gmra.mrb[18].mxu0 %vm1313_vm3, %v3862_v13 }
 0x2d3   : > { %2673 = vmatmul.mubr.msk.f32.gmra.mrb[18].mxu1 %vm1313_vm3, %v3862_v13  ;;  %1492 = vmatprep.mubr.f32.mxu0 %v3004_v44 }
 0x2d4   : > { %1665 = vmatprep.mubr.f32.mxu1 %v3004_v44 }
 0x2d6   : > { %2656 = vmatmul.mubr.msk.f32.gmra.mrb[20].mxu0 %vm1313_vm3, %v3870_v3 }
 0x2d7   : > { %2674 = vmatmul.mubr.msk.f32.gmra.mrb[20].mxu1 %vm1313_vm3, %v3870_v3  ;;  %1498 = vmatprep.mubr.f32.mxu0 %v3004_v44 }
 0x2d8   : > { %1671 = vmatprep.mubr.f32.mxu1 %v3004_v44 }
 0x2da   : > { %2657 = vmatmul.mubr.msk.f32.gmra.mrb[22].mxu0 %vm1313_vm3, %v3878_v10 }
 0x2db   : > { %2675 = vmatmul.mubr.msk.f32.gmra.mrb[22].mxu1 %vm1313_vm3, %v3878_v10  ;;  %1504 = vmatprep.mubr.f32.mxu0 %v3004_v44 }
 0x2dc   : > { %1677 = vmatprep.mubr.f32.mxu1 %v3004_v44 }
 0x2de   : > { %2658 = vmatmul.mubr.msk.f32.gmra.mrb[24].mxu0 %vm1313_vm3, %v3886_v23 }
 0x2df   : > { %2676 = vmatmul.mubr.msk.f32.gmra.mrb[24].mxu1 %vm1313_vm3, %v3886_v23  ;;  %1510 = vmatprep.mubr.f32.mxu0 %v3004_v44 }
 0x2e0   : > { %1683 = vmatprep.mubr.f32.mxu1 %v3004_v44 }
 0x2e2   : > { %2659 = vmatmul.mubr.msk.f32.gmra.mrb[26].mxu0 %vm1313_vm3, %v3894_v61 }
 0x2e3   : > { %2677 = vmatmul.mubr.msk.f32.gmra.mrb[26].mxu1 %vm1313_vm3, %v3894_v61  ;;  %1516 = vmatprep.mubr.f32.mxu0 %v3004_v44 }
 0x2e4   : > { %1689 = vmatprep.mubr.f32.mxu1 %v3004_v44 }
 0x2e6   : > { %2660 = vmatmul.mubr.msk.f32.gmra.mrb[28].mxu0 %vm1313_vm3, %v3902_v9 }
 0x2e7   : > { %2678 = vmatmul.mubr.msk.f32.gmra.mrb[28].mxu1 %vm1313_vm3, %v3902_v9  ;;  %1522 = vmatprep.mubr.f32.mxu0 %v3004_v44 }
 0x2e8   : > { %1695 = vmatprep.mubr.f32.mxu1 %v3004_v44 }
 0x2ea   : > { %2661 = vmatmul.mubr.msk.f32.gmra.mrb[30].mxu0 %vm1313_vm3, %v3910_v63 }
 0x2eb   : > { %2679 = vmatmul.mubr.msk.f32.gmra.mrb[30].mxu1 %vm1313_vm3, %v3910_v63  ;;  %1528 = vmatprep.mubr.f32.mxu0 %v3004_v44 }
 0x2ec   : > { %1701 = vmatprep.mubr.f32.mxu1 %v3004_v44 }
 0x2ee   : > { %2662 = vmatmul.mubr.msk.f32.gmra.mrb[32].mxu0 %vm1313_vm3, %v3918_v16 }
 0x2ef   : > { %2680 = vmatmul.mubr.msk.f32.gmra.mrb[32].mxu1 %vm1313_vm3, %v3918_v16  ;;  %1534 = vmatprep.mubr.f32.mxu0 %v3004_v44 }
 0x2f0   : > { %1707 = vmatprep.mubr.f32.mxu1 %v3004_v44 }
 0x2f2   : > { %2663 = vmatmul.mubr.msk.f32.gmra.mrb[34].mxu0 %vm1313_vm3, %v3926_v31 }
 0x2f3   : > { %2681 = vmatmul.mubr.msk.f32.gmra.mrb[34].mxu1 %vm1313_vm3, %v3926_v31  ;;  %1778 = vmatprep.mubr.f32.mxu0 %v3004_v44 }
 0x2f4   : > { %1951 = vmatprep.mubr.f32.mxu1 %v3004_v44 }
 0x2f6   : > { %2682 = vmatmul.mubr.msk.f32.vlgmr.msra.gmra.mrb[36].mxu0 %vm1313_vm3, %v3769_v17 }
 0x2f7   : > { %2700 = vmatmul.mubr.msk.f32.vlgmr.msra.gmra.mrb[36].mxu1 %vm1313_vm3, %v3769_v17  ;;  %1784 = vmatprep.mubr.f32.mxu0 %v3004_v44  ;;  %v4064_v17 = vrot.slane %v4049_v22, %v1287_v32 }
 0x2f8   : > { %1957 = vmatprep.mubr.f32.mxu1 %v3004_v44 }
 0x2fa   : > { %2683 = vmatmul.mubr.msk.f32.gmra.mrb[38].mxu0 %vm1313_vm3, %v3783_v45 }
 0x2fb   : > { %2701 = vmatmul.mubr.msk.f32.gmra.mrb[38].mxu1 %vm1313_vm3, %v3783_v45  ;;  %1790 = vmatprep.mubr.f32.mxu0 %v3004_v44 }
 0x2fc   : > { %1963 = vmatprep.mubr.f32.mxu1 %v3004_v44 }
 0x2fe   : > { %2684 = vmatmul.mubr.msk.f32.gmra.mrb[40].mxu0 %vm1313_vm3, %v3800_v19 }
 0x2ff   : > { %2702 = vmatmul.mubr.msk.f32.gmra.mrb[40].mxu1 %vm1313_vm3, %v3800_v19  ;;  %1796 = vmatprep.mubr.f32.mxu0 %v3004_v44 }
 0x300   : > { %1969 = vmatprep.mubr.f32.mxu1 %v3004_v44 }
 0x302   : > { %2685 = vmatmul.mubr.msk.f32.gmra.mrb[42].mxu0 %vm1313_vm3, %v3814_v51 }
 0x303   : > { %2703 = vmatmul.mubr.msk.f32.gmra.mrb[42].mxu1 %vm1313_vm3, %v3814_v51  ;;  %1802 = vmatprep.mubr.f32.mxu0 %v3004_v44 }
 0x304   : > { %1975 = vmatprep.mubr.f32.mxu1 %v3004_v44 }
 0x306   : > { %2686 = vmatmul.mubr.msk.f32.gmra.mrb[44].mxu0 %vm1313_vm3, %v3822_v0 }
 0x307   : > { %2704 = vmatmul.mubr.msk.f32.gmra.mrb[44].mxu1 %vm1313_vm3, %v3822_v0  ;;  %1808 = vmatprep.mubr.f32.mxu0 %v3004_v44 }
 0x308   : > { %1981 = vmatprep.mubr.f32.mxu1 %v3004_v44 }
 0x30a   : > { %2687 = vmatmul.mubr.msk.f32.gmra.mrb[46].mxu0 %vm1313_vm3, %v3830_v55 }
 0x30b   : > { %2705 = vmatmul.mubr.msk.f32.gmra.mrb[46].mxu1 %vm1313_vm3, %v3830_v55  ;;  %1814 = vmatprep.mubr.f32.mxu0 %v3004_v44 }
 0x30c   : > { %1987 = vmatprep.mubr.f32.mxu1 %v3004_v44 }
 0x30e   : > { %2688 = vmatmul.mubr.msk.f32.gmra.mrb[48].mxu0 %vm1313_vm3, %v3838_v56 }
 0x30f   : > { %2706 = vmatmul.mubr.msk.f32.gmra.mrb[48].mxu1 %vm1313_vm3, %v3838_v56  ;;  %1820 = vmatprep.mubr.f32.mxu0 %v3004_v44 }
 0x310   : > { %1993 = vmatprep.mubr.f32.mxu1 %v3004_v44 }
 0x312   : > { %2689 = vmatmul.mubr.msk.f32.gmra.mrb[50].mxu0 %vm1313_vm3, %v3846_v36 }
 0x313   : > { %2707 = vmatmul.mubr.msk.f32.gmra.mrb[50].mxu1 %vm1313_vm3, %v3846_v36  ;;  %1826 = vmatprep.mubr.f32.mxu0 %v3004_v44 }
 0x314   : > { %1999 = vmatprep.mubr.f32.mxu1 %v3004_v44 }
 0x316   : > { %2690 = vmatmul.mubr.msk.f32.gmra.mrb[52].mxu0 %vm1313_vm3, %v3854_v59 }
 0x317   : > { %2708 = vmatmul.mubr.msk.f32.gmra.mrb[52].mxu1 %vm1313_vm3, %v3854_v59  ;;  %1832 = vmatprep.mubr.f32.mxu0 %v3004_v44 }
 0x318   : > { %2005 = vmatprep.mubr.f32.mxu1 %v3004_v44 }
 0x31a   : > { %2691 = vmatmul.mubr.msk.f32.gmra.mrb[54].mxu0 %vm1313_vm3, %v3862_v13 }
 0x31b   : > { %2709 = vmatmul.mubr.msk.f32.gmra.mrb[54].mxu1 %vm1313_vm3, %v3862_v13  ;;  %1838 = vmatprep.mubr.f32.mxu0 %v3004_v44 }
 0x31c   : > { %2011 = vmatprep.mubr.f32.mxu1 %v3004_v44 }
 0x31e   : > { %2692 = vmatmul.mubr.msk.f32.gmra.mrb[56].mxu0 %vm1313_vm3, %v3870_v3 }
 0x31f   : > { %2710 = vmatmul.mubr.msk.f32.gmra.mrb[56].mxu1 %vm1313_vm3, %v3870_v3  ;;  %1844 = vmatprep.mubr.f32.mxu0 %v3004_v44 }
 0x320   : > { %2017 = vmatprep.mubr.f32.mxu1 %v3004_v44 }
 0x322   : > { %2693 = vmatmul.mubr.msk.f32.gmra.mrb[58].mxu0 %vm1313_vm3, %v3878_v10 }
 0x323   : > { %2711 = vmatmul.mubr.msk.f32.gmra.mrb[58].mxu1 %vm1313_vm3, %v3878_v10  ;;  %1850 = vmatprep.mubr.f32.mxu0 %v3004_v44 }
 0x324   : > { %2023 = vmatprep.mubr.f32.mxu1 %v3004_v44 }
 0x326   : > { %2694 = vmatmul.mubr.msk.f32.gmra.mrb[60].mxu0 %vm1313_vm3, %v3886_v23 }
 0x327   : > { %2712 = vmatmul.mubr.msk.f32.gmra.mrb[60].mxu1 %vm1313_vm3, %v3886_v23  ;;  %1856 = vmatprep.mubr.f32.mxu0 %v3004_v44 }
 0x328   : > { %2029 = vmatprep.mubr.f32.mxu1 %v3004_v44 }
 0x32a   : > { %2695 = vmatmul.mubr.msk.f32.gmra.mrb[62].mxu0 %vm1313_vm3, %v3894_v61 }
 0x32b   : > { %2713 = vmatmul.mubr.msk.f32.gmra.mrb[62].mxu1 %vm1313_vm3, %v3894_v61  ;;  %1862 = vmatprep.mubr.f32.mxu0 %v3004_v44 }
 0x32c   : > { %2035 = vmatprep.mubr.f32.mxu1 %v3004_v44 }
 0x32e   : > { %2696 = vmatmul.mubr.msk.f32.gmra.mrb[64].mxu0 %vm1313_vm3, %v3902_v9 }
 0x32f   : > { %2714 = vmatmul.mubr.msk.f32.gmra.mrb[64].mxu1 %vm1313_vm3, %v3902_v9  ;;  %1868 = vmatprep.mubr.f32.mxu0 %v3004_v44 }
 0x330   : > { %2041 = vmatprep.mubr.f32.mxu1 %v3004_v44 }
 0x332   : > { %2697 = vmatmul.mubr.msk.f32.gmra.mrb[66].mxu0 %vm1313_vm3, %v3910_v63 }
 0x333   : > { %2715 = vmatmul.mubr.msk.f32.gmra.mrb[66].mxu1 %vm1313_vm3, %v3910_v63  ;;  %1874 = vmatprep.mubr.f32.mxu0 %v3004_v44 }
 0x334   : > { %2047 = vmatprep.mubr.f32.mxu1 %v3004_v44 }
 0x336   : > { %2698 = vmatmul.mubr.msk.f32.gmra.mrb[68].mxu0 %vm1313_vm3, %v3918_v16 }
 0x337   : > { %2716 = vmatmul.mubr.msk.f32.gmra.mrb[68].mxu1 %vm1313_vm3, %v3918_v16  ;;  %1880 = vmatprep.mubr.f32.mxu0 %v3004_v44 }
 0x338   : > { %2053 = vmatprep.mubr.f32.mxu1 %v3004_v44  ;;  %v1283_v44 = vsub.s32 2, %v4041_v62 }
 0x33a   : > { %2699 = vmatmul.mubr.msk.f32.gmra.mrb[70].mxu0 %vm1313_vm3, %v3926_v31  ;;  %v4058_v21 = vrot.slane %v4049_v22, %v1283_v44 }
 0x33b   : > { %2717 = vmatmul.mubr.msk.f32.gmra.mrb[70].mxu1 %vm1313_vm3, %v3926_v31 }
 0x381   : > { %v1434_v48 = vpop.f32.mrb[0].mxu0 }
 0x382   : > { %v1435_v33 = vadd.f32 %v1434_v48, %v4055_v5  ;;  %v1607_v47 = vpop.f32.mrb[0].mxu1  ;;  %v1436_v60 = vpop.f32.mrb[1].mxu0 }
 0x383   : > { %v1608_v57 = vadd.f32 %v1607_v47, %v4058_v21  ;;  %v1437_v11 = vadd.f32 %v1436_v60, %v4061_v8  ;;  %v1609_v29 = vpop.f32.mrb[1].mxu1 }
 0x384   : > { %2060 = vst [vmem:[%s3237_s12] sm:$0xff] %v1435_v33  ;;  %v1610_v14 = vadd.f32 %v1609_v29, %v4064_v17 }
 0x385   : > { %2062 = vst [vmem:[%s3237_s12 + $0x10] sm:$0xff] %v1608_v57  ;;  %2061 = vst [vmem:[%s3237_s12 + $0x8] sm:$0xff] %v1437_v11  ;;  %v1440_v34 = vpop.f32.mrb[2].mxu0 }
 0x386   : > { %2063 = vst [vmem:[%s3237_s12 + $0x18] sm:$0xff] %v1610_v14  ;;  %v1441_v41 = vadd.f32 %v1440_v34, %v4055_v5  ;;  %v1613_v26 = vpop.f32.mrb[2].mxu1  ;;  %v1442_v27 = vpop.f32.mrb[3].mxu0 }
 0x387   : > { %v1614_v45 = vadd.f32 %v1613_v26, %v4058_v21  ;;  %v1443_v38 = vadd.f32 %v1442_v27, %v4061_v8  ;;  %v1615_v28 = vpop.f32.mrb[3].mxu1 }
 0x388   : > { %2068 = vst [vmem:[%s3237_s12 + $0x40] sm:$0xff] %v1441_v41  ;;  %v1616_v7 = vadd.f32 %v1615_v28, %v4064_v17 }
 0x389   : > { %2070 = vst [vmem:[%s3237_s12 + $0x50] sm:$0xff] %v1614_v45  ;;  %2069 = vst [vmem:[%s3237_s12 + $0x48] sm:$0xff] %v1443_v38  ;;  %v1446_v4 = vpop.f32.mrb[4].mxu0 }
 0x38a   : > { %2071 = vst [vmem:[%s3237_s12 + $0x58] sm:$0xff] %v1616_v7  ;;  %v1447_v54 = vadd.f32 %v1446_v4, %v4055_v5  ;;  %v1619_v39 = vpop.f32.mrb[4].mxu1  ;;  %v1448_v40 = vpop.f32.mrb[5].mxu0 }
 0x38b   : > { %v1620_v35 = vadd.f32 %v1619_v39, %v4058_v21  ;;  %v1449_v42 = vadd.f32 %v1448_v40, %v4061_v8  ;;  %v1621_v20 = vpop.f32.mrb[5].mxu1 }
 0x38c   : > { %2076 = vst [vmem:[%s3237_s12 + $0x80] sm:$0xff] %v1447_v54  ;;  %v1622_v2 = vadd.f32 %v1621_v20, %v4064_v17 }
 0x38d   : > { %2078 = vst [vmem:[%s3237_s12 + $0x90] sm:$0xff] %v1620_v35  ;;  %2077 = vst [vmem:[%s3237_s12 + $0x88] sm:$0xff] %v1449_v42  ;;  %v1452_v25 = vpop.f32.mrb[6].mxu0 }
 0x38e   : > { %2079 = vst [vmem:[%s3237_s12 + $0x98] sm:$0xff] %v1622_v2  ;;  %v1453_v19 = vadd.f32 %v1452_v25, %v4055_v5  ;;  %v1625_v12 = vpop.f32.mrb[6].mxu1  ;;  %v1454_v53 = vpop.f32.mrb[7].mxu0 }
 0x38f   : > { %v1626_v30 = vadd.f32 %v1625_v12, %v4058_v21  ;;  %v1455_v46 = vadd.f32 %v1454_v53, %v4061_v8  ;;  %v1627_v18 = vpop.f32.mrb[7].mxu1 }
 0x390   : > { %2084 = vst [vmem:[%s3237_s12 + $0xc0] sm:$0xff] %v1453_v19  ;;  %v1628_v43 = vadd.f32 %v1627_v18, %v4064_v17 }
 0x391   : > { %2086 = vst [vmem:[%s3237_s12 + $0xd0] sm:$0xff] %v1626_v30  ;;  %2085 = vst [vmem:[%s3237_s12 + $0xc8] sm:$0xff] %v1455_v46  ;;  %v1458_v37 = vpop.f32.mrb[8].mxu0 }
 0x392   : > { %2087 = vst [vmem:[%s3237_s12 + $0xd8] sm:$0xff] %v1628_v43  ;;  %v1459_v6 = vadd.f32 %v1458_v37, %v4055_v5  ;;  %v1631_v52 = vpop.f32.mrb[8].mxu1  ;;  %v1460_v49 = vpop.f32.mrb[9].mxu0 }
 0x393   : > { %v1632_v51 = vadd.f32 %v1631_v52, %v4058_v21  ;;  %v1461_v50 = vadd.f32 %v1460_v49, %v4061_v8  ;;  %v1633_v24 = vpop.f32.mrb[9].mxu1 }
 0x394   : > { %2092 = vst [vmem:[%s3237_s12 + $0x100] sm:$0xff] %v1459_v6  ;;  %v1634_v0 = vadd.f32 %v1633_v24, %v4064_v17 }
 0x395   : > { %2094 = vst [vmem:[%s3237_s12 + $0x110] sm:$0xff] %v1632_v51  ;;  %2093 = vst [vmem:[%s3237_s12 + $0x108] sm:$0xff] %v1461_v50  ;;  %v1464_v55 = vpop.f32.mrb[10].mxu0 }
 0x396   : > { %2095 = vst [vmem:[%s3237_s12 + $0x118] sm:$0xff] %v1634_v0  ;;  %v1465_v56 = vadd.f32 %v1464_v55, %v4055_v5  ;;  %v1637_v36 = vpop.f32.mrb[10].mxu1  ;;  %v1466_v59 = vpop.f32.mrb[11].mxu0 }
 0x397   : > { %v1638_v13 = vadd.f32 %v1637_v36, %v4058_v21  ;;  %v1467_v3 = vadd.f32 %v1466_v59, %v4061_v8  ;;  %v1639_v10 = vpop.f32.mrb[11].mxu1 }
 0x398   : > { %2100 = vst [vmem:[%s3237_s12 + $0x140] sm:$0xff] %v1465_v56  ;;  %v1640_v23 = vadd.f32 %v1639_v10, %v4064_v17 }
 0x399   : > { %2102 = vst [vmem:[%s3237_s12 + $0x150] sm:$0xff] %v1638_v13  ;;  %2101 = vst [vmem:[%s3237_s12 + $0x148] sm:$0xff] %v1467_v3  ;;  %v1470_v61 = vpop.f32.mrb[12].mxu0 }
 0x39a   : > { %2103 = vst [vmem:[%s3237_s12 + $0x158] sm:$0xff] %v1640_v23  ;;  %v1471_v9 = vadd.f32 %v1470_v61, %v4055_v5  ;;  %v1643_v63 = vpop.f32.mrb[12].mxu1  ;;  %v1472_v16 = vpop.f32.mrb[13].mxu0 }
 0x39b   : > { %v1644_v31 = vadd.f32 %v1643_v63, %v4058_v21  ;;  %v1473_v1 = vadd.f32 %v1472_v16, %v4061_v8  ;;  %v1645_v15 = vpop.f32.mrb[13].mxu1 }
 0x39c   : > { %2108 = vst [vmem:[%s3237_s12 + $0x180] sm:$0xff] %v1471_v9  ;;  %v1646_v44 = vadd.f32 %v1645_v15, %v4064_v17 }
 0x39d   : > { %2110 = vst [vmem:[%s3237_s12 + $0x190] sm:$0xff] %v1644_v31  ;;  %2109 = vst [vmem:[%s3237_s12 + $0x188] sm:$0xff] %v1473_v1  ;;  %v1476_v58 = vpop.f32.mrb[14].mxu0 }
 0x39e   : > { %2111 = vst [vmem:[%s3237_s12 + $0x198] sm:$0xff] %v1646_v44  ;;  %v1477_v32 = vadd.f32 %v1476_v58, %v4055_v5  ;;  %v1649_v48 = vpop.f32.mrb[14].mxu1  ;;  %v1478_v33 = vpop.f32.mrb[15].mxu0 }
 0x39f   : > { %v1650_v47 = vadd.f32 %v1649_v48, %v4058_v21  ;;  %v1479_v60 = vadd.f32 %v1478_v33, %v4061_v8  ;;  %v1651_v57 = vpop.f32.mrb[15].mxu1 }
 0x3a0   : > { %2116 = vst [vmem:[%s3237_s12 + $0x1c0] sm:$0xff] %v1477_v32  ;;  %v1652_v11 = vadd.f32 %v1651_v57, %v4064_v17 }
 0x3a1   : > { %2118 = vst [vmem:[%s3237_s12 + $0x1d0] sm:$0xff] %v1650_v47  ;;  %2117 = vst [vmem:[%s3237_s12 + $0x1c8] sm:$0xff] %v1479_v60  ;;  %v1482_v29 = vpop.f32.mrb[16].mxu0 }
 0x3a2   : > { %2119 = vst [vmem:[%s3237_s12 + $0x1d8] sm:$0xff] %v1652_v11  ;;  %v1483_v14 = vadd.f32 %v1482_v29, %v4055_v5  ;;  %v1655_v34 = vpop.f32.mrb[16].mxu1  ;;  %v1484_v41 = vpop.f32.mrb[17].mxu0 }
 0x3a3   : > { %v1656_v26 = vadd.f32 %v1655_v34, %v4058_v21  ;;  %v1485_v27 = vadd.f32 %v1484_v41, %v4061_v8  ;;  %v1657_v45 = vpop.f32.mrb[17].mxu1 }
 0x3a4   : > { %2124 = vst [vmem:[%s3237_s12 + $0x200] sm:$0xff] %v1483_v14  ;;  %v1658_v38 = vadd.f32 %v1657_v45, %v4064_v17 }
 0x3a5   : > { %2126 = vst [vmem:[%s3237_s12 + $0x210] sm:$0xff] %v1656_v26  ;;  %2125 = vst [vmem:[%s3237_s12 + $0x208] sm:$0xff] %v1485_v27  ;;  %v1488_v28 = vpop.f32.mrb[18].mxu0 }
 0x3a6   : > { %2127 = vst [vmem:[%s3237_s12 + $0x218] sm:$0xff] %v1658_v38  ;;  %v1489_v7 = vadd.f32 %v1488_v28, %v4055_v5  ;;  %v1661_v4 = vpop.f32.mrb[18].mxu1  ;;  %v1490_v54 = vpop.f32.mrb[19].mxu0 }
 0x3a7   : > { %v1662_v39 = vadd.f32 %v1661_v4, %v4058_v21  ;;  %v1491_v40 = vadd.f32 %v1490_v54, %v4061_v8  ;;  %v1663_v35 = vpop.f32.mrb[19].mxu1  ;;  %v1291_v4 = vsub.s32 4, %v4041_v62 }
 0x3a8   : > { %2132 = vst [vmem:[%s3237_s12 + $0x240] sm:$0xff] %v1489_v7  ;;  %v1664_v42 = vadd.f32 %v1663_v35, %v4064_v17  ;;  %v1299_v35 = vsub.s32 6, %v4041_v62 }
 0x3a9   : > { %2134 = vst [vmem:[%s3237_s12 + $0x250] sm:$0xff] %v1662_v39  ;;  %2133 = vst [vmem:[%s3237_s12 + $0x248] sm:$0xff] %v1491_v40  ;;  %v1494_v20 = vpop.f32.mrb[20].mxu0 }
 0x3aa   : > { %2135 = vst [vmem:[%s3237_s12 + $0x258] sm:$0xff] %v1664_v42  ;;  %v1495_v2 = vadd.f32 %v1494_v20, %v4055_v5  ;;  %v1667_v25 = vpop.f32.mrb[20].mxu1  ;;  %v1496_v19 = vpop.f32.mrb[21].mxu0  ;;  %v1295_v42 = vsub.s32 5, %v4041_v62 }
 0x3ab   : > { %v1668_v12 = vadd.f32 %v1667_v25, %v4058_v21  ;;  %v1497_v53 = vadd.f32 %v1496_v19, %v4061_v8  ;;  %v1669_v30 = vpop.f32.mrb[21].mxu1 }
 0x3ac   : > { %2140 = vst [vmem:[%s3237_s12 + $0x280] sm:$0xff] %v1495_v2  ;;  %v1670_v46 = vadd.f32 %v1669_v30, %v4064_v17  ;;  %v1303_v2 = vsub.s32 7, %v4041_v62  ;;  %v4208_v30 = vrot.slane %v4049_v22, %v1291_v4  ;;  %v4213_v62 = vrot.slane %v4049_v22, %v1299_v35 }
 0x3ad   : > { %2142 = vst [vmem:[%s3237_s12 + $0x290] sm:$0xff] %v1668_v12  ;;  %2141 = vst [vmem:[%s3237_s12 + $0x288] sm:$0xff] %v1497_v53  ;;  %v1500_v18 = vpop.f32.mrb[22].mxu0 }
 0x3ae   : > { %2143 = vst [vmem:[%s3237_s12 + $0x298] sm:$0xff] %v1670_v46  ;;  %v1501_v43 = vadd.f32 %v1500_v18, %v4055_v5  ;;  %v1673_v37 = vpop.f32.mrb[22].mxu1  ;;  %v1502_v6 = vpop.f32.mrb[23].mxu0 }
 0x3af   : > { %v1674_v52 = vadd.f32 %v1673_v37, %v4058_v21  ;;  %v1503_v49 = vadd.f32 %v1502_v6, %v4061_v8  ;;  %v1675_v51 = vpop.f32.mrb[23].mxu1  ;;  %v4216_v37 = vrot.slane %v4049_v22, %v1295_v42  ;;  %v4221_v6 = vrot.slane %v4049_v22, %v1303_v2 }
 0x3b0   : > { %2148 = vst [vmem:[%s3237_s12 + $0x2c0] sm:$0xff] %v1501_v43  ;;  %v1676_v50 = vadd.f32 %v1675_v51, %v4064_v17 }
 0x3b1   : > { %2150 = vst [vmem:[%s3237_s12 + $0x2d0] sm:$0xff] %v1674_v52  ;;  %2149 = vst [vmem:[%s3237_s12 + $0x2c8] sm:$0xff] %v1503_v49  ;;  %v1506_v24 = vpop.f32.mrb[24].mxu0 }
 0x3b2   : > { %2151 = vst [vmem:[%s3237_s12 + $0x2d8] sm:$0xff] %v1676_v50  ;;  %v1507_v0 = vadd.f32 %v1506_v24, %v4055_v5  ;;  %v1679_v55 = vpop.f32.mrb[24].mxu1  ;;  %v1508_v56 = vpop.f32.mrb[25].mxu0 }
 0x3b3   : > { %v1680_v36 = vadd.f32 %v1679_v55, %v4058_v21  ;;  %v1509_v59 = vadd.f32 %v1508_v56, %v4061_v8  ;;  %v1681_v13 = vpop.f32.mrb[25].mxu1 }
 0x3b4   : > { %2156 = vst [vmem:[%s3237_s12 + $0x300] sm:$0xff] %v1507_v0  ;;  %v1682_v3 = vadd.f32 %v1681_v13, %v4064_v17 }
 0x3b5   : > { %2158 = vst [vmem:[%s3237_s12 + $0x310] sm:$0xff] %v1680_v36  ;;  %2157 = vst [vmem:[%s3237_s12 + $0x308] sm:$0xff] %v1509_v59  ;;  %v1512_v10 = vpop.f32.mrb[26].mxu0 }
 0x3b6   : > { %2159 = vst [vmem:[%s3237_s12 + $0x318] sm:$0xff] %v1682_v3  ;;  %v1513_v23 = vadd.f32 %v1512_v10, %v4055_v5  ;;  %v1685_v61 = vpop.f32.mrb[26].mxu1  ;;  %v1514_v9 = vpop.f32.mrb[27].mxu0 }
 0x3b7   : > { %v1686_v63 = vadd.f32 %v1685_v61, %v4058_v21  ;;  %v1515_v16 = vadd.f32 %v1514_v9, %v4061_v8  ;;  %v1687_v31 = vpop.f32.mrb[27].mxu1 }
 0x3b8   : > { %2164 = vst [vmem:[%s3237_s12 + $0x340] sm:$0xff] %v1513_v23  ;;  %v1688_v1 = vadd.f32 %v1687_v31, %v4064_v17 }
 0x3b9   : > { %2166 = vst [vmem:[%s3237_s12 + $0x350] sm:$0xff] %v1686_v63  ;;  %2165 = vst [vmem:[%s3237_s12 + $0x348] sm:$0xff] %v1515_v16  ;;  %v1518_v15 = vpop.f32.mrb[28].mxu0 }
 0x3ba   : > { %2167 = vst [vmem:[%s3237_s12 + $0x358] sm:$0xff] %v1688_v1  ;;  %v1519_v44 = vadd.f32 %v1518_v15, %v4055_v5  ;;  %v1691_v58 = vpop.f32.mrb[28].mxu1  ;;  %v1520_v32 = vpop.f32.mrb[29].mxu0 }
 0x3bb   : > { %v1692_v48 = vadd.f32 %v1691_v58, %v4058_v21  ;;  %v1521_v33 = vadd.f32 %v1520_v32, %v4061_v8  ;;  %v1693_v47 = vpop.f32.mrb[29].mxu1 }
 0x3bc   : > { %2172 = vst [vmem:[%s3237_s12 + $0x380] sm:$0xff] %v1519_v44  ;;  %v1694_v60 = vadd.f32 %v1693_v47, %v4064_v17 }
 0x3bd   : > { %2174 = vst [vmem:[%s3237_s12 + $0x390] sm:$0xff] %v1692_v48  ;;  %2173 = vst [vmem:[%s3237_s12 + $0x388] sm:$0xff] %v1521_v33  ;;  %v1524_v57 = vpop.f32.mrb[30].mxu0 }
 0x3be   : > { %2175 = vst [vmem:[%s3237_s12 + $0x398] sm:$0xff] %v1694_v60  ;;  %v1525_v11 = vadd.f32 %v1524_v57, %v4055_v5  ;;  %v1697_v29 = vpop.f32.mrb[30].mxu1  ;;  %v1526_v14 = vpop.f32.mrb[31].mxu0 }
 0x3bf   : > { %v1698_v34 = vadd.f32 %v1697_v29, %v4058_v21  ;;  %v1527_v41 = vadd.f32 %v1526_v14, %v4061_v8  ;;  %v1699_v26 = vpop.f32.mrb[31].mxu1 }
 0x3c0   : > { %2180 = vst [vmem:[%s3237_s12 + $0x3c0] sm:$0xff] %v1525_v11  ;;  %v1700_v27 = vadd.f32 %v1699_v26, %v4064_v17 }
 0x3c1   : > { %2182 = vst [vmem:[%s3237_s12 + $0x3d0] sm:$0xff] %v1698_v34  ;;  %2181 = vst [vmem:[%s3237_s12 + $0x3c8] sm:$0xff] %v1527_v41  ;;  %v1530_v45 = vpop.f32.mrb[32].mxu0 }
 0x3c2   : > { %2183 = vst [vmem:[%s3237_s12 + $0x3d8] sm:$0xff] %v1700_v27  ;;  %v1531_v38 = vadd.f32 %v1530_v45, %v4055_v5  ;;  %v1703_v28 = vpop.f32.mrb[32].mxu1  ;;  %v1532_v7 = vpop.f32.mrb[33].mxu0 }
 0x3c3   : > { %v1704_v54 = vadd.f32 %v1703_v28, %v4058_v21  ;;  %v1533_v39 = vadd.f32 %v1532_v7, %v4061_v8  ;;  %v1705_v40 = vpop.f32.mrb[33].mxu1 }
 0x3c4   : > { %2188 = vst [vmem:[%s3237_s12 + $0x400] sm:$0xff] %v1531_v38  ;;  %v1706_v20 = vadd.f32 %v1705_v40, %v4064_v17 }
 0x3c5   : > { %2190 = vst [vmem:[%s3237_s12 + $0x410] sm:$0xff] %v1704_v54  ;;  %2189 = vst [vmem:[%s3237_s12 + $0x408] sm:$0xff] %v1533_v39  ;;  %v1536_v25 = vpop.f32.mrb[34].mxu0 }
 0x3c6   : > { %2191 = vst [vmem:[%s3237_s12 + $0x418] sm:$0xff] %v1706_v20  ;;  %v1537_v19 = vadd.f32 %v1536_v25, %v4055_v5  ;;  %v1709_v12 = vpop.f32.mrb[34].mxu1  ;;  %v1538_v53 = vpop.f32.mrb[35].mxu0 }
 0x3c7   : > { %v1710_v46 = vadd.f32 %v1709_v12, %v4058_v21  ;;  %v1539_v18 = vadd.f32 %v1538_v53, %v4061_v8  ;;  %v1711_v43 = vpop.f32.mrb[35].mxu1 }
 0x3c8   : > { %2196 = vst [vmem:[%s3237_s12 + $0x440] sm:$0xff] %v1537_v19  ;;  %v1712_v5 = vadd.f32 %v1711_v43, %v4064_v17 }
 0x3c9   : > { %2198 = vst [vmem:[%s3237_s12 + $0x450] sm:$0xff] %v1710_v46  ;;  %2197 = vst [vmem:[%s3237_s12 + $0x448] sm:$0xff] %v1539_v18  ;;  %v1780_v21 = vpop.f32.mrb[36].mxu0 }
 0x3ca   : > { %2199 = vst [vmem:[%s3237_s12 + $0x458] sm:$0xff] %v1712_v5  ;;  %v1781_v8 = vadd.f32 %v1780_v21, %v4208_v30  ;;  %v1953_v52 = vpop.f32.mrb[36].mxu1  ;;  %v1782_v49 = vpop.f32.mrb[37].mxu0 }
 0x3cb   : > { %v1954_v51 = vadd.f32 %v1953_v52, %v4213_v62  ;;  %v1783_v50 = vadd.f32 %v1782_v49, %v4216_v37  ;;  %v1955_v24 = vpop.f32.mrb[37].mxu1 }
 0x3cc   : > { %2064 = vst [vmem:[%s3237_s12 + $0x20] sm:$0xff] %v1781_v8  ;;  %v1956_v22 = vadd.f32 %v1955_v24, %v4221_v6 }
 0x3cd   : > { %2066 = vst [vmem:[%s3237_s12 + $0x30] sm:$0xff] %v1954_v51  ;;  %2065 = vst [vmem:[%s3237_s12 + $0x28] sm:$0xff] %v1783_v50  ;;  %v1786_v17 = vpop.f32.mrb[38].mxu0 }
 0x3ce   : > { %2067 = vst [vmem:[%s3237_s12 + $0x38] sm:$0xff] %v1956_v22  ;;  %v1787_v0 = vadd.f32 %v1786_v17, %v4208_v30  ;;  %v1959_v55 = vpop.f32.mrb[38].mxu1  ;;  %v1788_v56 = vpop.f32.mrb[39].mxu0 }
 0x3cf   : > { %v1960_v36 = vadd.f32 %v1959_v55, %v4213_v62  ;;  %v1789_v59 = vadd.f32 %v1788_v56, %v4216_v37  ;;  %v1961_v13 = vpop.f32.mrb[39].mxu1 }
 0x3d0   : > { %2072 = vst [vmem:[%s3237_s12 + $0x60] sm:$0xff] %v1787_v0  ;;  %v1962_v3 = vadd.f32 %v1961_v13, %v4221_v6 }
 0x3d1   : > { %2074 = vst [vmem:[%s3237_s12 + $0x70] sm:$0xff] %v1960_v36  ;;  %2073 = vst [vmem:[%s3237_s12 + $0x68] sm:$0xff] %v1789_v59  ;;  %v1792_v10 = vpop.f32.mrb[40].mxu0 }
 0x3d2   : > { %2075 = vst [vmem:[%s3237_s12 + $0x78] sm:$0xff] %v1962_v3  ;;  %v1793_v23 = vadd.f32 %v1792_v10, %v4208_v30  ;;  %v1965_v61 = vpop.f32.mrb[40].mxu1  ;;  %v1794_v9 = vpop.f32.mrb[41].mxu0 }
 0x3d3   : > { %v1966_v63 = vadd.f32 %v1965_v61, %v4213_v62  ;;  %v1795_v16 = vadd.f32 %v1794_v9, %v4216_v37  ;;  %v1967_v31 = vpop.f32.mrb[41].mxu1 }
 0x3d4   : > { %2080 = vst [vmem:[%s3237_s12 + $0xa0] sm:$0xff] %v1793_v23  ;;  %v1968_v1 = vadd.f32 %v1967_v31, %v4221_v6 }
 0x3d5   : > { %2082 = vst [vmem:[%s3237_s12 + $0xb0] sm:$0xff] %v1966_v63  ;;  %2081 = vst [vmem:[%s3237_s12 + $0xa8] sm:$0xff] %v1795_v16  ;;  %v1798_v15 = vpop.f32.mrb[42].mxu0 }
 0x3d6   : > { %2083 = vst [vmem:[%s3237_s12 + $0xb8] sm:$0xff] %v1968_v1  ;;  %v1799_v44 = vadd.f32 %v1798_v15, %v4208_v30  ;;  %v1971_v58 = vpop.f32.mrb[42].mxu1  ;;  %v1800_v32 = vpop.f32.mrb[43].mxu0 }
 0x3d7   : > { %v1972_v48 = vadd.f32 %v1971_v58, %v4213_v62  ;;  %v1801_v33 = vadd.f32 %v1800_v32, %v4216_v37  ;;  %v1973_v47 = vpop.f32.mrb[43].mxu1 }
 0x3d8   : > { %2088 = vst [vmem:[%s3237_s12 + $0xe0] sm:$0xff] %v1799_v44  ;;  %v1974_v60 = vadd.f32 %v1973_v47, %v4221_v6 }
 0x3d9   : > { %2090 = vst [vmem:[%s3237_s12 + $0xf0] sm:$0xff] %v1972_v48  ;;  %2089 = vst [vmem:[%s3237_s12 + $0xe8] sm:$0xff] %v1801_v33  ;;  %v1804_v57 = vpop.f32.mrb[44].mxu0 }
 0x3da   : > { %2091 = vst [vmem:[%s3237_s12 + $0xf8] sm:$0xff] %v1974_v60  ;;  %v1805_v11 = vadd.f32 %v1804_v57, %v4208_v30  ;;  %v1977_v29 = vpop.f32.mrb[44].mxu1  ;;  %v1806_v14 = vpop.f32.mrb[45].mxu0 }
 0x3db   : > { %v1978_v34 = vadd.f32 %v1977_v29, %v4213_v62  ;;  %v1807_v41 = vadd.f32 %v1806_v14, %v4216_v37  ;;  %v1979_v26 = vpop.f32.mrb[45].mxu1 }
 0x3dc   : > { %2096 = vst [vmem:[%s3237_s12 + $0x120] sm:$0xff] %v1805_v11  ;;  %v1980_v27 = vadd.f32 %v1979_v26, %v4221_v6 }
 0x3dd   : > { %2098 = vst [vmem:[%s3237_s12 + $0x130] sm:$0xff] %v1978_v34  ;;  %2097 = vst [vmem:[%s3237_s12 + $0x128] sm:$0xff] %v1807_v41  ;;  %v1810_v45 = vpop.f32.mrb[46].mxu0 }
 0x3de   : > { %2099 = vst [vmem:[%s3237_s12 + $0x138] sm:$0xff] %v1980_v27  ;;  %v1811_v38 = vadd.f32 %v1810_v45, %v4208_v30  ;;  %v1983_v28 = vpop.f32.mrb[46].mxu1  ;;  %v1812_v7 = vpop.f32.mrb[47].mxu0 }
 0x3df   : > { %v1984_v4 = vadd.f32 %v1983_v28, %v4213_v62  ;;  %v1813_v54 = vadd.f32 %v1812_v7, %v4216_v37  ;;  %v1985_v39 = vpop.f32.mrb[47].mxu1 }
 0x3e0   : > { %2104 = vst [vmem:[%s3237_s12 + $0x160] sm:$0xff] %v1811_v38  ;;  %v1986_v40 = vadd.f32 %v1985_v39, %v4221_v6 }
 0x3e1   : > { %2106 = vst [vmem:[%s3237_s12 + $0x170] sm:$0xff] %v1984_v4  ;;  %2105 = vst [vmem:[%s3237_s12 + $0x168] sm:$0xff] %v1813_v54  ;;  %v1816_v35 = vpop.f32.mrb[48].mxu0 }
 0x3e2   : > { %2107 = vst [vmem:[%s3237_s12 + $0x178] sm:$0xff] %v1986_v40  ;;  %v1817_v42 = vadd.f32 %v1816_v35, %v4208_v30  ;;  %v1989_v20 = vpop.f32.mrb[48].mxu1  ;;  %v1818_v2 = vpop.f32.mrb[49].mxu0 }
 0x3e3   : > { %v1990_v25 = vadd.f32 %v1989_v20, %v4213_v62  ;;  %v1819_v19 = vadd.f32 %v1818_v2, %v4216_v37  ;;  %v1991_v12 = vpop.f32.mrb[49].mxu1 }
 0x3e4   : > { %2112 = vst [vmem:[%s3237_s12 + $0x1a0] sm:$0xff] %v1817_v42  ;;  %v1992_v53 = vadd.f32 %v1991_v12, %v4221_v6 }
 0x3e5   : > { %2114 = vst [vmem:[%s3237_s12 + $0x1b0] sm:$0xff] %v1990_v25  ;;  %2113 = vst [vmem:[%s3237_s12 + $0x1a8] sm:$0xff] %v1819_v19  ;;  %v1822_v46 = vpop.f32.mrb[50].mxu0 }
 0x3e6   : > { %2115 = vst [vmem:[%s3237_s12 + $0x1b8] sm:$0xff] %v1992_v53  ;;  %v1823_v18 = vadd.f32 %v1822_v46, %v4208_v30  ;;  %v1995_v43 = vpop.f32.mrb[50].mxu1  ;;  %v1824_v5 = vpop.f32.mrb[51].mxu0 }
 0x3e7   : > { %v1996_v21 = vadd.f32 %v1995_v43, %v4213_v62  ;;  %v1825_v8 = vadd.f32 %v1824_v5, %v4216_v37  ;;  %v1997_v52 = vpop.f32.mrb[51].mxu1 }
 0x3e8   : > { %2120 = vst [vmem:[%s3237_s12 + $0x1e0] sm:$0xff] %v1823_v18  ;;  %v1998_v49 = vadd.f32 %v1997_v52, %v4221_v6 }
 0x3e9   : > { %2122 = vst [vmem:[%s3237_s12 + $0x1f0] sm:$0xff] %v1996_v21  ;;  %2121 = vst [vmem:[%s3237_s12 + $0x1e8] sm:$0xff] %v1825_v8  ;;  %v1828_v51 = vpop.f32.mrb[52].mxu0 }
 0x3ea   : > { %2123 = vst [vmem:[%s3237_s12 + $0x1f8] sm:$0xff] %v1998_v49  ;;  %v1829_v50 = vadd.f32 %v1828_v51, %v4208_v30  ;;  %v2001_v24 = vpop.f32.mrb[52].mxu1  ;;  %v1830_v22 = vpop.f32.mrb[53].mxu0 }
 0x3eb   : > { %v2002_v17 = vadd.f32 %v2001_v24, %v4213_v62  ;;  %v1831_v0 = vadd.f32 %v1830_v22, %v4216_v37  ;;  %v2003_v55 = vpop.f32.mrb[53].mxu1 }
 0x3ec   : > { %2128 = vst [vmem:[%s3237_s12 + $0x220] sm:$0xff] %v1829_v50  ;;  %v2004_v56 = vadd.f32 %v2003_v55, %v4221_v6 }
 0x3ed   : > { %2130 = vst [vmem:[%s3237_s12 + $0x230] sm:$0xff] %v2002_v17  ;;  %2129 = vst [vmem:[%s3237_s12 + $0x228] sm:$0xff] %v1831_v0  ;;  %v1834_v36 = vpop.f32.mrb[54].mxu0 }
 0x3ee   : > { %2131 = vst [vmem:[%s3237_s12 + $0x238] sm:$0xff] %v2004_v56  ;;  %v1835_v59 = vadd.f32 %v1834_v36, %v4208_v30  ;;  %v2007_v13 = vpop.f32.mrb[54].mxu1  ;;  %v1836_v3 = vpop.f32.mrb[55].mxu0 }
 0x3ef   : > { %v2008_v10 = vadd.f32 %v2007_v13, %v4213_v62  ;;  %v1837_v23 = vadd.f32 %v1836_v3, %v4216_v37  ;;  %v2009_v61 = vpop.f32.mrb[55].mxu1 }
 0x3f0   : > { %2136 = vst [vmem:[%s3237_s12 + $0x260] sm:$0xff] %v1835_v59  ;;  %v2010_v9 = vadd.f32 %v2009_v61, %v4221_v6 }
 0x3f1   : > { %2138 = vst [vmem:[%s3237_s12 + $0x270] sm:$0xff] %v2008_v10  ;;  %2137 = vst [vmem:[%s3237_s12 + $0x268] sm:$0xff] %v1837_v23  ;;  %v1840_v63 = vpop.f32.mrb[56].mxu0 }
 0x3f2   : > { %2139 = vst [vmem:[%s3237_s12 + $0x278] sm:$0xff] %v2010_v9  ;;  %v1841_v16 = vadd.f32 %v1840_v63, %v4208_v30  ;;  %v2013_v31 = vpop.f32.mrb[56].mxu1  ;;  %v1842_v1 = vpop.f32.mrb[57].mxu0 }
 0x3f3   : > { %v2014_v15 = vadd.f32 %v2013_v31, %v4213_v62  ;;  %v1843_v44 = vadd.f32 %v1842_v1, %v4216_v37  ;;  %v2015_v58 = vpop.f32.mrb[57].mxu1 }
 0x3f4   : > { %2144 = vst [vmem:[%s3237_s12 + $0x2a0] sm:$0xff] %v1841_v16  ;;  %v2016_v32 = vadd.f32 %v2015_v58, %v4221_v6  ;;  %v2241_v58 = vld [vmem:[%s3237_s12 + $0x30] sm:$0xff] (%p3080_p6) }
 0x3f5   : > { %2146 = vst [vmem:[%s3237_s12 + $0x2b0] sm:$0xff] %v2014_v15  ;;  %2145 = vst [vmem:[%s3237_s12 + $0x2a8] sm:$0xff] %v1843_v44  ;;  %v1846_v48 = vpop.f32.mrb[58].mxu0  ;;  %v2237_v15 = vld [vmem:[%s3237_s12 + $0x20] sm:$0xff] (%p3080_p6)  ;;  %v2239_v44 = vld [vmem:[%s3237_s12 + $0x28] sm:$0xff] (%p3080_p6) }
 0x3f6   : > { %2147 = vst [vmem:[%s3237_s12 + $0x2b8] sm:$0xff] %v2016_v32  ;;  %v1847_v33 = vadd.f32 %v1846_v48, %v4208_v30  ;;  %v2019_v47 = vpop.f32.mrb[58].mxu1  ;;  %v1848_v60 = vpop.f32.mrb[59].mxu0  ;;  %2238 = vst [vmem:[%s4379_s14 + $0x20] sm:$0xff] (%p3080_p6), %v2237_v15  ;;  %v2243_v32 = vld [vmem:[%s3237_s12 + $0x38] sm:$0xff] (%p3080_p6)  ;;  %v2245_v48 = vld [vmem:[%s3237_s12 + $0x40] sm:$0xff] (%p3080_p6) }
 0x3f7   : > { %v2020_v57 = vadd.f32 %v2019_v47, %v4213_v62  ;;  %v1849_v11 = vadd.f32 %v1848_v60, %v4216_v37  ;;  %v2021_v29 = vpop.f32.mrb[59].mxu1  ;;  %2240 = vst [vmem:[%s4379_s14 + $0x28] sm:$0xff] (%p3080_p6), %v2239_v44  ;;  %2242 = vst [vmem:[%s4379_s14 + $0x30] sm:$0xff] (%p3080_p6), %v2241_v58  ;;  %v2249_v47 = vld [vmem:[%s3237_s12 + $0x50] sm:$0xff] (%p3080_p6)  ;;  %v2251_v60 = vld [vmem:[%s3237_s12 + $0x58] sm:$0xff] (%p3080_p6) }
 0x3f8   : > { %2152 = vst [vmem:[%s3237_s12 + $0x2e0] sm:$0xff] %v1847_v33  ;;  %v2022_v14 = vadd.f32 %v2021_v29, %v4221_v6  ;;  %2244 = vst [vmem:[%s4379_s14 + $0x38] sm:$0xff] (%p3080_p6), %v2243_v32  ;;  %v2247_v33 = vld [vmem:[%s3237_s12 + $0x48] sm:$0xff] (%p3080_p6)  ;;  %v2257_v29 = vld [vmem:[%s3237_s12 + $0x70] sm:$0xff] (%p3080_p6) }
 0x3f9   : > { %2154 = vst [vmem:[%s3237_s12 + $0x2f0] sm:$0xff] %v2020_v57  ;;  %2153 = vst [vmem:[%s3237_s12 + $0x2e8] sm:$0xff] %v1849_v11  ;;  %v1852_v34 = vpop.f32.mrb[60].mxu0  ;;  %v2253_v57 = vld [vmem:[%s3237_s12 + $0x60] sm:$0xff] (%p3080_p6)  ;;  %v2255_v11 = vld [vmem:[%s3237_s12 + $0x68] sm:$0xff] (%p3080_p6) }
 0x3fa   : > { %2155 = vst [vmem:[%s3237_s12 + $0x2f8] sm:$0xff] %v2022_v14  ;;  %v1853_v41 = vadd.f32 %v1852_v34, %v4208_v30  ;;  %v2025_v26 = vpop.f32.mrb[60].mxu1  ;;  %v1854_v27 = vpop.f32.mrb[61].mxu0  ;;  %2246 = vst [vmem:[%s4379_s14 + $0x100] sm:$0xff] (%p3080_p6), %v2245_v48  ;;  %v2259_v14 = vld [vmem:[%s3237_s12 + $0x78] sm:$0xff] (%p3080_p6)  ;;  %v2261_v34 = vld [vmem:[%s3237_s12 + $0x80] sm:$0xff] (%p3080_p6) }
 0x3fb   : > { %v2026_v45 = vadd.f32 %v2025_v26, %v4213_v62  ;;  %v1855_v38 = vadd.f32 %v1854_v27, %v4216_v37  ;;  %v2027_v28 = vpop.f32.mrb[61].mxu1  ;;  %2248 = vst [vmem:[%s4379_s14 + $0x108] sm:$0xff] (%p3080_p6), %v2247_v33  ;;  %2250 = vst [vmem:[%s4379_s14 + $0x110] sm:$0xff] (%p3080_p6), %v2249_v47  ;;  %v2265_v26 = vld [vmem:[%s3237_s12 + $0x90] sm:$0xff] (%p3080_p6)  ;;  %v2267_v27 = vld [vmem:[%s3237_s12 + $0x98] sm:$0xff] (%p3080_p6) }
 0x3fc   : > { %2160 = vst [vmem:[%s3237_s12 + $0x320] sm:$0xff] %v1853_v41  ;;  %v2028_v7 = vadd.f32 %v2027_v28, %v4221_v6  ;;  %2252 = vst [vmem:[%s4379_s14 + $0x118] sm:$0xff] (%p3080_p6), %v2251_v60  ;;  %v2263_v41 = vld [vmem:[%s3237_s12 + $0x88] sm:$0xff] (%p3080_p6)  ;;  %v2273_v28 = vld [vmem:[%s3237_s12 + $0xb0] sm:$0xff] (%p3080_p6) }
 0x3fd   : > { %2162 = vst [vmem:[%s3237_s12 + $0x330] sm:$0xff] %v2026_v45  ;;  %2161 = vst [vmem:[%s3237_s12 + $0x328] sm:$0xff] %v1855_v38  ;;  %v1858_v4 = vpop.f32.mrb[62].mxu0  ;;  %v2269_v45 = vld [vmem:[%s3237_s12 + $0xa0] sm:$0xff] (%p3080_p6)  ;;  %v2271_v38 = vld [vmem:[%s3237_s12 + $0xa8] sm:$0xff] (%p3080_p6) }
 0x3fe   : > { %2163 = vst [vmem:[%s3237_s12 + $0x338] sm:$0xff] %v2028_v7  ;;  %v1859_v54 = vadd.f32 %v1858_v4, %v4208_v30  ;;  %v2031_v39 = vpop.f32.mrb[62].mxu1  ;;  %v1860_v40 = vpop.f32.mrb[63].mxu0  ;;  %2254 = vst [vmem:[%s4379_s14 + $0x120] sm:$0xff] (%p3080_p6), %v2253_v57  ;;  %v2275_v7 = vld [vmem:[%s3237_s12 + $0xb8] sm:$0xff] (%p3080_p6)  ;;  %v2277_v4 = vld [vmem:[%s3237_s12 + $0xc0] sm:$0xff] (%p3080_p6) }
 0x3ff   : > { %v2032_v35 = vadd.f32 %v2031_v39, %v4213_v62  ;;  %v1861_v42 = vadd.f32 %v1860_v40, %v4216_v37  ;;  %v2033_v20 = vpop.f32.mrb[63].mxu1  ;;  %2256 = vst [vmem:[%s4379_s14 + $0x128] sm:$0xff] (%p3080_p6), %v2255_v11  ;;  %2258 = vst [vmem:[%s4379_s14 + $0x130] sm:$0xff] (%p3080_p6), %v2257_v29  ;;  %v2281_v39 = vld [vmem:[%s3237_s12 + $0xd0] sm:$0xff] (%p3080_p6)  ;;  %v2283_v40 = vld [vmem:[%s3237_s12 + $0xd8] sm:$0xff] (%p3080_p6) }
 0x400   : > { %2168 = vst [vmem:[%s3237_s12 + $0x360] sm:$0xff] %v1859_v54  ;;  %v2034_v2 = vadd.f32 %v2033_v20, %v4221_v6  ;;  %2260 = vst [vmem:[%s4379_s14 + $0x138] sm:$0xff] (%p3080_p6), %v2259_v14  ;;  %v2279_v54 = vld [vmem:[%s3237_s12 + $0xc8] sm:$0xff] (%p3080_p6)  ;;  %v2289_v20 = vld [vmem:[%s3237_s12 + $0xf0] sm:$0xff] (%p3080_p6) }
 0x401   : > { %2170 = vst [vmem:[%s3237_s12 + $0x370] sm:$0xff] %v2032_v35  ;;  %2169 = vst [vmem:[%s3237_s12 + $0x368] sm:$0xff] %v1861_v42  ;;  %v1864_v25 = vpop.f32.mrb[64].mxu0  ;;  %v2285_v35 = vld [vmem:[%s3237_s12 + $0xe0] sm:$0xff] (%p3080_p6)  ;;  %v2287_v42 = vld [vmem:[%s3237_s12 + $0xe8] sm:$0xff] (%p3080_p6) }
 0x402   : > { %2171 = vst [vmem:[%s3237_s12 + $0x378] sm:$0xff] %v2034_v2  ;;  %v1865_v19 = vadd.f32 %v1864_v25, %v4208_v30  ;;  %v2037_v12 = vpop.f32.mrb[64].mxu1  ;;  %v1866_v53 = vpop.f32.mrb[65].mxu0  ;;  %2262 = vst [vmem:[%s4379_s14 + $0x200] sm:$0xff] (%p3080_p6), %v2261_v34  ;;  %v2291_v2 = vld [vmem:[%s3237_s12 + $0xf8] sm:$0xff] (%p3080_p6)  ;;  %v2293_v25 = vld [vmem:[%s3237_s12 + $0x100] sm:$0xff] (%p3080_p6) }
 0x403   : > { %v2038_v46 = vadd.f32 %v2037_v12, %v4213_v62  ;;  %v1867_v18 = vadd.f32 %v1866_v53, %v4216_v37  ;;  %v2039_v43 = vpop.f32.mrb[65].mxu1  ;;  %2264 = vst [vmem:[%s4379_s14 + $0x208] sm:$0xff] (%p3080_p6), %v2263_v41  ;;  %2266 = vst [vmem:[%s4379_s14 + $0x210] sm:$0xff] (%p3080_p6), %v2265_v26  ;;  %v2297_v12 = vld [vmem:[%s3237_s12 + $0x110] sm:$0xff] (%p3080_p6)  ;;  %v2299_v53 = vld [vmem:[%s3237_s12 + $0x118] sm:$0xff] (%p3080_p6) }
 0x404   : > { %2176 = vst [vmem:[%s3237_s12 + $0x3a0] sm:$0xff] %v1865_v19  ;;  %v2040_v5 = vadd.f32 %v2039_v43, %v4221_v6  ;;  %2268 = vst [vmem:[%s4379_s14 + $0x218] sm:$0xff] (%p3080_p6), %v2267_v27  ;;  %v2295_v19 = vld [vmem:[%s3237_s12 + $0x108] sm:$0xff] (%p3080_p6)  ;;  %v2305_v43 = vld [vmem:[%s3237_s12 + $0x130] sm:$0xff] (%p3080_p6) }
 0x405   : > { %2178 = vst [vmem:[%s3237_s12 + $0x3b0] sm:$0xff] %v2038_v46  ;;  %2177 = vst [vmem:[%s3237_s12 + $0x3a8] sm:$0xff] %v1867_v18  ;;  %v1870_v21 = vpop.f32.mrb[66].mxu0  ;;  %v2301_v46 = vld [vmem:[%s3237_s12 + $0x120] sm:$0xff] (%p3080_p6)  ;;  %v2303_v18 = vld [vmem:[%s3237_s12 + $0x128] sm:$0xff] (%p3080_p6) }
 0x406   : > { %2179 = vst [vmem:[%s3237_s12 + $0x3b8] sm:$0xff] %v2040_v5  ;;  %v1871_v8 = vadd.f32 %v1870_v21, %v4208_v30  ;;  %v2043_v52 = vpop.f32.mrb[66].mxu1  ;;  %v1872_v49 = vpop.f32.mrb[67].mxu0  ;;  %2270 = vst [vmem:[%s4379_s14 + $0x220] sm:$0xff] (%p3080_p6), %v2269_v45  ;;  %v2307_v5 = vld [vmem:[%s3237_s12 + $0x138] sm:$0xff] (%p3080_p6)  ;;  %v2309_v21 = vld [vmem:[%s3237_s12 + $0x140] sm:$0xff] (%p3080_p6) }
 0x407   : > { %v2044_v51 = vadd.f32 %v2043_v52, %v4213_v62  ;;  %v1873_v50 = vadd.f32 %v1872_v49, %v4216_v37  ;;  %v2045_v24 = vpop.f32.mrb[67].mxu1  ;;  %2272 = vst [vmem:[%s4379_s14 + $0x228] sm:$0xff] (%p3080_p6), %v2271_v38  ;;  %2274 = vst [vmem:[%s4379_s14 + $0x230] sm:$0xff] (%p3080_p6), %v2273_v28  ;;  %v2313_v52 = vld [vmem:[%s3237_s12 + $0x150] sm:$0xff] (%p3080_p6)  ;;  %v2315_v49 = vld [vmem:[%s3237_s12 + $0x158] sm:$0xff] (%p3080_p6) }
 0x408   : > { %2184 = vst [vmem:[%s3237_s12 + $0x3e0] sm:$0xff] %v1871_v8  ;;  %v2046_v22 = vadd.f32 %v2045_v24, %v4221_v6  ;;  %2276 = vst [vmem:[%s4379_s14 + $0x238] sm:$0xff] (%p3080_p6), %v2275_v7  ;;  %v2311_v8 = vld [vmem:[%s3237_s12 + $0x148] sm:$0xff] (%p3080_p6)  ;;  %v2321_v24 = vld [vmem:[%s3237_s12 + $0x170] sm:$0xff] (%p3080_p6) }
 0x409   : > { %2186 = vst [vmem:[%s3237_s12 + $0x3f0] sm:$0xff] %v2044_v51  ;;  %2185 = vst [vmem:[%s3237_s12 + $0x3e8] sm:$0xff] %v1873_v50  ;;  %v1876_v17 = vpop.f32.mrb[68].mxu0  ;;  %v2317_v51 = vld [vmem:[%s3237_s12 + $0x160] sm:$0xff] (%p3080_p6)  ;;  %v2319_v50 = vld [vmem:[%s3237_s12 + $0x168] sm:$0xff] (%p3080_p6) }
 0x40a   : > { %2187 = vst [vmem:[%s3237_s12 + $0x3f8] sm:$0xff] %v2046_v22  ;;  %v1877_v0 = vadd.f32 %v1876_v17, %v4208_v30  ;;  %v2049_v55 = vpop.f32.mrb[68].mxu1  ;;  %v1878_v56 = vpop.f32.mrb[69].mxu0  ;;  %2278 = vst [vmem:[%s4379_s14 + $0x300] sm:$0xff] (%p3080_p6), %v2277_v4  ;;  %v2323_v22 = vld [vmem:[%s3237_s12 + $0x178] sm:$0xff] (%p3080_p6)  ;;  %v2325_v17 = vld [vmem:[%s3237_s12 + $0x180] sm:$0xff] (%p3080_p6) }
 0x40b   : > { %v2050_v36 = vadd.f32 %v2049_v55, %v4213_v62  ;;  %v1879_v59 = vadd.f32 %v1878_v56, %v4216_v37  ;;  %v2051_v13 = vpop.f32.mrb[69].mxu1  ;;  %2280 = vst [vmem:[%s4379_s14 + $0x308] sm:$0xff] (%p3080_p6), %v2279_v54  ;;  %2282 = vst [vmem:[%s4379_s14 + $0x310] sm:$0xff] (%p3080_p6), %v2281_v39  ;;  %v2329_v55 = vld [vmem:[%s3237_s12 + $0x190] sm:$0xff] (%p3080_p6)  ;;  %v2331_v56 = vld [vmem:[%s3237_s12 + $0x198] sm:$0xff] (%p3080_p6) }
 0x40c   : > { %2192 = vst [vmem:[%s3237_s12 + $0x420] sm:$0xff] %v1877_v0  ;;  %v2052_v3 = vadd.f32 %v2051_v13, %v4221_v6  ;;  %2210 = sbr.rel (!%p3080_p6) target bundleno = 1101 (0x44d), region = 79  ;;  %2284 = vst [vmem:[%s4379_s14 + $0x318] sm:$0xff] (%p3080_p6), %v2283_v40  ;;  %v2327_v0 = vld [vmem:[%s3237_s12 + $0x188] sm:$0xff] (%p3080_p6)  ;;  %v2337_v13 = vld [vmem:[%s3237_s12 + $0x1b0] sm:$0xff] (%p3080_p6) }
 0x40d   : > { %2194 = vst [vmem:[%s3237_s12 + $0x430] sm:$0xff] %v2050_v36  ;;  %2193 = vst [vmem:[%s3237_s12 + $0x428] sm:$0xff] %v1879_v59  ;;  %v1882_v10 = vpop.f32.mrb[70].mxu0  ;;  %v2333_v36 = vld [vmem:[%s3237_s12 + $0x1a0] sm:$0xff] (%p3080_p6)  ;;  %v2335_v59 = vld [vmem:[%s3237_s12 + $0x1a8] sm:$0xff] (%p3080_p6) }
 0x40e   : > { %2195 = vst [vmem:[%s3237_s12 + $0x438] sm:$0xff] %v2052_v3  ;;  %v1883_v23 = vadd.f32 %v1882_v10, %v4208_v30  ;;  %v2055_v61 = vpop.f32.mrb[70].mxu1  ;;  %v1884_v9 = vpop.f32.mrb[71].mxu0  ;;  %v2229_v30 = vld [vmem:[%s3237_s12] sm:$0xff] (%p3080_p6)  ;;  %2286 = vst [vmem:[%s4379_s14 + $0x320] sm:$0xff] (%p3080_p6), %v2285_v35  ;;  %v2339_v3 = vld [vmem:[%s3237_s12 + $0x1b8] sm:$0xff] (%p3080_p6) }
 0x40f   : > { %v2056_v63 = vadd.f32 %v2055_v61, %v4213_v62  ;;  %v1885_v16 = vadd.f32 %v1884_v9, %v4216_v37  ;;  %v2057_v31 = vpop.f32.mrb[71].mxu1  ;;  %v2231_v62 = vld [vmem:[%s3237_s12 + $0x8] sm:$0xff] (%p3080_p6)  ;;  %v2233_v37 = vld [vmem:[%s3237_s12 + $0x10] sm:$0xff] (%p3080_p6)  ;;  %2230 = vst [vmem:[%s4379_s14] sm:$0xff] (%p3080_p6), %v2229_v30  ;;  %2288 = vst [vmem:[%s4379_s14 + $0x328] sm:$0xff] (%p3080_p6), %v2287_v42 }
 0x410   : > { %2200 = vst [vmem:[%s3237_s12 + $0x460] sm:$0xff] %v1883_v23  ;;  %v2058_v1 = vadd.f32 %v2057_v31, %v4221_v6  ;;  %v2235_v6 = vld [vmem:[%s3237_s12 + $0x18] sm:$0xff] (%p3080_p6)  ;;  %2232 = vst [vmem:[%s4379_s14 + $0x8] sm:$0xff] (%p3080_p6), %v2231_v62  ;;  %v2341_v10 = vld [vmem:[%s3237_s12 + $0x1c0] sm:$0xff] (%p3080_p6) }
 0x411   : > { %2202 = vst [vmem:[%s3237_s12 + $0x470] sm:$0xff] %v2056_v63  ;;  %2201 = vst [vmem:[%s3237_s12 + $0x468] sm:$0xff] %v1885_v16  ;;  %v2343_v23 = vld [vmem:[%s3237_s12 + $0x1c8] sm:$0xff] (%p3080_p6)  ;;  %v2345_v61 = vld [vmem:[%s3237_s12 + $0x1d0] sm:$0xff] (%p3080_p6) }
 0x412   : > { %2203 = vst [vmem:[%s3237_s12 + $0x478] sm:$0xff] %v2058_v1  ;;  %2234 = vst [vmem:[%s4379_s14 + $0x10] sm:$0xff] (%p3080_p6), %v2233_v37  ;;  %v2347_v9 = vld [vmem:[%s3237_s12 + $0x1d8] sm:$0xff] (%p3080_p6)  ;;  %v2349_v63 = vld [vmem:[%s3237_s12 + $0x1e0] sm:$0xff] (%p3080_p6) }
 0x413   : > { %2236 = vst [vmem:[%s4379_s14 + $0x18] sm:$0xff] %v2235_v6  ;;  %2290 = vst [vmem:[%s4379_s14 + $0x330] sm:$0xff] %v2289_v20  ;;  %v2351_v16 = vld [vmem:[%s3237_s12 + $0x1e8] sm:$0xff]  ;;  %v2353_v31 = vld [vmem:[%s3237_s12 + $0x1f0] sm:$0xff] }
 0x414   : > { %2292 = vst [vmem:[%s4379_s14 + $0x338] sm:$0xff] %v2291_v2  ;;  %2294 = vst [vmem:[%s4379_s14 + $0x400] sm:$0xff] %v2293_v25  ;;  %v2355_v1 = vld [vmem:[%s3237_s12 + $0x1f8] sm:$0xff]  ;;  %v2357_v30 = vld [vmem:[%s3237_s12 + $0x200] sm:$0xff] }
 0x415   : > { %2296 = vst [vmem:[%s4379_s14 + $0x408] sm:$0xff] %v2295_v19  ;;  %2298 = vst [vmem:[%s4379_s14 + $0x410] sm:$0xff] %v2297_v12  ;;  %v2359_v62 = vld [vmem:[%s3237_s12 + $0x208] sm:$0xff]  ;;  %v2361_v37 = vld [vmem:[%s3237_s12 + $0x210] sm:$0xff] }
 0x416   : > { %2300 = vst [vmem:[%s4379_s14 + $0x418] sm:$0xff] %v2299_v53  ;;  %2302 = vst [vmem:[%s4379_s14 + $0x420] sm:$0xff] %v2301_v46  ;;  %v2363_v6 = vld [vmem:[%s3237_s12 + $0x218] sm:$0xff]  ;;  %v2365_v15 = vld [vmem:[%s3237_s12 + $0x220] sm:$0xff] }
 0x417   : > { %2304 = vst [vmem:[%s4379_s14 + $0x428] sm:$0xff] %v2303_v18  ;;  %2306 = vst [vmem:[%s4379_s14 + $0x430] sm:$0xff] %v2305_v43  ;;  %v2367_v44 = vld [vmem:[%s3237_s12 + $0x228] sm:$0xff]  ;;  %v2369_v58 = vld [vmem:[%s3237_s12 + $0x230] sm:$0xff] }
 0x418   : > { %2308 = vst [vmem:[%s4379_s14 + $0x438] sm:$0xff] %v2307_v5  ;;  %2310 = vst [vmem:[%s4379_s14 + $0x500] sm:$0xff] %v2309_v21  ;;  %v2371_v32 = vld [vmem:[%s3237_s12 + $0x238] sm:$0xff]  ;;  %v2373_v48 = vld [vmem:[%s3237_s12 + $0x240] sm:$0xff] }
 0x419   : > { %2312 = vst [vmem:[%s4379_s14 + $0x508] sm:$0xff] %v2311_v8  ;;  %2314 = vst [vmem:[%s4379_s14 + $0x510] sm:$0xff] %v2313_v52  ;;  %v2375_v33 = vld [vmem:[%s3237_s12 + $0x248] sm:$0xff]  ;;  %v2377_v47 = vld [vmem:[%s3237_s12 + $0x250] sm:$0xff] }
 0x41a   : > { %2316 = vst [vmem:[%s4379_s14 + $0x518] sm:$0xff] %v2315_v49  ;;  %2318 = vst [vmem:[%s4379_s14 + $0x520] sm:$0xff] %v2317_v51  ;;  %v2379_v60 = vld [vmem:[%s3237_s12 + $0x258] sm:$0xff]  ;;  %v2381_v57 = vld [vmem:[%s3237_s12 + $0x260] sm:$0xff] }
 0x41b   : > { %2320 = vst [vmem:[%s4379_s14 + $0x528] sm:$0xff] %v2319_v50  ;;  %2322 = vst [vmem:[%s4379_s14 + $0x530] sm:$0xff] %v2321_v24  ;;  %v2383_v11 = vld [vmem:[%s3237_s12 + $0x268] sm:$0xff]  ;;  %v2385_v29 = vld [vmem:[%s3237_s12 + $0x270] sm:$0xff] }
 0x41c   : > { %2324 = vst [vmem:[%s4379_s14 + $0x538] sm:$0xff] %v2323_v22  ;;  %2326 = vst [vmem:[%s4379_s14 + $0x600] sm:$0xff] %v2325_v17  ;;  %v2387_v14 = vld [vmem:[%s3237_s12 + $0x278] sm:$0xff]  ;;  %v2389_v34 = vld [vmem:[%s3237_s12 + $0x280] sm:$0xff] }
 0x41d   : > { %2328 = vst [vmem:[%s4379_s14 + $0x608] sm:$0xff] %v2327_v0  ;;  %2330 = vst [vmem:[%s4379_s14 + $0x610] sm:$0xff] %v2329_v55  ;;  %v2391_v41 = vld [vmem:[%s3237_s12 + $0x288] sm:$0xff]  ;;  %v2393_v26 = vld [vmem:[%s3237_s12 + $0x290] sm:$0xff] }
 0x41e   : > { %2332 = vst [vmem:[%s4379_s14 + $0x618] sm:$0xff] %v2331_v56  ;;  %2334 = vst [vmem:[%s4379_s14 + $0x620] sm:$0xff] %v2333_v36  ;;  %v2395_v27 = vld [vmem:[%s3237_s12 + $0x298] sm:$0xff]  ;;  %v2397_v45 = vld [vmem:[%s3237_s12 + $0x2a0] sm:$0xff] }
 0x41f   : > { %2336 = vst [vmem:[%s4379_s14 + $0x628] sm:$0xff] %v2335_v59  ;;  %2338 = vst [vmem:[%s4379_s14 + $0x630] sm:$0xff] %v2337_v13  ;;  %v2399_v38 = vld [vmem:[%s3237_s12 + $0x2a8] sm:$0xff]  ;;  %v2401_v28 = vld [vmem:[%s3237_s12 + $0x2b0] sm:$0xff] }
 0x420   : > { %2340 = vst [vmem:[%s4379_s14 + $0x638] sm:$0xff] %v2339_v3  ;;  %2342 = vst [vmem:[%s4379_s14 + $0x700] sm:$0xff] %v2341_v10  ;;  %v2403_v7 = vld [vmem:[%s3237_s12 + $0x2b8] sm:$0xff]  ;;  %v2405_v4 = vld [vmem:[%s3237_s12 + $0x2c0] sm:$0xff] }
 0x421   : > { %2344 = vst [vmem:[%s4379_s14 + $0x708] sm:$0xff] %v2343_v23  ;;  %2346 = vst [vmem:[%s4379_s14 + $0x710] sm:$0xff] %v2345_v61  ;;  %v2407_v54 = vld [vmem:[%s3237_s12 + $0x2c8] sm:$0xff]  ;;  %v2409_v39 = vld [vmem:[%s3237_s12 + $0x2d0] sm:$0xff] }
 0x422   : > { %2348 = vst [vmem:[%s4379_s14 + $0x718] sm:$0xff] %v2347_v9  ;;  %2350 = vst [vmem:[%s4379_s14 + $0x720] sm:$0xff] %v2349_v63  ;;  %v2411_v40 = vld [vmem:[%s3237_s12 + $0x2d8] sm:$0xff]  ;;  %v2413_v35 = vld [vmem:[%s3237_s12 + $0x2e0] sm:$0xff] }
 0x423   : > { %2352 = vst [vmem:[%s4379_s14 + $0x728] sm:$0xff] %v2351_v16  ;;  %2354 = vst [vmem:[%s4379_s14 + $0x730] sm:$0xff] %v2353_v31  ;;  %v2415_v42 = vld [vmem:[%s3237_s12 + $0x2e8] sm:$0xff]  ;;  %v2417_v20 = vld [vmem:[%s3237_s12 + $0x2f0] sm:$0xff] }
 0x424   : > { %2356 = vst [vmem:[%s4379_s14 + $0x738] sm:$0xff] %v2355_v1  ;;  %2358 = vst [vmem:[%s4379_s14 + $0x800] sm:$0xff] %v2357_v30  ;;  %v2419_v2 = vld [vmem:[%s3237_s12 + $0x2f8] sm:$0xff]  ;;  %v2421_v25 = vld [vmem:[%s3237_s12 + $0x300] sm:$0xff] }
 0x425   : > { %2360 = vst [vmem:[%s4379_s14 + $0x808] sm:$0xff] %v2359_v62  ;;  %2362 = vst [vmem:[%s4379_s14 + $0x810] sm:$0xff] %v2361_v37  ;;  %v2423_v19 = vld [vmem:[%s3237_s12 + $0x308] sm:$0xff]  ;;  %v2425_v12 = vld [vmem:[%s3237_s12 + $0x310] sm:$0xff] }
 0x426   : > { %2364 = vst [vmem:[%s4379_s14 + $0x818] sm:$0xff] %v2363_v6  ;;  %2366 = vst [vmem:[%s4379_s14 + $0x820] sm:$0xff] %v2365_v15  ;;  %v2427_v53 = vld [vmem:[%s3237_s12 + $0x318] sm:$0xff]  ;;  %v2429_v46 = vld [vmem:[%s3237_s12 + $0x320] sm:$0xff] }
 0x427   : > { %2368 = vst [vmem:[%s4379_s14 + $0x828] sm:$0xff] %v2367_v44  ;;  %2370 = vst [vmem:[%s4379_s14 + $0x830] sm:$0xff] %v2369_v58  ;;  %v2431_v18 = vld [vmem:[%s3237_s12 + $0x328] sm:$0xff]  ;;  %v2433_v43 = vld [vmem:[%s3237_s12 + $0x330] sm:$0xff] }
 0x428   : > { %2372 = vst [vmem:[%s4379_s14 + $0x838] sm:$0xff] %v2371_v32  ;;  %2374 = vst [vmem:[%s4379_s14 + $0x900] sm:$0xff] %v2373_v48  ;;  %v2435_v5 = vld [vmem:[%s3237_s12 + $0x338] sm:$0xff]  ;;  %v2437_v21 = vld [vmem:[%s3237_s12 + $0x340] sm:$0xff] }
 0x429   : > { %2376 = vst [vmem:[%s4379_s14 + $0x908] sm:$0xff] %v2375_v33  ;;  %2378 = vst [vmem:[%s4379_s14 + $0x910] sm:$0xff] %v2377_v47  ;;  %v2439_v8 = vld [vmem:[%s3237_s12 + $0x348] sm:$0xff]  ;;  %v2441_v52 = vld [vmem:[%s3237_s12 + $0x350] sm:$0xff] }
 0x42a   : > { %2380 = vst [vmem:[%s4379_s14 + $0x918] sm:$0xff] %v2379_v60  ;;  %2382 = vst [vmem:[%s4379_s14 + $0x920] sm:$0xff] %v2381_v57  ;;  %v2443_v49 = vld [vmem:[%s3237_s12 + $0x358] sm:$0xff]  ;;  %v2445_v51 = vld [vmem:[%s3237_s12 + $0x360] sm:$0xff] }
 0x42b   : > { %2384 = vst [vmem:[%s4379_s14 + $0x928] sm:$0xff] %v2383_v11  ;;  %2386 = vst [vmem:[%s4379_s14 + $0x930] sm:$0xff] %v2385_v29  ;;  %v2447_v50 = vld [vmem:[%s3237_s12 + $0x368] sm:$0xff]  ;;  %v2449_v24 = vld [vmem:[%s3237_s12 + $0x370] sm:$0xff] }
 0x42c   : > { %2388 = vst [vmem:[%s4379_s14 + $0x938] sm:$0xff] %v2387_v14  ;;  %2390 = vst [vmem:[%s4379_s14 + $0xa00] sm:$0xff] %v2389_v34  ;;  %v2451_v22 = vld [vmem:[%s3237_s12 + $0x378] sm:$0xff]  ;;  %v2453_v17 = vld [vmem:[%s3237_s12 + $0x380] sm:$0xff] }
 0x42d   : > { %2392 = vst [vmem:[%s4379_s14 + $0xa08] sm:$0xff] %v2391_v41  ;;  %2394 = vst [vmem:[%s4379_s14 + $0xa10] sm:$0xff] %v2393_v26  ;;  %v2455_v0 = vld [vmem:[%s3237_s12 + $0x388] sm:$0xff]  ;;  %v2457_v55 = vld [vmem:[%s3237_s12 + $0x390] sm:$0xff] }
 0x42e   : > { %2396 = vst [vmem:[%s4379_s14 + $0xa18] sm:$0xff] %v2395_v27  ;;  %2398 = vst [vmem:[%s4379_s14 + $0xa20] sm:$0xff] %v2397_v45  ;;  %v2459_v56 = vld [vmem:[%s3237_s12 + $0x398] sm:$0xff]  ;;  %v2461_v36 = vld [vmem:[%s3237_s12 + $0x3a0] sm:$0xff] }
 0x42f   : > { %2400 = vst [vmem:[%s4379_s14 + $0xa28] sm:$0xff] %v2399_v38  ;;  %2402 = vst [vmem:[%s4379_s14 + $0xa30] sm:$0xff] %v2401_v28  ;;  %v2463_v59 = vld [vmem:[%s3237_s12 + $0x3a8] sm:$0xff]  ;;  %v2465_v13 = vld [vmem:[%s3237_s12 + $0x3b0] sm:$0xff] }
 0x430   : > { %2404 = vst [vmem:[%s4379_s14 + $0xa38] sm:$0xff] %v2403_v7  ;;  %2406 = vst [vmem:[%s4379_s14 + $0xb00] sm:$0xff] %v2405_v4  ;;  %v2467_v3 = vld [vmem:[%s3237_s12 + $0x3b8] sm:$0xff]  ;;  %v2469_v10 = vld [vmem:[%s3237_s12 + $0x3c0] sm:$0xff] }
 0x431   : > { %2408 = vst [vmem:[%s4379_s14 + $0xb08] sm:$0xff] %v2407_v54  ;;  %2410 = vst [vmem:[%s4379_s14 + $0xb10] sm:$0xff] %v2409_v39  ;;  %v2471_v23 = vld [vmem:[%s3237_s12 + $0x3c8] sm:$0xff]  ;;  %v2473_v61 = vld [vmem:[%s3237_s12 + $0x3d0] sm:$0xff] }
 0x432   : > { %2412 = vst [vmem:[%s4379_s14 + $0xb18] sm:$0xff] %v2411_v40  ;;  %2414 = vst [vmem:[%s4379_s14 + $0xb20] sm:$0xff] %v2413_v35  ;;  %v2475_v9 = vld [vmem:[%s3237_s12 + $0x3d8] sm:$0xff]  ;;  %v2477_v63 = vld [vmem:[%s3237_s12 + $0x3e0] sm:$0xff] }
 0x433   : > { %2416 = vst [vmem:[%s4379_s14 + $0xb28] sm:$0xff] %v2415_v42  ;;  %2418 = vst [vmem:[%s4379_s14 + $0xb30] sm:$0xff] %v2417_v20  ;;  %v2479_v16 = vld [vmem:[%s3237_s12 + $0x3e8] sm:$0xff]  ;;  %v2481_v31 = vld [vmem:[%s3237_s12 + $0x3f0] sm:$0xff] }
 0x434   : > { %2420 = vst [vmem:[%s4379_s14 + $0xb38] sm:$0xff] %v2419_v2  ;;  %2422 = vst [vmem:[%s4379_s14 + $0xc00] sm:$0xff] %v2421_v25  ;;  %v2483_v1 = vld [vmem:[%s3237_s12 + $0x3f8] sm:$0xff]  ;;  %v2485_v30 = vld [vmem:[%s3237_s12 + $0x400] sm:$0xff] }
 0x435   : > { %2424 = vst [vmem:[%s4379_s14 + $0xc08] sm:$0xff] %v2423_v19  ;;  %2426 = vst [vmem:[%s4379_s14 + $0xc10] sm:$0xff] %v2425_v12  ;;  %v2487_v62 = vld [vmem:[%s3237_s12 + $0x408] sm:$0xff]  ;;  %v2489_v37 = vld [vmem:[%s3237_s12 + $0x410] sm:$0xff] }
 0x436   : > { %2428 = vst [vmem:[%s4379_s14 + $0xc18] sm:$0xff] %v2427_v53  ;;  %2430 = vst [vmem:[%s4379_s14 + $0xc20] sm:$0xff] %v2429_v46  ;;  %v2491_v6 = vld [vmem:[%s3237_s12 + $0x418] sm:$0xff]  ;;  %v2493_v15 = vld [vmem:[%s3237_s12 + $0x420] sm:$0xff] }
 0x437   : > { %2432 = vst [vmem:[%s4379_s14 + $0xc28] sm:$0xff] %v2431_v18  ;;  %2434 = vst [vmem:[%s4379_s14 + $0xc30] sm:$0xff] %v2433_v43  ;;  %v2495_v44 = vld [vmem:[%s3237_s12 + $0x428] sm:$0xff]  ;;  %v2497_v58 = vld [vmem:[%s3237_s12 + $0x430] sm:$0xff] }
 0x438   : > { %2436 = vst [vmem:[%s4379_s14 + $0xc38] sm:$0xff] %v2435_v5  ;;  %2438 = vst [vmem:[%s4379_s14 + $0xd00] sm:$0xff] %v2437_v21  ;;  %v2499_v32 = vld [vmem:[%s3237_s12 + $0x438] sm:$0xff]  ;;  %v2501_v48 = vld [vmem:[%s3237_s12 + $0x440] sm:$0xff] }
 0x439   : > { %2440 = vst [vmem:[%s4379_s14 + $0xd08] sm:$0xff] %v2439_v8  ;;  %2442 = vst [vmem:[%s4379_s14 + $0xd10] sm:$0xff] %v2441_v52  ;;  %v2503_v33 = vld [vmem:[%s3237_s12 + $0x448] sm:$0xff]  ;;  %v2505_v47 = vld [vmem:[%s3237_s12 + $0x450] sm:$0xff] }
 0x43a   : > { %2444 = vst [vmem:[%s4379_s14 + $0xd18] sm:$0xff] %v2443_v49  ;;  %2446 = vst [vmem:[%s4379_s14 + $0xd20] sm:$0xff] %v2445_v51  ;;  %v2507_v60 = vld [vmem:[%s3237_s12 + $0x458] sm:$0xff]  ;;  %v2509_v57 = vld [vmem:[%s3237_s12 + $0x460] sm:$0xff] }
 0x43b   : > { %2448 = vst [vmem:[%s4379_s14 + $0xd28] sm:$0xff] %v2447_v50  ;;  %2450 = vst [vmem:[%s4379_s14 + $0xd30] sm:$0xff] %v2449_v24  ;;  %v2511_v11 = vld [vmem:[%s3237_s12 + $0x468] sm:$0xff]  ;;  %v2513_v29 = vld [vmem:[%s3237_s12 + $0x470] sm:$0xff] }
 0x43c   : > { %2452 = vst [vmem:[%s4379_s14 + $0xd38] sm:$0xff] %v2451_v22  ;;  %2454 = vst [vmem:[%s4379_s14 + $0xe00] sm:$0xff] %v2453_v17  ;;  %v2515_v14 = vld [vmem:[%s3237_s12 + $0x478] sm:$0xff] }
 0x43d   : > { %2456 = vst [vmem:[%s4379_s14 + $0xe08] sm:$0xff] %v2455_v0  ;;  %2458 = vst [vmem:[%s4379_s14 + $0xe10] sm:$0xff] %v2457_v55 }
 0x43e   : > { %2460 = vst [vmem:[%s4379_s14 + $0xe18] sm:$0xff] %v2459_v56  ;;  %2462 = vst [vmem:[%s4379_s14 + $0xe20] sm:$0xff] %v2461_v36 }
 0x43f   : > { %2464 = vst [vmem:[%s4379_s14 + $0xe28] sm:$0xff] %v2463_v59  ;;  %2466 = vst [vmem:[%s4379_s14 + $0xe30] sm:$0xff] %v2465_v13 }
 0x440   : > { %2468 = vst [vmem:[%s4379_s14 + $0xe38] sm:$0xff] %v2467_v3  ;;  %2470 = vst [vmem:[%s4379_s14 + $0xf00] sm:$0xff] %v2469_v10 }
 0x441   : > { %2472 = vst [vmem:[%s4379_s14 + $0xf08] sm:$0xff] %v2471_v23  ;;  %2474 = vst [vmem:[%s4379_s14 + $0xf10] sm:$0xff] %v2473_v61 }
 0x442   : > { %2476 = vst [vmem:[%s4379_s14 + $0xf18] sm:$0xff] %v2475_v9  ;;  %2478 = vst [vmem:[%s4379_s14 + $0xf20] sm:$0xff] %v2477_v63 }
 0x443   : > { %2480 = vst [vmem:[%s4379_s14 + $0xf28] sm:$0xff] %v2479_v16  ;;  %2482 = vst [vmem:[%s4379_s14 + $0xf30] sm:$0xff] %v2481_v31 }
 0x444   : > { %2484 = vst [vmem:[%s4379_s14 + $0xf38] sm:$0xff] %v2483_v1  ;;  %2486 = vst [vmem:[%s4379_s14 + $0x1000] sm:$0xff] %v2485_v30 }
 0x445   : > { %2488 = vst [vmem:[%s4379_s14 + $0x1008] sm:$0xff] %v2487_v62  ;;  %2490 = vst [vmem:[%s4379_s14 + $0x1010] sm:$0xff] %v2489_v37 }
 0x446   : > { %2492 = vst [vmem:[%s4379_s14 + $0x1018] sm:$0xff] %v2491_v6  ;;  %2494 = vst [vmem:[%s4379_s14 + $0x1020] sm:$0xff] %v2493_v15 }
 0x447   : > { %2496 = vst [vmem:[%s4379_s14 + $0x1028] sm:$0xff] %v2495_v44  ;;  %2498 = vst [vmem:[%s4379_s14 + $0x1030] sm:$0xff] %v2497_v58 }
 0x448   : > { %2500 = vst [vmem:[%s4379_s14 + $0x1038] sm:$0xff] %v2499_v32  ;;  %2502 = vst [vmem:[%s4379_s14 + $0x1100] sm:$0xff] %v2501_v48 }
 0x449   : > { %2504 = vst [vmem:[%s4379_s14 + $0x1108] sm:$0xff] %v2503_v33  ;;  %2506 = vst [vmem:[%s4379_s14 + $0x1110] sm:$0xff] %v2505_v47 }
 0x44a   : > { %2508 = vst [vmem:[%s4379_s14 + $0x1118] sm:$0xff] %v2507_v60  ;;  %2510 = vst [vmem:[%s4379_s14 + $0x1120] sm:$0xff] %v2509_v57 }
 0x44b   : > { %2512 = vst [vmem:[%s4379_s14 + $0x1128] sm:$0xff] %v2511_v11  ;;  %2514 = vst [vmem:[%s4379_s14 + $0x1130] sm:$0xff] %v2513_v29 }
 0x44c   : > { %2516 = vst [vmem:[%s4379_s14 + $0x1138] sm:$0xff] %v2515_v14 }
 0x44d PF: > { %s17_s28 = sadd.s32 1, %s3002_s28   ;;  %s4690_s24 = smov %s2990_s25 }
 0x44e   : > { %p14_p13 = scmp.ge.s32.totalorder %s17_s28, 6   ;;  %s4691_s25 = smov %s3085_s11 }
 0x44f   : > { %s4692_s26 = smov %s2998_s27  ;;  %s4693_s27 = smov %s4695_s29 }
 0x450   :  { %16 = sbr.rel (!%p14_p13) target bundleno = 3 (0x3), region = 139 }

// kernel: complete_model_forward.5
= control target key start
LH: loop header
LB: loop body
LE: loop exit
PB: predicated region body
PF: predicated region fallthrough
CT: control target
= control target key end

     0   :  { %s2289_s24 = smov 0   ;;  %s2291_s25 = smov 0   ;;  %s3158_s0 = inlined_call_operand.vmem [shape: f32[288,4096], index: 0, kind: input, shape index: {}]   ;;  %s3159_s1 = inlined_call_operand.vmem [shape: f32[4096,64], index: 1, kind: input, shape index: {}]   ;;  %s3160_s2 = inlined_call_operand.vmem [shape: f32[1,64], index: 2, kind: input, shape index: {}]   ;;  %s3161_s3 = inlined_call_operand.vmem [shape: f32[1,64], index: 3, kind: input, shape index: {}]   ;;  %s3162_s4 = inlined_call_operand.vmem [shape: f32[1,64], index: 4, kind: input, shape index: {}]   ;;  %s3163_s5 = inlined_call_operand.vmem [shape: f32[64,128], index: 5, kind: input, shape index: {}]   ;;  %s3164_s6 = inlined_call_operand.vmem [shape: f32[1,128], index: 6, kind: input, shape index: {}]   ;;  %s3165_s7 = inlined_call_operand.vmem [shape: f32[288,128], index: 7, kind: output, shape index: {}]  }
   0x1   :  { %s2293_s26 = smov 0   ;;  %s2295_s27 = smov 0  }
   0x2   :  { %s2297_s28 = smov 0   ;;  %s2299_s29 = smov 0  }
   0x3   :  { %s2301_s30 = smov 0  }
   0x4 LB: > { %s26_s8 = sadd.s32 1, %s2237_s28  ;;  %s29_s9 = sadd.s32 1, %s2241_s29  ;;  %s2245_s30 = sphi %s2301_s30, %s17_s30   ;;  %s2241_s29 = sphi %s2299_s29, %s3171_s29   ;;  %s2237_s28 = sphi %s2297_s28, %s3170_s28   ;;  %s2233_s27 = sphi %s2295_s27, %s3169_s27   ;;  %s2229_s26 = sphi %s2293_s26, %s3168_s26   ;;  %s2225_s25 = sphi %s2291_s25, %s3167_s25   ;;  %s2221_s24 = sphi %s2289_s24, %s3166_s24  }
   0x5   : > { %p27_p0 = scmp.ge.s32.totalorder %s26_s8, 8  ;;  %p45_p1 = scmp.ne.s32.totalorder %s2225_s25, %s2221_s24 }
   0x6   : > { %p46_p2 = scmp.eq.s32.totalorder %s2245_s30, 0  ;;  %s38_s13 = sadd.s32 1, %s2225_s25 }
   0x7   : > { %s3173_s8 = smov (%p27_p0, %s26_s8), 0  ;;  %s3175_s9 = smov (!%p27_p0, %s29_s9), %s2241_s29 }
   0x8   : > { %p47_p3 = por %p46_p2, %p45_p1  ;;  %p31_p4 = scmp.ge.s32.totalorder %s3175_s9, 2 }
   0x9   : > { %s34_s10 = ssub.s32 %s2237_s28, %s3173_s8  ;;  %p1835_p6 = scmp.ge.s32.totalorder %s2245_s30, 16 }
   0xa   : > { %s3177_s9 = smov (%p31_p4, %s3175_s9), 0 }
   0xb   : > { %s33_s11 = ssub.s32 %s2241_s29, %s3177_s9  ;;  %243 = sbr.rel (%p1835_p6) target bundleno = 62 (0x3e), region = 36 }
   0xc   : > { %s35_s12 = sor.u32 %s34_s10, %s33_s11 }
   0xd   : > { %p36_p5 = scmp.eq.s32.totalorder %s35_s12, 0 }
   0xf   : > { %s2340_s14 = scalar_select %p36_p5, %s2225_s25, %s38_s13  }
  0x12   : > { %246 = sbr.rel (!%p47_p3) target bundleno = 62 (0x3e), region = 40  ;;  %s248_s15 = sand.u32 (%p47_p3), 1, %s2225_s25  }
  0x13   : > { %s2059_s16 = smul.u32 (%p47_p3), 576, %s248_s15  ;;  %s1836_s17 = sshll.u32 (%p47_p3), %s2237_s28, 2 }
  0x14   : > { %s1869_s18 = smul.u32 (%p47_p3), 576, %s2241_s29 }
  0x15   : > { %s2354_s10 = scalar_lea.vmem (%p47_p3), [#allocation3], %s2059_s16 }
  0x16   : > { %s254_s19 = sadd.s32 (%p47_p3), %s1869_s18, %s1836_s17 }
  0x17   : > { %s1838_s20 = sshll.u32 (%p47_p3), %s254_s19, 3 }
  0x18   : > { %s2349_s23 = scalar_lea.vmem (%p47_p3), %s3158_s0, %s1838_s20 }
  0x19   : > { %v269_v0 = vld [vmem:[%s2349_s23] sm:$0xff]  ;;  %v271_v1 = vld [vmem:[%s2349_s23 + $0x8] sm:$0xff]  ;;  %v273_v2 = vld [vmem:[%s2349_s23 + $0x10] sm:$0xff] }
  0x1a   : > { %270 = vst [vmem:[%s2354_s10] sm:$0xff] %v269_v0  ;;  %272 = vst [vmem:[%s2354_s10 + $0x8] sm:$0xff] %v271_v1  ;;  %v275_v3 = vld [vmem:[%s2349_s23 + $0x18] sm:$0xff]  ;;  %v277_v4 = vld [vmem:[%s2349_s23 + $0x100] sm:$0xff] }
  0x1b   : > { %274 = vst [vmem:[%s2354_s10 + $0x10] sm:$0xff] %v273_v2  ;;  %v279_v5 = vld [vmem:[%s2349_s23 + $0x108] sm:$0xff]  ;;  %276 = vst [vmem:[%s2354_s10 + $0x18] sm:$0xff] %v275_v3  ;;  %v281_v6 = vld [vmem:[%s2349_s23 + $0x110] sm:$0xff] }
  0x1c   : > { %278 = vst [vmem:[%s2354_s10 + $0x20] sm:$0xff] %v277_v4  ;;  %280 = vst [vmem:[%s2354_s10 + $0x28] sm:$0xff] %v279_v5  ;;  %v283_v7 = vld [vmem:[%s2349_s23 + $0x118] sm:$0xff]  ;;  %v285_v8 = vld [vmem:[%s2349_s23 + $0x200] sm:$0xff] }
  0x1d   : > { %282 = vst [vmem:[%s2354_s10 + $0x30] sm:$0xff] %v281_v6  ;;  %284 = vst [vmem:[%s2354_s10 + $0x38] sm:$0xff] %v283_v7  ;;  %v287_v9 = vld [vmem:[%s2349_s23 + $0x208] sm:$0xff]  ;;  %v289_v10 = vld [vmem:[%s2349_s23 + $0x210] sm:$0xff] }
  0x1e   : > { %286 = vst [vmem:[%s2354_s10 + $0x40] sm:$0xff] %v285_v8  ;;  %v291_v11 = vld [vmem:[%s2349_s23 + $0x218] sm:$0xff]  ;;  %288 = vst [vmem:[%s2354_s10 + $0x48] sm:$0xff] %v287_v9  ;;  %v293_v12 = vld [vmem:[%s2349_s23 + $0x300] sm:$0xff] }
  0x1f   : > { %290 = vst [vmem:[%s2354_s10 + $0x50] sm:$0xff] %v289_v10  ;;  %292 = vst [vmem:[%s2354_s10 + $0x58] sm:$0xff] %v291_v11  ;;  %v295_v13 = vld [vmem:[%s2349_s23 + $0x308] sm:$0xff]  ;;  %v297_v14 = vld [vmem:[%s2349_s23 + $0x310] sm:$0xff] }
  0x20   : > { %294 = vst [vmem:[%s2354_s10 + $0x60] sm:$0xff] %v293_v12  ;;  %296 = vst [vmem:[%s2354_s10 + $0x68] sm:$0xff] %v295_v13  ;;  %v299_v15 = vld [vmem:[%s2349_s23 + $0x318] sm:$0xff]  ;;  %v301_v16 = vld [vmem:[%s2349_s23 + $0x400] sm:$0xff] }
  0x21   : > { %298 = vst [vmem:[%s2354_s10 + $0x70] sm:$0xff] %v297_v14  ;;  %v303_v17 = vld [vmem:[%s2349_s23 + $0x408] sm:$0xff]  ;;  %300 = vst [vmem:[%s2354_s10 + $0x78] sm:$0xff] %v299_v15  ;;  %v305_v18 = vld [vmem:[%s2349_s23 + $0x410] sm:$0xff] }
  0x22   : > { %302 = vst [vmem:[%s2354_s10 + $0x80] sm:$0xff] %v301_v16  ;;  %304 = vst [vmem:[%s2354_s10 + $0x88] sm:$0xff] %v303_v17  ;;  %v307_v19 = vld [vmem:[%s2349_s23 + $0x418] sm:$0xff]  ;;  %v309_v20 = vld [vmem:[%s2349_s23 + $0x500] sm:$0xff] }
  0x23   : > { %306 = vst [vmem:[%s2354_s10 + $0x90] sm:$0xff] %v305_v18  ;;  %308 = vst [vmem:[%s2354_s10 + $0x98] sm:$0xff] %v307_v19  ;;  %v311_v21 = vld [vmem:[%s2349_s23 + $0x508] sm:$0xff]  ;;  %v313_v22 = vld [vmem:[%s2349_s23 + $0x510] sm:$0xff] }
  0x24   : > { %310 = vst [vmem:[%s2354_s10 + $0xa0] sm:$0xff] %v309_v20  ;;  %v315_v23 = vld [vmem:[%s2349_s23 + $0x518] sm:$0xff]  ;;  %312 = vst [vmem:[%s2354_s10 + $0xa8] sm:$0xff] %v311_v21  ;;  %v317_v24 = vld [vmem:[%s2349_s23 + $0x600] sm:$0xff] }
  0x25   : > { %314 = vst [vmem:[%s2354_s10 + $0xb0] sm:$0xff] %v313_v22  ;;  %316 = vst [vmem:[%s2354_s10 + $0xb8] sm:$0xff] %v315_v23  ;;  %v319_v25 = vld [vmem:[%s2349_s23 + $0x608] sm:$0xff]  ;;  %v321_v26 = vld [vmem:[%s2349_s23 + $0x610] sm:$0xff] }
  0x26   : > { %318 = vst [vmem:[%s2354_s10 + $0xc0] sm:$0xff] %v317_v24  ;;  %320 = vst [vmem:[%s2354_s10 + $0xc8] sm:$0xff] %v319_v25  ;;  %v323_v27 = vld [vmem:[%s2349_s23 + $0x618] sm:$0xff]  ;;  %v325_v28 = vld [vmem:[%s2349_s23 + $0x700] sm:$0xff] }
  0x27   : > { %322 = vst [vmem:[%s2354_s10 + $0xd0] sm:$0xff] %v321_v26  ;;  %v327_v29 = vld [vmem:[%s2349_s23 + $0x708] sm:$0xff]  ;;  %324 = vst [vmem:[%s2354_s10 + $0xd8] sm:$0xff] %v323_v27  ;;  %v329_v30 = vld [vmem:[%s2349_s23 + $0x710] sm:$0xff] }
  0x28   : > { %326 = vst [vmem:[%s2354_s10 + $0xe0] sm:$0xff] %v325_v28  ;;  %328 = vst [vmem:[%s2354_s10 + $0xe8] sm:$0xff] %v327_v29  ;;  %v331_v31 = vld [vmem:[%s2349_s23 + $0x718] sm:$0xff]  ;;  %v333_v32 = vld [vmem:[%s2349_s23 + $0x800] sm:$0xff] }
  0x29   : > { %330 = vst [vmem:[%s2354_s10 + $0xf0] sm:$0xff] %v329_v30  ;;  %332 = vst [vmem:[%s2354_s10 + $0xf8] sm:$0xff] %v331_v31  ;;  %v335_v33 = vld [vmem:[%s2349_s23 + $0x808] sm:$0xff]  ;;  %v337_v34 = vld [vmem:[%s2349_s23 + $0x810] sm:$0xff] }
  0x2a   : > { %334 = vst [vmem:[%s2354_s10 + $0x100] sm:$0xff] %v333_v32  ;;  %v339_v35 = vld [vmem:[%s2349_s23 + $0x818] sm:$0xff]  ;;  %336 = vst [vmem:[%s2354_s10 + $0x108] sm:$0xff] %v335_v33  ;;  %v341_v36 = vld [vmem:[%s2349_s23 + $0x900] sm:$0xff] }
  0x2b   : > { %338 = vst [vmem:[%s2354_s10 + $0x110] sm:$0xff] %v337_v34  ;;  %340 = vst [vmem:[%s2354_s10 + $0x118] sm:$0xff] %v339_v35  ;;  %v343_v37 = vld [vmem:[%s2349_s23 + $0x908] sm:$0xff]  ;;  %v345_v38 = vld [vmem:[%s2349_s23 + $0x910] sm:$0xff] }
  0x2c   : > { %342 = vst [vmem:[%s2354_s10 + $0x120] sm:$0xff] %v341_v36  ;;  %344 = vst [vmem:[%s2354_s10 + $0x128] sm:$0xff] %v343_v37  ;;  %v347_v39 = vld [vmem:[%s2349_s23 + $0x918] sm:$0xff]  ;;  %v349_v40 = vld [vmem:[%s2349_s23 + $0xa00] sm:$0xff] }
  0x2d   : > { %346 = vst [vmem:[%s2354_s10 + $0x130] sm:$0xff] %v345_v38  ;;  %v351_v41 = vld [vmem:[%s2349_s23 + $0xa08] sm:$0xff]  ;;  %348 = vst [vmem:[%s2354_s10 + $0x138] sm:$0xff] %v347_v39  ;;  %v353_v42 = vld [vmem:[%s2349_s23 + $0xa10] sm:$0xff] }
  0x2e   : > { %350 = vst [vmem:[%s2354_s10 + $0x140] sm:$0xff] %v349_v40  ;;  %352 = vst [vmem:[%s2354_s10 + $0x148] sm:$0xff] %v351_v41  ;;  %v355_v43 = vld [vmem:[%s2349_s23 + $0xa18] sm:$0xff]  ;;  %v357_v44 = vld [vmem:[%s2349_s23 + $0xb00] sm:$0xff] }
  0x2f   : > { %354 = vst [vmem:[%s2354_s10 + $0x150] sm:$0xff] %v353_v42  ;;  %356 = vst [vmem:[%s2354_s10 + $0x158] sm:$0xff] %v355_v43  ;;  %v359_v45 = vld [vmem:[%s2349_s23 + $0xb08] sm:$0xff]  ;;  %v361_v46 = vld [vmem:[%s2349_s23 + $0xb10] sm:$0xff] }
  0x30   : > { %358 = vst [vmem:[%s2354_s10 + $0x160] sm:$0xff] %v357_v44  ;;  %v363_v47 = vld [vmem:[%s2349_s23 + $0xb18] sm:$0xff]  ;;  %360 = vst [vmem:[%s2354_s10 + $0x168] sm:$0xff] %v359_v45  ;;  %v365_v48 = vld [vmem:[%s2349_s23 + $0xc00] sm:$0xff] }
  0x31   : > { %362 = vst [vmem:[%s2354_s10 + $0x170] sm:$0xff] %v361_v46  ;;  %364 = vst [vmem:[%s2354_s10 + $0x178] sm:$0xff] %v363_v47  ;;  %v367_v49 = vld [vmem:[%s2349_s23 + $0xc08] sm:$0xff]  ;;  %v369_v50 = vld [vmem:[%s2349_s23 + $0xc10] sm:$0xff] }
  0x32   : > { %366 = vst [vmem:[%s2354_s10 + $0x180] sm:$0xff] %v365_v48  ;;  %368 = vst [vmem:[%s2354_s10 + $0x188] sm:$0xff] %v367_v49  ;;  %v371_v51 = vld [vmem:[%s2349_s23 + $0xc18] sm:$0xff]  ;;  %v373_v52 = vld [vmem:[%s2349_s23 + $0xd00] sm:$0xff] }
  0x33   : > { %370 = vst [vmem:[%s2354_s10 + $0x190] sm:$0xff] %v369_v50  ;;  %v375_v53 = vld [vmem:[%s2349_s23 + $0xd08] sm:$0xff]  ;;  %372 = vst [vmem:[%s2354_s10 + $0x198] sm:$0xff] %v371_v51  ;;  %v377_v54 = vld [vmem:[%s2349_s23 + $0xd10] sm:$0xff] }
  0x34   : > { %374 = vst [vmem:[%s2354_s10 + $0x1a0] sm:$0xff] %v373_v52  ;;  %376 = vst [vmem:[%s2354_s10 + $0x1a8] sm:$0xff] %v375_v53  ;;  %v379_v55 = vld [vmem:[%s2349_s23 + $0xd18] sm:$0xff]  ;;  %v381_v56 = vld [vmem:[%s2349_s23 + $0xe00] sm:$0xff] }
  0x35   : > { %378 = vst [vmem:[%s2354_s10 + $0x1b0] sm:$0xff] %v377_v54  ;;  %380 = vst [vmem:[%s2354_s10 + $0x1b8] sm:$0xff] %v379_v55  ;;  %v383_v57 = vld [vmem:[%s2349_s23 + $0xe08] sm:$0xff]  ;;  %v385_v58 = vld [vmem:[%s2349_s23 + $0xe10] sm:$0xff] }
  0x36   : > { %382 = vst [vmem:[%s2354_s10 + $0x1c0] sm:$0xff] %v381_v56  ;;  %v387_v59 = vld [vmem:[%s2349_s23 + $0xe18] sm:$0xff]  ;;  %384 = vst [vmem:[%s2354_s10 + $0x1c8] sm:$0xff] %v383_v57  ;;  %v389_v60 = vld [vmem:[%s2349_s23 + $0xf00] sm:$0xff] }
  0x37   : > { %386 = vst [vmem:[%s2354_s10 + $0x1d0] sm:$0xff] %v385_v58  ;;  %388 = vst [vmem:[%s2354_s10 + $0x1d8] sm:$0xff] %v387_v59  ;;  %v391_v61 = vld [vmem:[%s2349_s23 + $0xf08] sm:$0xff]  ;;  %v393_v62 = vld [vmem:[%s2349_s23 + $0xf10] sm:$0xff] }
  0x38   : > { %390 = vst [vmem:[%s2354_s10 + $0x1e0] sm:$0xff] %v389_v60  ;;  %392 = vst [vmem:[%s2354_s10 + $0x1e8] sm:$0xff] %v391_v61  ;;  %v395_v63 = vld [vmem:[%s2349_s23 + $0xf18] sm:$0xff]  ;;  %v397_v0 = vld [vmem:[%s2349_s23 + $0x1000] sm:$0xff] }
  0x39   : > { %394 = vst [vmem:[%s2354_s10 + $0x1f0] sm:$0xff] %v393_v62  ;;  %v399_v1 = vld [vmem:[%s2349_s23 + $0x1008] sm:$0xff]  ;;  %396 = vst [vmem:[%s2354_s10 + $0x1f8] sm:$0xff] %v395_v63  ;;  %v401_v2 = vld [vmem:[%s2349_s23 + $0x1010] sm:$0xff] }
  0x3a   : > { %398 = vst [vmem:[%s2354_s10 + $0x200] sm:$0xff] %v397_v0  ;;  %400 = vst [vmem:[%s2354_s10 + $0x208] sm:$0xff] %v399_v1  ;;  %v403_v3 = vld [vmem:[%s2349_s23 + $0x1018] sm:$0xff]  ;;  %v405_v4 = vld [vmem:[%s2349_s23 + $0x1100] sm:$0xff] }
  0x3b   : > { %402 = vst [vmem:[%s2354_s10 + $0x210] sm:$0xff] %v401_v2  ;;  %404 = vst [vmem:[%s2354_s10 + $0x218] sm:$0xff] %v403_v3  ;;  %v407_v5 = vld [vmem:[%s2349_s23 + $0x1108] sm:$0xff]  ;;  %v409_v6 = vld [vmem:[%s2349_s23 + $0x1110] sm:$0xff] }
  0x3c   : > { %406 = vst [vmem:[%s2354_s10 + $0x220] sm:$0xff] %v405_v4  ;;  %v411_v7 = vld [vmem:[%s2349_s23 + $0x1118] sm:$0xff]  ;;  %408 = vst [vmem:[%s2354_s10 + $0x228] sm:$0xff] %v407_v5 }
  0x3d   : > { %410 = vst [vmem:[%s2354_s10 + $0x230] sm:$0xff] %v409_v6  ;;  %412 = vst [vmem:[%s2354_s10 + $0x238] sm:$0xff] %v411_v7 }
  0x3e PF: > { %p1839_p7 = scmp.ge.s32.totalorder %s2245_s30, 1  ;;  %p426_p8 = scmp.lt.s32.totalorder %s2245_s30, 17 }
  0x40   : > { %p427_p9 = pnand %p1839_p7, %p426_p8 }
  0x41   : > { %s433_s11 = sand.u32 (!%p427_p9), 1, %s2221_s24   ;;  %s1840_s12 = sshll.u32 (!%p427_p9), %s2229_s26, 6 }
  0x42   : > { %430 = sbr.rel (%p427_p9) target bundleno = 1010 (0x3f2), region = 67  ;;  %p472_p10 = scmp.lt.s32.totalorder (!%p427_p9), %s1840_s12, 511 }
  0x43   : > { %s2060_s13 = smul.u32 (!%p427_p9), 576, %s433_s11  ;;  %p1843_p12 = scmp.ne.s32.totalorder (!%p427_p9), %s2229_s26, 0 }
  0x44   : > { %s477_s15 = smul.u32 (!%p427_p9), 18, %s2233_s27 }
  0x45   : > { %s2512_s24 = scalar_lea.vmem (!%p427_p9), [#allocation3], %s2060_s13 }
  0x46   : > { %p478_p11 = scmp.lt.s32.totalorder (!%p427_p9), %s477_s15, 35 }
  0x49   : > { %s3179_s12 = smov (!%p472_p10, %s1840_s12), 511  ;;  %s3181_s15 = smov (!%p478_p11, %s477_s15), 35 }
  0x4a   : > { %s1841_s16 = sshll.u32 %s3179_s12, 3  ;;  %s1842_s20 = sshll.u32 %s3181_s15, 3  ;;  %vm487_vm0 = vcmask (!%p1843_p12), 523264   ;;  %v2247_v8 = vmov (!%p1843_p12), 0.0  }
  0x4b   : > { %s2505_s19 = scalar_lea.vmem %s3159_s1, %s1841_s16  ;;  %s2510_s23 = scalar_lea.vmem %s3165_s7, %s1842_s20  ;;  %488 = vst.msk [vmem:[#allocation2] sm:$0xff] (!%p1843_p12), %vm487_vm0, %v2247_v8  ;;  %489 = vst.msk [vmem:[#allocation2 + $0x8] sm:$0xff] (!%p1843_p12), %vm487_vm0, %v2247_v8 }
  0x4c   : > { %486 = sbr.rel (%p1843_p12) target bundleno = 84 (0x54), region = 75  ;;  %490 = vst.msk [vmem:[#allocation2 + $0x10] sm:$0xff] (!%p1843_p12), %vm487_vm0, %v2247_v8  ;;  %491 = vst.msk [vmem:[#allocation2 + $0x18] sm:$0xff] (!%p1843_p12), %vm487_vm0, %v2247_v8 }
  0x4d   : > { %492 = vst.msk [vmem:[#allocation2 + $0x20] sm:$0xff] (!%p1843_p12), %vm487_vm0, %v2247_v8  ;;  %493 = vst.msk [vmem:[#allocation2 + $0x28] sm:$0xff] (!%p1843_p12), %vm487_vm0, %v2247_v8 }
  0x4e   : > { %494 = vst.msk [vmem:[#allocation2 + $0x30] sm:$0xff] (!%p1843_p12), %vm487_vm0, %v2247_v8  ;;  %495 = vst.msk [vmem:[#allocation2 + $0x38] sm:$0xff] (!%p1843_p12), %vm487_vm0, %v2247_v8 }
  0x4f   : > { %496 = vst.msk [vmem:[#allocation2 + $0x40] sm:$0xff] (!%p1843_p12), %vm487_vm0, %v2247_v8  ;;  %497 = vst.msk [vmem:[#allocation2 + $0x48] sm:$0xff] (!%p1843_p12), %vm487_vm0, %v2247_v8 }
  0x50   : > { %498 = vst.msk [vmem:[#allocation2 + $0x50] sm:$0xff] (!%p1843_p12), %vm487_vm0, %v2247_v8  ;;  %499 = vst.msk [vmem:[#allocation2 + $0x58] sm:$0xff] (!%p1843_p12), %vm487_vm0, %v2247_v8 }
  0x51   : > { %500 = vst.msk [vmem:[#allocation2 + $0x60] sm:$0xff] (!%p1843_p12), %vm487_vm0, %v2247_v8  ;;  %501 = vst.msk [vmem:[#allocation2 + $0x68] sm:$0xff] (!%p1843_p12), %vm487_vm0, %v2247_v8 }
  0x52   : > { %502 = vst.msk [vmem:[#allocation2 + $0x70] sm:$0xff] (!%p1843_p12), %vm487_vm0, %v2247_v8  ;;  %503 = vst.msk [vmem:[#allocation2 + $0x78] sm:$0xff] (!%p1843_p12), %vm487_vm0, %v2247_v8 }
  0x53   : > { %504 = vst.msk [vmem:[#allocation2 + $0x80] sm:$0xff] %vm487_vm0, %v2247_v8  ;;  %505 = vst.msk [vmem:[#allocation2 + $0x88] sm:$0xff] %vm487_vm0, %v2247_v8 }
  0x54 PF: > { %v596_v9 = vld [vmem:[%s2505_s19] sm:$0xff]  ;;  %v597_v10 = vld [vmem:[%s2505_s19 + $0x8] sm:$0xff]  ;;  %v2248_v12 = vmov 0.0|0.0   ;;  %v598_v15 = vld [vmem:[%s2505_s19 + $0x10] sm:$0xff]  ;;  %vm988_vm1 = vcmask 523264   ;;  %p1844_p13 = scmp.ne.s32.totalorder %s2229_s26, 7 }
  0x55   : > { %v628_v11 = vld [vmem:[%s2505_s19 + $0x100] sm:$0xff]  ;;  %1939 = vmatprep.subr.bf16.mxu0 %v2248_v12  ;;  %1987 = vmatprep.subr.bf16.mxu1 %v2248_v12  ;;  %v1940_v13 = vpack.c.bf16 %v597_v10, %v596_v9  ;;  %v629_v14 = vld [vmem:[%s2505_s19 + $0x108] sm:$0xff]  ;;  %v599_v16 = vld [vmem:[%s2505_s19 + $0x18] sm:$0xff] }
  0x56   : > { %v1988_v17 = vpack.c.bf16 %v629_v14, %v628_v11  ;;  %v630_v18 = vld [vmem:[%s2505_s19 + $0x110] sm:$0xff]  ;;  %v631_v19 = vld [vmem:[%s2505_s19 + $0x118] sm:$0xff]  ;;  %v1943_v20 = vpack.c.bf16 %v599_v16, %v598_v15  ;;  %v600_v22 = vld [vmem:[%s2505_s19 + $0x20] sm:$0xff] }
  0x57   : > { %1941 = vmatpush1.bf16.msra.mxu0 %v1940_v13  ;;  %v1991_v21 = vpack.c.bf16 %v631_v19, %v630_v18  ;;  %v601_v23 = vld [vmem:[%s2505_s19 + $0x28] sm:$0xff]  ;;  %v632_v24 = vld [vmem:[%s2505_s19 + $0x120] sm:$0xff]  ;;  %v602_v28 = vld [vmem:[%s2505_s19 + $0x30] sm:$0xff] }
  0x58   : > { %1989 = vmatpush1.bf16.msra.mxu1 %v1988_v17  ;;  %1942 = vmatprep.subr.bf16.mxu0 %v2248_v12  ;;  %v633_v25 = vld [vmem:[%s2505_s19 + $0x128] sm:$0xff]  ;;  %v1946_v26 = vpack.c.bf16 %v601_v23, %v600_v22  ;;  %v603_v29 = vld [vmem:[%s2505_s19 + $0x38] sm:$0xff]  ;;  %v634_v30 = vld [vmem:[%s2505_s19 + $0x130] sm:$0xff] }
  0x59   : > { %1990 = vmatprep.subr.bf16.mxu1 %v2248_v12  ;;  %v1994_v27 = vpack.c.bf16 %v633_v25, %v632_v24  ;;  %v635_v31 = vld [vmem:[%s2505_s19 + $0x138] sm:$0xff]  ;;  %v1949_v32 = vpack.c.bf16 %v603_v29, %v602_v28  ;;  %v604_v34 = vld [vmem:[%s2505_s19 + $0x40] sm:$0xff]  ;;  %v605_v35 = vld [vmem:[%s2505_s19 + $0x48] sm:$0xff] }
  0x5a   : > { %v1997_v33 = vpack.c.bf16 %v635_v31, %v634_v30  ;;  %v636_v36 = vld [vmem:[%s2505_s19 + $0x140] sm:$0xff]  ;;  %v637_v37 = vld [vmem:[%s2505_s19 + $0x148] sm:$0xff]  ;;  %v1952_v38 = vpack.c.bf16 %v605_v35, %v604_v34  ;;  %v606_v40 = vld [vmem:[%s2505_s19 + $0x50] sm:$0xff] }
  0x5b   : > { %1944 = vmatpush1.bf16.msra.mxu0 %v1943_v20  ;;  %v2000_v39 = vpack.c.bf16 %v637_v37, %v636_v36  ;;  %v607_v41 = vld [vmem:[%s2505_s19 + $0x58] sm:$0xff]  ;;  %v638_v42 = vld [vmem:[%s2505_s19 + $0x150] sm:$0xff]  ;;  %v608_v46 = vld [vmem:[%s2505_s19 + $0x60] sm:$0xff] }
  0x5c   : > { %1992 = vmatpush1.bf16.msra.mxu1 %v1991_v21  ;;  %1945 = vmatprep.subr.bf16.mxu0 %v2248_v12  ;;  %v639_v43 = vld [vmem:[%s2505_s19 + $0x158] sm:$0xff]  ;;  %v1955_v44 = vpack.c.bf16 %v607_v41, %v606_v40  ;;  %v609_v47 = vld [vmem:[%s2505_s19 + $0x68] sm:$0xff]  ;;  %v640_v48 = vld [vmem:[%s2505_s19 + $0x160] sm:$0xff] }
  0x5d   : > { %1993 = vmatprep.subr.bf16.mxu1 %v2248_v12  ;;  %v2003_v45 = vpack.c.bf16 %v639_v43, %v638_v42  ;;  %v641_v49 = vld [vmem:[%s2505_s19 + $0x168] sm:$0xff]  ;;  %v525_v50 = vld [vmem:[%s2512_s24 + $0x8] sm:$0xff]  ;;  %v1958_v52 = vpack.c.bf16 %v609_v47, %v608_v46  ;;  %v610_v54 = vld [vmem:[%s2505_s19 + $0x70] sm:$0xff] }
  0x5e   : > { %v527_v51 = vld [vmem:[%s2512_s24 + $0x18] sm:$0xff]  ;;  %724 = vmatprep.mubr.f32.mxu0 %v525_v50  ;;  %v2006_v53 = vpack.c.bf16 %v641_v49, %v640_v48  ;;  %v611_v55 = vld [vmem:[%s2505_s19 + $0x78] sm:$0xff]  ;;  %v642_v56 = vld [vmem:[%s2505_s19 + $0x170] sm:$0xff] }
  0x5f   : > { %1947 = vmatpush1.bf16.msra.mxu0 %v1946_v26  ;;  %879 = vmatprep.mubr.f32.mxu1 %v527_v51  ;;  %v643_v57 = vld [vmem:[%s2505_s19 + $0x178] sm:$0xff]  ;;  %v1961_v58 = vpack.c.bf16 %v611_v55, %v610_v54  ;;  %v612_v60 = vld [vmem:[%s2505_s19 + $0x80] sm:$0xff]  ;;  %v613_v61 = vld [vmem:[%s2505_s19 + $0x88] sm:$0xff] }
  0x60   : > { %1995 = vmatpush1.bf16.msra.mxu1 %v1994_v27  ;;  %1948 = vmatprep.subr.bf16.mxu0 %v2248_v12  ;;  %v2009_v59 = vpack.c.bf16 %v643_v57, %v642_v56  ;;  %v644_v62 = vld [vmem:[%s2505_s19 + $0x180] sm:$0xff]  ;;  %v645_v63 = vld [vmem:[%s2505_s19 + $0x188] sm:$0xff]  ;;  %v1964_v0 = vpack.c.bf16 %v613_v61, %v612_v60  ;;  %v614_v2 = vld [vmem:[%s2505_s19 + $0x90] sm:$0xff] }
  0x61   : > { %1996 = vmatprep.subr.bf16.mxu1 %v2248_v12  ;;  %v2012_v1 = vpack.c.bf16 %v645_v63, %v644_v62  ;;  %v615_v3 = vld [vmem:[%s2505_s19 + $0x98] sm:$0xff]  ;;  %v646_v4 = vld [vmem:[%s2505_s19 + $0x190] sm:$0xff]  ;;  %v616_v8 = vld [vmem:[%s2505_s19 + $0xa0] sm:$0xff] }
  0x62   : > { %v647_v5 = vld [vmem:[%s2505_s19 + $0x198] sm:$0xff]  ;;  %v1967_v6 = vpack.c.bf16 %v615_v3, %v614_v2  ;;  %v617_v9 = vld [vmem:[%s2505_s19 + $0xa8] sm:$0xff]  ;;  %v648_v10 = vld [vmem:[%s2505_s19 + $0x1a0] sm:$0xff] }
  0x63   : > { %1950 = vmatpush1.bf16.msra.mxu0 %v1949_v32  ;;  %v2015_v7 = vpack.c.bf16 %v647_v5, %v646_v4  ;;  %v649_v11 = vld [vmem:[%s2505_s19 + $0x1a8] sm:$0xff]  ;;  %v1970_v13 = vpack.c.bf16 %v617_v9, %v616_v8  ;;  %v618_v15 = vld [vmem:[%s2505_s19 + $0xb0] sm:$0xff]  ;;  %v619_v16 = vld [vmem:[%s2505_s19 + $0xb8] sm:$0xff] }
  0x64   : > { %1998 = vmatpush1.bf16.msra.mxu1 %v1997_v33  ;;  %1951 = vmatprep.subr.bf16.mxu0 %v2248_v12  ;;  %v2018_v14 = vpack.c.bf16 %v649_v11, %v648_v10  ;;  %v650_v17 = vld [vmem:[%s2505_s19 + $0x1b0] sm:$0xff]  ;;  %v651_v18 = vld [vmem:[%s2505_s19 + $0x1b8] sm:$0xff]  ;;  %v1973_v19 = vpack.c.bf16 %v619_v16, %v618_v15  ;;  %v620_v21 = vld [vmem:[%s2505_s19 + $0xc0] sm:$0xff] }
  0x65   : > { %1999 = vmatprep.subr.bf16.mxu1 %v2248_v12  ;;  %v2021_v20 = vpack.c.bf16 %v651_v18, %v650_v17  ;;  %v621_v22 = vld [vmem:[%s2505_s19 + $0xc8] sm:$0xff]  ;;  %v652_v23 = vld [vmem:[%s2505_s19 + $0x1c0] sm:$0xff]  ;;  %v622_v27 = vld [vmem:[%s2505_s19 + $0xd0] sm:$0xff] }
  0x66   : > { %v653_v24 = vld [vmem:[%s2505_s19 + $0x1c8] sm:$0xff]  ;;  %v1976_v25 = vpack.c.bf16 %v621_v22, %v620_v21  ;;  %v623_v28 = vld [vmem:[%s2505_s19 + $0xd8] sm:$0xff]  ;;  %v654_v29 = vld [vmem:[%s2505_s19 + $0x1d0] sm:$0xff] }
  0x67   : > { %1953 = vmatpush1.bf16.msra.mxu0 %v1952_v38  ;;  %v2024_v26 = vpack.c.bf16 %v653_v24, %v652_v23  ;;  %v655_v30 = vld [vmem:[%s2505_s19 + $0x1d8] sm:$0xff]  ;;  %v1979_v31 = vpack.c.bf16 %v623_v28, %v622_v27  ;;  %v624_v33 = vld [vmem:[%s2505_s19 + $0xe0] sm:$0xff]  ;;  %v625_v34 = vld [vmem:[%s2505_s19 + $0xe8] sm:$0xff] }
  0x68   : > { %2001 = vmatpush1.bf16.msra.mxu1 %v2000_v39  ;;  %1954 = vmatprep.subr.bf16.mxu0 %v2248_v12  ;;  %v2027_v32 = vpack.c.bf16 %v655_v30, %v654_v29  ;;  %v656_v35 = vld [vmem:[%s2505_s19 + $0x1e0] sm:$0xff]  ;;  %v657_v36 = vld [vmem:[%s2505_s19 + $0x1e8] sm:$0xff]  ;;  %v1982_v37 = vpack.c.bf16 %v625_v34, %v624_v33  ;;  %v626_v39 = vld [vmem:[%s2505_s19 + $0xf0] sm:$0xff] }
  0x69   : > { %2002 = vmatprep.subr.bf16.mxu1 %v2248_v12  ;;  %v2030_v38 = vpack.c.bf16 %v657_v36, %v656_v35  ;;  %v627_v40 = vld [vmem:[%s2505_s19 + $0xf8] sm:$0xff]  ;;  %v658_v41 = vld [vmem:[%s2505_s19 + $0x1f0] sm:$0xff]  ;;  %v526_v46 = vld [vmem:[%s2512_s24 + $0x10] sm:$0xff] }
  0x6a   : > { %v659_v42 = vld [vmem:[%s2505_s19 + $0x1f8] sm:$0xff]  ;;  %v1985_v43 = vpack.c.bf16 %v627_v40, %v626_v39  ;;  %v531_v48 = vld [vmem:[%s2512_s24 + $0x38] sm:$0xff]  ;;  %v528_v49 = vld [vmem:[%s2512_s24 + $0x20] sm:$0xff] }
  0x6b   : > { %1956 = vmatpush1.bf16.msra.mxu0 %v1955_v44  ;;  %v2033_v44 = vpack.c.bf16 %v659_v42, %v658_v41  ;;  %v529_v47 = vld [vmem:[%s2512_s24 + $0x28] sm:$0xff]  ;;  %v530_v50 = vld [vmem:[%s2512_s24 + $0x30] sm:$0xff]  ;;  %v539_v55 = vld [vmem:[%s2512_s24 + $0x78] sm:$0xff] }
  0x6c   : > { %2004 = vmatpush1.bf16.msra.mxu1 %v2003_v45  ;;  %1957 = vmatprep.subr.bf16.mxu0 %v2248_v12  ;;  %v524_v45 = vld [vmem:[%s2512_s24] sm:$0xff]  ;;  %v533_v51 = vld [vmem:[%s2512_s24 + $0x48] sm:$0xff]  ;;  %v538_v57 = vld [vmem:[%s2512_s24 + $0x70] sm:$0xff] }
  0x6d   : > { %2005 = vmatprep.subr.bf16.mxu1 %v2248_v12  ;;  %v537_v54 = vld [vmem:[%s2512_s24 + $0x68] sm:$0xff]  ;;  %v536_v56 = vld [vmem:[%s2512_s24 + $0x60] sm:$0xff]  ;;  %v542_v61 = vld [vmem:[%s2512_s24 + $0x90] sm:$0xff] }
  0x6e   : > { %v540_v60 = vld [vmem:[%s2512_s24 + $0x80] sm:$0xff]  ;;  %v545_v62 = vld [vmem:[%s2512_s24 + $0xa8] sm:$0xff]  ;;  %v547_v63 = vld [vmem:[%s2512_s24 + $0xb8] sm:$0xff] }
  0x6f   : > { %1959 = vmatpush1.bf16.msra.mxu0 %v1958_v52  ;;  %v532_v52 = vld [vmem:[%s2512_s24 + $0x40] sm:$0xff]  ;;  %v549_v2 = vld [vmem:[%s2512_s24 + $0xc8] sm:$0xff]  ;;  %v551_v3 = vld [vmem:[%s2512_s24 + $0xd8] sm:$0xff] }
  0x70   : > { %2007 = vmatpush1.bf16.msra.mxu1 %v2006_v53  ;;  %1960 = vmatprep.subr.bf16.mxu0 %v2248_v12  ;;  %v534_v53 = vld [vmem:[%s2512_s24 + $0x50] sm:$0xff]  ;;  %v548_v4 = vld [vmem:[%s2512_s24 + $0xc0] sm:$0xff]  ;;  %v557_v10 = vld [vmem:[%s2512_s24 + $0x108] sm:$0xff] }
  0x71   : > { %2008 = vmatprep.subr.bf16.mxu1 %v2248_v12  ;;  %v550_v5 = vld [vmem:[%s2512_s24 + $0xd0] sm:$0xff]  ;;  %v552_v8 = vld [vmem:[%s2512_s24 + $0xe0] sm:$0xff]  ;;  %v559_v11 = vld [vmem:[%s2512_s24 + $0x118] sm:$0xff] }
  0x72   : > { %v554_v9 = vld [vmem:[%s2512_s24 + $0xf0] sm:$0xff]  ;;  %v561_v15 = vld [vmem:[%s2512_s24 + $0x128] sm:$0xff]  ;;  %v563_v16 = vld [vmem:[%s2512_s24 + $0x138] sm:$0xff] }
  0x73   : > { %1962 = vmatpush1.bf16.msra.mxu0 %v1961_v58  ;;  %v541_v58 = vld [vmem:[%s2512_s24 + $0x88] sm:$0xff]  ;;  %v560_v17 = vld [vmem:[%s2512_s24 + $0x120] sm:$0xff]  ;;  %v562_v18 = vld [vmem:[%s2512_s24 + $0x130] sm:$0xff] }
  0x74   : > { %2010 = vmatpush1.bf16.msra.mxu1 %v2009_v59  ;;  %1963 = vmatprep.subr.bf16.mxu0 %v2248_v12  ;;  %v543_v59 = vld [vmem:[%s2512_s24 + $0x98] sm:$0xff]  ;;  %v564_v21 = vld [vmem:[%s2512_s24 + $0x140] sm:$0xff]  ;;  %v566_v22 = vld [vmem:[%s2512_s24 + $0x150] sm:$0xff] }
  0x75   : > { %2011 = vmatprep.subr.bf16.mxu1 %v2248_v12  ;;  %v569_v23 = vld [vmem:[%s2512_s24 + $0x168] sm:$0xff]  ;;  %v571_v24 = vld [vmem:[%s2512_s24 + $0x178] sm:$0xff]  ;;  %v572_v29 = vld [vmem:[%s2512_s24 + $0x180] sm:$0xff] }
  0x76   : > { %v573_v27 = vld [vmem:[%s2512_s24 + $0x188] sm:$0xff]  ;;  %v575_v28 = vld [vmem:[%s2512_s24 + $0x198] sm:$0xff]  ;;  %v574_v30 = vld [vmem:[%s2512_s24 + $0x190] sm:$0xff] }
  0x77   : > { %1965 = vmatpush1.bf16.msra.mxu0 %v1964_v0  ;;  %v544_v0 = vld [vmem:[%s2512_s24 + $0xa0] sm:$0xff]  ;;  %v578_v34 = vld [vmem:[%s2512_s24 + $0x1b0] sm:$0xff]  ;;  %v581_v35 = vld [vmem:[%s2512_s24 + $0x1c8] sm:$0xff] }
  0x78   : > { %2013 = vmatpush1.bf16.msra.mxu1 %v2012_v1  ;;  %1966 = vmatprep.subr.bf16.mxu0 %v2248_v12  ;;  %v546_v1 = vld [vmem:[%s2512_s24 + $0xb0] sm:$0xff]  ;;  %v576_v33 = vld [vmem:[%s2512_s24 + $0x1a0] sm:$0xff]  ;;  %v583_v36 = vld [vmem:[%s2512_s24 + $0x1d8] sm:$0xff] }
  0x79   : > { %2014 = vmatprep.subr.bf16.mxu1 %v2248_v12  ;;  %v585_v39 = vld [vmem:[%s2512_s24 + $0x1e8] sm:$0xff]  ;;  %v587_v40 = vld [vmem:[%s2512_s24 + $0x1f8] sm:$0xff]  ;;  %v584_v41 = vld [vmem:[%s2512_s24 + $0x1e0] sm:$0xff] }
  0x7a   : > { %v586_v42 = vld [vmem:[%s2512_s24 + $0x1f0] sm:$0xff] }
  0x7b   : > { %1968 = vmatpush1.bf16.msra.mxu0 %v1967_v6  ;;  %v553_v6 = vld [vmem:[%s2512_s24 + $0xe8] sm:$0xff] }
  0x7c   : > { %2016 = vmatpush1.bf16.msra.mxu1 %v2015_v7  ;;  %1969 = vmatprep.subr.bf16.mxu0 %v2248_v12  ;;  %v555_v7 = vld [vmem:[%s2512_s24 + $0xf8] sm:$0xff] }
  0x7d   : > { %2017 = vmatprep.subr.bf16.mxu1 %v2248_v12 }
  0x7f   : > { %1971 = vmatpush1.bf16.msra.mxu0 %v1970_v13  ;;  %v556_v13 = vld [vmem:[%s2512_s24 + $0x100] sm:$0xff] }
  0x80   : > { %2019 = vmatpush1.bf16.msra.mxu1 %v2018_v14  ;;  %1972 = vmatprep.subr.bf16.mxu0 %v2248_v12  ;;  %v558_v14 = vld [vmem:[%s2512_s24 + $0x110] sm:$0xff] }
  0x81   : > { %2020 = vmatprep.subr.bf16.mxu1 %v2248_v12 }
  0x83   : > { %1974 = vmatpush1.bf16.msra.mxu0 %v1973_v19  ;;  %v565_v19 = vld [vmem:[%s2512_s24 + $0x148] sm:$0xff] }
  0x84   : > { %2022 = vmatpush1.bf16.msra.mxu1 %v2021_v20  ;;  %1975 = vmatprep.subr.bf16.mxu0 %v2248_v12  ;;  %v567_v20 = vld [vmem:[%s2512_s24 + $0x158] sm:$0xff] }
  0x85   : > { %2023 = vmatprep.subr.bf16.mxu1 %v2248_v12 }
  0x87   : > { %1977 = vmatpush1.bf16.msra.mxu0 %v1976_v25  ;;  %v568_v25 = vld [vmem:[%s2512_s24 + $0x160] sm:$0xff] }
  0x88   : > { %2025 = vmatpush1.bf16.msra.mxu1 %v2024_v26  ;;  %1978 = vmatprep.subr.bf16.mxu0 %v2248_v12  ;;  %v570_v26 = vld [vmem:[%s2512_s24 + $0x170] sm:$0xff] }
  0x89   : > { %2026 = vmatprep.subr.bf16.mxu1 %v2248_v12 }
  0x8b   : > { %1980 = vmatpush1.bf16.msra.mxu0 %v1979_v31  ;;  %v577_v31 = vld [vmem:[%s2512_s24 + $0x1a8] sm:$0xff] }
  0x8c   : > { %2028 = vmatpush1.bf16.msra.mxu1 %v2027_v32  ;;  %1981 = vmatprep.subr.bf16.mxu0 %v2248_v12  ;;  %v579_v32 = vld [vmem:[%s2512_s24 + $0x1b8] sm:$0xff] }
  0x8d   : > { %2029 = vmatprep.subr.bf16.mxu1 %v2248_v12 }
  0x8f   : > { %1983 = vmatpush1.bf16.msra.mxu0 %v1982_v37  ;;  %v580_v37 = vld [vmem:[%s2512_s24 + $0x1c0] sm:$0xff] }
  0x90   : > { %2031 = vmatpush1.bf16.msra.mxu1 %v2030_v38  ;;  %1984 = vmatprep.subr.bf16.mxu0 %v2248_v12  ;;  %v582_v38 = vld [vmem:[%s2512_s24 + $0x1d0] sm:$0xff] }
  0x91   : > { %2032 = vmatprep.subr.bf16.mxu1 %v2248_v12  ;;  %v535_v12 = vld [vmem:[%s2512_s24 + $0x58] sm:$0xff] }
  0x93   : > { %1986 = vmatpush1.bf16.msra.mxu0 %v1985_v43  ;;  %v589_v43 = vld [vmem:[%s2512_s24 + $0x208] sm:$0xff] }
  0x94   : > { %2034 = vmatpush1.bf16.msra.mxu1 %v2033_v44  ;;  %v591_v44 = vld [vmem:[%s2512_s24 + $0x218] sm:$0xff] }
  0x96   : > { %725 = vmatmul.mubr.f32.vlgmr.msra.gmra.mrb[0].mxu0 %v524_v45  ;;  %v588_v45 = vld [vmem:[%s2512_s24 + $0x200] sm:$0xff] }
  0x97   : > { %880 = vmatmul.mubr.f32.vlgmr.msra.gmra.mrb[0].mxu1 %v526_v46  ;;  %729 = vmatprep.mubr.f32.mxu0 %v529_v47  ;;  %v590_v46 = vld [vmem:[%s2512_s24 + $0x210] sm:$0xff]  ;;  %v593_v47 = vld [vmem:[%s2512_s24 + $0x228] sm:$0xff] }
  0x98   : > { %884 = vmatprep.mubr.f32.mxu1 %v531_v48  ;;  %v595_v48 = vld [vmem:[%s2512_s24 + $0x238] sm:$0xff] }
  0x9a   : > { %730 = vmatmul.mubr.f32.gmra.mrb[2].mxu0 %v528_v49  ;;  %v592_v49 = vld [vmem:[%s2512_s24 + $0x220] sm:$0xff] }
  0x9b   : > { %885 = vmatmul.mubr.f32.gmra.mrb[2].mxu1 %v530_v50  ;;  %734 = vmatprep.mubr.f32.mxu0 %v533_v51  ;;  %v594_v50 = vld [vmem:[%s2512_s24 + $0x230] sm:$0xff] }
  0x9c   : > { %889 = vmatprep.mubr.f32.mxu1 %v535_v12  ;;  %v506_v12 = vld [vmem:[#allocation2] sm:$0xff] }
  0x9e   : > { %735 = vmatmul.mubr.f32.gmra.mrb[4].mxu0 %v532_v52 }
  0x9f   : > { %890 = vmatmul.mubr.f32.gmra.mrb[4].mxu1 %v534_v53  ;;  %739 = vmatprep.mubr.f32.mxu0 %v537_v54 }
  0xa0   : > { %894 = vmatprep.mubr.f32.mxu1 %v539_v55 }
  0xa2   : > { %740 = vmatmul.mubr.f32.gmra.mrb[6].mxu0 %v536_v56 }
  0xa3   : > { %895 = vmatmul.mubr.f32.gmra.mrb[6].mxu1 %v538_v57  ;;  %744 = vmatprep.mubr.f32.mxu0 %v541_v58  ;;  %v507_v58 = vld [vmem:[#allocation2 + $0x8] sm:$0xff] }
  0xa4   : > { %899 = vmatprep.mubr.f32.mxu1 %v543_v59 }
  0xa6   : > { %745 = vmatmul.mubr.f32.gmra.mrb[8].mxu0 %v540_v60 }
  0xa7   : > { %900 = vmatmul.mubr.f32.gmra.mrb[8].mxu1 %v542_v61  ;;  %749 = vmatprep.mubr.f32.mxu0 %v545_v62 }
  0xa8   : > { %904 = vmatprep.mubr.f32.mxu1 %v547_v63 }
  0xaa   : > { %750 = vmatmul.mubr.f32.gmra.mrb[10].mxu0 %v544_v0 }
  0xab   : > { %905 = vmatmul.mubr.f32.gmra.mrb[10].mxu1 %v546_v1  ;;  %754 = vmatprep.mubr.f32.mxu0 %v549_v2  ;;  %v508_v1 = vld [vmem:[#allocation2 + $0x10] sm:$0xff] }
  0xac   : > { %909 = vmatprep.mubr.f32.mxu1 %v551_v3 }
  0xae   : > { %755 = vmatmul.mubr.f32.gmra.mrb[12].mxu0 %v548_v4 }
  0xaf   : > { %910 = vmatmul.mubr.f32.gmra.mrb[12].mxu1 %v550_v5  ;;  %759 = vmatprep.mubr.f32.mxu0 %v553_v6 }
  0xb0   : > { %914 = vmatprep.mubr.f32.mxu1 %v555_v7 }
  0xb2   : > { %760 = vmatmul.mubr.f32.gmra.mrb[14].mxu0 %v552_v8  ;;  %v509_v8 = vld [vmem:[#allocation2 + $0x18] sm:$0xff] }
  0xb3   : > { %915 = vmatmul.mubr.f32.gmra.mrb[14].mxu1 %v554_v9  ;;  %764 = vmatprep.mubr.f32.mxu0 %v557_v10 }
  0xb4   : > { %919 = vmatprep.mubr.f32.mxu1 %v559_v11 }
  0xb6   : > { %765 = vmatmul.mubr.f32.gmra.mrb[16].mxu0 %v556_v13 }
  0xb7   : > { %920 = vmatmul.mubr.f32.gmra.mrb[16].mxu1 %v558_v14  ;;  %769 = vmatprep.mubr.f32.mxu0 %v561_v15 }
  0xb8   : > { %924 = vmatprep.mubr.f32.mxu1 %v563_v16  ;;  %v510_v16 = vld [vmem:[#allocation2 + $0x20] sm:$0xff] }
  0xba   : > { %770 = vmatmul.mubr.f32.gmra.mrb[18].mxu0 %v560_v17 }
  0xbb   : > { %925 = vmatmul.mubr.f32.gmra.mrb[18].mxu1 %v562_v18  ;;  %774 = vmatprep.mubr.f32.mxu0 %v565_v19 }
  0xbc   : > { %929 = vmatprep.mubr.f32.mxu1 %v567_v20 }
  0xbe   : > { %775 = vmatmul.mubr.f32.gmra.mrb[20].mxu0 %v564_v21 }
  0xbf   : > { %930 = vmatmul.mubr.f32.gmra.mrb[20].mxu1 %v566_v22  ;;  %779 = vmatprep.mubr.f32.mxu0 %v569_v23  ;;  %v511_v23 = vld [vmem:[#allocation2 + $0x28] sm:$0xff] }
  0xc0   : > { %934 = vmatprep.mubr.f32.mxu1 %v571_v24 }
  0xc2   : > { %780 = vmatmul.mubr.f32.gmra.mrb[22].mxu0 %v568_v25 }
  0xc3   : > { %935 = vmatmul.mubr.f32.gmra.mrb[22].mxu1 %v570_v26  ;;  %784 = vmatprep.mubr.f32.mxu0 %v573_v27 }
  0xc4   : > { %939 = vmatprep.mubr.f32.mxu1 %v575_v28 }
  0xc6   : > { %785 = vmatmul.mubr.f32.gmra.mrb[24].mxu0 %v572_v29 }
  0xc7   : > { %940 = vmatmul.mubr.f32.gmra.mrb[24].mxu1 %v574_v30  ;;  %789 = vmatprep.mubr.f32.mxu0 %v577_v31  ;;  %v512_v30 = vld [vmem:[#allocation2 + $0x30] sm:$0xff] }
  0xc8   : > { %944 = vmatprep.mubr.f32.mxu1 %v579_v32 }
  0xca   : > { %790 = vmatmul.mubr.f32.gmra.mrb[26].mxu0 %v576_v33 }
  0xcb   : > { %945 = vmatmul.mubr.f32.gmra.mrb[26].mxu1 %v578_v34  ;;  %794 = vmatprep.mubr.f32.mxu0 %v581_v35 }
  0xcc   : > { %949 = vmatprep.mubr.f32.mxu1 %v583_v36 }
  0xce   : > { %795 = vmatmul.mubr.f32.gmra.mrb[28].mxu0 %v580_v37  ;;  %v513_v37 = vld [vmem:[#allocation2 + $0x38] sm:$0xff] }
  0xcf   : > { %950 = vmatmul.mubr.f32.gmra.mrb[28].mxu1 %v582_v38  ;;  %799 = vmatprep.mubr.f32.mxu0 %v585_v39 }
  0xd0   : > { %954 = vmatprep.mubr.f32.mxu1 %v587_v40 }
  0xd2   : > { %800 = vmatmul.mubr.f32.gmra.mrb[30].mxu0 %v584_v41 }
  0xd3   : > { %955 = vmatmul.mubr.f32.gmra.mrb[30].mxu1 %v586_v42  ;;  %804 = vmatprep.mubr.f32.mxu0 %v589_v43 }
  0xd4   : > { %959 = vmatprep.mubr.f32.mxu1 %v591_v44  ;;  %v514_v44 = vld [vmem:[#allocation2 + $0x40] sm:$0xff] }
  0xd6   : > { %805 = vmatmul.mubr.f32.gmra.mrb[32].mxu0 %v588_v45 }
  0xd7   : > { %960 = vmatmul.mubr.f32.gmra.mrb[32].mxu1 %v590_v46  ;;  %809 = vmatprep.mubr.f32.mxu0 %v593_v47 }
  0xd8   : > { %964 = vmatprep.mubr.f32.mxu1 %v595_v48 }
  0xda   : > { %810 = vmatmul.mubr.f32.gmra.mrb[34].mxu0 %v592_v49 }
  0xdb   : > { %965 = vmatmul.mubr.f32.gmra.mrb[34].mxu1 %v594_v50 }
 0x169   : > { %v726_v51 = vpop.f32.mrb[0].mxu0 }
 0x16a   : > { %v881_v52 = vpop.f32.mrb[0].mxu1  ;;  %v728_v53 = vpop.f32.mrb[1].mxu0 }
 0x16b   : > { %v882_v54 = vadd.f32 %v881_v52, %v726_v51  ;;  %v883_v55 = vpop.f32.mrb[1].mxu1  ;;  %v515_v51 = vld [vmem:[#allocation2 + $0x48] sm:$0xff] }
 0x16d   : > { %v970_v56 = vadd.f32 %v882_v54, %v506_v12  ;;  %v731_v57 = vpop.f32.mrb[2].mxu0 }
 0x16e   : > { %v886_v59 = vpop.f32.mrb[2].mxu1  ;;  %v733_v60 = vpop.f32.mrb[3].mxu0 }
 0x16f   : > { %989 = vst.msk [vmem:[#allocation2] sm:$0xff] %vm988_vm1, %v970_v56  ;;  %v887_v61 = vadd.f32 %v886_v59, %v731_v57  ;;  %v888_v62 = vpop.f32.mrb[3].mxu1  ;;  %v516_v57 = vld [vmem:[#allocation2 + $0x50] sm:$0xff] }
 0x171   : > { %v971_v63 = vadd.f32 %v887_v61, %v507_v58  ;;  %v736_v0 = vpop.f32.mrb[4].mxu0 }
 0x172   : > { %v891_v2 = vpop.f32.mrb[4].mxu1  ;;  %v738_v3 = vpop.f32.mrb[5].mxu0 }
 0x173   : > { %990 = vst.msk [vmem:[#allocation2 + $0x8] sm:$0xff] %vm988_vm1, %v971_v63  ;;  %v892_v4 = vadd.f32 %v891_v2, %v736_v0  ;;  %v893_v5 = vpop.f32.mrb[5].mxu1  ;;  %v517_v0 = vld [vmem:[#allocation2 + $0x58] sm:$0xff] }
 0x175   : > { %v972_v6 = vadd.f32 %v892_v4, %v508_v1  ;;  %v741_v7 = vpop.f32.mrb[6].mxu0 }
 0x176   : > { %v896_v9 = vpop.f32.mrb[6].mxu1  ;;  %v743_v10 = vpop.f32.mrb[7].mxu0 }
 0x177   : > { %991 = vst.msk [vmem:[#allocation2 + $0x10] sm:$0xff] %vm988_vm1, %v972_v6  ;;  %v897_v11 = vadd.f32 %v896_v9, %v741_v7  ;;  %v898_v13 = vpop.f32.mrb[7].mxu1  ;;  %v518_v7 = vld [vmem:[#allocation2 + $0x60] sm:$0xff] }
 0x179   : > { %v973_v14 = vadd.f32 %v897_v11, %v509_v8  ;;  %v746_v15 = vpop.f32.mrb[8].mxu0 }
 0x17a   : > { %v901_v17 = vpop.f32.mrb[8].mxu1  ;;  %v748_v18 = vpop.f32.mrb[9].mxu0 }
 0x17b   : > { %992 = vst.msk [vmem:[#allocation2 + $0x18] sm:$0xff] %vm988_vm1, %v973_v14  ;;  %v902_v19 = vadd.f32 %v901_v17, %v746_v15  ;;  %v903_v20 = vpop.f32.mrb[9].mxu1  ;;  %v519_v15 = vld [vmem:[#allocation2 + $0x68] sm:$0xff] }
 0x17d   : > { %v974_v21 = vadd.f32 %v902_v19, %v510_v16  ;;  %v751_v22 = vpop.f32.mrb[10].mxu0 }
 0x17e   : > { %v906_v24 = vpop.f32.mrb[10].mxu1  ;;  %v753_v25 = vpop.f32.mrb[11].mxu0 }
 0x17f   : > { %993 = vst.msk [vmem:[#allocation2 + $0x20] sm:$0xff] %vm988_vm1, %v974_v21  ;;  %v907_v26 = vadd.f32 %v906_v24, %v751_v22  ;;  %v908_v27 = vpop.f32.mrb[11].mxu1  ;;  %v520_v22 = vld [vmem:[#allocation2 + $0x70] sm:$0xff] }
 0x181   : > { %v975_v28 = vadd.f32 %v907_v26, %v511_v23  ;;  %v756_v29 = vpop.f32.mrb[12].mxu0 }
 0x182   : > { %v911_v31 = vpop.f32.mrb[12].mxu1  ;;  %v758_v32 = vpop.f32.mrb[13].mxu0 }
 0x183   : > { %994 = vst.msk [vmem:[#allocation2 + $0x28] sm:$0xff] %vm988_vm1, %v975_v28  ;;  %v912_v33 = vadd.f32 %v911_v31, %v756_v29  ;;  %v913_v34 = vpop.f32.mrb[13].mxu1  ;;  %v521_v29 = vld [vmem:[#allocation2 + $0x78] sm:$0xff] }
 0x185   : > { %v976_v35 = vadd.f32 %v912_v33, %v512_v30  ;;  %v761_v36 = vpop.f32.mrb[14].mxu0 }
 0x186   : > { %v916_v38 = vpop.f32.mrb[14].mxu1  ;;  %v763_v39 = vpop.f32.mrb[15].mxu0 }
 0x187   : > { %995 = vst.msk [vmem:[#allocation2 + $0x30] sm:$0xff] %vm988_vm1, %v976_v35  ;;  %v917_v40 = vadd.f32 %v916_v38, %v761_v36  ;;  %v918_v41 = vpop.f32.mrb[15].mxu1  ;;  %v522_v36 = vld [vmem:[#allocation2 + $0x80] sm:$0xff] }
 0x189   : > { %v977_v42 = vadd.f32 %v917_v40, %v513_v37  ;;  %v766_v43 = vpop.f32.mrb[16].mxu0 }
 0x18a   : > { %v921_v45 = vpop.f32.mrb[16].mxu1  ;;  %v768_v46 = vpop.f32.mrb[17].mxu0 }
 0x18b   : > { %996 = vst.msk [vmem:[#allocation2 + $0x38] sm:$0xff] %vm988_vm1, %v977_v42  ;;  %v922_v47 = vadd.f32 %v921_v45, %v766_v43  ;;  %v923_v48 = vpop.f32.mrb[17].mxu1  ;;  %v523_v43 = vld [vmem:[#allocation2 + $0x88] sm:$0xff] }
 0x18d   : > { %v978_v49 = vadd.f32 %v922_v47, %v514_v44  ;;  %v771_v50 = vpop.f32.mrb[18].mxu0 }
 0x18e   : > { %v926_v12 = vpop.f32.mrb[18].mxu1  ;;  %v773_v52 = vpop.f32.mrb[19].mxu0 }
 0x18f   : > { %997 = vst.msk [vmem:[#allocation2 + $0x40] sm:$0xff] %vm988_vm1, %v978_v49  ;;  %v927_v53 = vadd.f32 %v926_v12, %v771_v50  ;;  %v928_v54 = vpop.f32.mrb[19].mxu1  ;;  %v1011_v49 = vld [vmem:[#allocation2] sm:$0xff] (!%p1844_p13) }
 0x190   : > { %v2723_v50 = vld [vmem:[%s3160_s2] ss:$0 sm:$0xff] (!%p1844_p13) }
 0x191   : > { %v979_v55 = vadd.f32 %v927_v53, %v515_v51  ;;  %v776_v56 = vpop.f32.mrb[20].mxu0  ;;  %v1013_v51 = vld [vmem:[#allocation2 + $0x10] sm:$0xff] (!%p1844_p13)  ;;  %v1036_v12 = vadd.f32 (!%p1844_p13), %v2723_v50, %v1011_v49  ;;  %v1012_v53 = vld [vmem:[#allocation2 + $0x8] sm:$0xff] (!%p1844_p13) }
 0x192   : > { %v931_v58 = vpop.f32.mrb[20].mxu1  ;;  %v778_v59 = vpop.f32.mrb[21].mxu0  ;;  %v1038_v52 = vadd.f32 (!%p1844_p13), %v2723_v50, %v1013_v51  ;;  %v1018_v51 = vld [vmem:[#allocation2 + $0x38] sm:$0xff] (!%p1844_p13) }
 0x193   : > { %998 = vst.msk [vmem:[#allocation2 + $0x48] sm:$0xff] %vm988_vm1, %v979_v55  ;;  %v932_v60 = vadd.f32 %v931_v58, %v776_v56  ;;  %v933_v61 = vpop.f32.mrb[21].mxu1  ;;  %v1014_v55 = vld [vmem:[#allocation2 + $0x18] sm:$0xff] (!%p1844_p13)  ;;  %v1037_v56 = vadd.f32 (!%p1844_p13), %v2723_v50, %v1012_v53  ;;  %v1072_v59 = vmul.f32 (!%p1844_p13), 0.044715, %v1036_v12 }
 0x194   : > { %v1039_v58 = vadd.f32 (!%p1844_p13), %v2723_v50, %v1014_v55 }
 0x195   : > { %v980_v62 = vadd.f32 %v932_v60, %v516_v57  ;;  %v781_v63 = vpop.f32.mrb[22].mxu0  ;;  %v1074_v60 = vmul.f32 (!%p1844_p13), 0.044715, %v1038_v52 }
 0x196   : > { %v936_v1 = vpop.f32.mrb[22].mxu1  ;;  %v783_v2 = vpop.f32.mrb[23].mxu0 }
 0x197   : > { %999 = vst.msk [vmem:[#allocation2 + $0x50] sm:$0xff] %vm988_vm1, %v980_v62  ;;  %v937_v3 = vadd.f32 %v936_v1, %v781_v63  ;;  %v938_v4 = vpop.f32.mrb[23].mxu1  ;;  %v1015_v62 = vld [vmem:[#allocation2 + $0x20] sm:$0xff] (!%p1844_p13)  ;;  %v1073_v63 = vmul.f32 (!%p1844_p13), 0.044715, %v1037_v56  ;;  %v1090_v1 = vmul.f32 (!%p1844_p13), %v1072_v59, %v1036_v12  ;;  %v1092_v2 = vmul.f32 (!%p1844_p13), %v1074_v60, %v1038_v52 }
 0x198   : > { %v2756_v60 = vadd.f32 (!%p1844_p13), %v2723_v50, %v1018_v51 }
 0x199   : > { %v981_v5 = vadd.f32 %v937_v3, %v517_v0  ;;  %v786_v6 = vpop.f32.mrb[24].mxu0  ;;  %v1075_v3 = vmul.f32 (!%p1844_p13), 0.044715, %v1039_v58  ;;  %v1091_v4 = vmul.f32 (!%p1844_p13), %v1073_v63, %v1037_v56 }
 0x19a   : > { %v941_v8 = vpop.f32.mrb[24].mxu1  ;;  %v788_v9 = vpop.f32.mrb[25].mxu0  ;;  %v1020_v51 = vld [vmem:[#allocation2 + $0x48] sm:$0xff] (!%p1844_p13) }
 0x19b   : > { %1000 = vst.msk [vmem:[#allocation2 + $0x58] sm:$0xff] %vm988_vm1, %v981_v5  ;;  %v942_v10 = vadd.f32 %v941_v8, %v786_v6  ;;  %v943_v11 = vpop.f32.mrb[25].mxu1  ;;  %v2732_v9 = vmul.f32 (!%p1844_p13), 0.5, %v1036_v12 }
 0x19c   : > { %v1110_v11 = vmul.f32 (!%p1844_p13), %v1092_v2, %v1038_v52 }
 0x19d   : > { %v982_v13 = vadd.f32 %v942_v10, %v518_v7  ;;  %v791_v14 = vpop.f32.mrb[26].mxu0  ;;  %v1040_v7 = vadd.f32 (!%p1844_p13), %v2723_v50, %v1015_v62  ;;  %v1108_v10 = vmul.f32 (!%p1844_p13), %v1090_v1, %v1036_v12 }
 0x19e   : > { %v946_v16 = vpop.f32.mrb[26].mxu1  ;;  %v793_v17 = vpop.f32.mrb[27].mxu0  ;;  %v1021_v54 = vld [vmem:[#allocation2 + $0x50] sm:$0xff] (!%p1844_p13) }
 0x19f   : > { %1001 = vst.msk [vmem:[#allocation2 + $0x60] sm:$0xff] %vm988_vm1, %v982_v13  ;;  %v947_v18 = vadd.f32 %v946_v16, %v791_v14  ;;  %v948_v19 = vpop.f32.mrb[27].mxu1  ;;  %v1046_v57 = vadd.f32 (!%p1844_p13), %v2723_v50, %v1021_v54  ;;  %v1093_v13 = vmul.f32 (!%p1844_p13), %v1075_v3, %v1039_v58  ;;  %v2734_v14 = vmul.f32 (!%p1844_p13), 0.5, %v1038_v52 }
 0x1a0   : > { %v1128_v19 = vadd.f32 (!%p1844_p13), %v1110_v11, %v1038_v52  ;;  %v2758_v62 = vmul.f32 (!%p1844_p13), 0.5, %v1040_v7 }
 0x1a1   : > { %v983_v20 = vadd.f32 %v947_v18, %v519_v15  ;;  %v796_v21 = vpop.f32.mrb[28].mxu0  ;;  %v1082_v0 = vmul.f32 (!%p1844_p13), 0.044715, %v1046_v57  ;;  %v1109_v15 = vmul.f32 (!%p1844_p13), %v1091_v4, %v1037_v56  ;;  %v1126_v18 = vadd.f32 (!%p1844_p13), %v1108_v10, %v1036_v12 }
 0x1a2   : > { %v951_v23 = vpop.f32.mrb[28].mxu1  ;;  %v798_v24 = vpop.f32.mrb[29].mxu0  ;;  %v1022_v61 = vld [vmem:[#allocation2 + $0x58] sm:$0xff] (!%p1844_p13) }
 0x1a3   : > { %1002 = vst.msk [vmem:[#allocation2 + $0x68] sm:$0xff] %vm988_vm1, %v983_v20  ;;  %v952_v25 = vadd.f32 %v951_v23, %v796_v21  ;;  %v953_v26 = vpop.f32.mrb[29].mxu1  ;;  %v1100_v5 = vmul.f32 (!%p1844_p13), %v1082_v0, %v1046_v57  ;;  %v1047_v6 = vadd.f32 (!%p1844_p13), %v2723_v50, %v1022_v61  ;;  %v1111_v20 = vmul.f32 (!%p1844_p13), %v1093_v13, %v1039_v58 }
 0x1a4   : > { %v1016_v26 = vld [vmem:[#allocation2 + $0x28] sm:$0xff] (!%p1844_p13) }
 0x1a5   : > { %v984_v27 = vadd.f32 %v952_v25, %v520_v22  ;;  %v801_v28 = vpop.f32.mrb[30].mxu0  ;;  %v1118_v16 = vmul.f32 (!%p1844_p13), %v1100_v5, %v1046_v57  ;;  %v1083_v17 = vmul.f32 (!%p1844_p13), 0.044715, %v1047_v6  ;;  %v1127_v22 = vadd.f32 (!%p1844_p13), %v1109_v15, %v1037_v56 }
 0x1a6   : > { %v956_v30 = vpop.f32.mrb[30].mxu1  ;;  %v803_v31 = vpop.f32.mrb[31].mxu0  ;;  %v1023_v8 = vld [vmem:[#allocation2 + $0x60] sm:$0xff] (!%p1844_p13)  ;;  %v1076_v25 = vmul.f32 (!%p1844_p13), 0.044715, %v1040_v7  ;;  %v1065_v61 = vmul.f32 (!%p1844_p13), 0.5, %v1047_v6 }
 0x1a7   : > { %1003 = vst.msk [vmem:[#allocation2 + $0x70] sm:$0xff] %vm988_vm1, %v984_v27  ;;  %v957_v32 = vadd.f32 %v956_v30, %v801_v28  ;;  %v958_v33 = vpop.f32.mrb[31].mxu1  ;;  %v1048_v21 = vadd.f32 (!%p1844_p13), %v2723_v50, %v1023_v8  ;;  %v1136_v23 = vadd.f32 (!%p1844_p13), %v1118_v16, %v1046_v57  ;;  %v1101_v24 = vmul.f32 (!%p1844_p13), %v1083_v17, %v1047_v6 }
 0x1a8   : > { %v1144_v27 = vmul.f32 (!%p1844_p13), 0.7978845, %v1126_v18  ;;  %v1146_v28 = vmul.f32 (!%p1844_p13), 0.7978845, %v1128_v19  ;;  %v1129_v30 = vadd.f32 (!%p1844_p13), %v1111_v20, %v1039_v58 }
 0x1a9   : > { %v985_v34 = vadd.f32 %v957_v32, %v521_v29  ;;  %v806_v35 = vpop.f32.mrb[32].mxu0  ;;  %v2737_v29 = vmul.f32 (!%p1844_p13), 0.5, %v1037_v56  ;;  %v1145_v32 = vmul.f32 (!%p1844_p13), 0.7978845, %v1127_v22  ;;  %v1154_v33 = vmul.f32 (!%p1844_p13), 0.7978845, %v1136_v23 }
 0x1aa   : > { %v961_v37 = vpop.f32.mrb[32].mxu1  ;;  %v808_v38 = vpop.f32.mrb[33].mxu0  ;;  %v1024_v31 = vld [vmem:[#allocation2 + $0x68] sm:$0xff] (!%p1844_p13)  ;;  %2119 = vtanh.f32 (!%p1844_p13), %v1144_v27  ;;  %v2763_v5 = vmul.f32 (!%p1844_p13), 0.5, %v1048_v21 }
 0x1ab   : > { %1004 = vst.msk [vmem:[#allocation2 + $0x78] sm:$0xff] %vm988_vm1, %v985_v34  ;;  %v962_v39 = vadd.f32 %v961_v37, %v806_v35  ;;  %v963_v40 = vpop.f32.mrb[33].mxu1  ;;  %v1119_v34 = vmul.f32 (!%p1844_p13), %v1101_v24, %v1047_v6  ;;  %v1094_v35 = vmul.f32 (!%p1844_p13), %v1076_v25, %v1040_v7  ;;  %v1084_v37 = vmul.f32 (!%p1844_p13), 0.044715, %v1048_v21 }
 0x1ac   : > { %v1041_v38 = vadd.f32 (!%p1844_p13), %v2723_v50, %v1016_v26  ;;  %2121 = vtanh.f32 (!%p1844_p13), %v1146_v28 }
 0x1ad   : > { %v986_v41 = vadd.f32 %v962_v39, %v522_v36  ;;  %v811_v42 = vpop.f32.mrb[34].mxu0  ;;  %1010 = sbr.rel (%p1844_p13) target bundleno = 1010 (0x3f2), region = 79  ;;  %v1147_v36 = vmul.f32 (!%p1844_p13), 0.7978845, %v1129_v30  ;;  %v1137_v39 = vadd.f32 (!%p1844_p13), %v1119_v34, %v1047_v6  ;;  %v1112_v40 = vmul.f32 (!%p1844_p13), %v1094_v35, %v1040_v7 }
 0x1ae   : > { %v966_v44 = vpop.f32.mrb[34].mxu1  ;;  %v813_v45 = vpop.f32.mrb[35].mxu0  ;;  %2123 = vtanh.f32 (!%p1844_p13), %v1145_v32  ;;  %v2765_v8 = vmul.f32 (!%p1844_p13), 0.5, %v1041_v38  ;;  %v1079_v6 = vmul.f32 (!%p1844_p13), 0.044715, %v2756_v60 }
 0x1af   : > { %1005 = vst.msk [vmem:[#allocation2 + $0x80] sm:$0xff] %vm988_vm1, %v986_v41  ;;  %v967_v46 = vadd.f32 %v966_v44, %v811_v42  ;;  %v968_v47 = vpop.f32.mrb[35].mxu1  ;;  %v2741_v41 = vadd.f32 (!%p1844_p13), %v2723_v50, %v1024_v31  ;;  %v2743_v42 = vmul.f32 (!%p1844_p13), 0.5, %v1046_v57  ;;  %v1077_v44 = vmul.f32 (!%p1844_p13), 0.044715, %v1041_v38  ;;  %v1017_v45 = vld [vmem:[#allocation2 + $0x30] sm:$0xff] (!%p1844_p13) }
 0x1b0   : > { %2125 = vtanh.f32 (!%p1844_p13), %v1154_v33  ;;  %v2745_v47 = vmul.f32 (!%p1844_p13), 0.5, %v1039_v58  ;;  %v1130_v49 = vadd.f32 (!%p1844_p13), %v1112_v40, %v1040_v7  ;;  %v2749_v55 = vadd.f32 (!%p1844_p13), %v2723_v50, %v1017_v45 }
 0x1b1   : > { %v987_v48 = vadd.f32 %v967_v46, %v523_v43  ;;  %v1102_v43 = vmul.f32 (!%p1844_p13), %v1084_v37, %v1048_v21  ;;  %v1025_v46 = vld [vmem:[#allocation2 + $0x70] sm:$0xff] (!%p1844_p13)  ;;  %2127 = vtanh.f32 (!%p1844_p13), %v1147_v36  ;;  %v1095_v52 = vmul.f32 (!%p1844_p13), %v1077_v44, %v1041_v38  ;;  %v1019_v44 = vld [vmem:[#allocation2 + $0x40] sm:$0xff] (!%p1844_p13) }
 0x1b2   : > { %v1085_v53 = vmul.f32 (!%p1844_p13), 0.044715, %v2741_v41  ;;  %v1148_v54 = vmul.f32 (!%p1844_p13), 0.7978845, %v1130_v49  ;;  %v2752_v56 = vadd.f32 (!%p1844_p13), %v2723_v50, %v1025_v46  ;;  %v1078_v63 = vmul.f32 (!%p1844_p13), 0.044715, %v2749_v55 }
 0x1b3   : > { %1006 = vst.msk [vmem:[#allocation2 + $0x88] sm:$0xff] %vm988_vm1, %v987_v48  ;;  %v1155_v48 = vmul.f32 (!%p1844_p13), 0.7978845, %v1137_v39  ;;  %v1120_v12 = vmul.f32 (!%p1844_p13), %v1102_v43, %v1048_v21  ;;  %v1113_v59 = vmul.f32 (!%p1844_p13), %v1095_v52, %v1041_v38  ;;  %v1026_v4 = vld [vmem:[#allocation2 + $0x78] sm:$0xff] (!%p1844_p13)  ;;  %v1097_v19 = vmul.f32 (!%p1844_p13), %v1079_v6, %v2756_v60 }
 0x1b4   : > { %v1103_v58 = vmul.f32 %v1085_v53, %v2741_v41  ;;  %v1086_v3 = vmul.f32 0.044715, %v2752_v56  ;;  %v1096_v10 = vmul.f32 %v1078_v63, %v2749_v55  ;;  %v2120_v7 = vpop.eup %2119  ;;  %v2774_v20 = vadd.f32 %v2723_v50, %v1026_v4 }
 0x1b5   : > { %2129 = vtanh.f32 %v1155_v48  ;;  %v1138_v57 = vadd.f32 %v1120_v12, %v1048_v21  ;;  %v1131_v1 = vadd.f32 %v1113_v59, %v1041_v38  ;;  %v1180_v17 = vadd.f32 1.0, %v2120_v7 }
 0x1b6   : > { %2131 = vtanh.f32 %v1148_v54  ;;  %v1121_v2 = vmul.f32 %v1103_v58, %v2741_v41  ;;  %v1104_v15 = vmul.f32 %v1086_v3, %v2752_v56  ;;  %v2122_v16 = vpop.eup %2121  ;;  %v1114_v18 = vmul.f32 %v1096_v10, %v2749_v55  ;;  %v1027_v49 = vld [vmem:[#allocation2 + $0x80] sm:$0xff] }
 0x1b7   : > { %v1156_v0 = vmul.f32 0.7978845, %v1138_v57  ;;  %v1149_v11 = vmul.f32 0.7978845, %v1131_v1  ;;  %v1182_v22 = vadd.f32 1.0, %v2122_v16  ;;  %v2778_v26 = vmul.f32 %v1180_v17, %v2732_v9 }
 0x1b8   : > { %v1139_v13 = vadd.f32 %v1121_v2, %v2741_v41  ;;  %v2124_v21 = vpop.eup %2123  ;;  %v1122_v24 = vmul.f32 %v1104_v15, %v2752_v56  ;;  %v1132_v28 = vadd.f32 %v1114_v18, %v2749_v55  ;;  %v1115_v30 = vmul.f32 %v1097_v19, %v2756_v60 }
 0x1b9   : > { %2133 = vtanh.f32 %v1156_v0  ;;  %v1181_v27 = vadd.f32 1.0, %v2124_v21  ;;  %v2783_v32 = vmul.f32 %v1182_v22, %v2734_v14  ;;  %v1218_v36 = vsel %vm988_vm1, %v2778_v26, 0.0 }
 0x1ba   : > { %2135 = vtanh.f32 %v1149_v11  ;;  %v1157_v23 = vmul.f32 0.7978845, %v1139_v13  ;;  %v2126_v25 = vpop.eup %2125  ;;  %v1140_v34 = vadd.f32 %v1122_v24, %v2752_v56  ;;  %v1150_v38 = vmul.f32 0.7978845, %v1132_v28  ;;  %1219 = vadd.xlane.f32.xlu0 %v1218_v36  ;;  %v1028_v3 = vld [vmem:[#allocation2 + $0x88] sm:$0xff] }
 0x1bb   : > { %v2128_v31 = vpop.eup %2127  ;;  %v1190_v33 = vadd.f32 1.0, %v2126_v25  ;;  %v2789_v9 = vmul.f32 %v1181_v27, %v2737_v29  ;;  %v1224_v39 = vsel %vm988_vm1, %v2783_v32, 0.0  ;;  %v1133_v48 = vadd.f32 %v1115_v30, %v2756_v60 }
 0x1bc   : > { %2137 = vtanh.f32 %v1157_v23  ;;  %v1183_v37 = vadd.f32 1.0, %v2128_v31  ;;  %v1158_v43 = vmul.f32 0.7978845, %v1140_v34  ;;  %1225 = vadd.xlane.f32.xlu1 %v1224_v39  ;;  %v1067_v53 = vmul.f32 0.5, %v2741_v41 }
 0x1bd   : > { %v2794_v14 = vmul.f32 %v1190_v33, %v2743_v42  ;;  %v1221_v46 = vsel %vm988_vm1, %v2789_v9, 0.0  ;;  %2139 = vtanh.f32 %v1150_v38  ;;  %v1151_v54 = vmul.f32 0.7978845, %v1133_v48 }
 0x1be   : > { %v2799_v29 = vmul.f32 %v1183_v37, %v2745_v47  ;;  %2141 = vtanh.f32 %v1158_v43  ;;  %v1087_v57 = vmul.f32 0.044715, %v2774_v20  ;;  %v2809_v47 = vadd.f32 %v2723_v50, %v1019_v44  ;;  %1222 = vadd.xlane.f32.xlu0 %v1221_v46 }
 0x1bf   : > { %v2130_v35 = vpop.eup %2129  ;;  %v1248_v42 = vsel %vm988_vm1, %v2794_v14, 0.0  ;;  %v1060_v63 = vmul.f32 0.5, %v2749_v55  ;;  %v2818_v0 = vadd.f32 %v2723_v50, %v1020_v51  ;;  %2143 = vtanh.f32 %v1151_v54 }
 0x1c0   : > { %v1191_v40 = vadd.f32 1.0, %v2130_v35  ;;  %v2132_v45 = vpop.eup %2131  ;;  %v1227_v58 = vsel %vm988_vm1, %v2799_v29, 0.0  ;;  %1249 = vadd.xlane.f32.xlu1 %v1248_v42  ;;  %v1105_v2 = vmul.f32 %v1087_v57, %v2774_v20  ;;  %v1068_v55 = vmul.f32 0.5, %v2752_v56 }
 0x1c1   : > { %v1184_v52 = vadd.f32 1.0, %v2132_v45  ;;  %v1080_v6 = vmul.f32 0.044715, %v2809_v47  ;;  %v1061_v13 = vmul.f32 0.5, %v2756_v60  ;;  %v1081_v56 = vmul.f32 0.044715, %v2818_v0 }
 0x1c2   : > { %v2804_v12 = vmul.f32 %v1191_v40, %v1065_v61  ;;  %v2815_v61 = vadd.f32 %v2723_v50, %v1027_v49  ;;  %v1123_v15 = vmul.f32 %v1105_v2, %v2774_v20  ;;  %1228 = vadd.xlane.f32.xlu0 %v1227_v58  ;;  %v2838_v19 = vadd.f32 %v2723_v50, %v1028_v3 }
 0x1c3   : > { %v2134_v59 = vpop.eup %2133  ;;  %v2821_v41 = vmul.f32 %v1184_v52, %v2758_v62  ;;  %v1098_v17 = vmul.f32 %v1080_v6, %v2809_v47  ;;  %v1099_v50 = vmul.f32 %v1081_v56, %v2818_v0 }
 0x1c4   : > { %v1192_v1 = vadd.f32 1.0, %v2134_v59  ;;  %v2136_v4 = vpop.eup %2135  ;;  %v1251_v10 = vsel %vm988_vm1, %v2804_v12, 0.0  ;;  %v1088_v7 = vmul.f32 0.044715, %v2815_v61  ;;  %v1141_v22 = vadd.f32 %v1123_v15, %v2774_v20 }
 0x1c5   : > { %v1185_v62 = vadd.f32 1.0, %v2136_v4  ;;  %1252 = vadd.xlane.f32.xlu1 %v1251_v10  ;;  %v1116_v24 = vmul.f32 %v1098_v17, %v2809_v47  ;;  %v1089_v31 = vmul.f32 0.044715, %v2838_v19  ;;  %v1117_v37 = vmul.f32 %v1099_v50, %v2818_v0 }
 0x1c6   : > { %v2830_v11 = vmul.f32 %v1192_v1, %v2763_v5  ;;  %v2138_v16 = vpop.eup %2137  ;;  %v1106_v18 = vmul.f32 %v1088_v7, %v2815_v61  ;;  %v1230_v5 = vsel %vm988_vm1, %v2821_v41, 0.0  ;;  %v1069_v1 = vmul.f32 0.5, %v2774_v20 }
 0x1c7   : > { %v2843_v21 = vmul.f32 %v1185_v62, %v2765_v8  ;;  %v1193_v60 = vadd.f32 1.0, %v2138_v16  ;;  %v2140_v27 = vpop.eup %2139  ;;  %v1159_v8 = vmul.f32 0.7978845, %v1141_v22  ;;  %1231 = vadd.xlane.f32.xlu0 %v1230_v5  ;;  %v1134_v35 = vadd.f32 %v1116_v24, %v2809_v47 }
 0x1c8   : > { %v1254_v23 = vsel %vm988_vm1, %v2830_v11, 0.0  ;;  %v1124_v25 = vmul.f32 %v1106_v18, %v2815_v61  ;;  %v2142_v33 = vpop.eup %2141  ;;  %v1186_v34 = vadd.f32 1.0, %v2140_v27  ;;  %v1107_v40 = vmul.f32 %v1089_v31, %v2838_v19 }
 0x1c9   : > { %v1233_v28 = vsel %vm988_vm1, %v2843_v21, 0.0  ;;  %v2853_v30 = vmul.f32 %v1193_v60, %v1067_v53  ;;  %1255 = vadd.xlane.f32.xlu1 %v1254_v23  ;;  %v1194_v39 = vadd.f32 1.0, %v2142_v33  ;;  %2145 = vtanh.f32 %v1159_v8  ;;  %v2144_v48 = vpop.eup %2143 }
 0x1ca   : > { %v1142_v36 = vadd.f32 %v1124_v25, %v2815_v61  ;;  %v2862_v43 = vmul.f32 %v1186_v34, %v1060_v63  ;;  %v1152_v44 = vmul.f32 0.7978845, %v1134_v35  ;;  %v1135_v46 = vadd.f32 %v1117_v37, %v2818_v0 }
 0x1cb   : > { %v1257_v38 = vsel %vm988_vm1, %v2853_v30, 0.0  ;;  %v2865_v49 = vmul.f32 %v1194_v39, %v1068_v55  ;;  %v1125_v51 = vmul.f32 %v1107_v40, %v2838_v19  ;;  %1234 = vadd.xlane.f32.xlu0 %v1233_v28  ;;  %v1187_v42 = vadd.f32 1.0, %v2144_v48 }
 0x1cc   : > { %v1160_v45 = vmul.f32 0.7978845, %v1142_v36  ;;  %2147 = vtanh.f32 %v1152_v44  ;;  %v1153_v52 = vmul.f32 0.7978845, %v1135_v46  ;;  %v1236_v53 = vsel %vm988_vm1, %v2862_v43, 0.0 }
 0x1cd   : > { %1258 = vadd.xlane.f32.xlu1 %v1257_v38  ;;  %v1143_v54 = vadd.f32 %v1125_v51, %v2838_v19  ;;  %v1260_v57 = vsel %vm988_vm1, %v2865_v49, 0.0  ;;  %v2873_v59 = vmul.f32 %v1187_v42, %v1061_v13  ;;  %v1062_v4 = vmul.f32 0.5, %v2809_v47 }
 0x1ce   : > { %2149 = vtanh.f32 %v1160_v45  ;;  %v1070_v6 = vmul.f32 0.5, %v2815_v61  ;;  %v1063_v13 = vmul.f32 0.5, %v2818_v0  ;;  %v1071_v47 = vmul.f32 0.5, %v2838_v19 }
 0x1cf   : > { %2151 = vtanh.f32 %v1153_v52  ;;  %v1161_v58 = vmul.f32 0.7978845, %v1143_v54  ;;  %1237 = vadd.xlane.f32.xlu0 %v1236_v53  ;;  %v1239_v63 = vsel %vm988_vm1, %v2873_v59, 0.0 }
 0x1d1   : > { %1261 = vadd.xlane.f32.xlu1 %v1260_v57  ;;  %2153 = vtanh.f32 %v1161_v58 }
 0x1d3   : > { %v2146_v2 = vpop.eup %2145  ;;  %1240 = vadd.xlane.f32.xlu0 %v1239_v63 }
 0x1d4   : > { %v1195_v3 = vadd.f32 1.0, %v2146_v2 }
 0x1d6   : > { %v2148_v10 = vpop.eup %2147  ;;  %v2879_v55 = vmul.f32 %v1195_v3, %v1069_v1 }
 0x1d7   : > { %v1188_v62 = vadd.f32 1.0, %v2148_v10 }
 0x1d8   : > { %v2150_v7 = vpop.eup %2149  ;;  %v1263_v16 = vsel %vm988_vm1, %v2879_v55, 0.0 }
 0x1d9   : > { %v2152_v15 = vpop.eup %2151  ;;  %v1196_v17 = vadd.f32 1.0, %v2150_v7  ;;  %1264 = vadd.xlane.f32.xlu1 %v1263_v16  ;;  %v2885_v20 = vmul.f32 %v1188_v62, %v1062_v4 }
 0x1da   : > { %v1189_v18 = vadd.f32 1.0, %v2152_v15 }
 0x1db   : > { %v2887_v56 = vmul.f32 %v1196_v17, %v1070_v6  ;;  %v2154_v5 = vpop.eup %2153  ;;  %v1242_v61 = vsel %vm988_vm1, %v2885_v20, 0.0 }
 0x1dc   : > { %v2892_v60 = vmul.f32 %v1189_v18, %v1063_v13  ;;  %1243 = vadd.xlane.f32.xlu0 %v1242_v61  ;;  %v1197_v22 = vadd.f32 1.0, %v2154_v5 }
 0x1dd   : > { %v1266_v0 = vsel %vm988_vm1, %v2887_v56, 0.0 }
 0x1de   : > { %1267 = vadd.xlane.f32.xlu1 %v1266_v0  ;;  %v1245_v23 = vsel %vm988_vm1, %v2892_v60, 0.0  ;;  %v2898_v24 = vmul.f32 %v1197_v22, %v1071_v47 }
 0x1e0   : > { %1246 = vadd.xlane.f32.xlu0 %v1245_v23  ;;  %v1269_v19 = vsel %vm988_vm1, %v2898_v24, 0.0 }
 0x1e2   : > { %1270 = vadd.xlane.f32.xlu1 %v1269_v19 }
 0x247   : > { %v1220_v25 = vpop.xlane.xlu0 %1219 }
 0x248   : > { %v1273_v50 = vmul.f32 0.015625, %v1220_v25 }
 0x249   : > { %v1226_v27 = vpop.xlane.xlu1 %1225 }
 0x24a   : > { %v1275_v28 = vmul.f32 0.015625, %v1226_v27  ;;  %v2903_v8 = vsub.f32 %v2778_v26, %v1273_v50 }
 0x24b   : > { %v1223_v33 = vpop.xlane.xlu0 %1222 }
 0x24c   : > { %v2906_v31 = vsub.f32 %v2783_v32, %v1275_v28  ;;  %v1274_v34 = vmul.f32 0.015625, %v1223_v33  ;;  %v1309_v36 = vmul.f32 %v2903_v8, %v2903_v8 }
 0x24d   : > { %v1250_v35 = vpop.xlane.xlu1 %1249 }
 0x24e   : > { %v1283_v37 = vmul.f32 0.015625, %v1250_v35  ;;  %v1311_v38 = vmul.f32 %v2906_v31, %v2906_v31  ;;  %v2913_v39 = vsub.f32 %v2789_v9, %v1274_v34  ;;  %v1327_v40 = vsel %vm988_vm1, %v1309_v36, 0.0 }
 0x24f   : > { %1328 = vadd.xlane.f32.xlu0 %v1327_v40  ;;  %v1229_v32 = vpop.xlane.xlu0 %1228 }
 0x250   : > { %v2917_v26 = vsub.f32 %v2794_v14, %v1283_v37  ;;  %v1276_v44 = vmul.f32 0.015625, %v1229_v32  ;;  %v1333_v46 = vsel %vm988_vm1, %v1311_v38, 0.0  ;;  %v1310_v48 = vmul.f32 %v2913_v39, %v2913_v39  ;;  %v1502_v32 = vld [vmem:[%s3163_s5 + $0x8] sm:$0xff] }
 0x252   : > { %v1253_v45 = vpop.xlane.xlu1 %1252  ;;  %v1319_v42 = vmul.f32 %v2917_v26, %v2917_v26  ;;  %v2925_v9 = vsub.f32 %v2799_v29, %v1276_v44  ;;  %v1330_v52 = vsel %vm988_vm1, %v1310_v48, 0.0 }
 0x253   : > { %v1284_v51 = vmul.f32 0.015625, %v1253_v45  ;;  %1334 = vadd.xlane.f32.xlu0 %v1333_v46  ;;  %1331 = vadd.xlane.f32.xlu1 %v1330_v52 }
 0x254   : > { %v1232_v53 = vpop.xlane.xlu0 %1231  ;;  %v1357_v58 = vsel %vm988_vm1, %v1319_v42, 0.0  ;;  %v1312_v63 = vmul.f32 %v2925_v9, %v2925_v9 }
 0x255   : > { %v2929_v14 = vsub.f32 %v2804_v12, %v1284_v51  ;;  %v1277_v54 = vmul.f32 0.015625, %v1232_v53 }
 0x256   : > { %v1256_v57 = vpop.xlane.xlu1 %1255  ;;  %v1336_v12 = vsel %vm988_vm1, %v1312_v63, 0.0 }
 0x257   : > { %v1285_v1 = vmul.f32 0.015625, %v1256_v57  ;;  %v1320_v29 = vmul.f32 %v2929_v14, %v2929_v14  ;;  %v2937_v2 = vsub.f32 %v2821_v41, %v1277_v54  ;;  %1358 = vadd.xlane.f32.xlu1 %v1357_v58  ;;  %1337 = vadd.xlane.f32.xlu0 %v1336_v12  ;;  %v1503_v54 = vld [vmem:[%s3163_s5 + $0x10] sm:$0xff]  ;;  %v1504_v57 = vld [vmem:[%s3163_s5 + $0x18] sm:$0xff] }
 0x258   : > { %v1235_v4 = vpop.xlane.xlu0 %1234  ;;  %v2039_v63 = vpack.c.bf16 %v1504_v57, %v1503_v54 }
 0x259   : > { %v2941_v3 = vsub.f32 %v2830_v11, %v1285_v1  ;;  %v1278_v10 = vmul.f32 0.015625, %v1235_v4  ;;  %v1360_v7 = vsel %vm988_vm1, %v1320_v29, 0.0  ;;  %v1313_v62 = vmul.f32 %v2937_v2, %v2937_v2 }
 0x25a   : > { %v1259_v6 = vpop.xlane.xlu1 %1258 }
 0x25b   : > { %v1286_v13 = vmul.f32 0.015625, %v1259_v6  ;;  %v1321_v41 = vmul.f32 %v2941_v3, %v2941_v3  ;;  %v2949_v15 = vsub.f32 %v2843_v21, %v1278_v10  ;;  %v1339_v11 = vsel %vm988_vm1, %v1313_v62, 0.0  ;;  %1361 = vadd.xlane.f32.xlu1 %v1360_v7  ;;  %v1505_v7 = vld [vmem:[%s3163_s5 + $0x20] sm:$0xff] }
 0x25c   : > { %1340 = vadd.xlane.f32.xlu0 %v1339_v11  ;;  %v1238_v17 = vpop.xlane.xlu0 %1237 }
 0x25d   : > { %v2953_v16 = vsub.f32 %v2853_v30, %v1286_v13  ;;  %v1279_v18 = vmul.f32 0.015625, %v1238_v17  ;;  %v1363_v5 = vsel %vm988_vm1, %v1321_v41, 0.0  ;;  %v1314_v61 = vmul.f32 %v2949_v15, %v2949_v15  ;;  %v1507_v17 = vld [vmem:[%s3163_s5 + $0x30] sm:$0xff] }
 0x25e   : > { %v1262_v47 = vpop.xlane.xlu1 %1261 }
 0x25f   : > { %v1287_v0 = vmul.f32 0.015625, %v1262_v47  ;;  %v1322_v21 = vmul.f32 %v2953_v16, %v2953_v16  ;;  %v2961_v22 = vsub.f32 %v2862_v43, %v1279_v18  ;;  %v1342_v30 = vsel %vm988_vm1, %v1314_v61, 0.0  ;;  %1364 = vadd.xlane.f32.xlu1 %v1363_v5  ;;  %v1508_v18 = vld [vmem:[%s3163_s5 + $0x38] sm:$0xff] }
 0x260   : > { %1343 = vadd.xlane.f32.xlu0 %v1342_v30  ;;  %v1241_v19 = vpop.xlane.xlu0 %1240  ;;  %v2047_v47 = vpack.c.bf16 %v1508_v18, %v1507_v17 }
 0x261   : > { %v2965_v23 = vsub.f32 %v2865_v49, %v1287_v0  ;;  %v1280_v25 = vmul.f32 0.015625, %v1241_v19  ;;  %v1366_v50 = vsel %vm988_vm1, %v1322_v21, 0.0  ;;  %v1315_v27 = vmul.f32 %v2961_v22, %v2961_v22 }
 0x263   : > { %v1323_v28 = vmul.f32 %v2965_v23, %v2965_v23  ;;  %v2973_v43 = vsub.f32 %v2873_v59, %v1280_v25  ;;  %v1345_v33 = vsel %vm988_vm1, %v1315_v27, 0.0  ;;  %1367 = vadd.xlane.f32.xlu1 %v1366_v50  ;;  %v1501_v59 = vld [vmem:[%s3163_s5] sm:$0xff] }
 0x264   : > { %1346 = vadd.xlane.f32.xlu0 %v1345_v33  ;;  %v2035_v46 = vpack.c.bf16 %v1502_v32, %v1501_v59 }
 0x265   : > { %v1369_v34 = vsel %vm988_vm1, %v1323_v28, 0.0  ;;  %v1316_v35 = vmul.f32 %v2973_v43, %v2973_v43 }
 0x266   : > { %v1265_v49 = vpop.xlane.xlu1 %1264  ;;  %2036 = vmatprep.subr.bf16.mxu0 %v2035_v46  ;;  %2051 = vmatprep.subr.bf16.mxu1 %v2035_v46 }
 0x267   : > { %v1288_v36 = vmul.f32 0.015625, %v1265_v49  ;;  %v1348_v37 = vsel %vm988_vm1, %v1316_v35, 0.0  ;;  %1370 = vadd.xlane.f32.xlu1 %v1369_v34  ;;  %2038 = vmatpush3.bf16.msra.mxu0 %v2035_v46 }
 0x268   : > { %1349 = vadd.xlane.f32.xlu0 %v1348_v37  ;;  %2055 = vmatpush3.bf16.msra.mxu1 %v2035_v46 }
 0x269   : > { %v2981_v38 = vsub.f32 %v2879_v55, %v1288_v36  ;;  %v1244_v40 = vpop.xlane.xlu0 %1243  ;;  %2040 = vmatprep.subr.bf16.mxu0 %v2039_v63  ;;  %2052 = vmatprep.subr.bf16.mxu1 %v2039_v63 }
 0x26a   : > { %v1281_v44 = vmul.f32 0.015625, %v1244_v40 }
 0x26b   : > { %v1268_v45 = vpop.xlane.xlu1 %1267  ;;  %v1324_v51 = vmul.f32 %v2981_v38, %v2981_v38  ;;  %2042 = vmatpush3.bf16.msra.mxu0 %v2039_v63 }
 0x26c   : > { %v1289_v48 = vmul.f32 0.015625, %v1268_v45  ;;  %v2992_v55 = vsub.f32 %v2885_v20, %v1281_v44  ;;  %2056 = vmatpush3.bf16.msra.mxu1 %v2039_v63 }
 0x26d   : > { %v1247_v52 = vpop.xlane.xlu0 %1246  ;;  %v1372_v53 = vsel %vm988_vm1, %v1324_v51, 0.0 }
 0x26e   : > { %v2995_v42 = vsub.f32 %v2887_v56, %v1289_v48  ;;  %v1282_v20 = vmul.f32 0.015625, %v1247_v52  ;;  %1373 = vadd.xlane.f32.xlu1 %v1372_v53  ;;  %v1317_v56 = vmul.f32 %v2992_v55, %v2992_v55  ;;  %v3037_v48 = vld [vmem:[%s3161_s3] ss:$0 sm:$0xff] }
 0x26f   : > { %v1271_v58 = vpop.xlane.xlu1 %1270 }
 0x270   : > { %v1290_v1 = vmul.f32 0.015625, %v1271_v58  ;;  %v1325_v29 = vmul.f32 %v2995_v42, %v2995_v42  ;;  %v3009_v12 = vsub.f32 %v2892_v60, %v1282_v20  ;;  %v1351_v4 = vsel %vm988_vm1, %v1317_v56, 0.0  ;;  %v1506_v60 = vld [vmem:[%s3163_s5 + $0x28] sm:$0xff]  ;;  %v3043_v20 = vld [vmem:[%s3162_s4] ss:$0 sm:$0xff] }
 0x271   : > { %1352 = vadd.xlane.f32.xlu0 %v1351_v4  ;;  %v2043_v13 = vpack.c.bf16 %v1506_v60, %v1505_v7 }
 0x272   : > { %v3013_v10 = vsub.f32 %v2898_v24, %v1290_v1  ;;  %v1375_v6 = vsel %vm988_vm1, %v1325_v29, 0.0  ;;  %v1318_v62 = vmul.f32 %v3009_v12, %v3009_v12 }
 0x273   : > { %1376 = vadd.xlane.f32.xlu1 %v1375_v6  ;;  %2044 = vmatprep.subr.bf16.mxu0 %v2043_v13 }
 0x274   : > { %v1326_v24 = vmul.f32 %v3013_v10, %v3013_v10  ;;  %v1354_v41 = vsel %vm988_vm1, %v1318_v62, 0.0  ;;  %2053 = vmatprep.subr.bf16.mxu1 %v2043_v13  ;;  %2046 = vmatpush3.bf16.msra.mxu0 %v2043_v13 }
 0x275   : > { %1355 = vadd.xlane.f32.xlu0 %v1354_v41  ;;  %2057 = vmatpush3.bf16.msra.mxu1 %v2043_v13 }
 0x276   : > { %v1378_v11 = vsel %vm988_vm1, %v1326_v24, 0.0  ;;  %2048 = vmatprep.subr.bf16.mxu0 %v2047_v47  ;;  %2054 = vmatprep.subr.bf16.mxu1 %v2047_v47 }
 0x277   : > { %1379 = vadd.xlane.f32.xlu1 %v1378_v11 }
 0x278   : > { %2050 = vmatpush3.bf16.msra.mxu0 %v2047_v47 }
 0x279   : > { %2058 = vmatpush3.bf16.msra.mxu1 %v2047_v47 }
 0x2dc   : > { %v1329_v5 = vpop.xlane.xlu0 %1328 }
 0x2dd   : > { %v1381_v61 = vmul.f32 0.015625, %v1329_v5 }
 0x2df   : > { %v1399_v0 = vadd.f32 1e-05, %v1381_v61 }
 0x2e0   : > { %v1332_v21 = vpop.xlane.xlu1 %1331  ;;  %v1335_v30 = vpop.xlane.xlu0 %1334 }
 0x2e1   : > { %2155 = vrsqrt.f32 %v1399_v0  ;;  %v1382_v19 = vmul.f32 0.015625, %v1332_v21  ;;  %v1383_v25 = vmul.f32 0.015625, %v1335_v30 }
 0x2e3   : > { %v1400_v50 = vadd.f32 1e-05, %v1382_v19  ;;  %v1401_v27 = vadd.f32 1e-05, %v1383_v25 }
 0x2e4   : > { %v1359_v28 = vpop.xlane.xlu1 %1358  ;;  %v1338_v33 = vpop.xlane.xlu0 %1337 }
 0x2e5   : > { %2157 = vrsqrt.f32 %v1400_v50  ;;  %v1391_v49 = vmul.f32 0.015625, %v1359_v28  ;;  %v1384_v34 = vmul.f32 0.015625, %v1338_v33 }
 0x2e6   : > { %2159 = vrsqrt.f32 %v1401_v27 }
 0x2e7   : > { %v1409_v35 = vadd.f32 1e-05, %v1391_v49  ;;  %v1402_v36 = vadd.f32 1e-05, %v1384_v34 }
 0x2e8   : > { %v1362_v37 = vpop.xlane.xlu1 %1361 }
 0x2e9   : > { %v1341_v40 = vpop.xlane.xlu0 %1340  ;;  %2161 = vrsqrt.f32 %v1409_v35  ;;  %v1392_v59 = vmul.f32 0.015625, %v1362_v37 }
 0x2ea   : > { %v1385_v32 = vmul.f32 0.015625, %v1341_v40  ;;  %2163 = vrsqrt.f32 %v1402_v36 }
 0x2eb   : > { %v2156_v44 = vpop.eup %2155  ;;  %v1410_v45 = vadd.f32 1e-05, %v1392_v59 }
 0x2ec   : > { %v1403_v46 = vadd.f32 1e-05, %v1385_v32  ;;  %v1365_v51 = vpop.xlane.xlu1 %1364  ;;  %v1435_v53 = vmul.f32 %v2156_v44, %v2903_v8 }
 0x2ed   : > { %v1344_v52 = vpop.xlane.xlu0 %1343  ;;  %2165 = vrsqrt.f32 %v1410_v45  ;;  %v1393_v54 = vmul.f32 0.015625, %v1365_v51 }
 0x2ee   : > { %v1386_v57 = vmul.f32 0.015625, %v1344_v52  ;;  %2167 = vrsqrt.f32 %v1403_v46  ;;  %v1459_v58 = vmul.f32 %v3037_v48, %v1435_v53 }
 0x2ef   : > { %v2158_v56 = vpop.eup %2157  ;;  %v1411_v63 = vadd.f32 1e-05, %v1393_v54 }
 0x2f0   : > { %v1404_v1 = vadd.f32 1e-05, %v1386_v57  ;;  %v2160_v29 = vpop.eup %2159  ;;  %v1368_v4 = vpop.xlane.xlu1 %1367  ;;  %v1483_v7 = vadd.f32 %v3043_v20, %v1459_v58  ;;  %v1436_v8 = vmul.f32 %v2158_v56, %v2913_v39 }
 0x2f1   : > { %v1347_v6 = vpop.xlane.xlu0 %1346  ;;  %2169 = vrsqrt.f32 %v1411_v63  ;;  %v1394_v60 = vmul.f32 0.015625, %v1368_v4  ;;  %v1437_v13 = vmul.f32 %v2160_v29, %v2906_v31 }
 0x2f2   : > { %v1387_v62 = vmul.f32 0.015625, %v1347_v6  ;;  %2171 = vrsqrt.f32 %v1404_v1  ;;  %1912 = vmatprep.mubr.msk.f32.mxu0 %vm988_vm1, %v1483_v7  ;;  %v1460_v24 = vmul.f32 %v3037_v48, %v1436_v8 }
 0x2f3   : > { %v2162_v41 = vpop.eup %2161  ;;  %v1412_v11 = vadd.f32 1e-05, %v1394_v60  ;;  %v1461_v18 = vmul.f32 %v3037_v48, %v1437_v13 }
 0x2f4   : > { %v1405_v17 = vadd.f32 1e-05, %v1387_v62  ;;  %v2164_v47 = vpop.eup %2163  ;;  %v1371_v5 = vpop.xlane.xlu1 %1370  ;;  %v1484_v39 = vadd.f32 %v3043_v20, %v1460_v24  ;;  %v1445_v0 = vmul.f32 %v2162_v41, %v2917_v26 }
 0x2f5   : > { %v1350_v61 = vpop.xlane.xlu0 %1349  ;;  %2173 = vrsqrt.f32 %v1412_v11  ;;  %v1395_v21 = vmul.f32 0.015625, %v1371_v5  ;;  %v1485_v30 = vadd.f32 %v3043_v20, %v1461_v18  ;;  %v1438_v19 = vmul.f32 %v2164_v47, %v2925_v9 }
 0x2f6   : > { %v1388_v31 = vmul.f32 0.015625, %v1350_v61  ;;  %2175 = vrsqrt.f32 %v1405_v17  ;;  %1913 = vmatmul.mubr.msk.f32.vlgmr.msra.gmra.mrb[0].mxu0 %vm988_vm1, %v1484_v39  ;;  %v1469_v25 = vmul.f32 %v3037_v48, %v1445_v0 }
 0x2f7   : > { %v2166_v50 = vpop.eup %2165  ;;  %v1413_v27 = vadd.f32 1e-05, %v1395_v21  ;;  %1915 = vmatprep.mubr.msk.f32.mxu0 %vm988_vm1, %v1485_v30  ;;  %v1462_v26 = vmul.f32 %v3037_v48, %v1438_v19 }
 0x2f8   : > { %v1406_v28 = vadd.f32 1e-05, %v1388_v31  ;;  %v2168_v33 = vpop.eup %2167  ;;  %v1493_v49 = vadd.f32 %v3043_v20, %v1469_v25  ;;  %v1446_v34 = vmul.f32 %v2166_v50, %v2929_v14 }
 0x2f9   : > { %2177 = vrsqrt.f32 %v1413_v27  ;;  %v1439_v36 = vmul.f32 %v2168_v33, %v2937_v2  ;;  %v1486_v37 = vadd.f32 %v3043_v20, %v1462_v26 }
 0x2fa   : > { %2179 = vrsqrt.f32 %v1406_v28  ;;  %1927 = vmatprep.mubr.msk.f32.mxu1 %vm988_vm1, %v1493_v49  ;;  %v1470_v40 = vmul.f32 %v3037_v48, %v1446_v34 }
 0x2fb   : > { %v1374_v35 = vpop.xlane.xlu1 %1373  ;;  %v2170_v59 = vpop.eup %2169  ;;  %v1463_v32 = vmul.f32 %v3037_v48, %v1439_v36  ;;  %1916 = vmatmul.mubr.msk.f32.gmra.mrb[2].mxu0 %vm988_vm1, %v1486_v37 }
 0x2fc   : > { %v1396_v9 = vmul.f32 0.015625, %v1374_v35  ;;  %v2172_v44 = vpop.eup %2171  ;;  %v1494_v14 = vadd.f32 %v3043_v20, %v1470_v40  ;;  %v1447_v2 = vmul.f32 %v2170_v59, %v2941_v3 }
 0x2fd   : > { %v1487_v53 = vadd.f32 %v3043_v20, %v1463_v32  ;;  %v1440_v54 = vmul.f32 %v2172_v44, %v2949_v15 }
 0x2fe   : > { %v1414_v45 = vadd.f32 1e-05, %v1396_v9  ;;  %v1353_v46 = vpop.xlane.xlu0 %1352  ;;  %1928 = vmatmul.mubr.msk.f32.vlgmr.msra.gmra.mrb[0].mxu1 %vm988_vm1, %v1494_v14  ;;  %v1471_v58 = vmul.f32 %v3037_v48, %v1447_v2 }
 0x2ff   : > { %v1389_v51 = vmul.f32 0.015625, %v1353_v46  ;;  %v2174_v56 = vpop.eup %2173  ;;  %1918 = vmatprep.mubr.msk.f32.mxu0 %vm988_vm1, %v1487_v53  ;;  %v1464_v1 = vmul.f32 %v3037_v48, %v1440_v54 }
 0x300   : > { %v1377_v52 = vpop.xlane.xlu1 %1376  ;;  %2181 = vrsqrt.f32 %v1414_v45  ;;  %v2176_v29 = vpop.eup %2175  ;;  %v1495_v6 = vadd.f32 %v3043_v20, %v1471_v58  ;;  %v1448_v7 = vmul.f32 %v2174_v56, %v2953_v16 }
 0x301   : > { %v1397_v57 = vmul.f32 0.015625, %v1377_v52  ;;  %v1407_v63 = vadd.f32 1e-05, %v1389_v51  ;;  %v1488_v60 = vadd.f32 %v3043_v20, %v1464_v1  ;;  %v1441_v62 = vmul.f32 %v2176_v29, %v2961_v22 }
 0x302   : > { %v1356_v4 = vpop.xlane.xlu0 %1355  ;;  %1930 = vmatprep.mubr.msk.f32.mxu1 %vm988_vm1, %v1495_v6  ;;  %v1472_v24 = vmul.f32 %v3037_v48, %v1448_v7 }
 0x303   : > { %v1415_v3 = vadd.f32 1e-05, %v1397_v57  ;;  %2183 = vrsqrt.f32 %v1407_v63  ;;  %v1390_v15 = vmul.f32 0.015625, %v1356_v4  ;;  %v2178_v41 = vpop.eup %2177  ;;  %1919 = vmatmul.mubr.msk.f32.gmra.mrb[4].mxu0 %vm988_vm1, %v1488_v60  ;;  %v1465_v17 = vmul.f32 %v3037_v48, %v1441_v62 }
 0x304   : > { %v1380_v8 = vpop.xlane.xlu1 %1379  ;;  %v2180_v16 = vpop.eup %2179  ;;  %v1496_v47 = vadd.f32 %v3043_v20, %v1472_v24  ;;  %v1449_v5 = vmul.f32 %v2178_v41, %v2965_v23 }
 0x305   : > { %2185 = vrsqrt.f32 %v1415_v3  ;;  %v1398_v13 = vmul.f32 0.015625, %v1380_v8  ;;  %v1408_v11 = vadd.f32 1e-05, %v1390_v15  ;;  %v1489_v22 = vadd.f32 %v3043_v20, %v1465_v17 }
 0x306   : > { %v1442_v61 = vmul.f32 %v2180_v16, %v2973_v43  ;;  %1931 = vmatmul.mubr.msk.f32.gmra.mrb[2].mxu1 %vm988_vm1, %v1496_v47  ;;  %v1473_v39 = vmul.f32 %v3037_v48, %v1449_v5 }
 0x307   : > { %v1416_v18 = vadd.f32 1e-05, %v1398_v13  ;;  %2187 = vrsqrt.f32 %v1408_v11  ;;  %1921 = vmatprep.mubr.msk.f32.mxu0 %vm988_vm1, %v1489_v22 }
 0x308   : > { %v1466_v0 = vmul.f32 %v3037_v48, %v1442_v61  ;;  %v1497_v31 = vadd.f32 %v3043_v20, %v1473_v39 }
 0x309   : > { %2189 = vrsqrt.f32 %v1416_v18 }
 0x30a   : > { %v2182_v21 = vpop.eup %2181  ;;  %v1490_v30 = vadd.f32 %v3043_v20, %v1466_v0  ;;  %1933 = vmatprep.mubr.msk.f32.mxu1 %vm988_vm1, %v1497_v31 }
 0x30b   : > { %v1450_v23 = vmul.f32 %v2182_v21, %v2981_v38 }
 0x30c   : > { %1922 = vmatmul.mubr.msk.f32.gmra.mrb[6].mxu0 %vm988_vm1, %v1490_v30 }
 0x30d   : > { %v2184_v19 = vpop.eup %2183  ;;  %v1474_v43 = vmul.f32 %v3037_v48, %v1450_v23 }
 0x30e   : > { %v1443_v50 = vmul.f32 %v2184_v19, %v2992_v55 }
 0x30f   : > { %v2186_v25 = vpop.eup %2185  ;;  %v1498_v27 = vadd.f32 %v3043_v20, %v1474_v43 }
 0x310   : > { %v1451_v28 = vmul.f32 %v2186_v25, %v2995_v42  ;;  %v1467_v33 = vmul.f32 %v3037_v48, %v1443_v50 }
 0x311   : > { %v2188_v26 = vpop.eup %2187  ;;  %1934 = vmatmul.mubr.msk.f32.gmra.mrb[4].mxu1 %vm988_vm1, %v1498_v27 }
 0x312   : > { %v1475_v38 = vmul.f32 %v3037_v48, %v1451_v28  ;;  %v1491_v34 = vadd.f32 %v3043_v20, %v1467_v33  ;;  %v1444_v35 = vmul.f32 %v2188_v26, %v3009_v12  ;;  %v1848_v12 = vld [vmem:[%s3164_s6] ss:$0 sm:$0xff] }
 0x313   : > { %v2190_v49 = vpop.eup %2189 }
 0x314   : > { %v1499_v36 = vadd.f32 %v3043_v20, %v1475_v38  ;;  %v1452_v55 = vmul.f32 %v2190_v49, %v3013_v10  ;;  %1924 = vmatprep.mubr.msk.f32.mxu0 %vm988_vm1, %v1491_v34  ;;  %v1468_v42 = vmul.f32 %v3037_v48, %v1444_v35 }
 0x316   : > { %1936 = vmatprep.mubr.msk.f32.mxu1 %vm988_vm1, %v1499_v36  ;;  %v1476_v9 = vmul.f32 %v3037_v48, %v1452_v55  ;;  %v1492_v37 = vadd.f32 %v3043_v20, %v1468_v42 }
 0x318   : > { %v1500_v40 = vadd.f32 %v3043_v20, %v1476_v9  ;;  %1925 = vmatmul.mubr.msk.f32.gmra.mrb[8].mxu0 %vm988_vm1, %v1492_v37 }
 0x31a   : > { %1937 = vmatmul.mubr.msk.f32.gmra.mrb[6].mxu1 %vm988_vm1, %v1500_v40 }
 0x3c9   : > { %v1914_v10 = vpop.f32.mrb[0].mxu0 }
 0x3ca   : > { %v1642_v59 = vadd.f32 %v1914_v10, %v1848_v12  ;;  %v1636_v32 = vpop.f32.mrb[1].mxu0 }
 0x3cb   : > { %v1637_v48 = vadd.f32 %v1848_v12, %v1636_v32 }
 0x3cc   : > { %1726 = vst [vmem:[%s2510_s23 + $0x8] sm:$0xff] %v1642_v59 }
 0x3cd   : > { %1725 = vst [vmem:[%s2510_s23] sm:$0xff] %v1637_v48 }
 0x3ce   : > { %v1917_v44 = vpop.f32.mrb[2].mxu0 }
 0x3cf   : > { %v1652_v20 = vadd.f32 %v1917_v44, %v1848_v12  ;;  %v1646_v45 = vpop.f32.mrb[3].mxu0 }
 0x3d0   : > { %v1647_v46 = vadd.f32 %v1848_v12, %v1646_v45 }
 0x3d1   : > { %v1929_v14 = vpop.f32.mrb[0].mxu1  ;;  %1728 = vst [vmem:[%s2510_s23 + $0x18] sm:$0xff] %v1652_v20 }
 0x3d2   : > { %v1692_v2 = vadd.f32 %v1929_v14, %v1848_v12  ;;  %v1686_v51 = vpop.f32.mrb[1].mxu1  ;;  %1727 = vst [vmem:[%s2510_s23 + $0x10] sm:$0xff] %v1647_v46 }
 0x3d3   : > { %v1687_v52 = vadd.f32 %v1848_v12, %v1686_v51 }
 0x3d4   : > { %1736 = vst [vmem:[%s2510_s23 + $0x58] sm:$0xff] %v1692_v2 }
 0x3d5   : > { %1735 = vst [vmem:[%s2510_s23 + $0x50] sm:$0xff] %v1687_v52 }
 0x3d6   : > { %v1920_v53 = vpop.f32.mrb[4].mxu0 }
 0x3d7   : > { %v1662_v54 = vadd.f32 %v1920_v53, %v1848_v12  ;;  %v1656_v57 = vpop.f32.mrb[5].mxu0 }
 0x3d8   : > { %v1657_v58 = vadd.f32 %v1848_v12, %v1656_v57 }
 0x3d9   : > { %1730 = vst [vmem:[%s2510_s23 + $0x28] sm:$0xff] %v1662_v54  ;;  %v1932_v56 = vpop.f32.mrb[2].mxu1 }
 0x3da   : > { %1729 = vst [vmem:[%s2510_s23 + $0x20] sm:$0xff] %v1657_v58  ;;  %v1702_v63 = vadd.f32 %v1932_v56, %v1848_v12  ;;  %v1696_v1 = vpop.f32.mrb[3].mxu1 }
 0x3db   : > { %v1697_v29 = vadd.f32 %v1848_v12, %v1696_v1 }
 0x3dc   : > { %1738 = vst [vmem:[%s2510_s23 + $0x68] sm:$0xff] %v1702_v63 }
 0x3dd   : > { %1737 = vst [vmem:[%s2510_s23 + $0x60] sm:$0xff] %v1697_v29 }
 0x3df   : > { %v1923_v3 = vpop.f32.mrb[6].mxu0 }
 0x3e0   : > { %v1672_v4 = vadd.f32 %v1923_v3, %v1848_v12  ;;  %v1666_v6 = vpop.f32.mrb[7].mxu0 }
 0x3e1   : > { %v1667_v7 = vadd.f32 %v1848_v12, %v1666_v6 }
 0x3e2   : > { %1732 = vst [vmem:[%s2510_s23 + $0x38] sm:$0xff] %v1672_v4 }
 0x3e3   : > { %1731 = vst [vmem:[%s2510_s23 + $0x30] sm:$0xff] %v1667_v7 }
 0x3e4   : > { %v1935_v15 = vpop.f32.mrb[4].mxu1 }
 0x3e5   : > { %v1712_v8 = vadd.f32 %v1935_v15, %v1848_v12  ;;  %v1706_v60 = vpop.f32.mrb[5].mxu1 }
 0x3e6   : > { %v1707_v62 = vadd.f32 %v1848_v12, %v1706_v60 }
 0x3e7   : > { %1740 = vst [vmem:[%s2510_s23 + $0x78] sm:$0xff] %v1712_v8 }
 0x3e8   : > { %1739 = vst [vmem:[%s2510_s23 + $0x70] sm:$0xff] %v1707_v62 }
 0x3eb   : > { %v1926_v13 = vpop.f32.mrb[8].mxu0 }
 0x3ec   : > { %v1682_v24 = vadd.f32 %v1926_v13, %v1848_v12  ;;  %v1676_v41 = vpop.f32.mrb[9].mxu0 }
 0x3ed   : > { %v1938_v11 = vpop.f32.mrb[6].mxu1  ;;  %v1677_v17 = vadd.f32 %v1848_v12, %v1676_v41 }
 0x3ee   : > { %v1722_v16 = vadd.f32 %v1938_v11, %v1848_v12  ;;  %v1716_v18 = vpop.f32.mrb[7].mxu1  ;;  %1734 = vst [vmem:[%s2510_s23 + $0x48] sm:$0xff] %v1682_v24 }
 0x3ef   : > { %v1717_v47 = vadd.f32 %v1848_v12, %v1716_v18  ;;  %1733 = vst [vmem:[%s2510_s23 + $0x40] sm:$0xff] %v1677_v17 }
 0x3f0   : > { %1742 = vst [vmem:[%s2510_s23 + $0x88] sm:$0xff] %v1722_v16 }
 0x3f1   : > { %1741 = vst [vmem:[%s2510_s23 + $0x80] sm:$0xff] %v1717_v47 }
 0x3f2 PF: > { %s17_s30 = sadd.s32 1, %s2245_s30   ;;  %s3166_s24 = smov %s2225_s25 }
 0x3f3   : > { %p14_p0 = scmp.ge.s32.totalorder %s17_s30, 18   ;;  %s3167_s25 = smov %s2340_s14 }
 0x3f4   : > { %s3168_s26 = smov %s2237_s28  ;;  %s3169_s27 = smov %s2241_s29 }
 0x3f5   : > { %s3170_s28 = smov %s3173_s8  ;;  %s3171_s29 = smov %s3177_s9 }
 0x3f6   :  { %16 = sbr.rel (!%p14_p0) target bundleno = 4 (0x4), region = 117 }

</bundles_post_ra>
